<compile_context>
chip_gen: v5e
topology: v5e:2x2
jax: 0.10.0
libtpu: 0.0.40
codegen_flags: <defaults>
</compile_context>

<pallas_src>
import numpy as np
import jax
import jax.numpy as jnp
from jax.experimental import pallas as pl
from jax.experimental.pallas import tpu as pltpu  # noqa: F401  (kept for TPU-specific extensions)


# ------------------------------- config ------------------------------------ #

INPUT_NC = 4
OUTPUT_NC = 4
NGF = 8          # reduced from 64 for the toy test; per-layer semantics identical
N_BLOCKS = 2     # reduced from 9; per-block semantics identical
EPS = 1e-5       # BatchNorm2d default


# ------------------------------ Pallas kernel ------------------------------- #

def _make_layer_kernel(*, n, rows_per_sample, out_rows, n_offsets, count,
                       act, use_bn, use_residual):
    """Fully fused layer: conv (n_offsets block-structured matmuls per sample)
    + training-mode BatchNorm (stats computed in-kernel over the resident
    activation) + optional residual add + ReLU / tanh, single VMEM pass."""

    def kernel(*refs):
        if use_bn:
            if use_residual:
                x_ref, w_ref, fa_ref, fb_ref, g_ref, b_ref, r_ref, o_ref = refs
            else:
                x_ref, w_ref, fa_ref, fb_ref, g_ref, b_ref, o_ref = refs
                r_ref = None
        else:
            x_ref, w_ref, bias_ref, o_ref = refs
            r_ref = None

        # ---- conv as accumulated matmuls (bf16 MXU, f32 accumulate) ----
        ys = []
        s = None
        q = None
        for i in range(n):                      # static unroll (tiny N)
            base = i * rows_per_sample
            acc = None
            for d in range(n_offsets):          # static unroll (<= 7 offsets)
                lhs = x_ref[base + d: base + d + out_rows, :]
                part = jnp.dot(lhs, w_ref[d],
                               preferred_element_type=jnp.float32)
                acc = part if acc is None else acc + part
            ys.append(acc)
            if use_bn:
                cs = jnp.sum(acc, axis=0, keepdims=True)
                cq = jnp.sum(acc * acc, axis=0, keepdims=True)
                s = cs if s is None else s + cs
                q = cq if q is None else q + cq

        # ---- BatchNorm scale/shift from in-kernel batch statistics ----
        if use_bn:
            # fold lane-groups -> per-channel with tiny 0/1 matmuls (idle MXU)
            sc = jnp.dot(s, fa_ref[...], preferred_element_type=jnp.float32)
            qc = jnp.dot(q, fa_ref[...], preferred_element_type=jnp.float32)
            inv_count = 1.0 / count
            mean = sc * inv_count
            var = jnp.maximum(qc * inv_count - mean * mean, 0.0)
            inv = jax.lax.rsqrt(var + EPS)
            scale = g_ref[...] * inv
            shift = b_ref[...] - mean * scale
            scale_row = jnp.dot(scale, fb_ref[...],
                                preferred_element_type=jnp.float32)
            shift_row = jnp.dot(shift, fb_ref[...],
                                preferred_element_type=jnp.float32)
        else:
            scale_row = None
            shift_row = bias_ref[...]

        # ---- apply + residual + activation + lane-dense store ----
        for i in range(n):
            y = ys[i]
            if scale_row is not None:
                y = y * scale_row
            y = y + shift_row
            if r_ref is not None:
                y = y + r_ref[i * out_rows:(i + 1) * out_rows, :].astype(jnp.float32)
            if act == "relu":
                y = jnp.maximum(y, 0.0)
            elif act == "tanh":
                y = jnp.tanh(y)
            o_ref[i * out_rows:(i + 1) * out_rows, :] = y.astype(o_ref.dtype)

    return kernel


def fused_layer(x2, wb, *, n, rows_per_sample, out_rows, cout, act,
                bn_args=None, bias_row=None, residual=None,
                out_dtype=jnp.bfloat16):
    """One pallas_call = one layer.  x2: (n*rows_per_sample, Kw) bf16 folded
    input; wb: (D, Kw, L) bf16 block-structured weights; output (n*out_rows, L)."""
    n_offsets, _, ell = wb.shape
    count = float(n * out_rows * (ell // cout))     # output pixels per channel
    use_bn = bn_args is not None
    kernel = _make_layer_kernel(
        n=n, rows_per_sample=rows_per_sample, out_rows=out_rows,
        n_offsets=n_offsets, count=count, act=act, use_bn=use_bn,
        use_residual=residual is not None)

    args = [x2, wb]
    if use_bn:
        fa, fb, gamma, beta = bn_args
        args += [fa, fb, gamma, beta]
    else:
        args += [bias_row]
    if residual is not None:
        args += [residual]

    # Grid-free call: every operand fits comfortably in VMEM at these shapes,
    # so full arrays are presented as single VMEM blocks (no tiling overhead).
    return pl.pallas_call(
        kernel,
        out_shape=jax.ShapeDtypeStruct((n * out_rows, ell), out_dtype),
    )(*args)


# --------------------------- layer wrappers (glue) --------------------------- #

def conv_layer(x4, wb, fa, fb, gamma, beta, *, pad, pad_mode, stride,
               residual=None, act="relu"):
    """Conv(k, stride, no bias) -> BatchNorm -> [+residual] -> ReLU.
    x4: NHWC bf16.  Only XLA work: the pad + free reshapes."""
    n, h, w, _ = x4.shape
    xp = jnp.pad(x4, ((0, 0), (pad, pad), (pad, pad), (0, 0)), mode=pad_mode)
    hp = h + 2 * pad
    # fold `stride` padded rows into one matmul row: (n*hp/stride, stride*wp*cin)
    x2 = xp.reshape(n * (hp // stride), -1)
    cout = fa.shape[1]
    wo = wb.shape[2] // cout
    y2 = fused_layer(x2, wb, n=n, rows_per_sample=hp // stride, out_rows=wo,
                     cout=cout, act=act, bn_args=(fa, fb, gamma, beta),
                     residual=residual)
    return y2.reshape(n, wo, wo, cout)              # free reshape (row-major NHWC)


def up_layer(x4, wb, fa, fb, gamma, beta):
    """ConvTranspose2d(3, s=2, p=1, op=1, no bias) -> BatchNorm -> ReLU.
    Even/odd output rows land in the two lane halves of each folded row, so
    the reshape to (n, 2h, 2w, c) is free (no parity de-interleave transpose)."""
    n, h, w, cin = x4.shape
    xp = jnp.pad(x4, ((0, 0), (0, 1), (0, 0), (0, 0)))   # one zero row per sample
    x2 = xp.reshape(n * (h + 1), w * cin)
    cout = fa.shape[1]
    y2 = fused_layer(x2, wb, n=n, rows_per_sample=h + 1, out_rows=h,
                     cout=cout, act="relu", bn_args=(fa, fb, gamma, beta))
    return y2.reshape(n, 2 * h, 2 * w, cout)


def out_layer(x4, wb, bias_row):
    """ReflectionPad(3) -> Conv7 (with bias) -> Tanh (no BN)."""
    n, h, w, _ = x4.shape
    xp = jnp.pad(x4, ((0, 0), (3, 3), (3, 3), (0, 0)), mode="reflect")
    hp = h + 6
    x2 = xp.reshape(n * hp, -1)
    wo = wb.shape[2] // OUTPUT_NC
    y2 = fused_layer(x2, wb, n=n, rows_per_sample=hp, out_rows=wo,
                     cout=OUTPUT_NC, act="tanh", bias_row=bias_row,
                     out_dtype=jnp.float32)
    return y2.reshape(n, wo, wo, OUTPUT_NC)


# ------------------------- parameter preprocessing --------------------------- #

def _conv_block_weights(w_oihw, *, wp, wo, stride):
    """Conv2d weight (Cout,Cin,k,k) -> (D, stride*Wp*Cin, Wo*Cout) bf16 stack.
    The kx tap and the stride are absorbed into block-sparse (stored dense)
    weights so the kernel LHS is a contiguous row-slice of the folded input."""
    w = np.asarray(w_oihw, np.float32)
    cout, cin, k, _ = w.shape
    f = stride
    d_count = -(-k // f)
    wb = np.zeros((d_count, f * wp * cin, wo * cout), np.float32)
    for d in range(d_count):
        for sub in range(f):
            ky = d * f + sub
            if ky >= k:
                continue
            for kx in range(k):
                for ow in range(wo):
                    iw = stride * ow + kx
                    if iw >= wp:
                        continue
                    r0 = sub * wp * cin + iw * cin
                    c0 = ow * cout
                    wb[d, r0:r0 + cin, c0:c0 + cout] = w[:, :, ky, kx].T
    return jnp.asarray(wb, jnp.bfloat16)


def _convt_block_weights(w_iokk, *, w_in):
    """ConvTranspose2d(3,s=2,p=1,op=1) weight (Cin,Cout,3,3) ->
    (2, Win*Cin, 4*Win*Cout) bf16 stack.  Output folded row h holds output
    rows 2h (first lane half) and 2h+1 (second half); offset d=0 reads input
    row h, d=1 reads row h+1 (the appended zero row at the bottom edge)."""
    w = np.asarray(w_iokk, np.float32)
    cin, cout, k, _ = w.shape
    assert k == 3
    half = 2 * w_in * cout
    wb = np.zeros((2, w_in * cin, 2 * half), np.float32)
    for j in range(2 * w_in):
        for iw in range(w_in):
            kx = j + 1 - 2 * iw
            if not (0 <= kx < k):
                continue
            r0 = iw * cin
            c0 = j * cout
            wb[0, r0:r0 + cin, c0:c0 + cout] = w[:, :, 1, kx]                # even rows
            wb[0, r0:r0 + cin, half + c0:half + c0 + cout] = w[:, :, 2, kx]  # odd, row h
            wb[1, r0:r0 + cin, half + c0:half + c0 + cout] = w[:, :, 0, kx]  # odd, row h+1
    return jnp.asarray(wb, jnp.bfloat16)


def _fold_mats(groups, cout):
    """0/1 matrices mapping lane-groups <-> channels for the BN stat fold."""
    fa = np.zeros((groups * cout, cout), np.float32)
    for g in range(groups):
        fa[g * cout:(g + 1) * cout, :] = np.eye(cout, dtype=np.float32)
    return jnp.asarray(fa), jnp.asarray(fa.T.copy())


def init_params(key):
    """Torch-layout params (Conv2d: (Cout,Cin,k,k); ConvTranspose2d: (Cin,Cout,k,k))."""
    keys = iter(jax.random.split(key, 32))

    def cw(cout, cin, k):
        return jax.random.normal(next(keys), (cout, cin, k, k), jnp.float32) * 0.02

    p = {}
    p["inc_w"] = cw(NGF, INPUT_NC, 7)
    p["inc_g"], p["inc_b"] = jnp.ones((NGF,)), jnp.zeros((NGF,))
    p["d1_w"] = cw(NGF * 2, NGF, 3)
    p["d1_g"], p["d1_b"] = jnp.ones((NGF * 2,)), jnp.zeros((NGF * 2,))
    p["d2_w"] = cw(NGF * 4, NGF * 2, 3)
    p["d2_g"], p["d2_b"] = jnp.ones((NGF * 4,)), jnp.zeros((NGF * 4,))
    for i in range(N_BLOCKS):
        p[f"rb{i}_w1"] = cw(NGF * 4, NGF * 4, 3)
        p[f"rb{i}_g1"], p[f"rb{i}_b1"] = jnp.ones((NGF * 4,)), jnp.zeros((NGF * 4,))
        p[f"rb{i}_w2"] = cw(NGF * 4, NGF * 4, 3)
        p[f"rb{i}_g2"], p[f"rb{i}_b2"] = jnp.ones((NGF * 4,)), jnp.zeros((NGF * 4,))
    p["u1_w"] = jax.random.normal(next(keys), (NGF * 4, NGF * 2, 3, 3), jnp.float32) * 0.02
    p["u1_g"], p["u1_b"] = jnp.ones((NGF * 2,)), jnp.zeros((NGF * 2,))
    p["u2_w"] = jax.random.normal(next(keys), (NGF * 2, NGF, 3, 3), jnp.float32) * 0.02
    p["u2_g"], p["u2_b"] = jnp.ones((NGF,)), jnp.zeros((NGF,))
    p["out_w"] = cw(OUTPUT_NC, NGF, 7)
    p["out_bias"] = jnp.zeros((OUTPUT_NC,), jnp.float32)
    return p


def prepare_params(p, *, h0=16):
    """One-time relayout: weights -> block-structured bf16 matmul stacks
    (specialized to the input resolution), BN vectors + fold matrices."""
    q = {}

    def add_bn(dst, gamma, beta, cout, groups):
        fa, fb = _fold_mats(groups, cout)
        q[dst + "_fa"], q[dst + "_fb"] = fa, fb
        q[dst + "_g"] = jnp.asarray(gamma, jnp.float32).reshape(1, cout)
        q[dst + "_b"] = jnp.asarray(beta, jnp.float32).reshape(1, cout)

    q["inc_w"] = _conv_block_weights(p["inc_w"], wp=h0 + 6, wo=h0, stride=1)
    add_bn("inc", p["inc_g"], p["inc_b"], NGF, h0)

    q["d1_w"] = _conv_block_weights(p["d1_w"], wp=h0 + 2, wo=h0 // 2, stride=2)
    add_bn("d1", p["d1_g"], p["d1_b"], NGF * 2, h0 // 2)

    q["d2_w"] = _conv_block_weights(p["d2_w"], wp=h0 // 2 + 2, wo=h0 // 4, stride=2)
    add_bn("d2", p["d2_g"], p["d2_b"], NGF * 4, h0 // 4)

    hb = h0 // 4
    for i in range(N_BLOCKS):
        q[f"rb{i}_w1"] = _conv_block_weights(p[f"rb{i}_w1"], wp=hb + 2, wo=hb, stride=1)
        add_bn(f"rb{i}_1", p[f"rb{i}_g1"], p[f"rb{i}_b1"], NGF * 4, hb)
        q[f"rb{i}_w2"] = _conv_block_weights(p[f"rb{i}_w2"], wp=hb + 2, wo=hb, stride=1)
        add_bn(f"rb{i}_2", p[f"rb{i}_g2"], p[f"rb{i}_b2"], NGF * 4, hb)

    q["u1_w"] = _convt_block_weights(p["u1_w"], w_in=hb)
    add_bn("u1", p["u1_g"], p["u1_b"], NGF * 2, 4 * hb)
    q["u2_w"] = _convt_block_weights(p["u2_w"], w_in=h0 // 2)
    add_bn("u2", p["u2_g"], p["u2_b"], NGF, 4 * (h0 // 2))

    q["out_w"] = _conv_block_weights(p["out_w"], wp=h0 + 6, wo=h0, stride=1)
    q["out_bias_row"] = jnp.asarray(
        np.tile(np.asarray(p["out_bias"], np.float32), h0).reshape(1, h0 * OUTPUT_NC))
    return q


# --------------------------------- forward ----------------------------------- #

def resnet_generator_forward(params, x_nchw):
    p = params
    x = jnp.transpose(x_nchw, (0, 2, 3, 1)).astype(jnp.bfloat16)   # NCHW -> NHWC

    # Inconv: ReflectionPad(3) -> Conv7 (no bias) -> BN -> ReLU
    h = conv_layer(x, p["inc_w"], p["inc_fa"], p["inc_fb"], p["inc_g"], p["inc_b"],
                   pad=3, pad_mode="reflect", stride=1)

    # Down1 / Down2: Conv3 stride2 pad1 -> BN -> ReLU
    h = conv_layer(h, p["d1_w"], p["d1_fa"], p["d1_fb"], p["d1_g"], p["d1_b"],
                   pad=1, pad_mode="constant", stride=2)
    h = conv_layer(h, p["d2_w"], p["d2_fa"], p["d2_fb"], p["d2_g"], p["d2_b"],
                   pad=1, pad_mode="constant", stride=2)

    # ResBlocks (reflect padding, no dropout); per the reference module:
    #   out = ReLU( x + BN(Conv(ReLU(BN(Conv(reflect_pad(x)))))) )
    for i in range(N_BLOCKS):
        n_, hh, ww, cc = h.shape
        res2 = h.reshape(n_ * hh, ww * cc)          # residual in folded layout (free)
        r = conv_layer(h, p[f"rb{i}_w1"], p[f"rb{i}_1_fa"], p[f"rb{i}_1_fb"],
                       p[f"rb{i}_1_g"], p[f"rb{i}_1_b"],
                       pad=1, pad_mode="reflect", stride=1)
        h = conv_layer(r, p[f"rb{i}_w2"], p[f"rb{i}_2_fa"], p[f"rb{i}_2_fb"],
                       p[f"rb{i}_2_g"], p[f"rb{i}_2_b"],
                       pad=1, pad_mode="reflect", stride=1, residual=res2)

    # Up1 / Up2: ConvTranspose3 s2 p1 op1 -> BN -> ReLU
    h = up_layer(h, p["u1_w"], p["u1_fa"], p["u1_fb"], p["u1_g"], p["u1_b"])
    h = up_layer(h, p["u2_w"], p["u2_fa"], p["u2_fb"], p["u2_g"], p["u2_b"])

    # Outconv: ReflectionPad(3) -> Conv7 (bias) -> Tanh
    y = out_layer(h, p["out_w"], p["out_bias_row"])

    return jnp.transpose(y, (0, 3, 1, 2))           # -> NCHW f32


# ----------------------------------- main ------------------------------------ #

if __name__ == "__main__":
    key = jax.random.PRNGKey(0)
    k_param, k_x = jax.random.split(key)
    params = prepare_params(init_params(k_param), h0=16)   # one-time weight relayout
    x = jax.random.normal(k_x, (2, INPUT_NC, 16, 16), jnp.float32)

    fwd = jax.jit(resnet_generator_forward)
    y = fwd(params, x)
    jax.block_until_ready(y)

    assert y.shape == (2, OUTPUT_NC, 16, 16), y.shape
    assert bool(jnp.all(jnp.isfinite(y)))
    assert bool(jnp.all(jnp.abs(y) <= 1.0))   # tanh range
    print("KERNEL_OK")
</pallas_src>

<mosaic_0001>
module attributes {stable_mosaic.version = 11 : i64} {
  func.func @kernel(%arg0: memref<44x88xbf16, #tpu.memory_space<vmem>>, %arg1: memref<7x88x128xbf16, #tpu.memory_space<vmem>>, %arg2: memref<128x8xf32, #tpu.memory_space<vmem>>, %arg3: memref<8x128xf32, #tpu.memory_space<vmem>>, %arg4: memref<1x8xf32, #tpu.memory_space<vmem>>, %arg5: memref<1x8xf32, #tpu.memory_space<vmem>>, %arg6: memref<32x128xbf16, #tpu.memory_space<vmem>>) attributes {dimension_semantics = [], scalar_prefetch = 0 : i64, scratch_operands = 0 : i64, tpu.core_type = #tpu.core_type<tc>} {
    %c0 = arith.constant 0 : index
    %c0_0 = arith.constant 0 : index
    %0 = vector.load %arg0[%c0, %c0_0] : memref<44x88xbf16, #tpu.memory_space<vmem>>, vector<16x88xbf16>
    %c0_1 = arith.constant 0 : index
    %c0_2 = arith.constant 0 : index
    %c0_3 = arith.constant 0 : index
    %1 = vector.load %arg1[%c0_1, %c0_2, %c0_3] : memref<7x88x128xbf16, #tpu.memory_space<vmem>>, vector<1x88x128xbf16>
    %2 = vector.shape_cast %1 : vector<1x88x128xbf16> to vector<88x128xbf16>
    %cst = arith.constant dense<0.000000e+00> : vector<16x128xf32>
    %3 = tpu.matmul %0, %2, %cst {dimension_numbers = #tpu.dot_dimension_numbers<[1], [0], [0], [1], [0, 0, 1, 1], [], []>} : vector<16x88xbf16>, vector<88x128xbf16>, vector<16x128xf32> -> vector<16x128xf32>
    %c1 = arith.constant 1 : index
    %c0_4 = arith.constant 0 : index
    %4 = vector.load %arg0[%c1, %c0_4] : memref<44x88xbf16, #tpu.memory_space<vmem>>, vector<16x88xbf16>
    %c1_5 = arith.constant 1 : index
    %c0_6 = arith.constant 0 : index
    %c0_7 = arith.constant 0 : index
    %5 = vector.load %arg1[%c1_5, %c0_6, %c0_7] : memref<7x88x128xbf16, #tpu.memory_space<vmem>>, vector<1x88x128xbf16>
    %6 = vector.shape_cast %5 : vector<1x88x128xbf16> to vector<88x128xbf16>
    %cst_8 = arith.constant dense<0.000000e+00> : vector<16x128xf32>
    %7 = tpu.matmul %4, %6, %cst_8 {dimension_numbers = #tpu.dot_dimension_numbers<[1], [0], [0], [1], [0, 0, 1, 1], [], []>} : vector<16x88xbf16>, vector<88x128xbf16>, vector<16x128xf32> -> vector<16x128xf32>
    %8 = arith.addf %3, %7 : vector<16x128xf32>
    %c2 = arith.constant 2 : index
    %c0_9 = arith.constant 0 : index
    %9 = vector.load %arg0[%c2, %c0_9] : memref<44x88xbf16, #tpu.memory_space<vmem>>, vector<16x88xbf16>
    %c2_10 = arith.constant 2 : index
    %c0_11 = arith.constant 0 : index
    %c0_12 = arith.constant 0 : index
    %10 = vector.load %arg1[%c2_10, %c0_11, %c0_12] : memref<7x88x128xbf16, #tpu.memory_space<vmem>>, vector<1x88x128xbf16>
    %11 = vector.shape_cast %10 : vector<1x88x128xbf16> to vector<88x128xbf16>
    %cst_13 = arith.constant dense<0.000000e+00> : vector<16x128xf32>
    %12 = tpu.matmul %9, %11, %cst_13 {dimension_numbers = #tpu.dot_dimension_numbers<[1], [0], [0], [1], [0, 0, 1, 1], [], []>} : vector<16x88xbf16>, vector<88x128xbf16>, vector<16x128xf32> -> vector<16x128xf32>
    %13 = arith.addf %8, %12 : vector<16x128xf32>
    %c3 = arith.constant 3 : index
    %c0_14 = arith.constant 0 : index
    %14 = vector.load %arg0[%c3, %c0_14] : memref<44x88xbf16, #tpu.memory_space<vmem>>, vector<16x88xbf16>
    %c3_15 = arith.constant 3 : index
    %c0_16 = arith.constant 0 : index
    %c0_17 = arith.constant 0 : index
    %15 = vector.load %arg1[%c3_15, %c0_16, %c0_17] : memref<7x88x128xbf16, #tpu.memory_space<vmem>>, vector<1x88x128xbf16>
    %16 = vector.shape_cast %15 : vector<1x88x128xbf16> to vector<88x128xbf16>
    %cst_18 = arith.constant dense<0.000000e+00> : vector<16x128xf32>
    %17 = tpu.matmul %14, %16, %cst_18 {dimension_numbers = #tpu.dot_dimension_numbers<[1], [0], [0], [1], [0, 0, 1, 1], [], []>} : vector<16x88xbf16>, vector<88x128xbf16>, vector<16x128xf32> -> vector<16x128xf32>
    %18 = arith.addf %13, %17 : vector<16x128xf32>
    %c4 = arith.constant 4 : index
    %c0_19 = arith.constant 0 : index
    %19 = vector.load %arg0[%c4, %c0_19] : memref<44x88xbf16, #tpu.memory_space<vmem>>, vector<16x88xbf16>
    %c4_20 = arith.constant 4 : index
    %c0_21 = arith.constant 0 : index
    %c0_22 = arith.constant 0 : index
    %20 = vector.load %arg1[%c4_20, %c0_21, %c0_22] : memref<7x88x128xbf16, #tpu.memory_space<vmem>>, vector<1x88x128xbf16>
    %21 = vector.shape_cast %20 : vector<1x88x128xbf16> to vector<88x128xbf16>
    %cst_23 = arith.constant dense<0.000000e+00> : vector<16x128xf32>
    %22 = tpu.matmul %19, %21, %cst_23 {dimension_numbers = #tpu.dot_dimension_numbers<[1], [0], [0], [1], [0, 0, 1, 1], [], []>} : vector<16x88xbf16>, vector<88x128xbf16>, vector<16x128xf32> -> vector<16x128xf32>
    %23 = arith.addf %18, %22 : vector<16x128xf32>
    %c5 = arith.constant 5 : index
    %c0_24 = arith.constant 0 : index
    %24 = vector.load %arg0[%c5, %c0_24] : memref<44x88xbf16, #tpu.memory_space<vmem>>, vector<16x88xbf16>
    %c5_25 = arith.constant 5 : index
    %c0_26 = arith.constant 0 : index
    %c0_27 = arith.constant 0 : index
    %25 = vector.load %arg1[%c5_25, %c0_26, %c0_27] : memref<7x88x128xbf16, #tpu.memory_space<vmem>>, vector<1x88x128xbf16>
    %26 = vector.shape_cast %25 : vector<1x88x128xbf16> to vector<88x128xbf16>
    %cst_28 = arith.constant dense<0.000000e+00> : vector<16x128xf32>
    %27 = tpu.matmul %24, %26, %cst_28 {dimension_numbers = #tpu.dot_dimension_numbers<[1], [0], [0], [1], [0, 0, 1, 1], [], []>} : vector<16x88xbf16>, vector<88x128xbf16>, vector<16x128xf32> -> vector<16x128xf32>
    %28 = arith.addf %23, %27 : vector<16x128xf32>
    %c6 = arith.constant 6 : index
    %c0_29 = arith.constant 0 : index
    %29 = vector.load %arg0[%c6, %c0_29] : memref<44x88xbf16, #tpu.memory_space<vmem>>, vector<16x88xbf16>
    %c6_30 = arith.constant 6 : index
    %c0_31 = arith.constant 0 : index
    %c0_32 = arith.constant 0 : index
    %30 = vector.load %arg1[%c6_30, %c0_31, %c0_32] : memref<7x88x128xbf16, #tpu.memory_space<vmem>>, vector<1x88x128xbf16>
    %31 = vector.shape_cast %30 : vector<1x88x128xbf16> to vector<88x128xbf16>
    %cst_33 = arith.constant dense<0.000000e+00> : vector<16x128xf32>
    %32 = tpu.matmul %29, %31, %cst_33 {dimension_numbers = #tpu.dot_dimension_numbers<[1], [0], [0], [1], [0, 0, 1, 1], [], []>} : vector<16x88xbf16>, vector<88x128xbf16>, vector<16x128xf32> -> vector<16x128xf32>
    %33 = arith.addf %28, %32 : vector<16x128xf32>
    %cst_34 = arith.constant dense<0.000000e+00> : vector<128xf32>
    %34 = vector.multi_reduction <add>, %33, %cst_34 [0] : vector<16x128xf32> to vector<128xf32>
    %35 = vector.shape_cast %34 : vector<128xf32> to vector<1x128xf32>
    %36 = arith.mulf %33, %33 : vector<16x128xf32>
    %cst_35 = arith.constant dense<0.000000e+00> : vector<128xf32>
    %37 = vector.multi_reduction <add>, %36, %cst_35 [0] : vector<16x128xf32> to vector<128xf32>
    %38 = vector.shape_cast %37 : vector<128xf32> to vector<1x128xf32>
    %c22 = arith.constant 22 : index
    %c0_36 = arith.constant 0 : index
    %39 = vector.load %arg0[%c22, %c0_36] : memref<44x88xbf16, #tpu.memory_space<vmem>>, vector<16x88xbf16>
    %c0_37 = arith.constant 0 : index
    %c0_38 = arith.constant 0 : index
    %c0_39 = arith.constant 0 : index
    %40 = vector.load %arg1[%c0_37, %c0_38, %c0_39] : memref<7x88x128xbf16, #tpu.memory_space<vmem>>, vector<1x88x128xbf16>
    %41 = vector.shape_cast %40 : vector<1x88x128xbf16> to vector<88x128xbf16>
    %cst_40 = arith.constant dense<0.000000e+00> : vector<16x128xf32>
    %42 = tpu.matmul %39, %41, %cst_40 {dimension_numbers = #tpu.dot_dimension_numbers<[1], [0], [0], [1], [0, 0, 1, 1], [], []>} : vector<16x88xbf16>, vector<88x128xbf16>, vector<16x128xf32> -> vector<16x128xf32>
    %c23 = arith.constant 23 : index
    %c0_41 = arith.constant 0 : index
    %43 = vector.load %arg0[%c23, %c0_41] : memref<44x88xbf16, #tpu.memory_space<vmem>>, vector<16x88xbf16>
    %c1_42 = arith.constant 1 : index
    %c0_43 = arith.constant 0 : index
    %c0_44 = arith.constant 0 : index
    %44 = vector.load %arg1[%c1_42, %c0_43, %c0_44] : memref<7x88x128xbf16, #tpu.memory_space<vmem>>, vector<1x88x128xbf16>
    %45 = vector.shape_cast %44 : vector<1x88x128xbf16> to vector<88x128xbf16>
    %cst_45 = arith.constant dense<0.000000e+00> : vector<16x128xf32>
    %46 = tpu.matmul %43, %45, %cst_45 {dimension_numbers = #tpu.dot_dimension_numbers<[1], [0], [0], [1], [0, 0, 1, 1], [], []>} : vector<16x88xbf16>, vector<88x128xbf16>, vector<16x128xf32> -> vector<16x128xf32>
    %47 = arith.addf %42, %46 : vector<16x128xf32>
    %c24 = arith.constant 24 : index
    %c0_46 = arith.constant 0 : index
    %48 = vector.load %arg0[%c24, %c0_46] : memref<44x88xbf16, #tpu.memory_space<vmem>>, vector<16x88xbf16>
    %c2_47 = arith.constant 2 : index
    %c0_48 = arith.constant 0 : index
    %c0_49 = arith.constant 0 : index
    %49 = vector.load %arg1[%c2_47, %c0_48, %c0_49] : memref<7x88x128xbf16, #tpu.memory_space<vmem>>, vector<1x88x128xbf16>
    %50 = vector.shape_cast %49 : vector<1x88x128xbf16> to vector<88x128xbf16>
    %cst_50 = arith.constant dense<0.000000e+00> : vector<16x128xf32>
    %51 = tpu.matmul %48, %50, %cst_50 {dimension_numbers = #tpu.dot_dimension_numbers<[1], [0], [0], [1], [0, 0, 1, 1], [], []>} : vector<16x88xbf16>, vector<88x128xbf16>, vector<16x128xf32> -> vector<16x128xf32>
    %52 = arith.addf %47, %51 : vector<16x128xf32>
    %c25 = arith.constant 25 : index
    %c0_51 = arith.constant 0 : index
    %53 = vector.load %arg0[%c25, %c0_51] : memref<44x88xbf16, #tpu.memory_space<vmem>>, vector<16x88xbf16>
    %c3_52 = arith.constant 3 : index
    %c0_53 = arith.constant 0 : index
    %c0_54 = arith.constant 0 : index
    %54 = vector.load %arg1[%c3_52, %c0_53, %c0_54] : memref<7x88x128xbf16, #tpu.memory_space<vmem>>, vector<1x88x128xbf16>
    %55 = vector.shape_cast %54 : vector<1x88x128xbf16> to vector<88x128xbf16>
    %cst_55 = arith.constant dense<0.000000e+00> : vector<16x128xf32>
    %56 = tpu.matmul %53, %55, %cst_55 {dimension_numbers = #tpu.dot_dimension_numbers<[1], [0], [0], [1], [0, 0, 1, 1], [], []>} : vector<16x88xbf16>, vector<88x128xbf16>, vector<16x128xf32> -> vector<16x128xf32>
    %57 = arith.addf %52, %56 : vector<16x128xf32>
    %c26 = arith.constant 26 : index
    %c0_56 = arith.constant 0 : index
    %58 = vector.load %arg0[%c26, %c0_56] : memref<44x88xbf16, #tpu.memory_space<vmem>>, vector<16x88xbf16>
    %c4_57 = arith.constant 4 : index
    %c0_58 = arith.constant 0 : index
    %c0_59 = arith.constant 0 : index
    %59 = vector.load %arg1[%c4_57, %c0_58, %c0_59] : memref<7x88x128xbf16, #tpu.memory_space<vmem>>, vector<1x88x128xbf16>
    %60 = vector.shape_cast %59 : vector<1x88x128xbf16> to vector<88x128xbf16>
    %cst_60 = arith.constant dense<0.000000e+00> : vector<16x128xf32>
    %61 = tpu.matmul %58, %60, %cst_60 {dimension_numbers = #tpu.dot_dimension_numbers<[1], [0], [0], [1], [0, 0, 1, 1], [], []>} : vector<16x88xbf16>, vector<88x128xbf16>, vector<16x128xf32> -> vector<16x128xf32>
    %62 = arith.addf %57, %61 : vector<16x128xf32>
    %c27 = arith.constant 27 : index
    %c0_61 = arith.constant 0 : index
    %63 = vector.load %arg0[%c27, %c0_61] : memref<44x88xbf16, #tpu.memory_space<vmem>>, vector<16x88xbf16>
    %c5_62 = arith.constant 5 : index
    %c0_63 = arith.constant 0 : index
    %c0_64 = arith.constant 0 : index
    %64 = vector.load %arg1[%c5_62, %c0_63, %c0_64] : memref<7x88x128xbf16, #tpu.memory_space<vmem>>, vector<1x88x128xbf16>
    %65 = vector.shape_cast %64 : vector<1x88x128xbf16> to vector<88x128xbf16>
    %cst_65 = arith.constant dense<0.000000e+00> : vector<16x128xf32>
    %66 = tpu.matmul %63, %65, %cst_65 {dimension_numbers = #tpu.dot_dimension_numbers<[1], [0], [0], [1], [0, 0, 1, 1], [], []>} : vector<16x88xbf16>, vector<88x128xbf16>, vector<16x128xf32> -> vector<16x128xf32>
    %67 = arith.addf %62, %66 : vector<16x128xf32>
    %c28 = arith.constant 28 : index
    %c0_66 = arith.constant 0 : index
    %68 = vector.load %arg0[%c28, %c0_66] : memref<44x88xbf16, #tpu.memory_space<vmem>>, vector<16x88xbf16>
    %c6_67 = arith.constant 6 : index
    %c0_68 = arith.constant 0 : index
    %c0_69 = arith.constant 0 : index
    %69 = vector.load %arg1[%c6_67, %c0_68, %c0_69] : memref<7x88x128xbf16, #tpu.memory_space<vmem>>, vector<1x88x128xbf16>
    %70 = vector.shape_cast %69 : vector<1x88x128xbf16> to vector<88x128xbf16>
    %cst_70 = arith.constant dense<0.000000e+00> : vector<16x128xf32>
    %71 = tpu.matmul %68, %70, %cst_70 {dimension_numbers = #tpu.dot_dimension_numbers<[1], [0], [0], [1], [0, 0, 1, 1], [], []>} : vector<16x88xbf16>, vector<88x128xbf16>, vector<16x128xf32> -> vector<16x128xf32>
    %72 = arith.addf %67, %71 : vector<16x128xf32>
    %cst_71 = arith.constant dense<0.000000e+00> : vector<128xf32>
    %73 = vector.multi_reduction <add>, %72, %cst_71 [0] : vector<16x128xf32> to vector<128xf32>
    %74 = vector.shape_cast %73 : vector<128xf32> to vector<1x128xf32>
    %75 = arith.mulf %72, %72 : vector<16x128xf32>
    %cst_72 = arith.constant dense<0.000000e+00> : vector<128xf32>
    %76 = vector.multi_reduction <add>, %75, %cst_72 [0] : vector<16x128xf32> to vector<128xf32>
    %77 = vector.shape_cast %76 : vector<128xf32> to vector<1x128xf32>
    %78 = arith.addf %35, %74 : vector<1x128xf32>
    %79 = arith.addf %38, %77 : vector<1x128xf32>
    %c0_73 = arith.constant 0 : index
    %c0_74 = arith.constant 0 : index
    %80 = vector.load %arg2[%c0_73, %c0_74] : memref<128x8xf32, #tpu.memory_space<vmem>>, vector<128x8xf32>
    %cst_75 = arith.constant dense<0.000000e+00> : vector<1x8xf32>
    %81 = tpu.matmul %78, %80, %cst_75 {dimension_numbers = #tpu.dot_dimension_numbers<[1], [0], [0], [1], [0, 0, 1, 1], [], []>} : vector<1x128xf32>, vector<128x8xf32>, vector<1x8xf32> -> vector<1x8xf32>
    %c0_76 = arith.constant 0 : index
    %c0_77 = arith.constant 0 : index
    %82 = vector.load %arg2[%c0_76, %c0_77] : memref<128x8xf32, #tpu.memory_space<vmem>>, vector<128x8xf32>
    %cst_78 = arith.constant dense<0.000000e+00> : vector<1x8xf32>
    %83 = tpu.matmul %79, %82, %cst_78 {dimension_numbers = #tpu.dot_dimension_numbers<[1], [0], [0], [1], [0, 0, 1, 1], [], []>} : vector<1x128xf32>, vector<128x8xf32>, vector<1x8xf32> -> vector<1x8xf32>
    %cst_79 = arith.constant 0.001953125 : f32
    %84 = vector.broadcast %cst_79 : f32 to vector<1x8xf32>
    %85 = arith.mulf %81, %84 : vector<1x8xf32>
    %cst_80 = arith.constant 0.001953125 : f32
    %86 = vector.broadcast %cst_80 : f32 to vector<1x8xf32>
    %87 = arith.mulf %83, %86 : vector<1x8xf32>
    %88 = arith.mulf %85, %85 : vector<1x8xf32>
    %89 = arith.subf %87, %88 : vector<1x8xf32>
    %cst_81 = arith.constant 0.000000e+00 : f32
    %90 = vector.broadcast %cst_81 : f32 to vector<1x8xf32>
    %91 = arith.maximumf %89, %90 : vector<1x8xf32>
    %cst_82 = arith.constant 9.99999974E-6 : f32
    %92 = vector.broadcast %cst_82 : f32 to vector<1x8xf32>
    %93 = arith.addf %91, %92 : vector<1x8xf32>
    %94 = math.rsqrt %93 : vector<1x8xf32>
    %c0_83 = arith.constant 0 : index
    %c0_84 = arith.constant 0 : index
    %95 = vector.load %arg4[%c0_83, %c0_84] : memref<1x8xf32, #tpu.memory_space<vmem>>, vector<1x8xf32>
    %96 = arith.mulf %95, %94 : vector<1x8xf32>
    %c0_85 = arith.constant 0 : index
    %c0_86 = arith.constant 0 : index
    %97 = vector.load %arg5[%c0_85, %c0_86] : memref<1x8xf32, #tpu.memory_space<vmem>>, vector<1x8xf32>
    %98 = arith.mulf %85, %96 : vector<1x8xf32>
    %99 = arith.subf %97, %98 : vector<1x8xf32>
    %c0_87 = arith.constant 0 : index
    %c0_88 = arith.constant 0 : index
    %100 = vector.load %arg3[%c0_87, %c0_88] : memref<8x128xf32, #tpu.memory_space<vmem>>, vector<8x128xf32>
    %cst_89 = arith.constant dense<0.000000e+00> : vector<1x128xf32>
    %101 = tpu.matmul %96, %100, %cst_89 {dimension_numbers = #tpu.dot_dimension_numbers<[1], [0], [0], [1], [0, 0, 1, 1], [], []>} : vector<1x8xf32>, vector<8x128xf32>, vector<1x128xf32> -> vector<1x128xf32>
    %c0_90 = arith.constant 0 : index
    %c0_91 = arith.constant 0 : index
    %102 = vector.load %arg3[%c0_90, %c0_91] : memref<8x128xf32, #tpu.memory_space<vmem>>, vector<8x128xf32>
    %cst_92 = arith.constant dense<0.000000e+00> : vector<1x128xf32>
    %103 = tpu.matmul %99, %102, %cst_92 {dimension_numbers = #tpu.dot_dimension_numbers<[1], [0], [0], [1], [0, 0, 1, 1], [], []>} : vector<1x8xf32>, vector<8x128xf32>, vector<1x128xf32> -> vector<1x128xf32>
    %104 = vector.broadcast %101 : vector<1x128xf32> to vector<16x128xf32>
    %105 = arith.mulf %33, %104 : vector<16x128xf32>
    %106 = vector.broadcast %103 : vector<1x128xf32> to vector<16x128xf32>
    %107 = arith.addf %105, %106 : vector<16x128xf32>
    %cst_93 = arith.constant 0.000000e+00 : f32
    %108 = vector.broadcast %cst_93 : f32 to vector<16x128xf32>
    %109 = arith.maximumf %107, %108 : vector<16x128xf32>
    %110 = arith.truncf %109 : vector<16x128xf32> to vector<16x128xbf16>
    %c0_94 = arith.constant 0 : index
    %c0_95 = arith.constant 0 : index
    %111 = vector.load %arg6[%c0_94, %c0_95] : memref<32x128xbf16, #tpu.memory_space<vmem>>, vector<16x128xbf16>
    tpu.vector_store %arg6[%c0_94, %c0_95], %110 {strides = array<i32>} : memref<32x128xbf16, #tpu.memory_space<vmem>>, vector<16x128xbf16>,
    %112 = vector.broadcast %101 : vector<1x128xf32> to vector<16x128xf32>
    %113 = arith.mulf %72, %112 : vector<16x128xf32>
    %114 = vector.broadcast %103 : vector<1x128xf32> to vector<16x128xf32>
    %115 = arith.addf %113, %114 : vector<16x128xf32>
    %cst_96 = arith.constant 0.000000e+00 : f32
    %116 = vector.broadcast %cst_96 : f32 to vector<16x128xf32>
    %117 = arith.maximumf %115, %116 : vector<16x128xf32>
    %118 = arith.truncf %117 : vector<16x128xf32> to vector<16x128xbf16>
    %c16 = arith.constant 16 : index
    %c0_97 = arith.constant 0 : index
    %119 = vector.load %arg6[%c16, %c0_97] : memref<32x128xbf16, #tpu.memory_space<vmem>>, vector<16x128xbf16>
    tpu.vector_store %arg6[%c16, %c0_97], %118 {strides = array<i32>} : memref<32x128xbf16, #tpu.memory_space<vmem>>, vector<16x128xbf16>,
    return
  }
}

module attributes {stable_mosaic.version = 11 : i64} {
  func.func @kernel(%arg0: memref<18x288xbf16, #tpu.memory_space<vmem>>, %arg1: memref<2x288x128xbf16, #tpu.memory_space<vmem>>, %arg2: memref<128x16xf32, #tpu.memory_space<vmem>>, %arg3: memref<16x128xf32, #tpu.memory_space<vmem>>, %arg4: memref<1x16xf32, #tpu.memory_space<vmem>>, %arg5: memref<1x16xf32, #tpu.memory_space<vmem>>, %arg6: memref<16x128xbf16, #tpu.memory_space<vmem>>) attributes {dimension_semantics = [], scalar_prefetch = 0 : i64, scratch_operands = 0 : i64, tpu.core_type = #tpu.core_type<tc>} {
    %c0 = arith.constant 0 : index
    %c0_0 = arith.constant 0 : index
    %0 = vector.load %arg0[%c0, %c0_0] : memref<18x288xbf16, #tpu.memory_space<vmem>>, vector<8x288xbf16>
    %c0_1 = arith.constant 0 : index
    %c0_2 = arith.constant 0 : index
    %c0_3 = arith.constant 0 : index
    %1 = vector.load %arg1[%c0_1, %c0_2, %c0_3] : memref<2x288x128xbf16, #tpu.memory_space<vmem>>, vector<1x288x128xbf16>
    %2 = vector.shape_cast %1 : vector<1x288x128xbf16> to vector<288x128xbf16>
    %cst = arith.constant dense<0.000000e+00> : vector<8x128xf32>
    %3 = tpu.matmul %0, %2, %cst {dimension_numbers = #tpu.dot_dimension_numbers<[1], [0], [0], [1], [0, 0, 1, 1], [], []>} : vector<8x288xbf16>, vector<288x128xbf16>, vector<8x128xf32> -> vector<8x128xf32>
    %c1 = arith.constant 1 : index
    %c0_4 = arith.constant 0 : index
    %4 = vector.load %arg0[%c1, %c0_4] : memref<18x288xbf16, #tpu.memory_space<vmem>>, vector<8x288xbf16>
    %c1_5 = arith.constant 1 : index
    %c0_6 = arith.constant 0 : index
    %c0_7 = arith.constant 0 : index
    %5 = vector.load %arg1[%c1_5, %c0_6, %c0_7] : memref<2x288x128xbf16, #tpu.memory_space<vmem>>, vector<1x288x128xbf16>
    %6 = vector.shape_cast %5 : vector<1x288x128xbf16> to vector<288x128xbf16>
    %cst_8 = arith.constant dense<0.000000e+00> : vector<8x128xf32>
    %7 = tpu.matmul %4, %6, %cst_8 {dimension_numbers = #tpu.dot_dimension_numbers<[1], [0], [0], [1], [0, 0, 1, 1], [], []>} : vector<8x288xbf16>, vector<288x128xbf16>, vector<8x128xf32> -> vector<8x128xf32>
    %8 = arith.addf %3, %7 : vector<8x128xf32>
    %cst_9 = arith.constant dense<0.000000e+00> : vector<128xf32>
    %9 = vector.multi_reduction <add>, %8, %cst_9 [0] : vector<8x128xf32> to vector<128xf32>
    %10 = vector.shape_cast %9 : vector<128xf32> to vector<1x128xf32>
    %11 = arith.mulf %8, %8 : vector<8x128xf32>
    %cst_10 = arith.constant dense<0.000000e+00> : vector<128xf32>
    %12 = vector.multi_reduction <add>, %11, %cst_10 [0] : vector<8x128xf32> to vector<128xf32>
    %13 = vector.shape_cast %12 : vector<128xf32> to vector<1x128xf32>
    %c9 = arith.constant 9 : index
    %c0_11 = arith.constant 0 : index
    %14 = vector.load %arg0[%c9, %c0_11] : memref<18x288xbf16, #tpu.memory_space<vmem>>, vector<8x288xbf16>
    %c0_12 = arith.constant 0 : index
    %c0_13 = arith.constant 0 : index
    %c0_14 = arith.constant 0 : index
    %15 = vector.load %arg1[%c0_12, %c0_13, %c0_14] : memref<2x288x128xbf16, #tpu.memory_space<vmem>>, vector<1x288x128xbf16>
    %16 = vector.shape_cast %15 : vector<1x288x128xbf16> to vector<288x128xbf16>
    %cst_15 = arith.constant dense<0.000000e+00> : vector<8x128xf32>
    %17 = tpu.matmul %14, %16, %cst_15 {dimension_numbers = #tpu.dot_dimension_numbers<[1], [0], [0], [1], [0, 0, 1, 1], [], []>} : vector<8x288xbf16>, vector<288x128xbf16>, vector<8x128xf32> -> vector<8x128xf32>
    %c10 = arith.constant 10 : index
    %c0_16 = arith.constant 0 : index
    %18 = vector.load %arg0[%c10, %c0_16] : memref<18x288xbf16, #tpu.memory_space<vmem>>, vector<8x288xbf16>
    %c1_17 = arith.constant 1 : index
    %c0_18 = arith.constant 0 : index
    %c0_19 = arith.constant 0 : index
    %19 = vector.load %arg1[%c1_17, %c0_18, %c0_19] : memref<2x288x128xbf16, #tpu.memory_space<vmem>>, vector<1x288x128xbf16>
    %20 = vector.shape_cast %19 : vector<1x288x128xbf16> to vector<288x128xbf16>
    %cst_20 = arith.constant dense<0.000000e+00> : vector<8x128xf32>
    %21 = tpu.matmul %18, %20, %cst_20 {dimension_numbers = #tpu.dot_dimension_numbers<[1], [0], [0], [1], [0, 0, 1, 1], [], []>} : vector<8x288xbf16>, vector<288x128xbf16>, vector<8x128xf32> -> vector<8x128xf32>
    %22 = arith.addf %17, %21 : vector<8x128xf32>
    %cst_21 = arith.constant dense<0.000000e+00> : vector<128xf32>
    %23 = vector.multi_reduction <add>, %22, %cst_21 [0] : vector<8x128xf32> to vector<128xf32>
    %24 = vector.shape_cast %23 : vector<128xf32> to vector<1x128xf32>
    %25 = arith.mulf %22, %22 : vector<8x128xf32>
    %cst_22 = arith.constant dense<0.000000e+00> : vector<128xf32>
    %26 = vector.multi_reduction <add>, %25, %cst_22 [0] : vector<8x128xf32> to vector<128xf32>
    %27 = vector.shape_cast %26 : vector<128xf32> to vector<1x128xf32>
    %28 = arith.addf %10, %24 : vector<1x128xf32>
    %29 = arith.addf %13, %27 : vector<1x128xf32>
    %c0_23 = arith.constant 0 : index
    %c0_24 = arith.constant 0 : index
    %30 = vector.load %arg2[%c0_23, %c0_24] : memref<128x16xf32, #tpu.memory_space<vmem>>, vector<128x16xf32>
    %cst_25 = arith.constant dense<0.000000e+00> : vector<1x16xf32>
    %31 = tpu.matmul %28, %30, %cst_25 {dimension_numbers = #tpu.dot_dimension_numbers<[1], [0], [0], [1], [0, 0, 1, 1], [], []>} : vector<1x128xf32>, vector<128x16xf32>, vector<1x16xf32> -> vector<1x16xf32>
    %c0_26 = arith.constant 0 : index
    %c0_27 = arith.constant 0 : index
    %32 = vector.load %arg2[%c0_26, %c0_27] : memref<128x16xf32, #tpu.memory_space<vmem>>, vector<128x16xf32>
    %cst_28 = arith.constant dense<0.000000e+00> : vector<1x16xf32>
    %33 = tpu.matmul %29, %32, %cst_28 {dimension_numbers = #tpu.dot_dimension_numbers<[1], [0], [0], [1], [0, 0, 1, 1], [], []>} : vector<1x128xf32>, vector<128x16xf32>, vector<1x16xf32> -> vector<1x16xf32>
    %cst_29 = arith.constant 7.812500e-03 : f32
    %34 = vector.broadcast %cst_29 : f32 to vector<1x16xf32>
    %35 = arith.mulf %31, %34 : vector<1x16xf32>
    %cst_30 = arith.constant 7.812500e-03 : f32
    %36 = vector.broadcast %cst_30 : f32 to vector<1x16xf32>
    %37 = arith.mulf %33, %36 : vector<1x16xf32>
    %38 = arith.mulf %35, %35 : vector<1x16xf32>
    %39 = arith.subf %37, %38 : vector<1x16xf32>
    %cst_31 = arith.constant 0.000000e+00 : f32
    %40 = vector.broadcast %cst_31 : f32 to vector<1x16xf32>
    %41 = arith.maximumf %39, %40 : vector<1x16xf32>
    %cst_32 = arith.constant 9.99999974E-6 : f32
    %42 = vector.broadcast %cst_32 : f32 to vector<1x16xf32>
    %43 = arith.addf %41, %42 : vector<1x16xf32>
    %44 = math.rsqrt %43 : vector<1x16xf32>
    %c0_33 = arith.constant 0 : index
    %c0_34 = arith.constant 0 : index
    %45 = vector.load %arg4[%c0_33, %c0_34] : memref<1x16xf32, #tpu.memory_space<vmem>>, vector<1x16xf32>
    %46 = arith.mulf %45, %44 : vector<1x16xf32>
    %c0_35 = arith.constant 0 : index
    %c0_36 = arith.constant 0 : index
    %47 = vector.load %arg5[%c0_35, %c0_36] : memref<1x16xf32, #tpu.memory_space<vmem>>, vector<1x16xf32>
    %48 = arith.mulf %35, %46 : vector<1x16xf32>
    %49 = arith.subf %47, %48 : vector<1x16xf32>
    %c0_37 = arith.constant 0 : index
    %c0_38 = arith.constant 0 : index
    %50 = vector.load %arg3[%c0_37, %c0_38] : memref<16x128xf32, #tpu.memory_space<vmem>>, vector<16x128xf32>
    %cst_39 = arith.constant dense<0.000000e+00> : vector<1x128xf32>
    %51 = tpu.matmul %46, %50, %cst_39 {dimension_numbers = #tpu.dot_dimension_numbers<[1], [0], [0], [1], [0, 0, 1, 1], [], []>} : vector<1x16xf32>, vector<16x128xf32>, vector<1x128xf32> -> vector<1x128xf32>
    %c0_40 = arith.constant 0 : index
    %c0_41 = arith.constant 0 : index
    %52 = vector.load %arg3[%c0_40, %c0_41] : memref<16x128xf32, #tpu.memory_space<vmem>>, vector<16x128xf32>
    %cst_42 = arith.constant dense<0.000000e+00> : vector<1x128xf32>
    %53 = tpu.matmul %49, %52, %cst_42 {dimension_numbers = #tpu.dot_dimension_numbers<[1], [0], [0], [1], [0, 0, 1, 1], [], []>} : vector<1x16xf32>, vector<16x128xf32>, vector<1x128xf32> -> vector<1x128xf32>
    %54 = vector.broadcast %51 : vector<1x128xf32> to vector<8x128xf32>
    %55 = arith.mulf %8, %54 : vector<8x128xf32>
    %56 = vector.broadcast %53 : vector<1x128xf32> to vector<8x128xf32>
    %57 = arith.addf %55, %56 : vector<8x128xf32>
    %cst_43 = arith.constant 0.000000e+00 : f32
    %58 = vector.broadcast %cst_43 : f32 to vector<8x128xf32>
    %59 = arith.maximumf %57, %58 : vector<8x128xf32>
    %60 = arith.truncf %59 : vector<8x128xf32> to vector<8x128xbf16>
    %c0_44 = arith.constant 0 : index
    %c0_45 = arith.constant 0 : index
    %61 = vector.load %arg6[%c0_44, %c0_45] : memref<16x128xbf16, #tpu.memory_space<vmem>>, vector<8x128xbf16>
    tpu.vector_store %arg6[%c0_44, %c0_45], %60 {strides = array<i32>} : memref<16x128xbf16, #tpu.memory_space<vmem>>, vector<8x128xbf16>,
    %62 = vector.broadcast %51 : vector<1x128xf32> to vector<8x128xf32>
    %63 = arith.mulf %22, %62 : vector<8x128xf32>
    %64 = vector.broadcast %53 : vector<1x128xf32> to vector<8x128xf32>
    %65 = arith.addf %63, %64 : vector<8x128xf32>
    %cst_46 = arith.constant 0.000000e+00 : f32
    %66 = vector.broadcast %cst_46 : f32 to vector<8x128xf32>
    %67 = arith.maximumf %65, %66 : vector<8x128xf32>
    %68 = arith.truncf %67 : vector<8x128xf32> to vector<8x128xbf16>
    %c8 = arith.constant 8 : index
    %c0_47 = arith.constant 0 : index
    %69 = vector.load %arg6[%c8, %c0_47] : memref<16x128xbf16, #tpu.memory_space<vmem>>, vector<8x128xbf16>
    tpu.vector_store %arg6[%c8, %c0_47], %68 {strides = array<i32>} : memref<16x128xbf16, #tpu.memory_space<vmem>>, vector<8x128xbf16>,
    return
  }
}

module attributes {stable_mosaic.version = 11 : i64} {
  func.func @kernel(%arg0: memref<10x320xbf16, #tpu.memory_space<vmem>>, %arg1: memref<2x320x128xbf16, #tpu.memory_space<vmem>>, %arg2: memref<128x32xf32, #tpu.memory_space<vmem>>, %arg3: memref<32x128xf32, #tpu.memory_space<vmem>>, %arg4: memref<1x32xf32, #tpu.memory_space<vmem>>, %arg5: memref<1x32xf32, #tpu.memory_space<vmem>>, %arg6: memref<8x128xbf16, #tpu.memory_space<vmem>>) attributes {dimension_semantics = [], scalar_prefetch = 0 : i64, scratch_operands = 0 : i64, tpu.core_type = #tpu.core_type<tc>} {
    %c0 = arith.constant 0 : index
    %c0_0 = arith.constant 0 : index
    %0 = vector.load %arg0[%c0, %c0_0] : memref<10x320xbf16, #tpu.memory_space<vmem>>, vector<4x320xbf16>
    %c0_1 = arith.constant 0 : index
    %c0_2 = arith.constant 0 : index
    %c0_3 = arith.constant 0 : index
    %1 = vector.load %arg1[%c0_1, %c0_2, %c0_3] : memref<2x320x128xbf16, #tpu.memory_space<vmem>>, vector<1x320x128xbf16>
    %2 = vector.shape_cast %1 : vector<1x320x128xbf16> to vector<320x128xbf16>
    %cst = arith.constant dense<0.000000e+00> : vector<4x128xf32>
    %3 = tpu.matmul %0, %2, %cst {dimension_numbers = #tpu.dot_dimension_numbers<[1], [0], [0], [1], [0, 0, 1, 1], [], []>} : vector<4x320xbf16>, vector<320x128xbf16>, vector<4x128xf32> -> vector<4x128xf32>
    %c1 = arith.constant 1 : index
    %c0_4 = arith.constant 0 : index
    %4 = vector.load %arg0[%c1, %c0_4] : memref<10x320xbf16, #tpu.memory_space<vmem>>, vector<4x320xbf16>
    %c1_5 = arith.constant 1 : index
    %c0_6 = arith.constant 0 : index
    %c0_7 = arith.constant 0 : index
    %5 = vector.load %arg1[%c1_5, %c0_6, %c0_7] : memref<2x320x128xbf16, #tpu.memory_space<vmem>>, vector<1x320x128xbf16>
    %6 = vector.shape_cast %5 : vector<1x320x128xbf16> to vector<320x128xbf16>
    %cst_8 = arith.constant dense<0.000000e+00> : vector<4x128xf32>
    %7 = tpu.matmul %4, %6, %cst_8 {dimension_numbers = #tpu.dot_dimension_numbers<[1], [0], [0], [1], [0, 0, 1, 1], [], []>} : vector<4x320xbf16>, vector<320x128xbf16>, vector<4x128xf32> -> vector<4x128xf32>
    %8 = arith.addf %3, %7 : vector<4x128xf32>
    %cst_9 = arith.constant dense<0.000000e+00> : vector<128xf32>
    %9 = vector.multi_reduction <add>, %8, %cst_9 [0] : vector<4x128xf32> to vector<128xf32>
    %10 = vector.shape_cast %9 : vector<128xf32> to vector<1x128xf32>
    %11 = arith.mulf %8, %8 : vector<4x128xf32>
    %cst_10 = arith.constant dense<0.000000e+00> : vector<128xf32>
    %12 = vector.multi_reduction <add>, %11, %cst_10 [0] : vector<4x128xf32> to vector<128xf32>
    %13 = vector.shape_cast %12 : vector<128xf32> to vector<1x128xf32>
    %c5 = arith.constant 5 : index
    %c0_11 = arith.constant 0 : index
    %14 = vector.load %arg0[%c5, %c0_11] : memref<10x320xbf16, #tpu.memory_space<vmem>>, vector<4x320xbf16>
    %c0_12 = arith.constant 0 : index
    %c0_13 = arith.constant 0 : index
    %c0_14 = arith.constant 0 : index
    %15 = vector.load %arg1[%c0_12, %c0_13, %c0_14] : memref<2x320x128xbf16, #tpu.memory_space<vmem>>, vector<1x320x128xbf16>
    %16 = vector.shape_cast %15 : vector<1x320x128xbf16> to vector<320x128xbf16>
    %cst_15 = arith.constant dense<0.000000e+00> : vector<4x128xf32>
    %17 = tpu.matmul %14, %16, %cst_15 {dimension_numbers = #tpu.dot_dimension_numbers<[1], [0], [0], [1], [0, 0, 1, 1], [], []>} : vector<4x320xbf16>, vector<320x128xbf16>, vector<4x128xf32> -> vector<4x128xf32>
    %c6 = arith.constant 6 : index
    %c0_16 = arith.constant 0 : index
    %18 = vector.load %arg0[%c6, %c0_16] : memref<10x320xbf16, #tpu.memory_space<vmem>>, vector<4x320xbf16>
    %c1_17 = arith.constant 1 : index
    %c0_18 = arith.constant 0 : index
    %c0_19 = arith.constant 0 : index
    %19 = vector.load %arg1[%c1_17, %c0_18, %c0_19] : memref<2x320x128xbf16, #tpu.memory_space<vmem>>, vector<1x320x128xbf16>
    %20 = vector.shape_cast %19 : vector<1x320x128xbf16> to vector<320x128xbf16>
    %cst_20 = arith.constant dense<0.000000e+00> : vector<4x128xf32>
    %21 = tpu.matmul %18, %20, %cst_20 {dimension_numbers = #tpu.dot_dimension_numbers<[1], [0], [0], [1], [0, 0, 1, 1], [], []>} : vector<4x320xbf16>, vector<320x128xbf16>, vector<4x128xf32> -> vector<4x128xf32>
    %22 = arith.addf %17, %21 : vector<4x128xf32>
    %cst_21 = arith.constant dense<0.000000e+00> : vector<128xf32>
    %23 = vector.multi_reduction <add>, %22, %cst_21 [0] : vector<4x128xf32> to vector<128xf32>
    %24 = vector.shape_cast %23 : vector<128xf32> to vector<1x128xf32>
    %25 = arith.mulf %22, %22 : vector<4x128xf32>
    %cst_22 = arith.constant dense<0.000000e+00> : vector<128xf32>
    %26 = vector.multi_reduction <add>, %25, %cst_22 [0] : vector<4x128xf32> to vector<128xf32>
    %27 = vector.shape_cast %26 : vector<128xf32> to vector<1x128xf32>
    %28 = arith.addf %10, %24 : vector<1x128xf32>
    %29 = arith.addf %13, %27 : vector<1x128xf32>
    %c0_23 = arith.constant 0 : index
    %c0_24 = arith.constant 0 : index
    %30 = vector.load %arg2[%c0_23, %c0_24] : memref<128x32xf32, #tpu.memory_space<vmem>>, vector<128x32xf32>
    %cst_25 = arith.constant dense<0.000000e+00> : vector<1x32xf32>
    %31 = tpu.matmul %28, %30, %cst_25 {dimension_numbers = #tpu.dot_dimension_numbers<[1], [0], [0], [1], [0, 0, 1, 1], [], []>} : vector<1x128xf32>, vector<128x32xf32>, vector<1x32xf32> -> vector<1x32xf32>
    %c0_26 = arith.constant 0 : index
    %c0_27 = arith.constant 0 : index
    %32 = vector.load %arg2[%c0_26, %c0_27] : memref<128x32xf32, #tpu.memory_space<vmem>>, vector<128x32xf32>
    %cst_28 = arith.constant dense<0.000000e+00> : vector<1x32xf32>
    %33 = tpu.matmul %29, %32, %cst_28 {dimension_numbers = #tpu.dot_dimension_numbers<[1], [0], [0], [1], [0, 0, 1, 1], [], []>} : vector<1x128xf32>, vector<128x32xf32>, vector<1x32xf32> -> vector<1x32xf32>
    %cst_29 = arith.constant 3.125000e-02 : f32
    %34 = vector.broadcast %cst_29 : f32 to vector<1x32xf32>
    %35 = arith.mulf %31, %34 : vector<1x32xf32>
    %cst_30 = arith.constant 3.125000e-02 : f32
    %36 = vector.broadcast %cst_30 : f32 to vector<1x32xf32>
    %37 = arith.mulf %33, %36 : vector<1x32xf32>
    %38 = arith.mulf %35, %35 : vector<1x32xf32>
    %39 = arith.subf %37, %38 : vector<1x32xf32>
    %cst_31 = arith.constant 0.000000e+00 : f32
    %40 = vector.broadcast %cst_31 : f32 to vector<1x32xf32>
    %41 = arith.maximumf %39, %40 : vector<1x32xf32>
    %cst_32 = arith.constant 9.99999974E-6 : f32
    %42 = vector.broadcast %cst_32 : f32 to vector<1x32xf32>
    %43 = arith.addf %41, %42 : vector<1x32xf32>
    %44 = math.rsqrt %43 : vector<1x32xf32>
    %c0_33 = arith.constant 0 : index
    %c0_34 = arith.constant 0 : index
    %45 = vector.load %arg4[%c0_33, %c0_34] : memref<1x32xf32, #tpu.memory_space<vmem>>, vector<1x32xf32>
    %46 = arith.mulf %45, %44 : vector<1x32xf32>
    %c0_35 = arith.constant 0 : index
    %c0_36 = arith.constant 0 : index
    %47 = vector.load %arg5[%c0_35, %c0_36] : memref<1x32xf32, #tpu.memory_space<vmem>>, vector<1x32xf32>
    %48 = arith.mulf %35, %46 : vector<1x32xf32>
    %49 = arith.subf %47, %48 : vector<1x32xf32>
    %c0_37 = arith.constant 0 : index
    %c0_38 = arith.constant 0 : index
    %50 = vector.load %arg3[%c0_37, %c0_38] : memref<32x128xf32, #tpu.memory_space<vmem>>, vector<32x128xf32>
    %cst_39 = arith.constant dense<0.000000e+00> : vector<1x128xf32>
    %51 = tpu.matmul %46, %50, %cst_39 {dimension_numbers = #tpu.dot_dimension_numbers<[1], [0], [0], [1], [0, 0, 1, 1], [], []>} : vector<1x32xf32>, vector<32x128xf32>, vector<1x128xf32> -> vector<1x128xf32>
    %c0_40 = arith.constant 0 : index
    %c0_41 = arith.constant 0 : index
    %52 = vector.load %arg3[%c0_40, %c0_41] : memref<32x128xf32, #tpu.memory_space<vmem>>, vector<32x128xf32>
    %cst_42 = arith.constant dense<0.000000e+00> : vector<1x128xf32>
    %53 = tpu.matmul %49, %52, %cst_42 {dimension_numbers = #tpu.dot_dimension_numbers<[1], [0], [0], [1], [0, 0, 1, 1], [], []>} : vector<1x32xf32>, vector<32x128xf32>, vector<1x128xf32> -> vector<1x128xf32>
    %54 = vector.broadcast %51 : vector<1x128xf32> to vector<4x128xf32>
    %55 = arith.mulf %8, %54 : vector<4x128xf32>
    %56 = vector.broadcast %53 : vector<1x128xf32> to vector<4x128xf32>
    %57 = arith.addf %55, %56 : vector<4x128xf32>
    %cst_43 = arith.constant 0.000000e+00 : f32
    %58 = vector.broadcast %cst_43 : f32 to vector<4x128xf32>
    %59 = arith.maximumf %57, %58 : vector<4x128xf32>
    %60 = arith.truncf %59 : vector<4x128xf32> to vector<4x128xbf16>
    %c0_44 = arith.constant 0 : index
    %c0_45 = arith.constant 0 : index
    %61 = vector.load %arg6[%c0_44, %c0_45] : memref<8x128xbf16, #tpu.memory_space<vmem>>, vector<4x128xbf16>
    tpu.vector_store %arg6[%c0_44, %c0_45], %60 {strides = array<i32>} : memref<8x128xbf16, #tpu.memory_space<vmem>>, vector<4x128xbf16>,
    %62 = vector.broadcast %51 : vector<1x128xf32> to vector<4x128xf32>
    %63 = arith.mulf %22, %62 : vector<4x128xf32>
    %64 = vector.broadcast %53 : vector<1x128xf32> to vector<4x128xf32>
    %65 = arith.addf %63, %64 : vector<4x128xf32>
    %cst_46 = arith.constant 0.000000e+00 : f32
    %66 = vector.broadcast %cst_46 : f32 to vector<4x128xf32>
    %67 = arith.maximumf %65, %66 : vector<4x128xf32>
    %68 = arith.truncf %67 : vector<4x128xf32> to vector<4x128xbf16>
    %c4 = arith.constant 4 : index
    %c0_47 = arith.constant 0 : index
    %69 = vector.load %arg6[%c4, %c0_47] : memref<8x128xbf16, #tpu.memory_space<vmem>>, vector<4x128xbf16>
    tpu.vector_store %arg6[%c4, %c0_47], %68 {strides = array<i32>} : memref<8x128xbf16, #tpu.memory_space<vmem>>, vector<4x128xbf16>,
    return
  }
}

module attributes {stable_mosaic.version = 11 : i64} {
  func.func @kernel(%arg0: memref<12x192xbf16, #tpu.memory_space<vmem>>, %arg1: memref<3x192x128xbf16, #tpu.memory_space<vmem>>, %arg2: memref<128x32xf32, #tpu.memory_space<vmem>>, %arg3: memref<32x128xf32, #tpu.memory_space<vmem>>, %arg4: memref<1x32xf32, #tpu.memory_space<vmem>>, %arg5: memref<1x32xf32, #tpu.memory_space<vmem>>, %arg6: memref<8x128xbf16, #tpu.memory_space<vmem>>, %arg7: memref<8x128xbf16, #tpu.memory_space<vmem>>) attributes {dimension_semantics = [], scalar_prefetch = 0 : i64, scratch_operands = 0 : i64, tpu.core_type = #tpu.core_type<tc>} {
    %c0 = arith.constant 0 : index
    %c0_0 = arith.constant 0 : index
    %0 = vector.load %arg0[%c0, %c0_0] : memref<12x192xbf16, #tpu.memory_space<vmem>>, vector<4x192xbf16>
    %c0_1 = arith.constant 0 : index
    %c0_2 = arith.constant 0 : index
    %c0_3 = arith.constant 0 : index
    %1 = vector.load %arg1[%c0_1, %c0_2, %c0_3] : memref<3x192x128xbf16, #tpu.memory_space<vmem>>, vector<1x192x128xbf16>
    %2 = vector.shape_cast %1 : vector<1x192x128xbf16> to vector<192x128xbf16>
    %cst = arith.constant dense<0.000000e+00> : vector<4x128xf32>
    %3 = tpu.matmul %0, %2, %cst {dimension_numbers = #tpu.dot_dimension_numbers<[1], [0], [0], [1], [0, 0, 1, 1], [], []>} : vector<4x192xbf16>, vector<192x128xbf16>, vector<4x128xf32> -> vector<4x128xf32>
    %c1 = arith.constant 1 : index
    %c0_4 = arith.constant 0 : index
    %4 = vector.load %arg0[%c1, %c0_4] : memref<12x192xbf16, #tpu.memory_space<vmem>>, vector<4x192xbf16>
    %c1_5 = arith.constant 1 : index
    %c0_6 = arith.constant 0 : index
    %c0_7 = arith.constant 0 : index
    %5 = vector.load %arg1[%c1_5, %c0_6, %c0_7] : memref<3x192x128xbf16, #tpu.memory_space<vmem>>, vector<1x192x128xbf16>
    %6 = vector.shape_cast %5 : vector<1x192x128xbf16> to vector<192x128xbf16>
    %cst_8 = arith.constant dense<0.000000e+00> : vector<4x128xf32>
    %7 = tpu.matmul %4, %6, %cst_8 {dimension_numbers = #tpu.dot_dimension_numbers<[1], [0], [0], [1], [0, 0, 1, 1], [], []>} : vector<4x192xbf16>, vector<192x128xbf16>, vector<4x128xf32> -> vector<4x128xf32>
    %8 = arith.addf %3, %7 : vector<4x128xf32>
    %c2 = arith.constant 2 : index
    %c0_9 = arith.constant 0 : index
    %9 = vector.load %arg0[%c2, %c0_9] : memref<12x192xbf16, #tpu.memory_space<vmem>>, vector<4x192xbf16>
    %c2_10 = arith.constant 2 : index
    %c0_11 = arith.constant 0 : index
    %c0_12 = arith.constant 0 : index
    %10 = vector.load %arg1[%c2_10, %c0_11, %c0_12] : memref<3x192x128xbf16, #tpu.memory_space<vmem>>, vector<1x192x128xbf16>
    %11 = vector.shape_cast %10 : vector<1x192x128xbf16> to vector<192x128xbf16>
    %cst_13 = arith.constant dense<0.000000e+00> : vector<4x128xf32>
    %12 = tpu.matmul %9, %11, %cst_13 {dimension_numbers = #tpu.dot_dimension_numbers<[1], [0], [0], [1], [0, 0, 1, 1], [], []>} : vector<4x192xbf16>, vector<192x128xbf16>, vector<4x128xf32> -> vector<4x128xf32>
    %13 = arith.addf %8, %12 : vector<4x128xf32>
    %cst_14 = arith.constant dense<0.000000e+00> : vector<128xf32>
    %14 = vector.multi_reduction <add>, %13, %cst_14 [0] : vector<4x128xf32> to vector<128xf32>
    %15 = vector.shape_cast %14 : vector<128xf32> to vector<1x128xf32>
    %16 = arith.mulf %13, %13 : vector<4x128xf32>
    %cst_15 = arith.constant dense<0.000000e+00> : vector<128xf32>
    %17 = vector.multi_reduction <add>, %16, %cst_15 [0] : vector<4x128xf32> to vector<128xf32>
    %18 = vector.shape_cast %17 : vector<128xf32> to vector<1x128xf32>
    %c6 = arith.constant 6 : index
    %c0_16 = arith.constant 0 : index
    %19 = vector.load %arg0[%c6, %c0_16] : memref<12x192xbf16, #tpu.memory_space<vmem>>, vector<4x192xbf16>
    %c0_17 = arith.constant 0 : index
    %c0_18 = arith.constant 0 : index
    %c0_19 = arith.constant 0 : index
    %20 = vector.load %arg1[%c0_17, %c0_18, %c0_19] : memref<3x192x128xbf16, #tpu.memory_space<vmem>>, vector<1x192x128xbf16>
    %21 = vector.shape_cast %20 : vector<1x192x128xbf16> to vector<192x128xbf16>
    %cst_20 = arith.constant dense<0.000000e+00> : vector<4x128xf32>
    %22 = tpu.matmul %19, %21, %cst_20 {dimension_numbers = #tpu.dot_dimension_numbers<[1], [0], [0], [1], [0, 0, 1, 1], [], []>} : vector<4x192xbf16>, vector<192x128xbf16>, vector<4x128xf32> -> vector<4x128xf32>
    %c7 = arith.constant 7 : index
    %c0_21 = arith.constant 0 : index
    %23 = vector.load %arg0[%c7, %c0_21] : memref<12x192xbf16, #tpu.memory_space<vmem>>, vector<4x192xbf16>
    %c1_22 = arith.constant 1 : index
    %c0_23 = arith.constant 0 : index
    %c0_24 = arith.constant 0 : index
    %24 = vector.load %arg1[%c1_22, %c0_23, %c0_24] : memref<3x192x128xbf16, #tpu.memory_space<vmem>>, vector<1x192x128xbf16>
    %25 = vector.shape_cast %24 : vector<1x192x128xbf16> to vector<192x128xbf16>
    %cst_25 = arith.constant dense<0.000000e+00> : vector<4x128xf32>
    %26 = tpu.matmul %23, %25, %cst_25 {dimension_numbers = #tpu.dot_dimension_numbers<[1], [0], [0], [1], [0, 0, 1, 1], [], []>} : vector<4x192xbf16>, vector<192x128xbf16>, vector<4x128xf32> -> vector<4x128xf32>
    %27 = arith.addf %22, %26 : vector<4x128xf32>
    %c8 = arith.constant 8 : index
    %c0_26 = arith.constant 0 : index
    %28 = vector.load %arg0[%c8, %c0_26] : memref<12x192xbf16, #tpu.memory_space<vmem>>, vector<4x192xbf16>
    %c2_27 = arith.constant 2 : index
    %c0_28 = arith.constant 0 : index
    %c0_29 = arith.constant 0 : index
    %29 = vector.load %arg1[%c2_27, %c0_28, %c0_29] : memref<3x192x128xbf16, #tpu.memory_space<vmem>>, vector<1x192x128xbf16>
    %30 = vector.shape_cast %29 : vector<1x192x128xbf16> to vector<192x128xbf16>
    %cst_30 = arith.constant dense<0.000000e+00> : vector<4x128xf32>
    %31 = tpu.matmul %28, %30, %cst_30 {dimension_numbers = #tpu.dot_dimension_numbers<[1], [0], [0], [1], [0, 0, 1, 1], [], []>} : vector<4x192xbf16>, vector<192x128xbf16>, vector<4x128xf32> -> vector<4x128xf32>
    %32 = arith.addf %27, %31 : vector<4x128xf32>
    %cst_31 = arith.constant dense<0.000000e+00> : vector<128xf32>
    %33 = vector.multi_reduction <add>, %32, %cst_31 [0] : vector<4x128xf32> to vector<128xf32>
    %34 = vector.shape_cast %33 : vector<128xf32> to vector<1x128xf32>
    %35 = arith.mulf %32, %32 : vector<4x128xf32>
    %cst_32 = arith.constant dense<0.000000e+00> : vector<128xf32>
    %36 = vector.multi_reduction <add>, %35, %cst_32 [0] : vector<4x128xf32> to vector<128xf32>
    %37 = vector.shape_cast %36 : vector<128xf32> to vector<1x128xf32>
    %38 = arith.addf %15, %34 : vector<1x128xf32>
    %39 = arith.addf %18, %37 : vector<1x128xf32>
    %c0_33 = arith.constant 0 : index
    %c0_34 = arith.constant 0 : index
    %40 = vector.load %arg2[%c0_33, %c0_34] : memref<128x32xf32, #tpu.memory_space<vmem>>, vector<128x32xf32>
    %cst_35 = arith.constant dense<0.000000e+00> : vector<1x32xf32>
    %41 = tpu.matmul %38, %40, %cst_35 {dimension_numbers = #tpu.dot_dimension_numbers<[1], [0], [0], [1], [0, 0, 1, 1], [], []>} : vector<1x128xf32>, vector<128x32xf32>, vector<1x32xf32> -> vector<1x32xf32>
    %c0_36 = arith.constant 0 : index
    %c0_37 = arith.constant 0 : index
    %42 = vector.load %arg2[%c0_36, %c0_37] : memref<128x32xf32, #tpu.memory_space<vmem>>, vector<128x32xf32>
    %cst_38 = arith.constant dense<0.000000e+00> : vector<1x32xf32>
    %43 = tpu.matmul %39, %42, %cst_38 {dimension_numbers = #tpu.dot_dimension_numbers<[1], [0], [0], [1], [0, 0, 1, 1], [], []>} : vector<1x128xf32>, vector<128x32xf32>, vector<1x32xf32> -> vector<1x32xf32>
    %cst_39 = arith.constant 3.125000e-02 : f32
    %44 = vector.broadcast %cst_39 : f32 to vector<1x32xf32>
    %45 = arith.mulf %41, %44 : vector<1x32xf32>
    %cst_40 = arith.constant 3.125000e-02 : f32
    %46 = vector.broadcast %cst_40 : f32 to vector<1x32xf32>
    %47 = arith.mulf %43, %46 : vector<1x32xf32>
    %48 = arith.mulf %45, %45 : vector<1x32xf32>
    %49 = arith.subf %47, %48 : vector<1x32xf32>
    %cst_41 = arith.constant 0.000000e+00 : f32
    %50 = vector.broadcast %cst_41 : f32 to vector<1x32xf32>
    %51 = arith.maximumf %49, %50 : vector<1x32xf32>
    %cst_42 = arith.constant 9.99999974E-6 : f32
    %52 = vector.broadcast %cst_42 : f32 to vector<1x32xf32>
    %53 = arith.addf %51, %52 : vector<1x32xf32>
    %54 = math.rsqrt %53 : vector<1x32xf32>
    %c0_43 = arith.constant 0 : index
    %c0_44 = arith.constant 0 : index
    %55 = vector.load %arg4[%c0_43, %c0_44] : memref<1x32xf32, #tpu.memory_space<vmem>>, vector<1x32xf32>
    %56 = arith.mulf %55, %54 : vector<1x32xf32>
    %c0_45 = arith.constant 0 : index
    %c0_46 = arith.constant 0 : index
    %57 = vector.load %arg5[%c0_45, %c0_46] : memref<1x32xf32, #tpu.memory_space<vmem>>, vector<1x32xf32>
    %58 = arith.mulf %45, %56 : vector<1x32xf32>
    %59 = arith.subf %57, %58 : vector<1x32xf32>
    %c0_47 = arith.constant 0 : index
    %c0_48 = arith.constant 0 : index
    %60 = vector.load %arg3[%c0_47, %c0_48] : memref<32x128xf32, #tpu.memory_space<vmem>>, vector<32x128xf32>
    %cst_49 = arith.constant dense<0.000000e+00> : vector<1x128xf32>
    %61 = tpu.matmul %56, %60, %cst_49 {dimension_numbers = #tpu.dot_dimension_numbers<[1], [0], [0], [1], [0, 0, 1, 1], [], []>} : vector<1x32xf32>, vector<32x128xf32>, vector<1x128xf32> -> vector<1x128xf32>
    %c0_50 = arith.constant 0 : index
    %c0_51 = arith.constant 0 : index
    %62 = vector.load %arg3[%c0_50, %c0_51] : memref<32x128xf32, #tpu.memory_space<vmem>>, vector<32x128xf32>
    %cst_52 = arith.constant dense<0.000000e+00> : vector<1x128xf32>
    %63 = tpu.matmul %59, %62, %cst_52 {dimension_numbers = #tpu.dot_dimension_numbers<[1], [0], [0], [1], [0, 0, 1, 1], [], []>} : vector<1x32xf32>, vector<32x128xf32>, vector<1x128xf32> -> vector<1x128xf32>
    %64 = vector.broadcast %61 : vector<1x128xf32> to vector<4x128xf32>
    %65 = arith.mulf %13, %64 : vector<4x128xf32>
    %66 = vector.broadcast %63 : vector<1x128xf32> to vector<4x128xf32>
    %67 = arith.addf %65, %66 : vector<4x128xf32>
    %c0_53 = arith.constant 0 : index
    %c0_54 = arith.constant 0 : index
    %68 = vector.load %arg6[%c0_53, %c0_54] : memref<8x128xbf16, #tpu.memory_space<vmem>>, vector<4x128xbf16>
    %69 = arith.extf %68 : vector<4x128xbf16> to vector<4x128xf32>
    %70 = arith.addf %67, %69 : vector<4x128xf32>
    %cst_55 = arith.constant 0.000000e+00 : f32
    %71 = vector.broadcast %cst_55 : f32 to vector<4x128xf32>
    %72 = arith.maximumf %70, %71 : vector<4x128xf32>
    %73 = arith.truncf %72 : vector<4x128xf32> to vector<4x128xbf16>
    %c0_56 = arith.constant 0 : index
    %c0_57 = arith.constant 0 : index
    %74 = vector.load %arg7[%c0_56, %c0_57] : memref<8x128xbf16, #tpu.memory_space<vmem>>, vector<4x128xbf16>
    tpu.vector_store %arg7[%c0_56, %c0_57], %73 {strides = array<i32>} : memref<8x128xbf16, #tpu.memory_space<vmem>>, vector<4x128xbf16>,
    %75 = vector.broadcast %61 : vector<1x128xf32> to vector<4x128xf32>
    %76 = arith.mulf %32, %75 : vector<4x128xf32>
    %77 = vector.broadcast %63 : vector<1x128xf32> to vector<4x128xf32>
    %78 = arith.addf %76, %77 : vector<4x128xf32>
    %c4 = arith.constant 4 : index
    %c0_58 = arith.constant 0 : index
    %79 = vector.load %arg6[%c4, %c0_58] : memref<8x128xbf16, #tpu.memory_space<vmem>>, vector<4x128xbf16>
    %80 = arith.extf %79 : vector<4x128xbf16> to vector<4x128xf32>
    %81 = arith.addf %78, %80 : vector<4x128xf32>
    %cst_59 = arith.constant 0.000000e+00 : f32
    %82 = vector.broadcast %cst_59 : f32 to vector<4x128xf32>
    %83 = arith.maximumf %81, %82 : vector<4x128xf32>
    %84 = arith.truncf %83 : vector<4x128xf32> to vector<4x128xbf16>
    %c4_60 = arith.constant 4 : index
    %c0_61 = arith.constant 0 : index
    %85 = vector.load %arg7[%c4_60, %c0_61] : memref<8x128xbf16, #tpu.memory_space<vmem>>, vector<4x128xbf16>
    tpu.vector_store %arg7[%c4_60, %c0_61], %84 {strides = array<i32>} : memref<8x128xbf16, #tpu.memory_space<vmem>>, vector<4x128xbf16>,
    return
  }
}

module attributes {stable_mosaic.version = 11 : i64} {
  func.func @kernel(%arg0: memref<12x192xbf16, #tpu.memory_space<vmem>>, %arg1: memref<3x192x128xbf16, #tpu.memory_space<vmem>>, %arg2: memref<128x32xf32, #tpu.memory_space<vmem>>, %arg3: memref<32x128xf32, #tpu.memory_space<vmem>>, %arg4: memref<1x32xf32, #tpu.memory_space<vmem>>, %arg5: memref<1x32xf32, #tpu.memory_space<vmem>>, %arg6: memref<8x128xbf16, #tpu.memory_space<vmem>>) attributes {dimension_semantics = [], scalar_prefetch = 0 : i64, scratch_operands = 0 : i64, tpu.core_type = #tpu.core_type<tc>} {
    %c0 = arith.constant 0 : index
    %c0_0 = arith.constant 0 : index
    %0 = vector.load %arg0[%c0, %c0_0] : memref<12x192xbf16, #tpu.memory_space<vmem>>, vector<4x192xbf16>
    %c0_1 = arith.constant 0 : index
    %c0_2 = arith.constant 0 : index
    %c0_3 = arith.constant 0 : index
    %1 = vector.load %arg1[%c0_1, %c0_2, %c0_3] : memref<3x192x128xbf16, #tpu.memory_space<vmem>>, vector<1x192x128xbf16>
    %2 = vector.shape_cast %1 : vector<1x192x128xbf16> to vector<192x128xbf16>
    %cst = arith.constant dense<0.000000e+00> : vector<4x128xf32>
    %3 = tpu.matmul %0, %2, %cst {dimension_numbers = #tpu.dot_dimension_numbers<[1], [0], [0], [1], [0, 0, 1, 1], [], []>} : vector<4x192xbf16>, vector<192x128xbf16>, vector<4x128xf32> -> vector<4x128xf32>
    %c1 = arith.constant 1 : index
    %c0_4 = arith.constant 0 : index
    %4 = vector.load %arg0[%c1, %c0_4] : memref<12x192xbf16, #tpu.memory_space<vmem>>, vector<4x192xbf16>
    %c1_5 = arith.constant 1 : index
    %c0_6 = arith.constant 0 : index
    %c0_7 = arith.constant 0 : index
    %5 = vector.load %arg1[%c1_5, %c0_6, %c0_7] : memref<3x192x128xbf16, #tpu.memory_space<vmem>>, vector<1x192x128xbf16>
    %6 = vector.shape_cast %5 : vector<1x192x128xbf16> to vector<192x128xbf16>
    %cst_8 = arith.constant dense<0.000000e+00> : vector<4x128xf32>
    %7 = tpu.matmul %4, %6, %cst_8 {dimension_numbers = #tpu.dot_dimension_numbers<[1], [0], [0], [1], [0, 0, 1, 1], [], []>} : vector<4x192xbf16>, vector<192x128xbf16>, vector<4x128xf32> -> vector<4x128xf32>
    %8 = arith.addf %3, %7 : vector<4x128xf32>
    %c2 = arith.constant 2 : index
    %c0_9 = arith.constant 0 : index
    %9 = vector.load %arg0[%c2, %c0_9] : memref<12x192xbf16, #tpu.memory_space<vmem>>, vector<4x192xbf16>
    %c2_10 = arith.constant 2 : index
    %c0_11 = arith.constant 0 : index
    %c0_12 = arith.constant 0 : index
    %10 = vector.load %arg1[%c2_10, %c0_11, %c0_12] : memref<3x192x128xbf16, #tpu.memory_space<vmem>>, vector<1x192x128xbf16>
    %11 = vector.shape_cast %10 : vector<1x192x128xbf16> to vector<192x128xbf16>
    %cst_13 = arith.constant dense<0.000000e+00> : vector<4x128xf32>
    %12 = tpu.matmul %9, %11, %cst_13 {dimension_numbers = #tpu.dot_dimension_numbers<[1], [0], [0], [1], [0, 0, 1, 1], [], []>} : vector<4x192xbf16>, vector<192x128xbf16>, vector<4x128xf32> -> vector<4x128xf32>
    %13 = arith.addf %8, %12 : vector<4x128xf32>
    %cst_14 = arith.constant dense<0.000000e+00> : vector<128xf32>
    %14 = vector.multi_reduction <add>, %13, %cst_14 [0] : vector<4x128xf32> to vector<128xf32>
    %15 = vector.shape_cast %14 : vector<128xf32> to vector<1x128xf32>
    %16 = arith.mulf %13, %13 : vector<4x128xf32>
    %cst_15 = arith.constant dense<0.000000e+00> : vector<128xf32>
    %17 = vector.multi_reduction <add>, %16, %cst_15 [0] : vector<4x128xf32> to vector<128xf32>
    %18 = vector.shape_cast %17 : vector<128xf32> to vector<1x128xf32>
    %c6 = arith.constant 6 : index
    %c0_16 = arith.constant 0 : index
    %19 = vector.load %arg0[%c6, %c0_16] : memref<12x192xbf16, #tpu.memory_space<vmem>>, vector<4x192xbf16>
    %c0_17 = arith.constant 0 : index
    %c0_18 = arith.constant 0 : index
    %c0_19 = arith.constant 0 : index
    %20 = vector.load %arg1[%c0_17, %c0_18, %c0_19] : memref<3x192x128xbf16, #tpu.memory_space<vmem>>, vector<1x192x128xbf16>
    %21 = vector.shape_cast %20 : vector<1x192x128xbf16> to vector<192x128xbf16>
    %cst_20 = arith.constant dense<0.000000e+00> : vector<4x128xf32>
    %22 = tpu.matmul %19, %21, %cst_20 {dimension_numbers = #tpu.dot_dimension_numbers<[1], [0], [0], [1], [0, 0, 1, 1], [], []>} : vector<4x192xbf16>, vector<192x128xbf16>, vector<4x128xf32> -> vector<4x128xf32>
    %c7 = arith.constant 7 : index
    %c0_21 = arith.constant 0 : index
    %23 = vector.load %arg0[%c7, %c0_21] : memref<12x192xbf16, #tpu.memory_space<vmem>>, vector<4x192xbf16>
    %c1_22 = arith.constant 1 : index
    %c0_23 = arith.constant 0 : index
    %c0_24 = arith.constant 0 : index
    %24 = vector.load %arg1[%c1_22, %c0_23, %c0_24] : memref<3x192x128xbf16, #tpu.memory_space<vmem>>, vector<1x192x128xbf16>
    %25 = vector.shape_cast %24 : vector<1x192x128xbf16> to vector<192x128xbf16>
    %cst_25 = arith.constant dense<0.000000e+00> : vector<4x128xf32>
    %26 = tpu.matmul %23, %25, %cst_25 {dimension_numbers = #tpu.dot_dimension_numbers<[1], [0], [0], [1], [0, 0, 1, 1], [], []>} : vector<4x192xbf16>, vector<192x128xbf16>, vector<4x128xf32> -> vector<4x128xf32>
    %27 = arith.addf %22, %26 : vector<4x128xf32>
    %c8 = arith.constant 8 : index
    %c0_26 = arith.constant 0 : index
    %28 = vector.load %arg0[%c8, %c0_26] : memref<12x192xbf16, #tpu.memory_space<vmem>>, vector<4x192xbf16>
    %c2_27 = arith.constant 2 : index
    %c0_28 = arith.constant 0 : index
    %c0_29 = arith.constant 0 : index
    %29 = vector.load %arg1[%c2_27, %c0_28, %c0_29] : memref<3x192x128xbf16, #tpu.memory_space<vmem>>, vector<1x192x128xbf16>
    %30 = vector.shape_cast %29 : vector<1x192x128xbf16> to vector<192x128xbf16>
    %cst_30 = arith.constant dense<0.000000e+00> : vector<4x128xf32>
    %31 = tpu.matmul %28, %30, %cst_30 {dimension_numbers = #tpu.dot_dimension_numbers<[1], [0], [0], [1], [0, 0, 1, 1], [], []>} : vector<4x192xbf16>, vector<192x128xbf16>, vector<4x128xf32> -> vector<4x128xf32>
    %32 = arith.addf %27, %31 : vector<4x128xf32>
    %cst_31 = arith.constant dense<0.000000e+00> : vector<128xf32>
    %33 = vector.multi_reduction <add>, %32, %cst_31 [0] : vector<4x128xf32> to vector<128xf32>
    %34 = vector.shape_cast %33 : vector<128xf32> to vector<1x128xf32>
    %35 = arith.mulf %32, %32 : vector<4x128xf32>
    %cst_32 = arith.constant dense<0.000000e+00> : vector<128xf32>
    %36 = vector.multi_reduction <add>, %35, %cst_32 [0] : vector<4x128xf32> to vector<128xf32>
    %37 = vector.shape_cast %36 : vector<128xf32> to vector<1x128xf32>
    %38 = arith.addf %15, %34 : vector<1x128xf32>
    %39 = arith.addf %18, %37 : vector<1x128xf32>
    %c0_33 = arith.constant 0 : index
    %c0_34 = arith.constant 0 : index
    %40 = vector.load %arg2[%c0_33, %c0_34] : memref<128x32xf32, #tpu.memory_space<vmem>>, vector<128x32xf32>
    %cst_35 = arith.constant dense<0.000000e+00> : vector<1x32xf32>
    %41 = tpu.matmul %38, %40, %cst_35 {dimension_numbers = #tpu.dot_dimension_numbers<[1], [0], [0], [1], [0, 0, 1, 1], [], []>} : vector<1x128xf32>, vector<128x32xf32>, vector<1x32xf32> -> vector<1x32xf32>
    %c0_36 = arith.constant 0 : index
    %c0_37 = arith.constant 0 : index
    %42 = vector.load %arg2[%c0_36, %c0_37] : memref<128x32xf32, #tpu.memory_space<vmem>>, vector<128x32xf32>
    %cst_38 = arith.constant dense<0.000000e+00> : vector<1x32xf32>
    %43 = tpu.matmul %39, %42, %cst_38 {dimension_numbers = #tpu.dot_dimension_numbers<[1], [0], [0], [1], [0, 0, 1, 1], [], []>} : vector<1x128xf32>, vector<128x32xf32>, vector<1x32xf32> -> vector<1x32xf32>
    %cst_39 = arith.constant 3.125000e-02 : f32
    %44 = vector.broadcast %cst_39 : f32 to vector<1x32xf32>
    %45 = arith.mulf %41, %44 : vector<1x32xf32>
    %cst_40 = arith.constant 3.125000e-02 : f32
    %46 = vector.broadcast %cst_40 : f32 to vector<1x32xf32>
    %47 = arith.mulf %43, %46 : vector<1x32xf32>
    %48 = arith.mulf %45, %45 : vector<1x32xf32>
    %49 = arith.subf %47, %48 : vector<1x32xf32>
    %cst_41 = arith.constant 0.000000e+00 : f32
    %50 = vector.broadcast %cst_41 : f32 to vector<1x32xf32>
    %51 = arith.maximumf %49, %50 : vector<1x32xf32>
    %cst_42 = arith.constant 9.99999974E-6 : f32
    %52 = vector.broadcast %cst_42 : f32 to vector<1x32xf32>
    %53 = arith.addf %51, %52 : vector<1x32xf32>
    %54 = math.rsqrt %53 : vector<1x32xf32>
    %c0_43 = arith.constant 0 : index
    %c0_44 = arith.constant 0 : index
    %55 = vector.load %arg4[%c0_43, %c0_44] : memref<1x32xf32, #tpu.memory_space<vmem>>, vector<1x32xf32>
    %56 = arith.mulf %55, %54 : vector<1x32xf32>
    %c0_45 = arith.constant 0 : index
    %c0_46 = arith.constant 0 : index
    %57 = vector.load %arg5[%c0_45, %c0_46] : memref<1x32xf32, #tpu.memory_space<vmem>>, vector<1x32xf32>
    %58 = arith.mulf %45, %56 : vector<1x32xf32>
    %59 = arith.subf %57, %58 : vector<1x32xf32>
    %c0_47 = arith.constant 0 : index
    %c0_48 = arith.constant 0 : index
    %60 = vector.load %arg3[%c0_47, %c0_48] : memref<32x128xf32, #tpu.memory_space<vmem>>, vector<32x128xf32>
    %cst_49 = arith.constant dense<0.000000e+00> : vector<1x128xf32>
    %61 = tpu.matmul %56, %60, %cst_49 {dimension_numbers = #tpu.dot_dimension_numbers<[1], [0], [0], [1], [0, 0, 1, 1], [], []>} : vector<1x32xf32>, vector<32x128xf32>, vector<1x128xf32> -> vector<1x128xf32>
    %c0_50 = arith.constant 0 : index
    %c0_51 = arith.constant 0 : index
    %62 = vector.load %arg3[%c0_50, %c0_51] : memref<32x128xf32, #tpu.memory_space<vmem>>, vector<32x128xf32>
    %cst_52 = arith.constant dense<0.000000e+00> : vector<1x128xf32>
    %63 = tpu.matmul %59, %62, %cst_52 {dimension_numbers = #tpu.dot_dimension_numbers<[1], [0], [0], [1], [0, 0, 1, 1], [], []>} : vector<1x32xf32>, vector<32x128xf32>, vector<1x128xf32> -> vector<1x128xf32>
    %64 = vector.broadcast %61 : vector<1x128xf32> to vector<4x128xf32>
    %65 = arith.mulf %13, %64 : vector<4x128xf32>
    %66 = vector.broadcast %63 : vector<1x128xf32> to vector<4x128xf32>
    %67 = arith.addf %65, %66 : vector<4x128xf32>
    %cst_53 = arith.constant 0.000000e+00 : f32
    %68 = vector.broadcast %cst_53 : f32 to vector<4x128xf32>
    %69 = arith.maximumf %67, %68 : vector<4x128xf32>
    %70 = arith.truncf %69 : vector<4x128xf32> to vector<4x128xbf16>
    %c0_54 = arith.constant 0 : index
    %c0_55 = arith.constant 0 : index
    %71 = vector.load %arg6[%c0_54, %c0_55] : memref<8x128xbf16, #tpu.memory_space<vmem>>, vector<4x128xbf16>
    tpu.vector_store %arg6[%c0_54, %c0_55], %70 {strides = array<i32>} : memref<8x128xbf16, #tpu.memory_space<vmem>>, vector<4x128xbf16>,
    %72 = vector.broadcast %61 : vector<1x128xf32> to vector<4x128xf32>
    %73 = arith.mulf %32, %72 : vector<4x128xf32>
    %74 = vector.broadcast %63 : vector<1x128xf32> to vector<4x128xf32>
    %75 = arith.addf %73, %74 : vector<4x128xf32>
    %cst_56 = arith.constant 0.000000e+00 : f32
    %76 = vector.broadcast %cst_56 : f32 to vector<4x128xf32>
    %77 = arith.maximumf %75, %76 : vector<4x128xf32>
    %78 = arith.truncf %77 : vector<4x128xf32> to vector<4x128xbf16>
    %c4 = arith.constant 4 : index
    %c0_57 = arith.constant 0 : index
    %79 = vector.load %arg6[%c4, %c0_57] : memref<8x128xbf16, #tpu.memory_space<vmem>>, vector<4x128xbf16>
    tpu.vector_store %arg6[%c4, %c0_57], %78 {strides = array<i32>} : memref<8x128xbf16, #tpu.memory_space<vmem>>, vector<4x128xbf16>,
    return
  }
}

module attributes {stable_mosaic.version = 11 : i64} {
  func.func @kernel(%arg0: memref<10x128xbf16, #tpu.memory_space<vmem>>, %arg1: memref<2x128x256xbf16, #tpu.memory_space<vmem>>, %arg2: memref<256x16xf32, #tpu.memory_space<vmem>>, %arg3: memref<16x256xf32, #tpu.memory_space<vmem>>, %arg4: memref<1x16xf32, #tpu.memory_space<vmem>>, %arg5: memref<1x16xf32, #tpu.memory_space<vmem>>, %arg6: memref<8x256xbf16, #tpu.memory_space<vmem>>) attributes {dimension_semantics = [], scalar_prefetch = 0 : i64, scratch_operands = 0 : i64, tpu.core_type = #tpu.core_type<tc>} {
    %c0 = arith.constant 0 : index
    %c0_0 = arith.constant 0 : index
    %0 = vector.load %arg0[%c0, %c0_0] : memref<10x128xbf16, #tpu.memory_space<vmem>>, vector<4x128xbf16>
    %c0_1 = arith.constant 0 : index
    %c0_2 = arith.constant 0 : index
    %c0_3 = arith.constant 0 : index
    %1 = vector.load %arg1[%c0_1, %c0_2, %c0_3] : memref<2x128x256xbf16, #tpu.memory_space<vmem>>, vector<1x128x256xbf16>
    %2 = vector.shape_cast %1 : vector<1x128x256xbf16> to vector<128x256xbf16>
    %cst = arith.constant dense<0.000000e+00> : vector<4x256xf32>
    %3 = tpu.matmul %0, %2, %cst {dimension_numbers = #tpu.dot_dimension_numbers<[1], [0], [0], [1], [0, 0, 1, 1], [], []>} : vector<4x128xbf16>, vector<128x256xbf16>, vector<4x256xf32> -> vector<4x256xf32>
    %c1 = arith.constant 1 : index
    %c0_4 = arith.constant 0 : index
    %4 = vector.load %arg0[%c1, %c0_4] : memref<10x128xbf16, #tpu.memory_space<vmem>>, vector<4x128xbf16>
    %c1_5 = arith.constant 1 : index
    %c0_6 = arith.constant 0 : index
    %c0_7 = arith.constant 0 : index
    %5 = vector.load %arg1[%c1_5, %c0_6, %c0_7] : memref<2x128x256xbf16, #tpu.memory_space<vmem>>, vector<1x128x256xbf16>
    %6 = vector.shape_cast %5 : vector<1x128x256xbf16> to vector<128x256xbf16>
    %cst_8 = arith.constant dense<0.000000e+00> : vector<4x256xf32>
    %7 = tpu.matmul %4, %6, %cst_8 {dimension_numbers = #tpu.dot_dimension_numbers<[1], [0], [0], [1], [0, 0, 1, 1], [], []>} : vector<4x128xbf16>, vector<128x256xbf16>, vector<4x256xf32> -> vector<4x256xf32>
    %8 = arith.addf %3, %7 : vector<4x256xf32>
    %cst_9 = arith.constant dense<0.000000e+00> : vector<256xf32>
    %9 = vector.multi_reduction <add>, %8, %cst_9 [0] : vector<4x256xf32> to vector<256xf32>
    %10 = vector.shape_cast %9 : vector<256xf32> to vector<1x256xf32>
    %11 = arith.mulf %8, %8 : vector<4x256xf32>
    %cst_10 = arith.constant dense<0.000000e+00> : vector<256xf32>
    %12 = vector.multi_reduction <add>, %11, %cst_10 [0] : vector<4x256xf32> to vector<256xf32>
    %13 = vector.shape_cast %12 : vector<256xf32> to vector<1x256xf32>
    %c5 = arith.constant 5 : index
    %c0_11 = arith.constant 0 : index
    %14 = vector.load %arg0[%c5, %c0_11] : memref<10x128xbf16, #tpu.memory_space<vmem>>, vector<4x128xbf16>
    %c0_12 = arith.constant 0 : index
    %c0_13 = arith.constant 0 : index
    %c0_14 = arith.constant 0 : index
    %15 = vector.load %arg1[%c0_12, %c0_13, %c0_14] : memref<2x128x256xbf16, #tpu.memory_space<vmem>>, vector<1x128x256xbf16>
    %16 = vector.shape_cast %15 : vector<1x128x256xbf16> to vector<128x256xbf16>
    %cst_15 = arith.constant dense<0.000000e+00> : vector<4x256xf32>
    %17 = tpu.matmul %14, %16, %cst_15 {dimension_numbers = #tpu.dot_dimension_numbers<[1], [0], [0], [1], [0, 0, 1, 1], [], []>} : vector<4x128xbf16>, vector<128x256xbf16>, vector<4x256xf32> -> vector<4x256xf32>
    %c6 = arith.constant 6 : index
    %c0_16 = arith.constant 0 : index
    %18 = vector.load %arg0[%c6, %c0_16] : memref<10x128xbf16, #tpu.memory_space<vmem>>, vector<4x128xbf16>
    %c1_17 = arith.constant 1 : index
    %c0_18 = arith.constant 0 : index
    %c0_19 = arith.constant 0 : index
    %19 = vector.load %arg1[%c1_17, %c0_18, %c0_19] : memref<2x128x256xbf16, #tpu.memory_space<vmem>>, vector<1x128x256xbf16>
    %20 = vector.shape_cast %19 : vector<1x128x256xbf16> to vector<128x256xbf16>
    %cst_20 = arith.constant dense<0.000000e+00> : vector<4x256xf32>
    %21 = tpu.matmul %18, %20, %cst_20 {dimension_numbers = #tpu.dot_dimension_numbers<[1], [0], [0], [1], [0, 0, 1, 1], [], []>} : vector<4x128xbf16>, vector<128x256xbf16>, vector<4x256xf32> -> vector<4x256xf32>
    %22 = arith.addf %17, %21 : vector<4x256xf32>
    %cst_21 = arith.constant dense<0.000000e+00> : vector<256xf32>
    %23 = vector.multi_reduction <add>, %22, %cst_21 [0] : vector<4x256xf32> to vector<256xf32>
    %24 = vector.shape_cast %23 : vector<256xf32> to vector<1x256xf32>
    %25 = arith.mulf %22, %22 : vector<4x256xf32>
    %cst_22 = arith.constant dense<0.000000e+00> : vector<256xf32>
    %26 = vector.multi_reduction <add>, %25, %cst_22 [0] : vector<4x256xf32> to vector<256xf32>
    %27 = vector.shape_cast %26 : vector<256xf32> to vector<1x256xf32>
    %28 = arith.addf %10, %24 : vector<1x256xf32>
    %29 = arith.addf %13, %27 : vector<1x256xf32>
    %c0_23 = arith.constant 0 : index
    %c0_24 = arith.constant 0 : index
    %30 = vector.load %arg2[%c0_23, %c0_24] : memref<256x16xf32, #tpu.memory_space<vmem>>, vector<256x16xf32>
    %cst_25 = arith.constant dense<0.000000e+00> : vector<1x16xf32>
    %31 = tpu.matmul %28, %30, %cst_25 {dimension_numbers = #tpu.dot_dimension_numbers<[1], [0], [0], [1], [0, 0, 1, 1], [], []>} : vector<1x256xf32>, vector<256x16xf32>, vector<1x16xf32> -> vector<1x16xf32>
    %c0_26 = arith.constant 0 : index
    %c0_27 = arith.constant 0 : index
    %32 = vector.load %arg2[%c0_26, %c0_27] : memref<256x16xf32, #tpu.memory_space<vmem>>, vector<256x16xf32>
    %cst_28 = arith.constant dense<0.000000e+00> : vector<1x16xf32>
    %33 = tpu.matmul %29, %32, %cst_28 {dimension_numbers = #tpu.dot_dimension_numbers<[1], [0], [0], [1], [0, 0, 1, 1], [], []>} : vector<1x256xf32>, vector<256x16xf32>, vector<1x16xf32> -> vector<1x16xf32>
    %cst_29 = arith.constant 7.812500e-03 : f32
    %34 = vector.broadcast %cst_29 : f32 to vector<1x16xf32>
    %35 = arith.mulf %31, %34 : vector<1x16xf32>
    %cst_30 = arith.constant 7.812500e-03 : f32
    %36 = vector.broadcast %cst_30 : f32 to vector<1x16xf32>
    %37 = arith.mulf %33, %36 : vector<1x16xf32>
    %38 = arith.mulf %35, %35 : vector<1x16xf32>
    %39 = arith.subf %37, %38 : vector<1x16xf32>
    %cst_31 = arith.constant 0.000000e+00 : f32
    %40 = vector.broadcast %cst_31 : f32 to vector<1x16xf32>
    %41 = arith.maximumf %39, %40 : vector<1x16xf32>
    %cst_32 = arith.constant 9.99999974E-6 : f32
    %42 = vector.broadcast %cst_32 : f32 to vector<1x16xf32>
    %43 = arith.addf %41, %42 : vector<1x16xf32>
    %44 = math.rsqrt %43 : vector<1x16xf32>
    %c0_33 = arith.constant 0 : index
    %c0_34 = arith.constant 0 : index
    %45 = vector.load %arg4[%c0_33, %c0_34] : memref<1x16xf32, #tpu.memory_space<vmem>>, vector<1x16xf32>
    %46 = arith.mulf %45, %44 : vector<1x16xf32>
    %c0_35 = arith.constant 0 : index
    %c0_36 = arith.constant 0 : index
    %47 = vector.load %arg5[%c0_35, %c0_36] : memref<1x16xf32, #tpu.memory_space<vmem>>, vector<1x16xf32>
    %48 = arith.mulf %35, %46 : vector<1x16xf32>
    %49 = arith.subf %47, %48 : vector<1x16xf32>
    %c0_37 = arith.constant 0 : index
    %c0_38 = arith.constant 0 : index
    %50 = vector.load %arg3[%c0_37, %c0_38] : memref<16x256xf32, #tpu.memory_space<vmem>>, vector<16x256xf32>
    %cst_39 = arith.constant dense<0.000000e+00> : vector<1x256xf32>
    %51 = tpu.matmul %46, %50, %cst_39 {dimension_numbers = #tpu.dot_dimension_numbers<[1], [0], [0], [1], [0, 0, 1, 1], [], []>} : vector<1x16xf32>, vector<16x256xf32>, vector<1x256xf32> -> vector<1x256xf32>
    %c0_40 = arith.constant 0 : index
    %c0_41 = arith.constant 0 : index
    %52 = vector.load %arg3[%c0_40, %c0_41] : memref<16x256xf32, #tpu.memory_space<vmem>>, vector<16x256xf32>
    %cst_42 = arith.constant dense<0.000000e+00> : vector<1x256xf32>
    %53 = tpu.matmul %49, %52, %cst_42 {dimension_numbers = #tpu.dot_dimension_numbers<[1], [0], [0], [1], [0, 0, 1, 1], [], []>} : vector<1x16xf32>, vector<16x256xf32>, vector<1x256xf32> -> vector<1x256xf32>
    %54 = vector.broadcast %51 : vector<1x256xf32> to vector<4x256xf32>
    %55 = arith.mulf %8, %54 : vector<4x256xf32>
    %56 = vector.broadcast %53 : vector<1x256xf32> to vector<4x256xf32>
    %57 = arith.addf %55, %56 : vector<4x256xf32>
    %cst_43 = arith.constant 0.000000e+00 : f32
    %58 = vector.broadcast %cst_43 : f32 to vector<4x256xf32>
    %59 = arith.maximumf %57, %58 : vector<4x256xf32>
    %60 = arith.truncf %59 : vector<4x256xf32> to vector<4x256xbf16>
    %c0_44 = arith.constant 0 : index
    %c0_45 = arith.constant 0 : index
    %61 = vector.load %arg6[%c0_44, %c0_45] : memref<8x256xbf16, #tpu.memory_space<vmem>>, vector<4x256xbf16>
    tpu.vector_store %arg6[%c0_44, %c0_45], %60 {strides = array<i32>} : memref<8x256xbf16, #tpu.memory_space<vmem>>, vector<4x256xbf16>,
    %62 = vector.broadcast %51 : vector<1x256xf32> to vector<4x256xf32>
    %63 = arith.mulf %22, %62 : vector<4x256xf32>
    %64 = vector.broadcast %53 : vector<1x256xf32> to vector<4x256xf32>
    %65 = arith.addf %63, %64 : vector<4x256xf32>
    %cst_46 = arith.constant 0.000000e+00 : f32
    %66 = vector.broadcast %cst_46 : f32 to vector<4x256xf32>
    %67 = arith.maximumf %65, %66 : vector<4x256xf32>
    %68 = arith.truncf %67 : vector<4x256xf32> to vector<4x256xbf16>
    %c4 = arith.constant 4 : index
    %c0_47 = arith.constant 0 : index
    %69 = vector.load %arg6[%c4, %c0_47] : memref<8x256xbf16, #tpu.memory_space<vmem>>, vector<4x256xbf16>
    tpu.vector_store %arg6[%c4, %c0_47], %68 {strides = array<i32>} : memref<8x256xbf16, #tpu.memory_space<vmem>>, vector<4x256xbf16>,
    return
  }
}

module attributes {stable_mosaic.version = 11 : i64} {
  func.func @kernel(%arg0: memref<18x128xbf16, #tpu.memory_space<vmem>>, %arg1: memref<2x128x256xbf16, #tpu.memory_space<vmem>>, %arg2: memref<256x8xf32, #tpu.memory_space<vmem>>, %arg3: memref<8x256xf32, #tpu.memory_space<vmem>>, %arg4: memref<1x8xf32, #tpu.memory_space<vmem>>, %arg5: memref<1x8xf32, #tpu.memory_space<vmem>>, %arg6: memref<16x256xbf16, #tpu.memory_space<vmem>>) attributes {dimension_semantics = [], scalar_prefetch = 0 : i64, scratch_operands = 0 : i64, tpu.core_type = #tpu.core_type<tc>} {
    %c0 = arith.constant 0 : index
    %c0_0 = arith.constant 0 : index
    %0 = vector.load %arg0[%c0, %c0_0] : memref<18x128xbf16, #tpu.memory_space<vmem>>, vector<8x128xbf16>
    %c0_1 = arith.constant 0 : index
    %c0_2 = arith.constant 0 : index
    %c0_3 = arith.constant 0 : index
    %1 = vector.load %arg1[%c0_1, %c0_2, %c0_3] : memref<2x128x256xbf16, #tpu.memory_space<vmem>>, vector<1x128x256xbf16>
    %2 = vector.shape_cast %1 : vector<1x128x256xbf16> to vector<128x256xbf16>
    %cst = arith.constant dense<0.000000e+00> : vector<8x256xf32>
    %3 = tpu.matmul %0, %2, %cst {dimension_numbers = #tpu.dot_dimension_numbers<[1], [0], [0], [1], [0, 0, 1, 1], [], []>} : vector<8x128xbf16>, vector<128x256xbf16>, vector<8x256xf32> -> vector<8x256xf32>
    %c1 = arith.constant 1 : index
    %c0_4 = arith.constant 0 : index
    %4 = vector.load %arg0[%c1, %c0_4] : memref<18x128xbf16, #tpu.memory_space<vmem>>, vector<8x128xbf16>
    %c1_5 = arith.constant 1 : index
    %c0_6 = arith.constant 0 : index
    %c0_7 = arith.constant 0 : index
    %5 = vector.load %arg1[%c1_5, %c0_6, %c0_7] : memref<2x128x256xbf16, #tpu.memory_space<vmem>>, vector<1x128x256xbf16>
    %6 = vector.shape_cast %5 : vector<1x128x256xbf16> to vector<128x256xbf16>
    %cst_8 = arith.constant dense<0.000000e+00> : vector<8x256xf32>
    %7 = tpu.matmul %4, %6, %cst_8 {dimension_numbers = #tpu.dot_dimension_numbers<[1], [0], [0], [1], [0, 0, 1, 1], [], []>} : vector<8x128xbf16>, vector<128x256xbf16>, vector<8x256xf32> -> vector<8x256xf32>
    %8 = arith.addf %3, %7 : vector<8x256xf32>
    %cst_9 = arith.constant dense<0.000000e+00> : vector<256xf32>
    %9 = vector.multi_reduction <add>, %8, %cst_9 [0] : vector<8x256xf32> to vector<256xf32>
    %10 = vector.shape_cast %9 : vector<256xf32> to vector<1x256xf32>
    %11 = arith.mulf %8, %8 : vector<8x256xf32>
    %cst_10 = arith.constant dense<0.000000e+00> : vector<256xf32>
    %12 = vector.multi_reduction <add>, %11, %cst_10 [0] : vector<8x256xf32> to vector<256xf32>
    %13 = vector.shape_cast %12 : vector<256xf32> to vector<1x256xf32>
    %c9 = arith.constant 9 : index
    %c0_11 = arith.constant 0 : index
    %14 = vector.load %arg0[%c9, %c0_11] : memref<18x128xbf16, #tpu.memory_space<vmem>>, vector<8x128xbf16>
    %c0_12 = arith.constant 0 : index
    %c0_13 = arith.constant 0 : index
    %c0_14 = arith.constant 0 : index
    %15 = vector.load %arg1[%c0_12, %c0_13, %c0_14] : memref<2x128x256xbf16, #tpu.memory_space<vmem>>, vector<1x128x256xbf16>
    %16 = vector.shape_cast %15 : vector<1x128x256xbf16> to vector<128x256xbf16>
    %cst_15 = arith.constant dense<0.000000e+00> : vector<8x256xf32>
    %17 = tpu.matmul %14, %16, %cst_15 {dimension_numbers = #tpu.dot_dimension_numbers<[1], [0], [0], [1], [0, 0, 1, 1], [], []>} : vector<8x128xbf16>, vector<128x256xbf16>, vector<8x256xf32> -> vector<8x256xf32>
    %c10 = arith.constant 10 : index
    %c0_16 = arith.constant 0 : index
    %18 = vector.load %arg0[%c10, %c0_16] : memref<18x128xbf16, #tpu.memory_space<vmem>>, vector<8x128xbf16>
    %c1_17 = arith.constant 1 : index
    %c0_18 = arith.constant 0 : index
    %c0_19 = arith.constant 0 : index
    %19 = vector.load %arg1[%c1_17, %c0_18, %c0_19] : memref<2x128x256xbf16, #tpu.memory_space<vmem>>, vector<1x128x256xbf16>
    %20 = vector.shape_cast %19 : vector<1x128x256xbf16> to vector<128x256xbf16>
    %cst_20 = arith.constant dense<0.000000e+00> : vector<8x256xf32>
    %21 = tpu.matmul %18, %20, %cst_20 {dimension_numbers = #tpu.dot_dimension_numbers<[1], [0], [0], [1], [0, 0, 1, 1], [], []>} : vector<8x128xbf16>, vector<128x256xbf16>, vector<8x256xf32> -> vector<8x256xf32>
    %22 = arith.addf %17, %21 : vector<8x256xf32>
    %cst_21 = arith.constant dense<0.000000e+00> : vector<256xf32>
    %23 = vector.multi_reduction <add>, %22, %cst_21 [0] : vector<8x256xf32> to vector<256xf32>
    %24 = vector.shape_cast %23 : vector<256xf32> to vector<1x256xf32>
    %25 = arith.mulf %22, %22 : vector<8x256xf32>
    %cst_22 = arith.constant dense<0.000000e+00> : vector<256xf32>
    %26 = vector.multi_reduction <add>, %25, %cst_22 [0] : vector<8x256xf32> to vector<256xf32>
    %27 = vector.shape_cast %26 : vector<256xf32> to vector<1x256xf32>
    %28 = arith.addf %10, %24 : vector<1x256xf32>
    %29 = arith.addf %13, %27 : vector<1x256xf32>
    %c0_23 = arith.constant 0 : index
    %c0_24 = arith.constant 0 : index
    %30 = vector.load %arg2[%c0_23, %c0_24] : memref<256x8xf32, #tpu.memory_space<vmem>>, vector<256x8xf32>
    %cst_25 = arith.constant dense<0.000000e+00> : vector<1x8xf32>
    %31 = tpu.matmul %28, %30, %cst_25 {dimension_numbers = #tpu.dot_dimension_numbers<[1], [0], [0], [1], [0, 0, 1, 1], [], []>} : vector<1x256xf32>, vector<256x8xf32>, vector<1x8xf32> -> vector<1x8xf32>
    %c0_26 = arith.constant 0 : index
    %c0_27 = arith.constant 0 : index
    %32 = vector.load %arg2[%c0_26, %c0_27] : memref<256x8xf32, #tpu.memory_space<vmem>>, vector<256x8xf32>
    %cst_28 = arith.constant dense<0.000000e+00> : vector<1x8xf32>
    %33 = tpu.matmul %29, %32, %cst_28 {dimension_numbers = #tpu.dot_dimension_numbers<[1], [0], [0], [1], [0, 0, 1, 1], [], []>} : vector<1x256xf32>, vector<256x8xf32>, vector<1x8xf32> -> vector<1x8xf32>
    %cst_29 = arith.constant 0.001953125 : f32
    %34 = vector.broadcast %cst_29 : f32 to vector<1x8xf32>
    %35 = arith.mulf %31, %34 : vector<1x8xf32>
    %cst_30 = arith.constant 0.001953125 : f32
    %36 = vector.broadcast %cst_30 : f32 to vector<1x8xf32>
    %37 = arith.mulf %33, %36 : vector<1x8xf32>
    %38 = arith.mulf %35, %35 : vector<1x8xf32>
    %39 = arith.subf %37, %38 : vector<1x8xf32>
    %cst_31 = arith.constant 0.000000e+00 : f32
    %40 = vector.broadcast %cst_31 : f32 to vector<1x8xf32>
    %41 = arith.maximumf %39, %40 : vector<1x8xf32>
    %cst_32 = arith.constant 9.99999974E-6 : f32
    %42 = vector.broadcast %cst_32 : f32 to vector<1x8xf32>
    %43 = arith.addf %41, %42 : vector<1x8xf32>
    %44 = math.rsqrt %43 : vector<1x8xf32>
    %c0_33 = arith.constant 0 : index
    %c0_34 = arith.constant 0 : index
    %45 = vector.load %arg4[%c0_33, %c0_34] : memref<1x8xf32, #tpu.memory_space<vmem>>, vector<1x8xf32>
    %46 = arith.mulf %45, %44 : vector<1x8xf32>
    %c0_35 = arith.constant 0 : index
    %c0_36 = arith.constant 0 : index
    %47 = vector.load %arg5[%c0_35, %c0_36] : memref<1x8xf32, #tpu.memory_space<vmem>>, vector<1x8xf32>
    %48 = arith.mulf %35, %46 : vector<1x8xf32>
    %49 = arith.subf %47, %48 : vector<1x8xf32>
    %c0_37 = arith.constant 0 : index
    %c0_38 = arith.constant 0 : index
    %50 = vector.load %arg3[%c0_37, %c0_38] : memref<8x256xf32, #tpu.memory_space<vmem>>, vector<8x256xf32>
    %cst_39 = arith.constant dense<0.000000e+00> : vector<1x256xf32>
    %51 = tpu.matmul %46, %50, %cst_39 {dimension_numbers = #tpu.dot_dimension_numbers<[1], [0], [0], [1], [0, 0, 1, 1], [], []>} : vector<1x8xf32>, vector<8x256xf32>, vector<1x256xf32> -> vector<1x256xf32>
    %c0_40 = arith.constant 0 : index
    %c0_41 = arith.constant 0 : index
    %52 = vector.load %arg3[%c0_40, %c0_41] : memref<8x256xf32, #tpu.memory_space<vmem>>, vector<8x256xf32>
    %cst_42 = arith.constant dense<0.000000e+00> : vector<1x256xf32>
    %53 = tpu.matmul %49, %52, %cst_42 {dimension_numbers = #tpu.dot_dimension_numbers<[1], [0], [0], [1], [0, 0, 1, 1], [], []>} : vector<1x8xf32>, vector<8x256xf32>, vector<1x256xf32> -> vector<1x256xf32>
    %54 = vector.broadcast %51 : vector<1x256xf32> to vector<8x256xf32>
    %55 = arith.mulf %8, %54 : vector<8x256xf32>
    %56 = vector.broadcast %53 : vector<1x256xf32> to vector<8x256xf32>
    %57 = arith.addf %55, %56 : vector<8x256xf32>
    %cst_43 = arith.constant 0.000000e+00 : f32
    %58 = vector.broadcast %cst_43 : f32 to vector<8x256xf32>
    %59 = arith.maximumf %57, %58 : vector<8x256xf32>
    %60 = arith.truncf %59 : vector<8x256xf32> to vector<8x256xbf16>
    %c0_44 = arith.constant 0 : index
    %c0_45 = arith.constant 0 : index
    %61 = vector.load %arg6[%c0_44, %c0_45] : memref<16x256xbf16, #tpu.memory_space<vmem>>, vector<8x256xbf16>
    tpu.vector_store %arg6[%c0_44, %c0_45], %60 {strides = array<i32>} : memref<16x256xbf16, #tpu.memory_space<vmem>>, vector<8x256xbf16>,
    %62 = vector.broadcast %51 : vector<1x256xf32> to vector<8x256xf32>
    %63 = arith.mulf %22, %62 : vector<8x256xf32>
    %64 = vector.broadcast %53 : vector<1x256xf32> to vector<8x256xf32>
    %65 = arith.addf %63, %64 : vector<8x256xf32>
    %cst_46 = arith.constant 0.000000e+00 : f32
    %66 = vector.broadcast %cst_46 : f32 to vector<8x256xf32>
    %67 = arith.maximumf %65, %66 : vector<8x256xf32>
    %68 = arith.truncf %67 : vector<8x256xf32> to vector<8x256xbf16>
    %c8 = arith.constant 8 : index
    %c0_47 = arith.constant 0 : index
    %69 = vector.load %arg6[%c8, %c0_47] : memref<16x256xbf16, #tpu.memory_space<vmem>>, vector<8x256xbf16>
    tpu.vector_store %arg6[%c8, %c0_47], %68 {strides = array<i32>} : memref<16x256xbf16, #tpu.memory_space<vmem>>, vector<8x256xbf16>,
    return
  }
}

module attributes {stable_mosaic.version = 11 : i64} {
  func.func @kernel(%arg0: memref<44x176xbf16, #tpu.memory_space<vmem>>, %arg1: memref<7x176x64xbf16, #tpu.memory_space<vmem>>, %arg2: memref<1x64xf32, #tpu.memory_space<vmem>>, %arg3: memref<32x64xf32, #tpu.memory_space<vmem>>) attributes {dimension_semantics = [], scalar_prefetch = 0 : i64, scratch_operands = 0 : i64, tpu.core_type = #tpu.core_type<tc>} {
    %c0 = arith.constant 0 : index
    %c0_0 = arith.constant 0 : index
    %0 = vector.load %arg0[%c0, %c0_0] : memref<44x176xbf16, #tpu.memory_space<vmem>>, vector<16x176xbf16>
    %c0_1 = arith.constant 0 : index
    %c0_2 = arith.constant 0 : index
    %c0_3 = arith.constant 0 : index
    %1 = vector.load %arg1[%c0_1, %c0_2, %c0_3] : memref<7x176x64xbf16, #tpu.memory_space<vmem>>, vector<1x176x64xbf16>
    %2 = vector.shape_cast %1 : vector<1x176x64xbf16> to vector<176x64xbf16>
    %cst = arith.constant dense<0.000000e+00> : vector<16x64xf32>
    %3 = tpu.matmul %0, %2, %cst {dimension_numbers = #tpu.dot_dimension_numbers<[1], [0], [0], [1], [0, 0, 1, 1], [], []>} : vector<16x176xbf16>, vector<176x64xbf16>, vector<16x64xf32> -> vector<16x64xf32>
    %c1 = arith.constant 1 : index
    %c0_4 = arith.constant 0 : index
    %4 = vector.load %arg0[%c1, %c0_4] : memref<44x176xbf16, #tpu.memory_space<vmem>>, vector<16x176xbf16>
    %c1_5 = arith.constant 1 : index
    %c0_6 = arith.constant 0 : index
    %c0_7 = arith.constant 0 : index
    %5 = vector.load %arg1[%c1_5, %c0_6, %c0_7] : memref<7x176x64xbf16, #tpu.memory_space<vmem>>, vector<1x176x64xbf16>
    %6 = vector.shape_cast %5 : vector<1x176x64xbf16> to vector<176x64xbf16>
    %cst_8 = arith.constant dense<0.000000e+00> : vector<16x64xf32>
    %7 = tpu.matmul %4, %6, %cst_8 {dimension_numbers = #tpu.dot_dimension_numbers<[1], [0], [0], [1], [0, 0, 1, 1], [], []>} : vector<16x176xbf16>, vector<176x64xbf16>, vector<16x64xf32> -> vector<16x64xf32>
    %8 = arith.addf %3, %7 : vector<16x64xf32>
    %c2 = arith.constant 2 : index
    %c0_9 = arith.constant 0 : index
    %9 = vector.load %arg0[%c2, %c0_9] : memref<44x176xbf16, #tpu.memory_space<vmem>>, vector<16x176xbf16>
    %c2_10 = arith.constant 2 : index
    %c0_11 = arith.constant 0 : index
    %c0_12 = arith.constant 0 : index
    %10 = vector.load %arg1[%c2_10, %c0_11, %c0_12] : memref<7x176x64xbf16, #tpu.memory_space<vmem>>, vector<1x176x64xbf16>
    %11 = vector.shape_cast %10 : vector<1x176x64xbf16> to vector<176x64xbf16>
    %cst_13 = arith.constant dense<0.000000e+00> : vector<16x64xf32>
    %12 = tpu.matmul %9, %11, %cst_13 {dimension_numbers = #tpu.dot_dimension_numbers<[1], [0], [0], [1], [0, 0, 1, 1], [], []>} : vector<16x176xbf16>, vector<176x64xbf16>, vector<16x64xf32> -> vector<16x64xf32>
    %13 = arith.addf %8, %12 : vector<16x64xf32>
    %c3 = arith.constant 3 : index
    %c0_14 = arith.constant 0 : index
    %14 = vector.load %arg0[%c3, %c0_14] : memref<44x176xbf16, #tpu.memory_space<vmem>>, vector<16x176xbf16>
    %c3_15 = arith.constant 3 : index
    %c0_16 = arith.constant 0 : index
    %c0_17 = arith.constant 0 : index
    %15 = vector.load %arg1[%c3_15, %c0_16, %c0_17] : memref<7x176x64xbf16, #tpu.memory_space<vmem>>, vector<1x176x64xbf16>
    %16 = vector.shape_cast %15 : vector<1x176x64xbf16> to vector<176x64xbf16>
    %cst_18 = arith.constant dense<0.000000e+00> : vector<16x64xf32>
    %17 = tpu.matmul %14, %16, %cst_18 {dimension_numbers = #tpu.dot_dimension_numbers<[1], [0], [0], [1], [0, 0, 1, 1], [], []>} : vector<16x176xbf16>, vector<176x64xbf16>, vector<16x64xf32> -> vector<16x64xf32>
    %18 = arith.addf %13, %17 : vector<16x64xf32>
    %c4 = arith.constant 4 : index
    %c0_19 = arith.constant 0 : index
    %19 = vector.load %arg0[%c4, %c0_19] : memref<44x176xbf16, #tpu.memory_space<vmem>>, vector<16x176xbf16>
    %c4_20 = arith.constant 4 : index
    %c0_21 = arith.constant 0 : index
    %c0_22 = arith.constant 0 : index
    %20 = vector.load %arg1[%c4_20, %c0_21, %c0_22] : memref<7x176x64xbf16, #tpu.memory_space<vmem>>, vector<1x176x64xbf16>
    %21 = vector.shape_cast %20 : vector<1x176x64xbf16> to vector<176x64xbf16>
    %cst_23 = arith.constant dense<0.000000e+00> : vector<16x64xf32>
    %22 = tpu.matmul %19, %21, %cst_23 {dimension_numbers = #tpu.dot_dimension_numbers<[1], [0], [0], [1], [0, 0, 1, 1], [], []>} : vector<16x176xbf16>, vector<176x64xbf16>, vector<16x64xf32> -> vector<16x64xf32>
    %23 = arith.addf %18, %22 : vector<16x64xf32>
    %c5 = arith.constant 5 : index
    %c0_24 = arith.constant 0 : index
    %24 = vector.load %arg0[%c5, %c0_24] : memref<44x176xbf16, #tpu.memory_space<vmem>>, vector<16x176xbf16>
    %c5_25 = arith.constant 5 : index
    %c0_26 = arith.constant 0 : index
    %c0_27 = arith.constant 0 : index
    %25 = vector.load %arg1[%c5_25, %c0_26, %c0_27] : memref<7x176x64xbf16, #tpu.memory_space<vmem>>, vector<1x176x64xbf16>
    %26 = vector.shape_cast %25 : vector<1x176x64xbf16> to vector<176x64xbf16>
    %cst_28 = arith.constant dense<0.000000e+00> : vector<16x64xf32>
    %27 = tpu.matmul %24, %26, %cst_28 {dimension_numbers = #tpu.dot_dimension_numbers<[1], [0], [0], [1], [0, 0, 1, 1], [], []>} : vector<16x176xbf16>, vector<176x64xbf16>, vector<16x64xf32> -> vector<16x64xf32>
    %28 = arith.addf %23, %27 : vector<16x64xf32>
    %c6 = arith.constant 6 : index
    %c0_29 = arith.constant 0 : index
    %29 = vector.load %arg0[%c6, %c0_29] : memref<44x176xbf16, #tpu.memory_space<vmem>>, vector<16x176xbf16>
    %c6_30 = arith.constant 6 : index
    %c0_31 = arith.constant 0 : index
    %c0_32 = arith.constant 0 : index
    %30 = vector.load %arg1[%c6_30, %c0_31, %c0_32] : memref<7x176x64xbf16, #tpu.memory_space<vmem>>, vector<1x176x64xbf16>
    %31 = vector.shape_cast %30 : vector<1x176x64xbf16> to vector<176x64xbf16>
    %cst_33 = arith.constant dense<0.000000e+00> : vector<16x64xf32>
    %32 = tpu.matmul %29, %31, %cst_33 {dimension_numbers = #tpu.dot_dimension_numbers<[1], [0], [0], [1], [0, 0, 1, 1], [], []>} : vector<16x176xbf16>, vector<176x64xbf16>, vector<16x64xf32> -> vector<16x64xf32>
    %33 = arith.addf %28, %32 : vector<16x64xf32>
    %c22 = arith.constant 22 : index
    %c0_34 = arith.constant 0 : index
    %34 = vector.load %arg0[%c22, %c0_34] : memref<44x176xbf16, #tpu.memory_space<vmem>>, vector<16x176xbf16>
    %c0_35 = arith.constant 0 : index
    %c0_36 = arith.constant 0 : index
    %c0_37 = arith.constant 0 : index
    %35 = vector.load %arg1[%c0_35, %c0_36, %c0_37] : memref<7x176x64xbf16, #tpu.memory_space<vmem>>, vector<1x176x64xbf16>
    %36 = vector.shape_cast %35 : vector<1x176x64xbf16> to vector<176x64xbf16>
    %cst_38 = arith.constant dense<0.000000e+00> : vector<16x64xf32>
    %37 = tpu.matmul %34, %36, %cst_38 {dimension_numbers = #tpu.dot_dimension_numbers<[1], [0], [0], [1], [0, 0, 1, 1], [], []>} : vector<16x176xbf16>, vector<176x64xbf16>, vector<16x64xf32> -> vector<16x64xf32>
    %c23 = arith.constant 23 : index
    %c0_39 = arith.constant 0 : index
    %38 = vector.load %arg0[%c23, %c0_39] : memref<44x176xbf16, #tpu.memory_space<vmem>>, vector<16x176xbf16>
    %c1_40 = arith.constant 1 : index
    %c0_41 = arith.constant 0 : index
    %c0_42 = arith.constant 0 : index
    %39 = vector.load %arg1[%c1_40, %c0_41, %c0_42] : memref<7x176x64xbf16, #tpu.memory_space<vmem>>, vector<1x176x64xbf16>
    %40 = vector.shape_cast %39 : vector<1x176x64xbf16> to vector<176x64xbf16>
    %cst_43 = arith.constant dense<0.000000e+00> : vector<16x64xf32>
    %41 = tpu.matmul %38, %40, %cst_43 {dimension_numbers = #tpu.dot_dimension_numbers<[1], [0], [0], [1], [0, 0, 1, 1], [], []>} : vector<16x176xbf16>, vector<176x64xbf16>, vector<16x64xf32> -> vector<16x64xf32>
    %42 = arith.addf %37, %41 : vector<16x64xf32>
    %c24 = arith.constant 24 : index
    %c0_44 = arith.constant 0 : index
    %43 = vector.load %arg0[%c24, %c0_44] : memref<44x176xbf16, #tpu.memory_space<vmem>>, vector<16x176xbf16>
    %c2_45 = arith.constant 2 : index
    %c0_46 = arith.constant 0 : index
    %c0_47 = arith.constant 0 : index
    %44 = vector.load %arg1[%c2_45, %c0_46, %c0_47] : memref<7x176x64xbf16, #tpu.memory_space<vmem>>, vector<1x176x64xbf16>
    %45 = vector.shape_cast %44 : vector<1x176x64xbf16> to vector<176x64xbf16>
    %cst_48 = arith.constant dense<0.000000e+00> : vector<16x64xf32>
    %46 = tpu.matmul %43, %45, %cst_48 {dimension_numbers = #tpu.dot_dimension_numbers<[1], [0], [0], [1], [0, 0, 1, 1], [], []>} : vector<16x176xbf16>, vector<176x64xbf16>, vector<16x64xf32> -> vector<16x64xf32>
    %47 = arith.addf %42, %46 : vector<16x64xf32>
    %c25 = arith.constant 25 : index
    %c0_49 = arith.constant 0 : index
    %48 = vector.load %arg0[%c25, %c0_49] : memref<44x176xbf16, #tpu.memory_space<vmem>>, vector<16x176xbf16>
    %c3_50 = arith.constant 3 : index
    %c0_51 = arith.constant 0 : index
    %c0_52 = arith.constant 0 : index
    %49 = vector.load %arg1[%c3_50, %c0_51, %c0_52] : memref<7x176x64xbf16, #tpu.memory_space<vmem>>, vector<1x176x64xbf16>
    %50 = vector.shape_cast %49 : vector<1x176x64xbf16> to vector<176x64xbf16>
    %cst_53 = arith.constant dense<0.000000e+00> : vector<16x64xf32>
    %51 = tpu.matmul %48, %50, %cst_53 {dimension_numbers = #tpu.dot_dimension_numbers<[1], [0], [0], [1], [0, 0, 1, 1], [], []>} : vector<16x176xbf16>, vector<176x64xbf16>, vector<16x64xf32> -> vector<16x64xf32>
    %52 = arith.addf %47, %51 : vector<16x64xf32>
    %c26 = arith.constant 26 : index
    %c0_54 = arith.constant 0 : index
    %53 = vector.load %arg0[%c26, %c0_54] : memref<44x176xbf16, #tpu.memory_space<vmem>>, vector<16x176xbf16>
    %c4_55 = arith.constant 4 : index
    %c0_56 = arith.constant 0 : index
    %c0_57 = arith.constant 0 : index
    %54 = vector.load %arg1[%c4_55, %c0_56, %c0_57] : memref<7x176x64xbf16, #tpu.memory_space<vmem>>, vector<1x176x64xbf16>
    %55 = vector.shape_cast %54 : vector<1x176x64xbf16> to vector<176x64xbf16>
    %cst_58 = arith.constant dense<0.000000e+00> : vector<16x64xf32>
    %56 = tpu.matmul %53, %55, %cst_58 {dimension_numbers = #tpu.dot_dimension_numbers<[1], [0], [0], [1], [0, 0, 1, 1], [], []>} : vector<16x176xbf16>, vector<176x64xbf16>, vector<16x64xf32> -> vector<16x64xf32>
    %57 = arith.addf %52, %56 : vector<16x64xf32>
    %c27 = arith.constant 27 : index
    %c0_59 = arith.constant 0 : index
    %58 = vector.load %arg0[%c27, %c0_59] : memref<44x176xbf16, #tpu.memory_space<vmem>>, vector<16x176xbf16>
    %c5_60 = arith.constant 5 : index
    %c0_61 = arith.constant 0 : index
    %c0_62 = arith.constant 0 : index
    %59 = vector.load %arg1[%c5_60, %c0_61, %c0_62] : memref<7x176x64xbf16, #tpu.memory_space<vmem>>, vector<1x176x64xbf16>
    %60 = vector.shape_cast %59 : vector<1x176x64xbf16> to vector<176x64xbf16>
    %cst_63 = arith.constant dense<0.000000e+00> : vector<16x64xf32>
    %61 = tpu.matmul %58, %60, %cst_63 {dimension_numbers = #tpu.dot_dimension_numbers<[1], [0], [0], [1], [0, 0, 1, 1], [], []>} : vector<16x176xbf16>, vector<176x64xbf16>, vector<16x64xf32> -> vector<16x64xf32>
    %62 = arith.addf %57, %61 : vector<16x64xf32>
    %c28 = arith.constant 28 : index
    %c0_64 = arith.constant 0 : index
    %63 = vector.load %arg0[%c28, %c0_64] : memref<44x176xbf16, #tpu.memory_space<vmem>>, vector<16x176xbf16>
    %c6_65 = arith.constant 6 : index
    %c0_66 = arith.constant 0 : index
    %c0_67 = arith.constant 0 : index
    %64 = vector.load %arg1[%c6_65, %c0_66, %c0_67] : memref<7x176x64xbf16, #tpu.memory_space<vmem>>, vector<1x176x64xbf16>
    %65 = vector.shape_cast %64 : vector<1x176x64xbf16> to vector<176x64xbf16>
    %cst_68 = arith.constant dense<0.000000e+00> : vector<16x64xf32>
    %66 = tpu.matmul %63, %65, %cst_68 {dimension_numbers = #tpu.dot_dimension_numbers<[1], [0], [0], [1], [0, 0, 1, 1], [], []>} : vector<16x176xbf16>, vector<176x64xbf16>, vector<16x64xf32> -> vector<16x64xf32>
    %67 = arith.addf %62, %66 : vector<16x64xf32>
    %c0_69 = arith.constant 0 : index
    %c0_70 = arith.constant 0 : index
    %68 = vector.load %arg2[%c0_69, %c0_70] : memref<1x64xf32, #tpu.memory_space<vmem>>, vector<1x64xf32>
    %69 = vector.broadcast %68 : vector<1x64xf32> to vector<16x64xf32>
    %70 = arith.addf %33, %69 : vector<16x64xf32>
    %71 = math.tanh %70 : vector<16x64xf32>
    %c0_71 = arith.constant 0 : index
    %c0_72 = arith.constant 0 : index
    %72 = vector.load %arg3[%c0_71, %c0_72] : memref<32x64xf32, #tpu.memory_space<vmem>>, vector<16x64xf32>
    tpu.vector_store %arg3[%c0_71, %c0_72], %71 {strides = array<i32>} : memref<32x64xf32, #tpu.memory_space<vmem>>, vector<16x64xf32>,
    %73 = vector.broadcast %68 : vector<1x64xf32> to vector<16x64xf32>
    %74 = arith.addf %67, %73 : vector<16x64xf32>
    %75 = math.tanh %74 : vector<16x64xf32>
    %c16 = arith.constant 16 : index
    %c0_73 = arith.constant 0 : index
    %76 = vector.load %arg3[%c16, %c0_73] : memref<32x64xf32, #tpu.memory_space<vmem>>, vector<16x64xf32>
    tpu.vector_store %arg3[%c16, %c0_73], %75 {strides = array<i32>} : memref<32x64xf32, #tpu.memory_space<vmem>>, vector<16x64xf32>,
    return
  }
}

</mosaic_0001>

<bundles_post_ra>
// kernel: resnet_generator_forward.10
= control target key start
LH: loop header
LB: loop body
LE: loop exit
PB: predicated region body
PF: predicated region fallthrough
CT: control target
= control target key end

     0   :  { %vm108_vm0 = vcmask 1043456   ;;  %vm58_vm1 = vsmask.f32 7424  ;;  %vm194_vm2 = vcmask 1046528   ;;  %vm104_vm3 = vcmask 719872   ;;  %s1805_s1 = inlined_call_operand.vmem [shape: bf16[7,88,128], index: 1, kind: input, shape index: {}]   ;;  %s1806_s0 = inlined_call_operand.vmem [shape: bf16[44,88], index: 0, kind: input, shape index: {}]   ;;  %s1807_s2 = inlined_call_operand.vmem [shape: f32[128,8], index: 2, kind: input, shape index: {}]   ;;  %s1808_s3 = inlined_call_operand.vmem [shape: f32[8,128], index: 3, kind: input, shape index: {}]   ;;  %s1809_s4 = inlined_call_operand.vmem [shape: f32[1,8], index: 4, kind: input, shape index: {}]   ;;  %s1810_s5 = inlined_call_operand.vmem [shape: f32[1,8], index: 5, kind: input, shape index: {}]   ;;  %s1811_s6 = inlined_call_operand.vmem [shape: bf16[32,128], index: 6, kind: output, shape index: {}]  }
   0x1   :  { %v1000_v0 = vld [vmem:[%s1805_s1 + $0x54] sm:$0xf]  ;;  %v36_v1 = vld [vmem:[%s1805_s1 + $0x28] sm:$0xf]  ;;  %v1053_v2 = vld [vmem:[%s1805_s1 + $0x80] sm:$0xf] }
   0x2   :  { %v92_v3 = vunpack.c.l.b16 %v1000_v0  ;;  %v147_v4 = vunpack.c.l.b16 %v36_v1  ;;  %v219_v5 = vunpack.c.l.b16 %v1053_v2  ;;  %v1085_v6 = vld [vmem:[%s1805_s1 + $0xac] sm:$0xf]  ;;  %v1338_v17 = vld [vmem:[%s1805_s1 + $0x20] sm:$0xff]  ;;  %v1345_v18 = vld [vmem:[%s1805_s1 + $0x78] sm:$0xff]  ;;  %vm269_vm4 = vsmask.f32 6400 }
   0x3   :  { %v308_v7 = vunpack.c.l.b16 %v1085_v6  ;;  %v1333_v16 = vld [vmem:[%s1805_s1 + $0x4c] sm:$0xff]  ;;  %v1350_v19 = vld [vmem:[%s1805_s1 + $0xa4] sm:$0xff]  ;;  %v1360_v21 = vld [vmem:[%s1805_s1 + $0x18] sm:$0xff]  ;;  %vm358_vm5 = vcmask 1045504   ;;  %vm522_vm6 = vcmask 1044480   ;;  %vm917_vm12 = vcmask 64512  }
   0x4   :  { %v98_v8 = vpack.c.b16 %v92_v3, %v92_v3  ;;  %v153_v9 = vpack.c.b16 %v147_v4, %v147_v4  ;;  %v225_v10 = vpack.c.b16 %v219_v5, %v219_v5  ;;  %v1355_v20 = vld [vmem:[%s1805_s1 + $0x44] sm:$0xff]  ;;  %v178_v24 = vld [vmem:[%s1806_s0] sm:$0xe]  ;;  %v1380_v25 = vld [vmem:[%s1805_s1 + $0x70] sm:$0xff]  ;;  %vm433_vm7 = vsmask.f32 5376 }
   0x5   :  { %v314_v11 = vpack.c.b16 %v308_v7, %v308_v7  ;;  %v1367_v22 = vld [vmem:[%s1806_s0] sm:$0xff]   ;;  %v37_v23 = vld [vmem:[%s1806_s0 + $0x8] sm:$0x1]  ;;  %v192_v30 = vunpack.c.l.b16 %v178_v24  ;;  %v1117_v31 = vld [vmem:[%s1805_s1 + $0xd8] sm:$0xf] }
   0x6   :  { %v1317_v12 = vsel %vm108_vm0, %v98_v8, 0  ;;  %v1320_v13 = vsel %vm108_vm0, %v153_v9, 0  ;;  %v1323_v14 = vsel %vm108_vm0, %v225_v10, 0  ;;  %v1385_v26 = vld [vmem:[%s1805_s1 + $0x9c] sm:$0xff]  ;;  %v1388_v27 = vunpack.c.h.b16 %v1367_v22  ;;  %v253_v29 = vld [vmem:[%s1806_s0 + $0x8] sm:$0x3] }
   0x7   :  { %114 = vmatpush.bf16.msra.mxu0 %v1317_v12  ;;  %166 = vmatpush.bf16.msra.mxu1 %v1320_v13  ;;  %v1328_v15 = vsel %vm108_vm0, %v314_v11, 0  ;;  %v55_v28 = vunpack.c.l.b16 %v37_v23  ;;  %v1149_v32 = vld [vmem:[%s1805_s1 + $0x104] sm:$0xf]  ;;  %v62_v34 = vshll.u32 %v1367_v22, 16  ;;  %v267_v35 = vunpack.c.l.b16 %v253_v29  ;;  %v1407_v36 = vld [vmem:[%s1805_s1 + $0x3c] sm:$0xff]  ;;  %v1412_v37 = vld [vmem:[%s1805_s1 + $0x10] sm:$0xff] }
   0x8   :  { %239 = vmatpush.bf16.msra.mxu2 %v1323_v14  ;;  %328 = vmatpush.bf16.msra.mxu3 %v1328_v15  ;;  %v1181_v38 = vld [vmem:[%s1805_s1 + $0x130] sm:$0xf]  ;;  %v193_v39 = vpack.c.b16 %v1388_v27, %v192_v30  ;;  %v1423_v40 = vld [vmem:[%s1805_s1 + $0x68] sm:$0xff]  ;;  %v1428_v41 = vld [vmem:[%s1805_s1 + $0x94] sm:$0xff]  ;;  %v383_v43 = vunpack.c.l.b16 %v1117_v31  ;;  %v472_v44 = vunpack.c.l.b16 %v1149_v32  ;;  %v60_v46 = vshrl.u32 %v1367_v22, 16 }
   0x9   :  { %v1399_v33 = vpack.c.b16 %v55_v28, %v55_v28  ;;  %v1430_v42 = vpack.c.b16 %v267_v35, %v267_v35  ;;  %v547_v45 = vunpack.c.l.b16 %v1181_v38  ;;  %v64_v47 = vrot.slane %v62_v34, 1  ;;  %v1439_v49 = vld [vmem:[%s1805_s1 + $0x34] sm:$0xff]  ;;  %v1444_v50 = vld [vmem:[%s1805_s1 + $0x8] sm:$0xff]  ;;  %v1453_v55 = vld [vmem:[%s1805_s1 + $0x60] sm:$0xff] }
   0xa   :  { %v271_v51 = vshrl.u32 %v193_v39, 16  ;;  %v274_v52 = vshll.u32 %v193_v39, 16  ;;  %v1458_v56 = vld [vmem:[%s1805_s1 + $0x8c] sm:$0xff]  ;;  %v389_v57 = vpack.c.b16 %v383_v43, %v383_v43  ;;  %v478_v58 = vpack.c.b16 %v472_v44, %v472_v44  ;;  %v1470_v63 = vld [vmem:[%s1805_s1] sm:$0xff]  ;;  %v1477_v4 = vld [vmem:[%s1805_s1 + $0x58] sm:$0xff] }
   0xb   :  { %115 = vmatpush.bf16.msra.mxu0 %v1333_v16  ;;  %167 = vmatpush.bf16.msra.mxu1 %v1338_v17  ;;  %v67_v48 = vshll.u32 %v1399_v33, 16  ;;  %v279_v53 = vshrl.u32 %v1430_v42, 16  ;;  %v282_v54 = vshll.u32 %v1430_v42, 16  ;;  %v553_v59 = vpack.c.b16 %v547_v45, %v547_v45  ;;  %v1465_v62 = vld [vmem:[%s1805_s1 + $0x2c] sm:$0xff]  ;;  %v1492_v10 = vld [vmem:[%s1805_s1 + $0x84] sm:$0xff]  ;;  %v1513_v31 = vld [vmem:[%s1805_s1 + $0xfc] sm:$0xff] }
   0xc   :  { %240 = vmatpush.bf16.msra.mxu2 %v1345_v18  ;;  %329 = vmatpush.bf16.msra.mxu3 %v1350_v19  ;;  %v65_v60 = vor.u32 %v64_v47, %v60_v46  ;;  %v273_v0 = vrot.slane %v271_v51, 1  ;;  %v276_v1 = vrot.slane %v274_v52, 2  ;;  %v195_v5 = vrot.slane %v193_v39, 1  ;;  %v342_v28 = vld [vmem:[%s1806_s0] sm:$0xc]  ;;  %v1508_v30 = vld [vmem:[%s1805_s1 + $0xd0] sm:$0xff] }
   0xd   :  { %v69_v61 = vrot.slane %v67_v48, 1  ;;  %v281_v2 = vrot.slane %v279_v53, 1  ;;  %v284_v3 = vrot.slane %v282_v54, 2  ;;  %v196_v6 = vrot.slane %v1399_v33, 1  ;;  %v417_v29 = vld [vmem:[%s1806_s0 + $0x8] sm:$0x7] }
   0xe   :  { %v1481_v7 = vsel %vm108_vm0, %v389_v57, 0  ;;  %v1484_v8 = vsel %vm108_vm0, %v478_v58, 0  ;;  %v1487_v9 = vsel %vm108_vm0, %v553_v59, 0  ;;  %v277_v23 = vor.u32 %v276_v1, %v273_v0  ;;  %v1521_v33 = vld [vmem:[%s1805_s1 + $0x128] sm:$0xff]  ;;  %v1558_v47 = vld [vmem:[%s1805_s1 + $0x120] sm:$0xff]  ;;  %v1591_v1 = vld [vmem:[%s1805_s1 + $0xb8] sm:$0xff] }
   0xf   :  { %116 = vmatpush.bf16.msra.mxu0 %v1355_v20  ;;  %168 = vmatpush.bf16.msra.mxu1 %v1360_v21  ;;  %v70_v11 = vsel %vm58_vm1, %v65_v60, %v69_v61  ;;  %v285_v24 = vor.u32 %v284_v3, %v281_v2  ;;  %v197_v32 = vsel %vm194_vm2, %v195_v5, %v196_v6  ;;  %v1266_v34 = vld [vmem:[%s1806_s0 + $0x8] sm:$0x8]  ;;  %v1529_v35 = vld [vmem:[%s1806_s0 + $0xc] sm:$0xff]   ;;  %v356_v39 = vunpack.c.l.b16 %v342_v28  ;;  %v506_v51 = vld [vmem:[%s1806_s0] sm:$0x8] }
  0x10   :  { %241 = vmatpush.bf16.msra.mxu2 %v1380_v25  ;;  %330 = vmatpush.bf16.msra.mxu3 %v1385_v26  ;;  %v1268_v38 = vld [vmem:[%s1806_s0 + $0x8] sm:$0xf0]   ;;  %v431_v43 = vunpack.c.l.b16 %v417_v29  ;;  %v606_v46 = vunpack.c.h.b16 %v1529_v35  ;;  %v1570_v52 = vld [vmem:[%s1805_s1 + $0xc0] sm:$0xff]  ;;  %v520_v58 = vunpack.c.l.b16 %v506_v51  ;;  %v360_v51 = vrot.slane %v1430_v42, 2 }
  0x11   :  { %v286_v44 = vsel %vm269_vm4, %v277_v23, %v285_v24  ;;  %v1543_v45 = vld [vmem:[%s1805_s1 + $0xc8] sm:$0xff]  ;;  %v1572_v53 = vor.u32 %v1268_v38, %v1266_v34  ;;  %v1613_v34 = vld [vmem:[%s1805_s1 + $0xb0] sm:$0xff]  ;;  %vm609_vm8 = vsmask.f32 4352 }
  0x12   :  { %v432_v48 = vpack.c.b16 %v431_v43, %v431_v43  ;;  %v608_v54 = vpack.c.b16 %v606_v46, %v606_v46  ;;  %v1579_v57 = vld [vmem:[%s1805_s1 + $0xec] sm:$0xff]  ;;  %v521_v23 = vpack.c.b16 %v1388_v27, %v520_v58 }
  0x13   :  { %117 = vmatpush.bf16.msra.mxu0 %v1407_v36  ;;  %169 = vmatpush.bf16.msra.mxu1 %v1412_v37  ;;  %v611_v2 = vshrl.u32 %v1572_v53, 16  ;;  %v614_v3 = vshll.u32 %v1572_v53, 16 }
  0x14   :  { %242 = vmatpush.bf16.msra.mxu2 %v1423_v40  ;;  %331 = vmatpush.bf16.msra.mxu3 %v1428_v41  ;;  %v443_v61 = vshrl.u32 %v432_v48, 16  ;;  %v446_v0 = vshll.u32 %v432_v48, 16  ;;  %v619_v5 = vshrl.u32 %v608_v54, 16  ;;  %v622_v6 = vshll.u32 %v608_v54, 16 }
  0x15   :  { %v613_v38 = vrot.slane %v611_v2, 3  ;;  %v523_v54 = vrot.slane %v521_v23, 3  ;;  %v524_v58 = vrot.slane %v432_v48, 3  ;;  %v1633_v2 = vld [vmem:[%s1806_s0 + $0xc] sm:$0xff]  }
  0x16   :  { %v445_v29 = vrot.slane %v443_v61, 2  ;;  %v621_v43 = vrot.slane %v619_v5, 3  ;;  %v694_v48 = vunpack.c.h.b16 %v1633_v2  ;;  %v689_v5 = vld [vmem:[%s1806_s0 + $0x14] sm:$0x1] }
  0x17   :  { %118 = vmatpush.bf16.msra.mxu0 %v1439_v49  ;;  %170 = vmatpush.bf16.msra.mxu1 %v1444_v50 }
  0x18   :  { %243 = vmatpush.bf16.msra.mxu2 %v1453_v55  ;;  %332 = vmatpush.bf16.msra.mxu3 %v1458_v56 }
  0x1b   :  { %119 = vmatpush.bf16.msra.mxu0 %v1465_v62  ;;  %171 = vmatpush.bf16.msra.mxu1 %v1470_v63 }
  0x1c   :  { %244 = vmatpush.bf16.msra.mxu2 %v1477_v4  ;;  %333 = vmatpush.bf16.msra.mxu3 %v1492_v10 }
  0x1e   :  { %1021 = vmatmul.msk.bf16.vlgmr.msra.gmra.mxu0 %vm104_vm3, %v70_v11  ;;  %1042 = vmatmul.msk.bf16.vlgmr.msra.gmra.mxu1 %vm104_vm3, %v1367_v22  ;;  %v357_v22 = vpack.c.b16 %v1388_v27, %v356_v39  ;;  %v1605_v11 = vld [vmem:[%s1805_s1 + $0x110] sm:$0xff]  ;;  %v616_v39 = vrot.slane %v614_v3, 4  ;;  %v1620_v27 = vld [vmem:[%s1805_s1 + $0xdc] sm:$0xff] }
  0x1f   :  { %403 = vmatpush.bf16.msrb.mxu0 %v1481_v7  ;;  %492 = vmatpush.bf16.msrb.mxu1 %v1484_v8 }
  0x20   :  { %567 = vmatpush.bf16.msrb.mxu2 %v1487_v9  ;;  %632 = vmatpush.bf16.msrb.mxu3 %v1317_v12  ;;  %v1553_v12 = vld [vmem:[%s1805_s1 + $0xf4] sm:$0xff]  ;;  %v435_v59 = vshrl.u32 %v357_v22, 16  ;;  %v438_v60 = vshll.u32 %v357_v22, 16  ;;  %v359_v46 = vrot.slane %v357_v22, 2  ;;  %v617_v61 = vor.u32 %v616_v39, %v613_v38 }
  0x21   :  { %1074 = vmatmul.msk.bf16.vlgmr.msra.gmra.mxu2 %vm104_vm3, %v197_v32  ;;  %1106 = vmatmul.msk.bf16.vlgmr.msra.gmra.mxu3 %vm104_vm3, %v286_v44  ;;  %v448_v32 = vrot.slane %v446_v0, 3  ;;  %v624_v44 = vrot.slane %v622_v6, 4  ;;  %v525_v22 = vsel %vm522_vm6, %v523_v54, %v524_v58  ;;  %v755_v6 = vld [vmem:[%s1806_s0 + $0x14] sm:$0x3] }
  0x22   :  { %v437_v24 = vrot.slane %v435_v59, 2  ;;  %v440_v28 = vrot.slane %v438_v60, 3  ;;  %v361_v42 = vsel %vm358_vm5, %v359_v46, %v360_v51  ;;  %v853_v58 = vld [vmem:[%s1807_s2 + $0x70] sm:$0xff] }
  0x23   :  { %404 = vmatpush.bf16.msrb.mxu0 %v1508_v30  ;;  %493 = vmatpush.bf16.msrb.mxu1 %v1513_v31  ;;  %v449_v60 = vor.u32 %v448_v32, %v445_v29  ;;  %v625_v0 = vor.u32 %v624_v44, %v621_v43 }
  0x24   :  { %568 = vmatpush.bf16.msrb.mxu2 %v1521_v33  ;;  %633 = vmatpush.bf16.msrb.mxu3 %v1333_v16  ;;  %v1584_v16 = vld [vmem:[%s1805_s1 + $0x118] sm:$0xff]  ;;  %v441_v59 = vor.u32 %v440_v28, %v437_v24 }
  0x25   :  { %v626_v3 = vsel %vm609_vm8, %v617_v61, %v625_v0  ;;  %v851_v61 = vld [vmem:[%s1807_s2 + $0x60] sm:$0xff]  ;;  %v850_v0 = vld [vmem:[%s1807_s2 + $0x58] sm:$0xff] }
  0x27   :  { %405 = vmatpush.bf16.msrb.mxu0 %v1543_v45  ;;  %494 = vmatpush.bf16.msrb.mxu1 %v1553_v12 }
  0x28   :  { %569 = vmatpush.bf16.msrb.mxu2 %v1558_v47  ;;  %634 = vmatpush.bf16.msrb.mxu3 %v1355_v20  ;;  %v1600_v20 = vld [vmem:[%s1805_s1 + $0xe4] sm:$0xff] }
  0x2b   :  { %406 = vmatpush.bf16.msrb.mxu0 %v1570_v52  ;;  %495 = vmatpush.bf16.msrb.mxu1 %v1579_v57 }
  0x2c   :  { %570 = vmatpush.bf16.msrb.mxu2 %v1584_v16  ;;  %635 = vmatpush.bf16.msrb.mxu3 %v1407_v36  ;;  %v1625_v36 = vld [vmem:[%s1805_s1 + $0x108] sm:$0xff] }
  0x2f   :  { %407 = vmatpush.bf16.msrb.mxu0 %v1591_v1  ;;  %496 = vmatpush.bf16.msrb.mxu1 %v1600_v20 }
  0x30   :  { %571 = vmatpush.bf16.msrb.mxu2 %v1605_v11  ;;  %636 = vmatpush.bf16.msrb.mxu3 %v1439_v49  ;;  %v450_v49 = vsel %vm433_vm7, %v441_v59, %v449_v60  ;;  %v852_v59 = vld [vmem:[%s1807_s2 + $0x68] sm:$0xff] }
  0x33   :  { %408 = vmatpush.bf16.msrb.mxu0 %v1613_v34  ;;  %497 = vmatpush.bf16.msrb.mxu1 %v1620_v27 }
  0x34   :  { %572 = vmatpush.bf16.msrb.mxu2 %v1625_v36  ;;  %637 = vmatpush.bf16.msrb.mxu3 %v1465_v62 }
  0x36   :  { %1138 = vmatmul.msk.bf16.vlgmr.msrb.gmra.mxu0 %vm104_vm3, %v361_v42  ;;  %1170 = vmatmul.msk.bf16.vlgmr.msrb.gmra.mxu1 %vm104_vm3, %v450_v49  ;;  %v849_v49 = vld [vmem:[%s1807_s2 + $0x50] sm:$0xff] }
  0x37   :  { %655 = vmatpush.bf16.msra.mxu0 %v1320_v13  ;;  %673 = vmatpush.bf16.msra.mxu1 %v1323_v14  ;;  %v599_v13 = vld [vmem:[%s1806_s0 + $0x10] sm:$0x7]  ;;  %v695_v14 = vunpack.c.l.b16 %v689_v5 }
  0x38   :  { %715 = vmatpush.bf16.msra.mxu2 %v1328_v15  ;;  %741 = vmatpush.bf16.msra.mxu3 %v1481_v7  ;;  %v645_v15 = vunpack.c.l.b16 %v599_v13  ;;  %v847_v13 = vld [vmem:[%s1807_s2 + $0x40] sm:$0xff] }
  0x39   :  { %1202 = vmatmul.msk.bf16.vlgmr.msrb.gmra.mxu2 %vm104_vm3, %v525_v22  ;;  %1203 = vmatmul.msk.bf16.vlgmr.msrb.gmra.mxu3 %vm104_vm3, %v626_v3 }
  0x3b   :  { %656 = vmatpush.bf16.msra.mxu0 %v1338_v17  ;;  %674 = vmatpush.bf16.msra.mxu1 %v1345_v18  ;;  %v729_v17 = vld [vmem:[%s1806_s0 + $0xc] sm:$0xe]  ;;  %v697_v18 = vpack.c.b16 %v695_v14, %v695_v14 }
  0x3c   :  { %716 = vmatpush.bf16.msra.mxu2 %v1350_v19  ;;  %742 = vmatpush.bf16.msra.mxu3 %v1508_v30  ;;  %v701_v19 = vshll.u32 %v1633_v2, 16  ;;  %v731_v62 = vunpack.c.l.b16 %v729_v17  ;;  %v846_v17 = vld [vmem:[%s1807_s2 + $0x38] sm:$0xff] }
  0x3d   :  { %v706_v30 = vshll.u32 %v697_v18, 16  ;;  %v734_v23 = vrot.slane %v697_v18, 1 }
  0x3e   :  { %v703_v7 = vrot.slane %v701_v19, 1 }
  0x3f   :  { %657 = vmatpush.bf16.msra.mxu0 %v1360_v21  ;;  %675 = vmatpush.bf16.msra.mxu1 %v1380_v25  ;;  %v646_v21 = vpack.c.b16 %v645_v15, %v645_v15  ;;  %v699_v25 = vshrl.u32 %v1633_v2, 16 }
  0x40   :  { %717 = vmatpush.bf16.msra.mxu2 %v1385_v26  ;;  %743 = vmatpush.bf16.msra.mxu3 %v1543_v45  ;;  %v732_v26 = vpack.c.b16 %v694_v48, %v731_v62 }
  0x41   :  { %v648_v45 = vrot.slane %v646_v21, 3 }
  0x43   :  { %658 = vmatpush.bf16.msra.mxu0 %v1412_v37  ;;  %676 = vmatpush.bf16.msra.mxu1 %v1423_v40  ;;  %v647_v37 = vrot.slane %v1572_v53, 3  ;;  %v704_v40 = vor.u32 %v703_v7, %v699_v25  ;;  %v845_v25 = vld [vmem:[%s1807_s2 + $0x30] sm:$0xff]  ;;  %v844_v7 = vld [vmem:[%s1807_s2 + $0x28] sm:$0xff] }
  0x44   :  { %718 = vmatpush.bf16.msra.mxu2 %v1428_v41  ;;  %744 = vmatpush.bf16.msra.mxu3 %v1570_v52  ;;  %v708_v41 = vrot.slane %v706_v30, 1  ;;  %v733_v52 = vrot.slane %v732_v26, 1 }
  0x46   :  { %v735_v53 = vsel %vm194_vm2, %v733_v52, %v734_v23  ;;  %v841_v23 = vld [vmem:[%s1807_s2 + $0x10] sm:$0xff] }
  0x47   :  { %659 = vmatpush.bf16.msra.mxu0 %v1444_v50  ;;  %677 = vmatpush.bf16.msra.mxu1 %v1453_v55  ;;  %v649_v50 = vsel %vm522_vm6, %v647_v37, %v648_v45  ;;  %v709_v55 = vsel %vm58_vm1, %v704_v40, %v708_v41  ;;  %v843_v37 = vld [vmem:[%s1807_s2 + $0x20] sm:$0xff]  ;;  %v842_v41 = vld [vmem:[%s1807_s2 + $0x18] sm:$0xff] }
  0x48   :  { %719 = vmatpush.bf16.msra.mxu2 %v1458_v56  ;;  %745 = vmatpush.bf16.msra.mxu3 %v1591_v1  ;;  %v757_v56 = vunpack.c.l.b16 %v755_v6 }
  0x4b   :  { %660 = vmatpush.bf16.msra.mxu0 %v1470_v63  ;;  %678 = vmatpush.bf16.msra.mxu1 %v1477_v4  ;;  %v758_v63 = vpack.c.b16 %v757_v56, %v757_v56  ;;  %v795_v4 = vld [vmem:[%s1806_s0 + $0xc] sm:$0xc] }
  0x4c   :  { %720 = vmatpush.bf16.msra.mxu2 %v1492_v10  ;;  %746 = vmatpush.bf16.msra.mxu3 %v1613_v34 }
  0x4d   :  { %v768_v10 = vshrl.u32 %v758_v63, 16  ;;  %v771_v1 = vshll.u32 %v758_v63, 16 }
  0x4e   :  { %1204 = vmatmul.msk.bf16.vlgmr.msra.gmra.mxu0 %vm104_vm3, %v649_v50  ;;  %1205 = vmatmul.msk.bf16.vlgmr.msra.gmra.mxu1 %vm104_vm3, %v1529_v35  ;;  %v797_v35 = vunpack.c.l.b16 %v795_v4  ;;  %v839_v4 = vld [vmem:[%s1807_s2] sm:$0xff] }
  0x4f   :  { %781 = vmatpush.bf16.msrb.mxu0 %v1484_v8  ;;  %807 = vmatpush.bf16.msrb.mxu1 %v1487_v9  ;;  %v760_v8 = vshrl.u32 %v732_v26, 16  ;;  %v763_v9 = vshll.u32 %v732_v26, 16  ;;  %v770_v28 = vrot.slane %v768_v10, 1  ;;  %v773_v29 = vrot.slane %v771_v1, 2 }
  0x50   :  { %1206 = vmatmul.msk.bf16.vlgmr.msra.gmra.mxu2 %vm104_vm3, %v709_v55  ;;  %1207 = vmatmul.msk.bf16.vlgmr.msra.gmra.mxu3 %vm104_vm3, %v735_v53  ;;  %v840_v55 = vld [vmem:[%s1807_s2 + $0x8] sm:$0xff] }
  0x51   :  { %v765_v24 = vrot.slane %v763_v9, 2  ;;  %v774_v32 = vor.u32 %v773_v29, %v770_v28 }
  0x53   :  { %782 = vmatpush.bf16.msrb.mxu0 %v1513_v31  ;;  %808 = vmatpush.bf16.msrb.mxu1 %v1521_v33  ;;  %v762_v31 = vrot.slane %v760_v8, 1  ;;  %v798_v33 = vpack.c.b16 %v694_v48, %v797_v35  ;;  %v848_v48 = vld [vmem:[%s1807_s2 + $0x48] sm:$0xff] }
  0x55   :  { %v799_v34 = vrot.slane %v798_v33, 2 }
  0x57   :  { %783 = vmatpush.bf16.msrb.mxu0 %v1553_v12  ;;  %809 = vmatpush.bf16.msrb.mxu1 %v1558_v47  ;;  %v766_v12 = vor.u32 %v765_v24, %v762_v31  ;;  %v800_v47 = vrot.slane %v758_v63, 2 }
  0x59   :  { %v801_v38 = vsel %vm358_vm5, %v799_v34, %v800_v47 }
  0x5b   :  { %784 = vmatpush.bf16.msrb.mxu0 %v1579_v57  ;;  %810 = vmatpush.bf16.msrb.mxu1 %v1584_v16  ;;  %v775_v57 = vsel %vm269_vm4, %v766_v12, %v774_v32 }
  0x5f   :  { %785 = vmatpush.bf16.msrb.mxu0 %v1600_v20  ;;  %811 = vmatpush.bf16.msrb.mxu1 %v1605_v11 }
  0x63   :  { %786 = vmatpush.bf16.msrb.mxu0 %v1620_v27  ;;  %812 = vmatpush.bf16.msrb.mxu1 %v1625_v36  ;;  %v854_v27 = vld [vmem:[%s1807_s2 + $0x78] sm:$0xff] }
  0x64   :  { %855 = vmatpush.msrb.mxu2 %v854_v27  ;;  %875 = vmatpush.msrb.mxu3 %v854_v27 }
  0x66   :  { %1208 = vmatmul.msk.bf16.vlgmr.msrb.gmra.mxu0 %vm104_vm3, %v775_v57  ;;  %1209 = vmatmul.msk.bf16.vlgmr.msrb.gmra.mxu1 %vm104_vm3, %v801_v38 }
  0x67   :  { %856 = vmatpush.msrb.mxu2 %v853_v58  ;;  %876 = vmatpush.msrb.mxu3 %v853_v58 }
  0x69   :  { %857 = vmatpush.msrb.mxu2 %v852_v59  ;;  %877 = vmatpush.msrb.mxu3 %v852_v59 }
  0x6b   :  { %858 = vmatpush.msrb.mxu2 %v851_v61  ;;  %878 = vmatpush.msrb.mxu3 %v851_v61 }
  0x6d   :  { %859 = vmatpush.msrb.mxu2 %v850_v0  ;;  %879 = vmatpush.msrb.mxu3 %v850_v0 }
  0x6f   :  { %860 = vmatpush.msrb.mxu2 %v849_v49  ;;  %880 = vmatpush.msrb.mxu3 %v849_v49 }
  0x71   :  { %861 = vmatpush.msrb.mxu2 %v848_v48  ;;  %881 = vmatpush.msrb.mxu3 %v848_v48 }
  0x73   :  { %862 = vmatpush.msrb.mxu2 %v847_v13  ;;  %882 = vmatpush.msrb.mxu3 %v847_v13 }
  0x75   :  { %863 = vmatpush.msrb.mxu2 %v846_v17  ;;  %883 = vmatpush.msrb.mxu3 %v846_v17 }
  0x77   :  { %864 = vmatpush.msrb.mxu2 %v845_v25  ;;  %884 = vmatpush.msrb.mxu3 %v845_v25 }
  0x79   :  { %865 = vmatpush.msrb.mxu2 %v844_v7  ;;  %885 = vmatpush.msrb.mxu3 %v844_v7 }
  0x7b   :  { %866 = vmatpush.msrb.mxu2 %v843_v37  ;;  %886 = vmatpush.msrb.mxu3 %v843_v37 }
  0x7d   :  { %867 = vmatpush.msrb.mxu2 %v842_v41  ;;  %887 = vmatpush.msrb.mxu3 %v842_v41  ;;  %v916_v41 = vld [vmem:[%s1808_s3] sm:$0xff] }
  0x7e   :  { %936 = vmatpush.msra.mxu0 %v916_v41  ;;  %959 = vmatpush.msra.mxu1 %v916_v41 }
  0x7f   :  { %868 = vmatpush.msrb.mxu2 %v841_v23  ;;  %888 = vmatpush.msrb.mxu3 %v841_v23 }
  0x81   :  { %869 = vmatpush.msrb.mxu2 %v840_v55  ;;  %889 = vmatpush.msrb.mxu3 %v840_v55 }
  0x83   :  { %870 = vmatpush.msrb.mxu2 %v839_v4  ;;  %890 = vmatpush.msrb.mxu3 %v839_v4 }
  0x9b   :  { %v121_v16 = vpop.f32.mrf.mxu0  ;;  %v173_v20 = vpop.f32.mrf.mxu1 }
  0x9c   :  { %v174_v3 = vadd.f32 %v173_v20, %v121_v16 }
  0xa3   :  { %v123_v43 = vpop.f32.mrf.mxu0  ;;  %v175_v44 = vpop.f32.mrf.mxu1 }
  0xa4   :  { %v246_v39 = vpop.f32.mrf.mxu2  ;;  %v335_v11 = vpop.f32.mrf.mxu3  ;;  %v176_v5 = vadd.f32 %v175_v44, %v123_v43 }
  0xa5   :  { %v251_v18 = vadd.f32 %v246_v39, %v174_v3 }
  0xa7   :  { %v340_v30 = vadd.f32 %v335_v11, %v251_v18 }
  0xac   :  { %v248_v46 = vpop.f32.mrf.mxu2  ;;  %v337_v36 = vpop.f32.mrf.mxu3 }
  0xad   :  { %v252_v19 = vadd.f32 %v248_v46, %v176_v5 }
  0xaf   :  { %v341_v26 = vadd.f32 %v337_v36, %v252_v19 }
  0xb3   :  { %v410_v51 = vpop.f32.mrf.mxu0  ;;  %v1715_v54 = vpop.f32.mrf.mxu1 }
  0xb4   :  { %v415_v6 = vadd.f32 %v410_v51, %v340_v30 }
  0xb6   :  { %v504_v8 = vadd.f32 %v1715_v54, %v415_v6 }
  0xbb   :  { %v412_v2 = vpop.f32.mrf.mxu0  ;;  %v501_v22 = vpop.f32.mrf.mxu1 }
  0xbc   :  { %v574_v60 = vpop.f32.mrf.mxu2  ;;  %v639_v42 = vpop.f32.mrf.mxu3  ;;  %v416_v45 = vadd.f32 %v412_v2, %v341_v26 }
  0xbd   :  { %v1768_v1 = vadd.f32 %v574_v60, %v504_v8 }
  0xbe   :  { %v505_v56 = vadd.f32 %v501_v22, %v416_v45 }
  0xbf   :  { %v588_v33 = vmul.f32 %v1768_v1, %v1768_v1 }
  0xc4   :  { %v576_v14 = vpop.f32.mrf.mxu2  ;;  %v641_v21 = vpop.f32.mrf.mxu3 }
  0xc5   :  { %v1766_v9 = vadd.f32 %v576_v14, %v505_v56 }
  0xc7   :  { %v589_v31 = vmul.f32 %v1766_v9, %v1766_v9  ;;  %v581_v12 = vadd.f32 %v1766_v9, %v1768_v1 }
  0xc9   :  { %v590_v47 = vadd.f32 %v589_v31, %v588_v33  ;;  %v582_v20 = vrot.slane %v581_v12, 4 }
  0xcb   :  { %v662_v15 = vpop.f32.mrf.mxu0  ;;  %v680_v62 = vpop.f32.mrf.mxu1  ;;  %v591_v43 = vrot.slane %v590_v47, 4  ;;  %v583_v46 = vadd.f32 %v582_v20, %v581_v12  ;;  %v913_v12 = vld [vmem:[%s1810_s5] sm:$0x1] }
  0xcc   :  { %v663_v52 = vadd.f32 %v662_v15, %v639_v42 }
  0xcd   :  { %v592_v36 = vadd.f32 %v591_v43, %v590_v47  ;;  %v584_v59 = vrot.slane %v583_v46, 2 }
  0xce   :  { %v685_v10 = vadd.f32 %v680_v62, %v663_v52 }
  0xcf   :  { %v593_v2 = vrot.slane %v592_v36, 2  ;;  %v585_v49 = vadd.f32 %v584_v59, %v583_v46 }
  0xd1   :  { %v594_v5 = vadd.f32 %v593_v2, %v592_v36  ;;  %v586_v15 = vrot.slane %v585_v49, 1 }
  0xd3   :  { %v722_v40 = vpop.f32.mrf.mxu2  ;;  %v664_v50 = vpop.f32.mrf.mxu0  ;;  %v587_v25 = vadd.f32 %v586_v15, %v585_v49 }
  0xd4   :  { %v682_v53 = vpop.f32.mrf.mxu1  ;;  %v748_v63 = vpop.f32.mrf.mxu3  ;;  %v665_v35 = vadd.f32 %v664_v50, %v641_v21  ;;  %v727_v24 = vadd.f32 %v722_v40, %v685_v10  ;;  %v595_v21 = vrot.slane %v594_v5, 1 }
  0xd6   :  { %v686_v32 = vadd.f32 %v682_v53, %v665_v35  ;;  %v753_v57 = vadd.f32 %v748_v63, %v727_v24  ;;  %v596_v37 = vadd.f32 %v595_v21, %v594_v5 }
  0xdb   :  { %v724_v28 = vpop.f32.mrf.mxu2 }
  0xdc   :  { %v728_v38 = vadd.f32 %v724_v28, %v686_v32  ;;  %v750_v16 = vpop.f32.mrf.mxu3  ;;  %v911_v28 = vld [vmem:[%s1809_s4] sm:$0x1] }
  0xde   :  { %v754_v44 = vadd.f32 %v750_v16, %v728_v38 }
  0xe3   :  { %v788_v29 = vpop.f32.mrf.mxu0  ;;  %v814_v34 = vpop.f32.mrf.mxu1 }
  0xe4   :  { %v793_v39 = vadd.f32 %v788_v29, %v753_v57 }
  0xe6   :  { %v1776_v51 = vadd.f32 %v814_v34, %v793_v39 }
  0xe8   :  { %v828_v60 = vmul.f32 %v1776_v51, %v1776_v51 }
  0xeb   :  { %v790_v11 = vpop.f32.mrf.mxu0  ;;  %v816_v27 = vpop.f32.mrf.mxu1 }
  0xec   :  { %v794_v54 = vadd.f32 %v790_v11, %v754_v44 }
  0xee   :  { %v1778_v58 = vadd.f32 %v816_v27, %v794_v54 }
  0xf0   :  { %v821_v61 = vadd.f32 %v1778_v58, %v1776_v51  ;;  %v829_v0 = vmul.f32 %v1778_v58, %v1778_v58 }
  0xf2   :  { %v822_v42 = vrot.slane %v821_v61, 4  ;;  %v830_v22 = vadd.f32 %v829_v0, %v828_v60 }
  0xf4   :  { %v823_v48 = vadd.f32 %v822_v42, %v821_v61  ;;  %v831_v3 = vrot.slane %v830_v22, 4 }
  0xf6   :  { %v824_v13 = vrot.slane %v823_v48, 2  ;;  %v832_v14 = vadd.f32 %v831_v3, %v830_v22 }
  0xf8   :  { %v825_v17 = vadd.f32 %v824_v13, %v823_v48  ;;  %v833_v18 = vrot.slane %v832_v14, 2 }
  0xfa   :  { %v826_v19 = vrot.slane %v825_v17, 1  ;;  %v834_v62 = vadd.f32 %v833_v18, %v832_v14 }
  0xfc   :  { %v827_v7 = vadd.f32 %v826_v19, %v825_v17  ;;  %v835_v30 = vrot.slane %v834_v62, 1 }
  0xfe   :  { %v837_v26 = vadd.f32 %v827_v7, %v587_v25  ;;  %v836_v45 = vadd.f32 %v835_v30, %v834_v62 }
 0x100   :  { %871 = vmatmul.f32.vlgmr.msrb.gmra.mxu2 %v837_v26  ;;  %v838_v40 = vadd.f32 %v836_v45, %v596_v37 }
 0x102   :  { %891 = vmatmul.f32.vlgmr.msrb.gmra.mxu3 %v838_v40 }
 0x183   :  { %v872_v6 = vpop.f32.mrf.mxu2 }
 0x184   :  { %v895_v52 = vmul.f32 0.001953125, %v872_v6 }
 0x185   :  { %v892_v23 = vpop.f32.mrf.mxu3 }
 0x186   :  { %v897_v50 = vmul.f32 %v895_v52, %v895_v52  ;;  %v896_v55 = vmul.f32 0.001953125, %v892_v23 }
 0x188   :  { %v898_v56 = vsub.f32 %v896_v55, %v897_v50 }
 0x18a   :  { %v899_v53 = vmax.f32 %v898_v56, 0.0 }
 0x18c   :  { %v900_v63 = vadd.f32 1e-05, %v899_v53 }
 0x18e   :  { %1262 = vrsqrt.f32 %v900_v63  ;;  %vm907_vm10 = vweird.f32 %v900_v63 }
 0x194   :  { %v1263_v4 = vpop.eup %1262 }
 0x195   :  { %v902_v8 = vmul.f32 %v1263_v4, %v900_v63  ;;  %vm908_vm9 = vweird.f32 %v1263_v4 }
 0x196   :  { %vm909_vm11 = vmor %vm907_vm10, %vm908_vm9 }
 0x197   :  { %v903_v10 = vmul.f32 %v1263_v4, %v902_v8 }
 0x199   :  { %v904_v35 = vmul.f32 0.5, %v903_v10 }
 0x19b   :  { %v905_v31 = vsub.f32 1.5, %v904_v35 }
 0x19d   :  { %v906_v24 = vmul.f32 %v1263_v4, %v905_v31 }
 0x19f   :  { %v910_v29 = vsel %vm909_vm11, %v1263_v4, %v906_v24 }
 0x1a0   :  { %v912_v33 = vmul.f32 %v911_v28, %v910_v29 }
 0x1a2   :  { %v914_v32 = vmul.f32 %v912_v33, %v895_v52  ;;  %1210 = vmatmul.msk.f32.vlgmr.msra.gmra.mxu0 %vm917_vm12, %v912_v33 }
 0x1a4   :  { %v915_v34 = vsub.f32 %v913_v12, %v914_v32 }
 0x1a6   :  { %1211 = vmatmul.msk.f32.vlgmr.msra.gmra.mxu1 %vm917_vm12, %v915_v34 }
 0x21f   :  { %v938_v47 = vpop.f32.mrf.mxu0 }
 0x220   :  { %v964_v57 = vperm.slane %v938_v47, 0 }
 0x222   :  { %v965_v38 = vmul.f32 %v964_v57, %v1768_v1  ;;  %v966_v20 = vmul.f32 %v964_v57, %v1766_v9  ;;  %v976_v39 = vmul.f32 %v964_v57, %v1776_v51  ;;  %v977_v43 = vmul.f32 %v964_v57, %v1778_v58 }
 0x223   :  { %v961_v16 = vpop.f32.mrf.mxu1 }
 0x224   :  { %v967_v44 = vperm.slane %v961_v16, 0 }
 0x226   :  { %v968_v11 = vadd.f32 %v967_v44, %v965_v38  ;;  %v969_v46 = vadd.f32 %v967_v44, %v966_v20  ;;  %v978_v54 = vadd.f32 %v976_v39, %v967_v44  ;;  %v979_v27 = vadd.f32 %v977_v43, %v967_v44 }
 0x228   :  { %v970_v36 = vmax.f32 %v968_v11, 0.0  ;;  %v971_v59 = vmax.f32 %v969_v46, 0.0  ;;  %v980_v60 = vmax.f32 %v978_v54, 0.0  ;;  %v981_v61 = vmax.f32 %v979_v27, 0.0 }
 0x22a   :  { %v1254_v0 = vpack.c.bf16 %v971_v59, %v970_v36  ;;  %v1259_v2 = vpack.c.bf16 %v981_v61, %v980_v60 }
 0x22c   :  { %1255 = vst [vmem:[%s1811_s6] sm:$0xff] %v1254_v0  }
 0x22d   :  { %1261 = vst [vmem:[%s1811_s6 + $0x8] sm:$0xff] %v1259_v2  }

// kernel: resnet_generator_forward.11
= control target key start
LH: loop header
LB: loop body
LE: loop exit
PB: predicated region body
PF: predicated region fallthrough
CT: control target
= control target key end

     0   :  { %vm245_vm0 = vcmask 261120   ;;  %vm689_vm4 = vcmask 130048   ;;  %s1387_s1 = inlined_call_operand.vmem [shape: bf16[2,288,128], index: 1, kind: input, shape index: {}]   ;;  %s1388_s0 = inlined_call_operand.vmem [shape: bf16[18,288], index: 0, kind: input, shape index: {}]   ;;  %s1389_s2 = inlined_call_operand.vmem [shape: f32[128,16], index: 2, kind: input, shape index: {}]   ;;  %s1390_s3 = inlined_call_operand.vmem [shape: f32[16,128], index: 3, kind: input, shape index: {}]   ;;  %s1391_s4 = inlined_call_operand.vmem [shape: f32[1,16], index: 4, kind: input, shape index: {}]   ;;  %s1392_s5 = inlined_call_operand.vmem [shape: f32[1,16], index: 5, kind: input, shape index: {}]   ;;  %s1393_s6 = inlined_call_operand.vmem [shape: bf16[16,128], index: 6, kind: output, shape index: {}]  }
   0x1   :  { %v1014_v0 = vld [vmem:[%s1387_s1 + $0xc8] sm:$0xff]  ;;  %v1024_v2 = vld [vmem:[%s1387_s1 + $0x118] sm:$0xff]  ;;  %v1036_v4 = vld [vmem:[%s1387_s1 + $0xc0] sm:$0xff] }
   0x2   :  { %v1019_v1 = vld [vmem:[%s1387_s1 + $0x108] sm:$0xff]  ;;  %v1029_v3 = vld [vmem:[%s1387_s1 + $0x38] sm:$0xff]  ;;  %249 = vmatpush.bf16.msra.mxu0 %v1014_v0  ;;  %v1041_v5 = vld [vmem:[%s1387_s1 + $0x100] sm:$0xff]  ;;  %281 = vmatpush.bf16.msra.mxu2 %v1024_v2 }
   0x3   :  { %262 = vmatpush.bf16.msra.mxu1 %v1019_v1  ;;  %404 = vmatpush.bf16.msra.mxu3 %v1029_v3  ;;  %v1048_v6 = vld [vmem:[%s1387_s1 + $0x110] sm:$0xff]  ;;  %v1058_v8 = vld [vmem:[%s1387_s1 + $0x78] sm:$0xff]  ;;  %v25_v9 = vld [vmem:[%s1388_s0 + $0x8] sm:$0xf] }
   0x4   :  { %v1053_v7 = vld [vmem:[%s1387_s1 + $0x30] sm:$0xff]  ;;  %v1068_v10 = vld [vmem:[%s1387_s1 + $0xb8] sm:$0xff]  ;;  %v1078_v13 = vunpack.c.l.b16 %v25_v9  ;;  %v1085_v14 = vld [vmem:[%s1387_s1 + $0x28] sm:$0xff] }
   0x5   :  { %v1073_v11 = vld [vmem:[%s1387_s1 + $0xf8] sm:$0xff]  ;;  %v63_v12 = vld [vmem:[%s1388_s0 + $0x14] sm:$0x1]  ;;  %v1110_v20 = vld [vmem:[%s1387_s1 + $0x20] sm:$0xff] }
   0x6   :  { %250 = vmatpush.bf16.msra.mxu0 %v1036_v4  ;;  %282 = vmatpush.bf16.msra.mxu2 %v1048_v6  ;;  %v110_v15 = vunpack.c.l.b16 %v63_v12  ;;  %v1091_v16 = vld [vmem:[%s1387_s1 + $0x70] sm:$0xff]  ;;  %v1116_v23 = vld [vmem:[%s1387_s1 + $0x68] sm:$0xff]  ;;  %v24_v24 = vld [vmem:[%s1388_s0] sm:$0xff] }
   0x7   :  { %263 = vmatpush.bf16.msra.mxu1 %v1041_v5  ;;  %405 = vmatpush.bf16.msra.mxu3 %v1053_v7  ;;  %v1099_v18 = vld [vmem:[%s1387_s1 + $0xb0] sm:$0xff]  ;;  %v1124_v27 = vunpack.c.h.b16 %v24_v24  ;;  %v1131_v28 = vld [vmem:[%s1387_s1 + $0xa8] sm:$0xff]  ;;  %v105_v30 = vunpack.c.l.b16 %v24_v24  ;;  %v1142_v34 = vld [vmem:[%s1387_s1 + $0x18] sm:$0xff] }
   0x8   :  { %v113_v17 = vpack.c.b16 %v110_v15, %v1078_v13  ;;  %v1104_v19 = vld [vmem:[%s1387_s1 + $0xf0] sm:$0xff]  ;;  %v1136_v29 = vld [vmem:[%s1387_s1 + $0xe8] sm:$0xff]  ;;  %v1148_v35 = vld [vmem:[%s1387_s1 + $0x60] sm:$0xff] }
   0x9   :  { %v62_v25 = vld [vmem:[%s1388_s0 + $0xc] sm:$0x11]  ;;  %v1157_v37 = vld [vmem:[%s1387_s1 + $0xa0] sm:$0xff]  ;;  %v1174_v41 = vld [vmem:[%s1387_s1 + $0x58] sm:$0xff]  ;;  %v288_v59 = vpack.c.b16 %v105_v30, %v105_v30  ;;  %v289_v62 = vpack.c.b16 %v1124_v27, %v1124_v27 }
   0xa   :  { %417 = vmatpush.bf16.msrb.mxu2 %v1058_v8  ;;  %251 = vmatpush.bf16.msra.mxu0 %v1068_v10  ;;  %v129_v21 = vshrl.u32 %v113_v17, 16  ;;  %v131_v22 = vshll.u32 %v113_v17, 16  ;;  %v108_v31 = vunpack.c.l.b16 %v62_v25  ;;  %v109_v32 = vunpack.c.h.b16 %v62_v25  ;;  %v1162_v38 = vld [vmem:[%s1387_s1 + $0xe0] sm:$0xff]  ;;  %v1168_v40 = vld [vmem:[%s1387_s1 + $0x10] sm:$0xff]  ;;  %v1181_v43 = vld [vmem:[%s1387_s1 + $0x98] sm:$0xff] }
   0xb   :  { %264 = vmatpush.bf16.msra.mxu1 %v1073_v11  ;;  %406 = vmatpush.bf16.msra.mxu3 %v1085_v14  ;;  %v1186_v44 = vld [vmem:[%s1387_s1 + $0xd8] sm:$0xff]  ;;  %v1192_v46 = vld [vmem:[%s1387_s1 + $0x8] sm:$0xff]  ;;  %v1198_v47 = vld [vmem:[%s1387_s1 + $0x50] sm:$0xff] }
   0xc   :  { %v133_v26 = vrot.slane %v131_v22, 1  ;;  %v112_v36 = vpack.c.b16 %v109_v32, %v1124_v27  ;;  %v111_v39 = vpack.c.b16 %v108_v31, %v105_v30  ;;  %v1205_v50 = vld [vmem:[%s1387_s1 + $0x90] sm:$0xff]  ;;  %v1216_v54 = vld [vmem:[%s1387_s1] sm:$0xff]  ;;  %v1222_v55 = vld [vmem:[%s1387_s1 + $0x48] sm:$0xff] }
   0xd   :  { %v1210_v51 = vld [vmem:[%s1387_s1 + $0xd0] sm:$0xff]  ;;  %v1227_v56 = vld [vmem:[%s1387_s1 + $0x88] sm:$0xff]  ;;  %v1238_v60 = vld [vmem:[%s1387_s1 + $0x40] sm:$0xff] }
   0xe   :  { %418 = vmatpush.bf16.msrb.mxu2 %v1091_v16  ;;  %252 = vmatpush.bf16.msra.mxu0 %v1099_v18  ;;  %v134_v33 = vor.u32 %v133_v26, %v129_v21  ;;  %v124_v42 = vshll.u32 %v112_v36, 16  ;;  %v117_v45 = vshll.u32 %v111_v39, 16  ;;  %v122_v48 = vshrl.u32 %v112_v36, 16  ;;  %v1244_v61 = vld [vmem:[%s1387_s1 + $0x80] sm:$0xff] }
   0xf   :  { %265 = vmatpush.bf16.msra.mxu1 %v1104_v19  ;;  %407 = vmatpush.bf16.msra.mxu3 %v1110_v20  ;;  %v115_v52 = vshrl.u32 %v111_v39, 16  ;;  %v459_v63 = vld [vmem:[%s1388_s0 + $0x20] sm:$0x1] }
  0x10   :  { %860 = vmatmul.msk.bf16.vlgmr.msra.gmra.mxu2 %vm245_vm0, %v134_v33  ;;  %v126_v49 = vrot.slane %v124_v42, 1  ;;  %v119_v53 = vrot.slane %v117_v45, 1  ;;  %v623_v42 = vld [vmem:[%s1389_s2 + $0x68] sm:$0xff]  ;;  %v622_v45 = vld [vmem:[%s1389_s2 + $0x60] sm:$0xff] }
  0x12   :  { %419 = vmatpush.bf16.msrb.mxu2 %v1116_v23  ;;  %253 = vmatpush.bf16.msra.mxu0 %v1131_v28  ;;  %v127_v57 = vor.u32 %v126_v49, %v122_v48  ;;  %v120_v58 = vor.u32 %v119_v53, %v115_v52  ;;  %v620_v49 = vld [vmem:[%s1389_s2 + $0x50] sm:$0xff]  ;;  %v618_v52 = vld [vmem:[%s1389_s2 + $0x40] sm:$0xff] }
  0x13   :  { %266 = vmatpush.bf16.msra.mxu1 %v1136_v29  ;;  %408 = vmatpush.bf16.msra.mxu3 %v1142_v34 }
  0x16   :  { %420 = vmatpush.bf16.msrb.mxu2 %v1148_v35  ;;  %254 = vmatpush.bf16.msra.mxu0 %v1157_v37 }
  0x17   :  { %267 = vmatpush.bf16.msra.mxu1 %v1162_v38  ;;  %409 = vmatpush.bf16.msra.mxu3 %v1168_v40 }
  0x1a   :  { %421 = vmatpush.bf16.msrb.mxu2 %v1174_v41  ;;  %255 = vmatpush.bf16.msra.mxu0 %v1181_v43 }
  0x1b   :  { %268 = vmatpush.bf16.msra.mxu1 %v1186_v44  ;;  %410 = vmatpush.bf16.msra.mxu3 %v1192_v46 }
  0x1e   :  { %422 = vmatpush.bf16.msrb.mxu2 %v1198_v47  ;;  %256 = vmatpush.bf16.msra.mxu0 %v1205_v50 }
  0x1f   :  { %269 = vmatpush.bf16.msra.mxu1 %v1210_v51  ;;  %411 = vmatpush.bf16.msra.mxu3 %v1216_v54 }
  0x21   :  { %257 = vmatmul.bf16.vlgmr.msra.gmra.mxu0 %v120_v58  ;;  %v614_v58 = vld [vmem:[%s1389_s2 + $0x20] sm:$0xff] }
  0x22   :  { %423 = vmatpush.bf16.msrb.mxu2 %v1222_v55  ;;  %436 = vmatpush.bf16.msrb.mxu0 %v1227_v56 }
  0x23   :  { %483 = vmatpush.bf16.msrb.mxu1 %v1014_v0  ;;  %496 = vmatpush.bf16.msrb.mxu3 %v1019_v1  ;;  %v461_v0 = vld [vmem:[%s1388_s0 + $0x14] sm:$0xe] }
  0x24   :  { %270 = vmatmul.bf16.vlgmr.msra.gmra.mxu1 %v127_v57  ;;  %412 = vmatmul.bf16.vlgmr.msra.gmra.mxu3 %v288_v59  ;;  %v468_v1 = vunpack.c.l.b16 %v461_v0  ;;  %v615_v57 = vld [vmem:[%s1389_s2 + $0x28] sm:$0xff] }
  0x25   :  { %v611_v0 = vld [vmem:[%s1389_s2 + $0x8] sm:$0xff] }
  0x26   :  { %424 = vmatpush.bf16.msrb.mxu2 %v1238_v60  ;;  %437 = vmatpush.bf16.msrb.mxu0 %v1244_v61 }
  0x27   :  { %484 = vmatpush.bf16.msrb.mxu1 %v1036_v4  ;;  %497 = vmatpush.bf16.msrb.mxu3 %v1041_v5  ;;  %v456_v5 = vld [vmem:[%s1388_s0 + $0xc] sm:$0xff] }
  0x29   :  { %425 = vmatmul.bf16.vlgmr.msrb.gmra.mxu2 %v289_v62  ;;  %v612_v62 = vld [vmem:[%s1389_s2 + $0x10] sm:$0xff] }
  0x2a   :  { %515 = vmatpush.bf16.msra.mxu2 %v1024_v2  ;;  %556 = vmatpush.bf16.msra.mxu0 %v1029_v3  ;;  %v471_v2 = vunpack.c.l.b16 %v459_v63  ;;  %v290_v3 = vpack.c.b16 %v1078_v13, %v1078_v13 }
  0x2b   :  { %485 = vmatpush.bf16.msrb.mxu1 %v1068_v10  ;;  %498 = vmatpush.bf16.msrb.mxu3 %v1073_v11 }
  0x2c   :  { %v474_v4 = vpack.c.b16 %v471_v2, %v468_v1 }
  0x2e   :  { %516 = vmatpush.bf16.msra.mxu2 %v1048_v6  ;;  %557 = vmatpush.bf16.msra.mxu0 %v1053_v7  ;;  %v458_v6 = vld [vmem:[%s1388_s0 + $0x18] sm:$0x11]  ;;  %v460_v7 = vld [vmem:[%s1388_s0 + $0xc] sm:$0xee]  ;;  %v477_v9 = vrot.slane %v474_v4, 1 }
  0x2f   :  { %486 = vmatpush.bf16.msrb.mxu1 %v1099_v18  ;;  %499 = vmatpush.bf16.msrb.mxu3 %v1104_v19  ;;  %v466_v10 = vunpack.c.l.b16 %v460_v7  ;;  %v469_v11 = vunpack.c.l.b16 %v458_v6  ;;  %v467_v12 = vunpack.c.h.b16 %v460_v7  ;;  %v470_v13 = vunpack.c.h.b16 %v458_v6  ;;  %v457_v18 = vld [vmem:[%s1388_s0 + $0x14] sm:$0xf] }
  0x30   :  { %v526_v22 = vunpack.c.l.b16 %v457_v18 }
  0x31   :  { %933 = vmatmul.msk.bf16.vlgmr.msrb.gmra.mxu0 %vm245_vm0, %v290_v3  ;;  %v473_v17 = vpack.c.b16 %v470_v13, %v467_v12  ;;  %v610_v3 = vld [vmem:[%s1389_s2] sm:$0xff] }
  0x32   :  { %569 = vmatpush.bf16.msrb.mxu2 %v1058_v8  ;;  %558 = vmatpush.bf16.msra.mxu0 %v1085_v14  ;;  %v524_v8 = vunpack.c.l.b16 %v456_v5  ;;  %v525_v14 = vunpack.c.h.b16 %v456_v5  ;;  %v529_v27 = vpack.c.b16 %v471_v2, %v526_v22 }
  0x33   :  { %487 = vmatpush.bf16.msrb.mxu1 %v1131_v28  ;;  %500 = vmatpush.bf16.msrb.mxu3 %v1136_v29 }
  0x34   :  { %v527_v15 = vpack.c.b16 %v469_v11, %v524_v8  ;;  %v528_v19 = vpack.c.b16 %v470_v13, %v525_v14  ;;  %v547_v31 = vshll.u32 %v529_v27, 16  ;;  %v545_v33 = vshrl.u32 %v529_v27, 16 }
  0x36   :  { %570 = vmatpush.bf16.msrb.mxu2 %v1091_v16  ;;  %559 = vmatpush.bf16.msra.mxu0 %v1110_v20  ;;  %v472_v16 = vpack.c.b16 %v469_v11, %v466_v10  ;;  %v533_v20 = vshll.u32 %v527_v15, 16  ;;  %v540_v24 = vshll.u32 %v528_v19, 16  ;;  %v531_v25 = vshrl.u32 %v527_v15, 16 }
  0x37   :  { %488 = vmatpush.bf16.msrb.mxu1 %v1157_v37  ;;  %501 = vmatpush.bf16.msrb.mxu3 %v1162_v38  ;;  %v538_v28 = vshrl.u32 %v528_v19, 16  ;;  %v625_v38 = vld [vmem:[%s1389_s2 + $0x78] sm:$0xff] }
  0x38   :  { %v475_v21 = vrot.slane %v472_v16, 1  ;;  %v535_v26 = vrot.slane %v533_v20, 1  ;;  %v542_v29 = vrot.slane %v540_v24, 1 }
  0x39   :  { %934 = vmatmul.msk.bf16.vlgmr.msra.gmra.mxu2 %vm245_vm0, %v477_v9 }
  0x3a   :  { %571 = vmatpush.bf16.msrb.mxu2 %v1116_v23  ;;  %560 = vmatpush.bf16.msra.mxu0 %v1142_v34  ;;  %v476_v23 = vrot.slane %v473_v17, 1  ;;  %v536_v30 = vor.u32 %v535_v26, %v531_v25  ;;  %v543_v32 = vor.u32 %v542_v29, %v538_v28  ;;  %v549_v34 = vrot.slane %v547_v31, 1 }
  0x3b   :  { %489 = vmatpush.bf16.msrb.mxu1 %v1181_v43  ;;  %502 = vmatpush.bf16.msrb.mxu3 %v1186_v44 }
  0x3e   :  { %572 = vmatpush.bf16.msrb.mxu2 %v1148_v35  ;;  %561 = vmatpush.bf16.msra.mxu0 %v1168_v40  ;;  %v550_v35 = vor.u32 %v549_v34, %v545_v33 }
  0x3f   :  { %490 = vmatpush.bf16.msrb.mxu1 %v1205_v50  ;;  %503 = vmatpush.bf16.msrb.mxu3 %v1210_v51  ;;  %v619_v50 = vld [vmem:[%s1389_s2 + $0x48] sm:$0xff] }
  0x42   :  { %573 = vmatpush.bf16.msrb.mxu2 %v1174_v41  ;;  %562 = vmatpush.bf16.msra.mxu0 %v1192_v46  ;;  %v624_v41 = vld [vmem:[%s1389_s2 + $0x70] sm:$0xff] }
  0x43   :  { %588 = vmatpush.bf16.msra.mxu1 %v1227_v56  ;;  %504 = vmatmul.bf16.vlgmr.msrb.gmra.mxu3 %v476_v23  ;;  %v616_v56 = vld [vmem:[%s1389_s2 + $0x30] sm:$0xff] }
  0x44   :  { %491 = vmatmul.bf16.vlgmr.msrb.gmra.mxu1 %v475_v21  ;;  %626 = vmatpush.msra.mxu3 %v625_v38 }
  0x46   :  { %574 = vmatpush.bf16.msrb.mxu2 %v1198_v47  ;;  %563 = vmatpush.bf16.msra.mxu0 %v1216_v54  ;;  %v621_v47 = vld [vmem:[%s1389_s2 + $0x58] sm:$0xff] }
  0x47   :  { %589 = vmatpush.bf16.msra.mxu1 %v1244_v61  ;;  %627 = vmatpush.msra.mxu3 %v624_v41  ;;  %v617_v54 = vld [vmem:[%s1389_s2 + $0x38] sm:$0xff] }
  0x48   :  { %v613_v61 = vld [vmem:[%s1389_s2 + $0x18] sm:$0xff] }
  0x49   :  { %564 = vmatmul.bf16.vlgmr.msra.gmra.mxu0 %v536_v30  ;;  %628 = vmatpush.msra.mxu3 %v623_v42 }
  0x4a   :  { %575 = vmatpush.bf16.msrb.mxu2 %v1222_v55  ;;  %646 = vmatpush.msrb.mxu0 %v625_v38 }
  0x4b   :  { %629 = vmatpush.msra.mxu3 %v622_v45 }
  0x4c   :  { %647 = vmatpush.msrb.mxu0 %v624_v41 }
  0x4d   :  { %630 = vmatpush.msra.mxu3 %v621_v47 }
  0x4e   :  { %576 = vmatpush.bf16.msrb.mxu2 %v1238_v60  ;;  %648 = vmatpush.msrb.mxu0 %v623_v42 }
  0x4f   :  { %631 = vmatpush.msra.mxu3 %v620_v49 }
  0x50   :  { %649 = vmatpush.msrb.mxu0 %v622_v45 }
  0x51   :  { %577 = vmatmul.bf16.vlgmr.msrb.gmra.mxu2 %v543_v32  ;;  %632 = vmatpush.msra.mxu3 %v619_v50 }
  0x52   :  { %650 = vmatpush.msrb.mxu0 %v621_v47 }
  0x53   :  { %633 = vmatpush.msra.mxu3 %v618_v52 }
  0x54   :  { %935 = vmatmul.msk.bf16.vlgmr.msra.gmra.mxu1 %vm245_vm0, %v550_v35  ;;  %651 = vmatpush.msrb.mxu0 %v620_v49 }
  0x55   :  { %634 = vmatpush.msra.mxu3 %v617_v54 }
  0x56   :  { %652 = vmatpush.msrb.mxu0 %v619_v50  ;;  %v688_v50 = vld [vmem:[%s1390_s3 + $0x8] sm:$0xff] }
  0x57   :  { %635 = vmatpush.msra.mxu3 %v616_v56  ;;  %707 = vmatpush.msrb.mxu1 %v688_v50 }
  0x58   :  { %653 = vmatpush.msrb.mxu0 %v618_v52 }
  0x59   :  { %636 = vmatpush.msra.mxu3 %v615_v57 }
  0x5a   :  { %654 = vmatpush.msrb.mxu0 %v617_v54 }
  0x5b   :  { %637 = vmatpush.msra.mxu3 %v614_v58 }
  0x5c   :  { %655 = vmatpush.msrb.mxu0 %v616_v56 }
  0x5d   :  { %638 = vmatpush.msra.mxu3 %v613_v61 }
  0x5e   :  { %656 = vmatpush.msrb.mxu0 %v615_v57 }
  0x5f   :  { %639 = vmatpush.msra.mxu3 %v612_v62 }
  0x60   :  { %657 = vmatpush.msrb.mxu0 %v614_v58 }
  0x61   :  { %640 = vmatpush.msra.mxu3 %v611_v0 }
  0x62   :  { %658 = vmatpush.msrb.mxu0 %v613_v61 }
  0x63   :  { %641 = vmatpush.msra.mxu3 %v610_v3 }
  0x64   :  { %659 = vmatpush.msrb.mxu0 %v612_v62 }
  0x66   :  { %660 = vmatpush.msrb.mxu0 %v611_v0 }
  0x68   :  { %661 = vmatpush.msrb.mxu0 %v610_v3 }
  0x93   :  { %v284_v36 = vpop.f32.mrf.mxu2 }
  0x9b   :  { %v286_v37 = vpop.f32.mrf.mxu2 }
  0x9e   :  { %v258_v40 = vpop.f32.mrf.mxu0 }
  0xa1   :  { %v271_v39 = vpop.f32.mrf.mxu1 }
  0xa2   :  { %v272_v59 = vadd.f32 %v271_v39, %v258_v40 }
  0xa4   :  { %v285_v1 = vadd.f32 %v284_v36, %v272_v59 }
  0xa6   :  { %v260_v46 = vpop.f32.mrf.mxu0 }
  0xa7   :  { %v413_v43 = vpop.f32.mrf.mxu3 }
  0xa8   :  { %v414_v4 = vadd.f32 %v413_v43, %v285_v1 }
  0xa9   :  { %v273_v44 = vpop.f32.mrf.mxu1 }
  0xac   :  { %v426_v48 = vpop.f32.mrf.mxu2 }
  0xad   :  { %v427_v5 = vadd.f32 %v426_v48, %v414_v4 }
  0xae   :  { %v439_v53 = vpop.f32.mrf.mxu0 }
  0xaf   :  { %v415_v51 = vpop.f32.mrf.mxu3  ;;  %v1355_v6 = vadd.f32 %v439_v53, %v427_v5 }
  0xb0   :  { %v687_v51 = vld [vmem:[%s1390_s3] sm:$0xff] }
  0xb1   :  { %v449_v12 = vmul.f32 %v1355_v6, %v1355_v6  ;;  %v443_v13 = vrot.slane %v1355_v6, 4  ;;  %708 = vmatpush.msrb.mxu1 %v687_v51 }
  0xb3   :  { %v450_v15 = vrot.slane %v449_v12, 4  ;;  %v444_v16 = vadd.f32 %v443_v13, %v1355_v6  ;;  %730 = vmatpush.msra.mxu1 %v688_v50 }
  0xb4   :  { %v428_v55 = vpop.f32.mrf.mxu2 }
  0xb5   :  { %v451_v22 = vadd.f32 %v450_v15, %v449_v12  ;;  %v445_v24 = vrot.slane %v444_v16, 2  ;;  %731 = vmatpush.msra.mxu1 %v687_v51 }
  0xb6   :  { %v441_v60 = vpop.f32.mrf.mxu0 }
  0xb7   :  { %v452_v26 = vrot.slane %v451_v22, 2  ;;  %v446_v29 = vadd.f32 %v445_v24, %v444_v16 }
  0xb9   :  { %v453_v36 = vadd.f32 %v452_v26, %v451_v22  ;;  %v447_v39 = vrot.slane %v446_v29, 1 }
  0xbb   :  { %v454_v41 = vrot.slane %v453_v36, 1  ;;  %v448_v43 = vadd.f32 %v447_v39, %v446_v29 }
  0xbc   :  { %v518_v63 = vpop.f32.mrf.mxu2 }
  0xbd   :  { %v455_v47 = vadd.f32 %v454_v41, %v453_v36 }
  0xc1   :  { %v492_v2 = vpop.f32.mrf.mxu1 }
  0xc4   :  { %v520_v7 = vpop.f32.mrf.mxu2 }
  0xc5   :  { %v684_v7 = vld [vmem:[%s1392_s5] sm:$0x1] }
  0xc6   :  { %v505_v8 = vpop.f32.mrf.mxu3  ;;  %v565_v9 = vpop.f32.mrf.mxu0 }
  0xc7   :  { %v506_v10 = vadd.f32 %v505_v8, %v492_v2  ;;  %v682_v2 = vld [vmem:[%s1391_s4] sm:$0x1] }
  0xc9   :  { %v494_v11 = vpop.f32.mrf.mxu1  ;;  %v519_v14 = vadd.f32 %v518_v63, %v506_v10 }
  0xcb   :  { %v566_v17 = vadd.f32 %v565_v9, %v519_v14 }
  0xce   :  { %v507_v18 = vpop.f32.mrf.mxu3  ;;  %v567_v19 = vpop.f32.mrf.mxu0 }
  0xd1   :  { %v591_v21 = vpop.f32.mrf.mxu1 }
  0xd4   :  { %v578_v20 = vpop.f32.mrf.mxu2 }
  0xd5   :  { %v579_v23 = vadd.f32 %v578_v20, %v566_v17 }
  0xd7   :  { %v1361_v25 = vadd.f32 %v591_v21, %v579_v23 }
  0xd9   :  { %v595_v27 = vrot.slane %v1361_v25, 4  ;;  %v601_v28 = vmul.f32 %v1361_v25, %v1361_v25  ;;  %v593_v33 = vpop.f32.mrf.mxu1 }
  0xdb   :  { %v596_v30 = vadd.f32 %v595_v27, %v1361_v25  ;;  %v602_v31 = vrot.slane %v601_v28, 4 }
  0xdc   :  { %v580_v32 = vpop.f32.mrf.mxu2 }
  0xdd   :  { %v597_v34 = vrot.slane %v596_v30, 2  ;;  %v603_v35 = vadd.f32 %v602_v31, %v601_v28 }
  0xdf   :  { %v598_v37 = vadd.f32 %v597_v34, %v596_v30  ;;  %v604_v38 = vrot.slane %v603_v35, 2 }
  0xe1   :  { %v599_v40 = vrot.slane %v598_v37, 1  ;;  %v605_v42 = vadd.f32 %v604_v38, %v603_v35 }
  0xe3   :  { %v600_v44 = vadd.f32 %v599_v40, %v598_v37  ;;  %v606_v45 = vrot.slane %v605_v42, 1 }
  0xe5   :  { %v608_v46 = vadd.f32 %v600_v44, %v448_v43  ;;  %v607_v48 = vadd.f32 %v606_v45, %v605_v42 }
  0xe7   :  { %642 = vmatmul.f32.vlgmr.msra.gmra.mxu3 %v608_v46  ;;  %v609_v49 = vadd.f32 %v607_v48, %v455_v47 }
  0xe9   :  { %662 = vmatmul.f32.vlgmr.msrb.gmra.mxu0 %v609_v49 }
 0x166   :  { %v663_v52 = vpop.f32.mrf.mxu0 }
 0x167   :  { %v667_v55 = vmul.f32 0.0078125, %v663_v52 }
 0x16a   :  { %v643_v53 = vpop.f32.mrf.mxu3 }
 0x16b   :  { %v666_v54 = vmul.f32 0.0078125, %v643_v53 }
 0x16d   :  { %v668_v56 = vmul.f32 %v666_v54, %v666_v54 }
 0x16f   :  { %v669_v57 = vsub.f32 %v667_v55, %v668_v56 }
 0x171   :  { %v670_v58 = vmax.f32 %v669_v57, 0.0 }
 0x173   :  { %v671_v59 = vadd.f32 1e-05, %v670_v58 }
 0x175   :  { %974 = vrsqrt.f32 %v671_v59  ;;  %vm678_vm2 = vweird.f32 %v671_v59 }
 0x17b   :  { %v975_v60 = vpop.eup %974 }
 0x17c   :  { %v673_v61 = vmul.f32 %v975_v60, %v671_v59  ;;  %vm679_vm1 = vweird.f32 %v975_v60 }
 0x17d   :  { %vm680_vm3 = vmor %vm678_vm2, %vm679_vm1 }
 0x17e   :  { %v674_v62 = vmul.f32 %v975_v60, %v673_v61 }
 0x180   :  { %v675_v63 = vmul.f32 0.5, %v674_v62 }
 0x182   :  { %v676_v0 = vsub.f32 1.5, %v675_v63 }
 0x184   :  { %v677_v1 = vmul.f32 %v975_v60, %v676_v0 }
 0x186   :  { %v681_v3 = vsel %vm680_vm3, %v975_v60, %v677_v1 }
 0x187   :  { %v683_v4 = vmul.f32 %v682_v2, %v681_v3 }
 0x189   :  { %936 = vmatmul.msk.f32.vlgmr.msrb.gmra.mxu1 %vm689_vm4, %v683_v4  ;;  %v685_v5 = vmul.f32 %v683_v4, %v666_v54 }
 0x18b   :  { %v686_v8 = vsub.f32 %v684_v7, %v685_v5 }
 0x191   :  { %937 = vmatmul.msk.f32.vlgmr.msra.gmra.mxu1 %vm689_vm4, %v686_v8 }
 0x206   :  { %v710_v9 = vpop.f32.mrf.mxu1 }
 0x207   :  { %v736_v10 = vperm.slane %v710_v9, 0 }
 0x209   :  { %v737_v12 = vmul.f32 %v736_v10, %v1355_v6  ;;  %v743_v13 = vmul.f32 %v736_v10, %v1361_v25 }
 0x20e   :  { %v733_v11 = vpop.f32.mrf.mxu1 }
 0x20f   :  { %v738_v14 = vperm.slane %v733_v11, 0 }
 0x211   :  { %v739_v15 = vadd.f32 %v738_v14, %v737_v12  ;;  %v744_v16 = vadd.f32 %v743_v13, %v738_v14 }
 0x213   :  { %v740_v17 = vmax.f32 %v739_v15, 0.0  ;;  %v745_v18 = vmax.f32 %v744_v16, 0.0 }
 0x215   :  { %v741_v19 = vpack.c.bf16 %v740_v17, %v740_v17  ;;  %v746_v20 = vpack.c.bf16 %v745_v18, %v745_v18 }
 0x217   :  { %742 = vst [vmem:[%s1393_s6] sm:$0xf] %v741_v19 }
 0x218   :  { %747 = vst [vmem:[%s1393_s6 + $0x4] sm:$0xf] %v746_v20 }

// kernel: resnet_generator_forward.12
= control target key start
LH: loop header
LB: loop body
LE: loop exit
PB: predicated region body
PF: predicated region fallthrough
CT: control target
= control target key end

     0   :  { %vm260_vm0 = vcmask 523264   ;;  %vm475_vm1 = vcmask 1043456   ;;  %vm731_vm5 = vcmask 261120   ;;  %s1482_s1 = inlined_call_operand.vmem [shape: bf16[2,320,128], index: 1, kind: input, shape index: {}]   ;;  %s1483_s0 = inlined_call_operand.vmem [shape: bf16[10,320], index: 0, kind: input, shape index: {}]   ;;  %s1484_s2 = inlined_call_operand.vmem [shape: f32[128,32], index: 2, kind: input, shape index: {}]   ;;  %s1485_s3 = inlined_call_operand.vmem [shape: f32[32,128], index: 3, kind: input, shape index: {}]   ;;  %s1486_s4 = inlined_call_operand.vmem [shape: f32[1,32], index: 4, kind: input, shape index: {}]   ;;  %s1487_s5 = inlined_call_operand.vmem [shape: f32[1,32], index: 5, kind: input, shape index: {}]   ;;  %s1488_s6 = inlined_call_operand.vmem [shape: bf16[8,128], index: 6, kind: output, shape index: {}]  }
   0x1   :  { %v1083_v0 = vld [vmem:[%s1482_s1 + $0xd8] sm:$0xff]  ;;  %v1105_v4 = vld [vmem:[%s1482_s1 + $0xd0] sm:$0xff]  ;;  %v1129_v8 = vld [vmem:[%s1482_s1 + $0xc8] sm:$0xff] }
   0x2   :  { %v1088_v1 = vld [vmem:[%s1482_s1 + $0x138] sm:$0xff]  ;;  %264 = vmatpush.bf16.msra.mxu0 %v1083_v0  ;;  %v1110_v5 = vld [vmem:[%s1482_s1 + $0x130] sm:$0xff]  ;;  %v1134_v9 = vld [vmem:[%s1482_s1 + $0x128] sm:$0xff] }
   0x3   :  { %v1093_v2 = vld [vmem:[%s1482_s1 + $0x38] sm:$0xff]  ;;  %294 = vmatpush.bf16.msra.mxu2 %v1088_v1  ;;  %v1117_v6 = vld [vmem:[%s1482_s1 + $0x30] sm:$0xff]  ;;  %v1141_v10 = vld [vmem:[%s1482_s1 + $0x28] sm:$0xff] }
   0x4   :  { %v1098_v3 = vld [vmem:[%s1482_s1 + $0x118] sm:$0xff]  ;;  %436 = vmatpush.bf16.msra.mxu3 %v1093_v2  ;;  %v1122_v7 = vld [vmem:[%s1482_s1 + $0x110] sm:$0xff]  ;;  %v1146_v11 = vld [vmem:[%s1482_s1 + $0x108] sm:$0xff] }
   0x5   :  { %277 = vmatpush.bf16.msra.mxu1 %v1098_v3  ;;  %v1153_v12 = vld [vmem:[%s1482_s1 + $0xc0] sm:$0xff]  ;;  %v67_v14 = vld [vmem:[%s1483_s0 + $0x8] sm:$0x7]  ;;  %v1168_v15 = vld [vmem:[%s1482_s1 + $0x78] sm:$0xff] }
   0x6   :  { %265 = vmatpush.bf16.msra.mxu0 %v1105_v4  ;;  %v1158_v13 = vld [vmem:[%s1482_s1 + $0x120] sm:$0xff]  ;;  %v113_v17 = vunpack.c.l.b16 %v67_v14  ;;  %v1188_v22 = vld [vmem:[%s1482_s1 + $0xb8] sm:$0xff]  ;;  %v1195_v23 = vld [vmem:[%s1482_s1 + $0x70] sm:$0xff] }
   0x7   :  { %295 = vmatpush.bf16.msra.mxu2 %v1110_v5  ;;  %v1173_v16 = vld [vmem:[%s1482_s1 + $0x20] sm:$0xff]  ;;  %v1200_v24 = vld [vmem:[%s1482_s1 + $0x18] sm:$0xff]  ;;  %v1212_v31 = vld [vmem:[%s1482_s1 + $0xb0] sm:$0xff] }
   0x8   :  { %437 = vmatpush.bf16.msra.mxu3 %v1117_v6  ;;  %v66_v18 = vld [vmem:[%s1483_s0] sm:$0x77]  ;;  %v116_v20 = vpack.c.b16 %v113_v17, %v113_v17  ;;  %v1206_v27 = vld [vmem:[%s1482_s1 + $0xf8] sm:$0xff]  ;;  %v1219_v32 = vld [vmem:[%s1482_s1 + $0x68] sm:$0xff] }
   0x9   :  { %278 = vmatpush.bf16.msra.mxu1 %v1122_v7  ;;  %v1181_v19 = vld [vmem:[%s1482_s1 + $0x100] sm:$0xff]  ;;  %v111_v21 = vunpack.c.l.b16 %v66_v18  ;;  %v112_v28 = vunpack.c.h.b16 %v66_v18  ;;  %v1224_v33 = vld [vmem:[%s1482_s1 + $0x10] sm:$0xff]  ;;  %v1237_v38 = vld [vmem:[%s1482_s1 + $0xa8] sm:$0xff] }
   0xa   :  { %266 = vmatpush.bf16.msra.mxu0 %v1129_v8  ;;  %v132_v25 = vshrl.u32 %v116_v20, 16  ;;  %v134_v26 = vshll.u32 %v116_v20, 16  ;;  %v1230_v35 = vld [vmem:[%s1482_s1 + $0xf0] sm:$0xff]  ;;  %v1244_v39 = vld [vmem:[%s1482_s1 + $0x60] sm:$0xff]  ;;  %v1249_v40 = vld [vmem:[%s1482_s1 + $0x8] sm:$0xff] }
   0xb   :  { %296 = vmatpush.bf16.msra.mxu2 %v1134_v9  ;;  %v114_v30 = vpack.c.b16 %v111_v21, %v111_v21  ;;  %v115_v36 = vpack.c.b16 %v112_v28, %v112_v28  ;;  %v1255_v41 = vld [vmem:[%s1482_s1 + $0xe8] sm:$0xff]  ;;  %v24_v45 = vld [vmem:[%s1483_s0] sm:$0x33]  ;;  %v1271_v47 = vld [vmem:[%s1482_s1 + $0x58] sm:$0xff] }
   0xc   :  { %438 = vmatpush.bf16.msra.mxu3 %v1141_v10  ;;  %v136_v29 = vrot.slane %v134_v26, 1  ;;  %v1264_v46 = vld [vmem:[%s1482_s1 + $0xa0] sm:$0xff]  ;;  %v1276_v48 = vld [vmem:[%s1482_s1 + $0x98] sm:$0xff]  ;;  %v305_v51 = vunpack.c.l.b16 %v24_v45  ;;  %v1295_v55 = vld [vmem:[%s1482_s1 + $0x50] sm:$0xff]  ;;  %v306_v61 = vunpack.c.h.b16 %v24_v45 }
   0xd   :  { %279 = vmatpush.bf16.msra.mxu1 %v1146_v11  ;;  %v120_v37 = vshll.u32 %v114_v30, 16  ;;  %v127_v42 = vshll.u32 %v115_v36, 16  ;;  %v118_v43 = vshrl.u32 %v114_v30, 16  ;;  %v1282_v49 = vld [vmem:[%s1482_s1] sm:$0xff]  ;;  %v125_v52 = vshrl.u32 %v115_v36, 16  ;;  %v1300_v56 = vld [vmem:[%s1482_s1 + $0x90] sm:$0xff] }
   0xe   :  { %267 = vmatpush.bf16.msra.mxu0 %v1153_v12  ;;  %v137_v34 = vor.u32 %v136_v29, %v132_v25  ;;  %v1287_v50 = vld [vmem:[%s1482_s1 + $0xe0] sm:$0xff]  ;;  %v308_v57 = vpack.c.b16 %v305_v51, %v305_v51  ;;  %v1311_v59 = vld [vmem:[%s1482_s1 + $0x48] sm:$0xff] }
   0xf   :  { %297 = vmatpush.bf16.msra.mxu2 %v1158_v13  ;;  %v122_v44 = vrot.slane %v120_v37, 1  ;;  %v129_v53 = vrot.slane %v127_v42, 1  ;;  %v1316_v60 = vld [vmem:[%s1482_s1 + $0x88] sm:$0xff]  ;;  %v1328_v63 = vld [vmem:[%s1482_s1 + $0x40] sm:$0xff] }
  0x10   :  { %439 = vmatpush.bf16.msra.mxu3 %v1173_v16  ;;  %v25_v62 = vld [vmem:[%s1483_s0 + $0x8] sm:$0x3] }
  0x11   :  { %280 = vmatpush.bf16.msra.mxu1 %v1181_v19  ;;  %v123_v54 = vor.u32 %v122_v44, %v118_v43  ;;  %v130_v58 = vor.u32 %v129_v53, %v125_v52  ;;  %v663_v53 = vld [vmem:[%s1484_s2 + $0x68] sm:$0xff] }
  0x12   :  { %268 = vmatpush.bf16.msra.mxu0 %v1188_v22  ;;  %917 = vmatmul.msk.bf16.vlgmr.msra.gmra.mxu2 %vm260_vm0, %v137_v34 }
  0x13   :  { %449 = vmatpush.bf16.msrb.mxu2 %v1168_v15 }
  0x14   :  { %440 = vmatpush.bf16.msra.mxu3 %v1200_v24 }
  0x15   :  { %281 = vmatpush.bf16.msra.mxu1 %v1206_v27 }
  0x16   :  { %269 = vmatpush.bf16.msra.mxu0 %v1212_v31 }
  0x17   :  { %450 = vmatpush.bf16.msrb.mxu2 %v1195_v23 }
  0x18   :  { %441 = vmatpush.bf16.msra.mxu3 %v1224_v33 }
  0x19   :  { %282 = vmatpush.bf16.msra.mxu1 %v1230_v35 }
  0x1a   :  { %270 = vmatpush.bf16.msra.mxu0 %v1237_v38 }
  0x1b   :  { %451 = vmatpush.bf16.msrb.mxu2 %v1219_v32 }
  0x1c   :  { %442 = vmatpush.bf16.msra.mxu3 %v1249_v40 }
  0x1d   :  { %283 = vmatpush.bf16.msra.mxu1 %v1255_v41 }
  0x1e   :  { %271 = vmatpush.bf16.msra.mxu0 %v1264_v46 }
  0x1f   :  { %452 = vmatpush.bf16.msrb.mxu2 %v1244_v39 }
  0x20   :  { %443 = vmatpush.bf16.msra.mxu3 %v1282_v49 }
  0x21   :  { %284 = vmatpush.bf16.msra.mxu1 %v1287_v50  ;;  %272 = vmatmul.bf16.vlgmr.msra.gmra.mxu0 %v123_v54 }
  0x22   :  { %466 = vmatpush.bf16.msrb.mxu0 %v1276_v48 }
  0x23   :  { %453 = vmatpush.bf16.msrb.mxu2 %v1271_v47  ;;  %444 = vmatmul.bf16.vlgmr.msra.gmra.mxu3 %v308_v57 }
  0x24   :  { %531 = vmatpush.bf16.msrb.mxu3 %v1098_v3  ;;  %285 = vmatmul.bf16.vlgmr.msra.gmra.mxu1 %v130_v58  ;;  %v307_v3 = vunpack.c.l.b16 %v25_v62  ;;  %v660_v58 = vld [vmem:[%s1484_s2 + $0x50] sm:$0xff] }
  0x25   :  { %518 = vmatpush.bf16.msrb.mxu1 %v1083_v0  ;;  %v1333_v0 = vld [vmem:[%s1482_s1 + $0x80] sm:$0xff] }
  0x26   :  { %467 = vmatpush.bf16.msrb.mxu0 %v1300_v56 }
  0x27   :  { %454 = vmatpush.bf16.msrb.mxu2 %v1295_v55 }
  0x28   :  { %532 = vmatpush.bf16.msrb.mxu3 %v1122_v7  ;;  %v310_v7 = vpack.c.b16 %v307_v3, %v307_v3  ;;  %v656_v3 = vld [vmem:[%s1484_s2 + $0x30] sm:$0xff] }
  0x29   :  { %519 = vmatpush.bf16.msrb.mxu1 %v1105_v4  ;;  %v309_v4 = vpack.c.b16 %v306_v61, %v306_v61  ;;  %v658_v61 = vld [vmem:[%s1484_s2 + $0x40] sm:$0xff] }
  0x2a   :  { %468 = vmatpush.bf16.msrb.mxu0 %v1316_v60 }
  0x2b   :  { %455 = vmatpush.bf16.msrb.mxu2 %v1311_v59 }
  0x2c   :  { %533 = vmatpush.bf16.msrb.mxu3 %v1146_v11 }
  0x2d   :  { %520 = vmatpush.bf16.msrb.mxu1 %v1129_v8  ;;  %v491_v8 = vld [vmem:[%s1483_s0] sm:$0xcc] }
  0x2e   :  { %469 = vmatpush.bf16.msrb.mxu0 %v1333_v0  ;;  %v559_v20 = vunpack.c.l.b16 %v491_v8  ;;  %v560_v30 = vunpack.c.h.b16 %v491_v8  ;;  %v652_v8 = vld [vmem:[%s1484_s2 + $0x10] sm:$0xff] }
  0x2f   :  { %456 = vmatpush.bf16.msrb.mxu2 %v1328_v63 }
  0x30   :  { %534 = vmatpush.bf16.msrb.mxu3 %v1181_v19 }
  0x31   :  { %521 = vmatpush.bf16.msrb.mxu1 %v1153_v12  ;;  %998 = vmatmul.msk.bf16.vlgmr.msrb.gmra.mxu0 %vm260_vm0, %v310_v7 }
  0x32   :  { %548 = vmatpush.bf16.msra.mxu0 %v1088_v1  ;;  %457 = vmatmul.bf16.vlgmr.msrb.gmra.mxu2 %v309_v4  ;;  %v493_v1 = vld [vmem:[%s1483_s0 + $0xc] sm:$0x11] }
  0x33   :  { %594 = vmatpush.bf16.msra.mxu2 %v1093_v2  ;;  %v495_v2 = vld [vmem:[%s1483_s0] sm:$0x88]  ;;  %v505_v12 = vunpack.c.h.b16 %v493_v1  ;;  %v504_v19 = vunpack.c.l.b16 %v493_v1  ;;  %v655_v1 = vld [vmem:[%s1484_s2 + $0x28] sm:$0xff] }
  0x34   :  { %535 = vmatpush.bf16.msrb.mxu3 %v1206_v27  ;;  %v502_v11 = vunpack.c.h.b16 %v495_v2  ;;  %v501_v18 = vunpack.c.l.b16 %v495_v2 }
  0x35   :  { %522 = vmatpush.bf16.msrb.mxu1 %v1188_v22  ;;  %v492_v22 = vld [vmem:[%s1483_s0 + $0x8] sm:$0xc]  ;;  %v562_v25 = vpack.c.b16 %v504_v19, %v559_v20  ;;  %v650_v20 = vld [vmem:[%s1484_s2] sm:$0xff] }
  0x36   :  { %549 = vmatpush.bf16.msra.mxu0 %v1110_v5  ;;  %v494_v5 = vld [vmem:[%s1483_s0 + $0x14] sm:$0x1]  ;;  %v507_v21 = vpack.c.b16 %v504_v19, %v501_v18  ;;  %v561_v27 = vunpack.c.l.b16 %v492_v22 }
  0x37   :  { %595 = vmatpush.bf16.msra.mxu2 %v1117_v6  ;;  %v496_v6 = vld [vmem:[%s1483_s0 + $0x8] sm:$0x8]  ;;  %v506_v17 = vunpack.c.l.b16 %v494_v5  ;;  %v569_v28 = vshll.u32 %v562_v25, 16  ;;  %v654_v5 = vld [vmem:[%s1484_s2 + $0x20] sm:$0xff] }
  0x38   :  { %536 = vmatpush.bf16.msrb.mxu3 %v1230_v35  ;;  %v503_v14 = vunpack.c.l.b16 %v496_v6  ;;  %v653_v6 = vld [vmem:[%s1484_s2 + $0x18] sm:$0xff] }
  0x39   :  { %523 = vmatpush.bf16.msrb.mxu1 %v1212_v31  ;;  %v571_v29 = vrot.slane %v569_v28, 3 }
  0x3a   :  { %550 = vmatpush.bf16.msra.mxu0 %v1134_v9  ;;  %v508_v9 = vpack.c.b16 %v505_v12, %v502_v11 }
  0x3b   :  { %596 = vmatpush.bf16.msra.mxu2 %v1141_v10  ;;  %v509_v10 = vpack.c.b16 %v506_v17, %v503_v14  ;;  %v651_v14 = vld [vmem:[%s1484_s2 + $0x8] sm:$0xff] }
  0x3c   :  { %537 = vmatpush.bf16.msrb.mxu3 %v1255_v41  ;;  %v511_v26 = vrot.slane %v508_v9, 3 }
  0x3d   :  { %524 = vmatpush.bf16.msrb.mxu1 %v1237_v38 }
  0x3e   :  { %551 = vmatpush.bf16.msra.mxu0 %v1158_v13  ;;  %v512_v13 = vrot.slane %v509_v10, 3 }
  0x3f   :  { %597 = vmatpush.bf16.msra.mxu2 %v1173_v16  ;;  %v510_v16 = vrot.slane %v507_v21, 3 }
  0x40   :  { %538 = vmatpush.bf16.msrb.mxu3 %v1287_v50 }
  0x41   :  { %525 = vmatpush.bf16.msrb.mxu1 %v1264_v46  ;;  %999 = vmatmul.msk.bf16.vlgmr.msra.gmra.mxu0 %vm260_vm0, %v512_v13 }
  0x42   :  { %607 = vmatpush.bf16.msrb.mxu0 %v1168_v15  ;;  %v566_v15 = vshrl.u32 %v562_v25, 16 }
  0x43   :  { %598 = vmatpush.bf16.msra.mxu2 %v1200_v24  ;;  %539 = vmatmul.bf16.vlgmr.msrb.gmra.mxu3 %v511_v26  ;;  %v564_v24 = vpack.c.b16 %v506_v17, %v561_v27 }
  0x44   :  { %526 = vmatmul.bf16.vlgmr.msrb.gmra.mxu1 %v510_v16 }
  0x45   :  { %624 = vmatpush.bf16.msra.mxu1 %v1276_v48  ;;  %v582_v31 = vshrl.u32 %v564_v24, 16  ;;  %v585_v34 = vshll.u32 %v564_v24, 16  ;;  %v665_v48 = vld [vmem:[%s1484_s2 + $0x78] sm:$0xff] }
  0x46   :  { %608 = vmatpush.bf16.msrb.mxu0 %v1195_v23  ;;  %v568_v23 = vrot.slane %v566_v15, 2  ;;  %666 = vmatpush.msra.mxu3 %v665_v48 }
  0x47   :  { %599 = vmatpush.bf16.msra.mxu2 %v1224_v33  ;;  %v563_v33 = vpack.c.b16 %v505_v12, %v560_v30  ;;  %v584_v36 = vrot.slane %v582_v31, 2  ;;  %v587_v37 = vrot.slane %v585_v34, 3 }
  0x48   :  { %v572_v35 = vor.u32 %v571_v29, %v568_v23 }
  0x49   :  { %625 = vmatpush.bf16.msra.mxu1 %v1300_v56  ;;  %v574_v38 = vshrl.u32 %v563_v33, 16  ;;  %v661_v56 = vld [vmem:[%s1484_s2 + $0x58] sm:$0xff] }
  0x4a   :  { %609 = vmatpush.bf16.msrb.mxu0 %v1219_v32  ;;  %v588_v32 = vor.u32 %v587_v37, %v584_v36 }
  0x4b   :  { %600 = vmatpush.bf16.msra.mxu2 %v1249_v40  ;;  %v577_v40 = vshll.u32 %v563_v33, 16 }
  0x4d   :  { %626 = vmatpush.bf16.msra.mxu1 %v1316_v60  ;;  %v579_v41 = vrot.slane %v577_v40, 3  ;;  %v659_v60 = vld [vmem:[%s1484_s2 + $0x48] sm:$0xff] }
  0x4e   :  { %610 = vmatpush.bf16.msrb.mxu0 %v1244_v39  ;;  %v576_v39 = vrot.slane %v574_v38, 2 }
  0x4f   :  { %601 = vmatpush.bf16.msra.mxu2 %v1282_v49  ;;  %v664_v49 = vld [vmem:[%s1484_s2 + $0x70] sm:$0xff] }
  0x50   :  { %v580_v42 = vor.u32 %v579_v41, %v576_v39  ;;  %667 = vmatpush.msra.mxu3 %v664_v49 }
  0x51   :  { %627 = vmatpush.bf16.msra.mxu1 %v1333_v0 }
  0x52   :  { %611 = vmatpush.bf16.msrb.mxu0 %v1271_v47  ;;  %602 = vmatmul.bf16.vlgmr.msra.gmra.mxu2 %v572_v35 }
  0x53   :  { %668 = vmatpush.msra.mxu3 %v663_v53 }
  0x54   :  { %1000 = vmatmul.msk.bf16.vlgmr.msra.gmra.mxu1 %vm260_vm0, %v588_v32 }
  0x55   :  { %686 = vmatpush.msrb.mxu1 %v665_v48 }
  0x56   :  { %612 = vmatpush.bf16.msrb.mxu0 %v1295_v55  ;;  %v662_v55 = vld [vmem:[%s1484_s2 + $0x60] sm:$0xff] }
  0x57   :  { %687 = vmatpush.msrb.mxu1 %v664_v49  ;;  %669 = vmatpush.msra.mxu3 %v662_v55 }
  0x59   :  { %688 = vmatpush.msrb.mxu1 %v663_v53  ;;  %670 = vmatpush.msra.mxu3 %v661_v56 }
  0x5a   :  { %613 = vmatpush.bf16.msrb.mxu0 %v1311_v59 }
  0x5b   :  { %689 = vmatpush.msrb.mxu1 %v662_v55  ;;  %671 = vmatpush.msra.mxu3 %v660_v58 }
  0x5d   :  { %690 = vmatpush.msrb.mxu1 %v661_v56  ;;  %672 = vmatpush.msra.mxu3 %v659_v60 }
  0x5e   :  { %614 = vmatpush.bf16.msrb.mxu0 %v1328_v63  ;;  %v657_v63 = vld [vmem:[%s1484_s2 + $0x38] sm:$0xff] }
  0x5f   :  { %691 = vmatpush.msrb.mxu1 %v660_v58  ;;  %673 = vmatpush.msra.mxu3 %v658_v61 }
  0x61   :  { %615 = vmatmul.bf16.vlgmr.msrb.gmra.mxu0 %v580_v42  ;;  %692 = vmatpush.msrb.mxu1 %v659_v60 }
  0x62   :  { %674 = vmatpush.msra.mxu3 %v657_v63 }
  0x63   :  { %693 = vmatpush.msrb.mxu1 %v658_v61  ;;  %v730_v61 = vld [vmem:[%s1485_s3 + $0x18] sm:$0xff] }
  0x64   :  { %675 = vmatpush.msra.mxu3 %v656_v3  ;;  %747 = vmatpush.msrb.mxu2 %v730_v61 }
  0x65   :  { %694 = vmatpush.msrb.mxu1 %v657_v63  ;;  %v728_v63 = vld [vmem:[%s1485_s3 + $0x8] sm:$0xff] }
  0x66   :  { %676 = vmatpush.msra.mxu3 %v655_v1 }
  0x67   :  { %695 = vmatpush.msrb.mxu1 %v656_v3 }
  0x68   :  { %677 = vmatpush.msra.mxu3 %v654_v5 }
  0x69   :  { %696 = vmatpush.msrb.mxu1 %v655_v1 }
  0x6a   :  { %678 = vmatpush.msra.mxu3 %v653_v6 }
  0x6b   :  { %697 = vmatpush.msrb.mxu1 %v654_v5 }
  0x6c   :  { %679 = vmatpush.msra.mxu3 %v652_v8 }
  0x6d   :  { %698 = vmatpush.msrb.mxu1 %v653_v6 }
  0x6e   :  { %680 = vmatpush.msra.mxu3 %v651_v14 }
  0x6f   :  { %699 = vmatpush.msrb.mxu1 %v652_v8 }
  0x70   :  { %681 = vmatpush.msra.mxu3 %v650_v20 }
  0x71   :  { %700 = vmatpush.msrb.mxu1 %v651_v14 }
  0x73   :  { %701 = vmatpush.msrb.mxu1 %v650_v20  ;;  %v722_v20 = vld [vmem:[%s1486_s4] sm:$0x1] }
  0x95   :  { %v299_v43 = vpop.f32.mrf.mxu2 }
  0x9d   :  { %v301_v45 = vpop.f32.mrf.mxu2 }
  0x9e   :  { %v273_v44 = vpop.f32.mrf.mxu0 }
  0xa1   :  { %v286_v46 = vpop.f32.mrf.mxu1 }
  0xa2   :  { %v287_v0 = vadd.f32 %v286_v46, %v273_v44 }
  0xa4   :  { %v300_v2 = vadd.f32 %v299_v43, %v287_v0  ;;  %v727_v0 = vld [vmem:[%s1485_s3] sm:$0xff] }
  0xa6   :  { %v275_v47 = vpop.f32.mrf.mxu0  ;;  %v445_v50 = vpop.f32.mrf.mxu3 }
  0xa7   :  { %v446_v11 = vadd.f32 %v445_v50, %v300_v2 }
  0xa9   :  { %v288_v51 = vpop.f32.mrf.mxu1 }
  0xae   :  { %v471_v52 = vpop.f32.mrf.mxu0  ;;  %v447_v54 = vpop.f32.mrf.mxu3 }
  0xb5   :  { %v458_v57 = vpop.f32.mrf.mxu2 }
  0xb6   :  { %v473_v59 = vpop.f32.mrf.mxu0  ;;  %v459_v17 = vadd.f32 %v458_v57, %v446_v11 }
  0xb8   :  { %v1442_v9 = vadd.f32 %v471_v52, %v459_v17 }
  0xba   :  { %v483_v21 = vmul.f32 %v1442_v9, %v1442_v9  ;;  %v476_v26 = vsel %vm475_vm1, %v1442_v9, 0.0 }
  0xbb   :  { %v477_v27 = vrot.slane %v476_v26, 4 }
  0xbc   :  { %v484_v16 = vsel %vm475_vm1, %v483_v21, 0.0 }
  0xbd   :  { %v460_v62 = vpop.f32.mrf.mxu2  ;;  %v485_v28 = vrot.slane %v484_v16, 4  ;;  %v478_v23 = vadd.f32 %v477_v27, %v476_v26 }
  0xbe   :  { %v553_v4 = vpop.f32.mrf.mxu0  ;;  %v729_v62 = vld [vmem:[%s1485_s3 + $0x10] sm:$0xff] }
  0xbf   :  { %v486_v35 = vadd.f32 %v485_v28, %v484_v16  ;;  %v479_v36 = vrot.slane %v478_v23, 2  ;;  %748 = vmatpush.msrb.mxu2 %v729_v62 }
  0xc1   :  { %v527_v7 = vpop.f32.mrf.mxu1  ;;  %v487_v38 = vrot.slane %v486_v35, 2  ;;  %v480_v41 = vadd.f32 %v479_v36, %v478_v23  ;;  %749 = vmatpush.msrb.mxu2 %v728_v63 }
  0xc3   :  { %v488_v47 = vadd.f32 %v487_v38, %v486_v35  ;;  %v481_v50 = vrot.slane %v480_v41, 1  ;;  %750 = vmatpush.msrb.mxu2 %v727_v0 }
  0xc5   :  { %v489_v52 = vrot.slane %v488_v47, 1  ;;  %v482_v54 = vadd.f32 %v481_v50, %v480_v41  ;;  %770 = vmatpush.msra.mxu2 %v730_v61 }
  0xc6   :  { %v540_v12 = vpop.f32.mrf.mxu3  ;;  %v555_v18 = vpop.f32.mrf.mxu0 }
  0xc7   :  { %v541_v13 = vadd.f32 %v540_v12, %v527_v7  ;;  %v490_v58 = vadd.f32 %v489_v52, %v488_v47  ;;  %771 = vmatpush.msra.mxu2 %v729_v62 }
  0xc9   :  { %v529_v19 = vpop.f32.mrf.mxu1  ;;  %v554_v15 = vadd.f32 %v553_v4, %v541_v13  ;;  %772 = vmatpush.msra.mxu2 %v728_v63 }
  0xcb   :  { %773 = vmatpush.msra.mxu2 %v727_v0 }
  0xce   :  { %v542_v10 = vpop.f32.mrf.mxu3 }
  0xd1   :  { %v629_v25 = vpop.f32.mrf.mxu1 }
  0xd5   :  { %v603_v22 = vpop.f32.mrf.mxu2 }
  0xd6   :  { %v604_v24 = vadd.f32 %v603_v22, %v554_v15 }
  0xd9   :  { %v631_v34 = vpop.f32.mrf.mxu1 }
  0xdd   :  { %v605_v30 = vpop.f32.mrf.mxu2 }
  0xde   :  { %v616_v29 = vpop.f32.mrf.mxu0 }
  0xdf   :  { %v617_v31 = vadd.f32 %v616_v29, %v604_v24 }
  0xe1   :  { %v1449_v33 = vadd.f32 %v629_v25, %v617_v31  ;;  %v724_v25 = vld [vmem:[%s1487_s5] sm:$0x1] }
  0xe3   :  { %v633_v37 = vsel %vm475_vm1, %v1449_v33, 0.0  ;;  %v640_v32 = vmul.f32 %v1449_v33, %v1449_v33 }
  0xe4   :  { %v634_v40 = vrot.slane %v633_v37, 4 }
  0xe5   :  { %v641_v39 = vsel %vm475_vm1, %v640_v32, 0.0 }
  0xe6   :  { %v635_v42 = vadd.f32 %v634_v40, %v633_v37  ;;  %v642_v43 = vrot.slane %v641_v39, 4  ;;  %v618_v44 = vpop.f32.mrf.mxu0 }
  0xe8   :  { %v636_v45 = vrot.slane %v635_v42, 2  ;;  %v643_v46 = vadd.f32 %v642_v43, %v641_v39 }
  0xea   :  { %v637_v48 = vadd.f32 %v636_v45, %v635_v42  ;;  %v644_v49 = vrot.slane %v643_v46, 2 }
  0xec   :  { %v638_v51 = vrot.slane %v637_v48, 1  ;;  %v645_v53 = vadd.f32 %v644_v49, %v643_v46 }
  0xee   :  { %v639_v55 = vadd.f32 %v638_v51, %v637_v48  ;;  %v646_v56 = vrot.slane %v645_v53, 1 }
  0xf0   :  { %v648_v57 = vadd.f32 %v639_v55, %v482_v54  ;;  %v647_v59 = vadd.f32 %v646_v56, %v645_v53 }
  0xf2   :  { %682 = vmatmul.f32.vlgmr.msra.gmra.mxu3 %v648_v57  ;;  %v649_v60 = vadd.f32 %v647_v59, %v490_v58 }
  0xf4   :  { %702 = vmatmul.f32.vlgmr.msrb.gmra.mxu1 %v649_v60 }
 0x171   :  { %v703_v3 = vpop.f32.mrf.mxu1 }
 0x172   :  { %v707_v1 = vmul.f32 0.03125, %v703_v3 }
 0x175   :  { %v683_v4 = vpop.f32.mrf.mxu3 }
 0x176   :  { %v706_v7 = vmul.f32 0.03125, %v683_v4 }
 0x178   :  { %v708_v2 = vmul.f32 %v706_v7, %v706_v7 }
 0x17a   :  { %v709_v5 = vsub.f32 %v707_v1, %v708_v2 }
 0x17c   :  { %v710_v6 = vmax.f32 %v709_v5, 0.0 }
 0x17e   :  { %v711_v8 = vadd.f32 1e-05, %v710_v6 }
 0x180   :  { %1043 = vrsqrt.f32 %v711_v8  ;;  %vm718_vm3 = vweird.f32 %v711_v8 }
 0x186   :  { %v1044_v11 = vpop.eup %1043 }
 0x187   :  { %v713_v12 = vmul.f32 %v1044_v11, %v711_v8  ;;  %vm719_vm2 = vweird.f32 %v1044_v11 }
 0x188   :  { %vm720_vm4 = vmor %vm718_vm3, %vm719_vm2 }
 0x189   :  { %v714_v14 = vmul.f32 %v1044_v11, %v713_v12 }
 0x18b   :  { %v715_v17 = vmul.f32 0.5, %v714_v14 }
 0x18d   :  { %v716_v18 = vsub.f32 1.5, %v715_v17 }
 0x18f   :  { %v717_v19 = vmul.f32 %v1044_v11, %v716_v18 }
 0x191   :  { %v721_v10 = vsel %vm720_vm4, %v1044_v11, %v717_v19 }
 0x192   :  { %v723_v21 = vmul.f32 %v722_v20, %v721_v10 }
 0x194   :  { %1001 = vmatmul.msk.f32.vlgmr.msrb.gmra.mxu2 %vm731_vm5, %v723_v21  ;;  %v725_v22 = vmul.f32 %v723_v21, %v706_v7 }
 0x196   :  { %v726_v26 = vsub.f32 %v724_v25, %v725_v22 }
 0x19c   :  { %1002 = vmatmul.msk.f32.vlgmr.msra.gmra.mxu2 %vm731_vm5, %v726_v26 }
 0x217   :  { %v752_v13 = vpop.f32.mrf.mxu2 }
 0x218   :  { %v778_v16 = vperm.slane %v752_v13, 0 }
 0x21a   :  { %v779_v15 = vmul.f32 %v778_v16, %v1442_v9  ;;  %v785_v28 = vmul.f32 %v778_v16, %v1449_v33 }
 0x21f   :  { %v775_v27 = vpop.f32.mrf.mxu2 }
 0x220   :  { %v780_v24 = vperm.slane %v775_v27, 0 }
 0x222   :  { %v781_v23 = vadd.f32 %v780_v24, %v779_v15  ;;  %v786_v29 = vadd.f32 %v785_v28, %v780_v24 }
 0x224   :  { %v782_v30 = vmax.f32 %v781_v23, 0.0  ;;  %v787_v31 = vmax.f32 %v786_v29, 0.0 }
 0x226   :  { %v783_v34 = vpack.c.bf16 %v782_v30, %v782_v30  ;;  %v788_v35 = vpack.c.bf16 %v787_v31, %v787_v31 }
 0x228   :  { %784 = vst [vmem:[%s1488_s6] sm:$0x3] %v783_v34  ;;  %v790_v36 = vrot.slane %v788_v35, 6 }
 0x22a   :  { %792 = vst [vmem:[%s1488_s6] sm:$0xc] %v790_v36 }

// kernel: resnet_generator_forward.14
= control target key start
LH: loop header
LB: loop body
LE: loop exit
PB: predicated region body
PF: predicated region fallthrough
CT: control target
= control target key end

     0   :  { %vm170_vm0 = vcmask 523264   ;;  %vm443_vm1 = vcmask 1043456   ;;  %vm684_vm5 = vcmask 261120   ;;  %s1412_s1 = inlined_call_operand.vmem [shape: bf16[3,192,128], index: 1, kind: input, shape index: {}]   ;;  %s1413_s0 = inlined_call_operand.vmem [shape: bf16[12,192], index: 0, kind: input, shape index: {}]   ;;  %s1414_s2 = inlined_call_operand.vmem [shape: f32[128,32], index: 2, kind: input, shape index: {}]   ;;  %s1415_s3 = inlined_call_operand.vmem [shape: f32[32,128], index: 3, kind: input, shape index: {}]   ;;  %s1416_s4 = inlined_call_operand.vmem [shape: f32[1,32], index: 4, kind: input, shape index: {}]   ;;  %s1417_s5 = inlined_call_operand.vmem [shape: f32[1,32], index: 5, kind: input, shape index: {}]   ;;  %s1418_s6 = inlined_call_operand.vmem [shape: bf16[8,128], index: 6, kind: input, shape index: {}]   ;;  %s1419_s7 = inlined_call_operand.vmem [shape: bf16[8,128], index: 7, kind: output, shape index: {}]  }
   0x1   :  { %v1040_v0 = vld [vmem:[%s1412_s1 + $0x98] sm:$0xff]  ;;  %v1062_v4 = vld [vmem:[%s1412_s1 + $0x90] sm:$0xff]  ;;  %v1086_v8 = vld [vmem:[%s1412_s1 + $0x88] sm:$0xff] }
   0x2   :  { %v1045_v1 = vld [vmem:[%s1412_s1 + $0xb8] sm:$0xff]  ;;  %174 = vmatpush.bf16.msra.mxu0 %v1040_v0  ;;  %v1067_v5 = vld [vmem:[%s1412_s1 + $0xb0] sm:$0xff]  ;;  %v1091_v9 = vld [vmem:[%s1412_s1 + $0xa8] sm:$0xff] }
   0x3   :  { %v1050_v2 = vld [vmem:[%s1412_s1 + $0x38] sm:$0xff]  ;;  %191 = vmatpush.bf16.msra.mxu1 %v1045_v1  ;;  %v1074_v6 = vld [vmem:[%s1412_s1 + $0x30] sm:$0xff]  ;;  %v1098_v10 = vld [vmem:[%s1412_s1 + $0x28] sm:$0xff] }
   0x4   :  { %v1055_v3 = vld [vmem:[%s1412_s1 + $0x58] sm:$0xff]  ;;  %281 = vmatpush.bf16.msra.mxu2 %v1050_v2  ;;  %v1079_v7 = vld [vmem:[%s1412_s1 + $0x50] sm:$0xff]  ;;  %v1103_v11 = vld [vmem:[%s1412_s1 + $0x48] sm:$0xff] }
   0x5   :  { %298 = vmatpush.bf16.msra.mxu3 %v1055_v3  ;;  %v1108_v12 = vld [vmem:[%s1413_s0] sm:$0x33]  ;;  %v1135_v17 = vld [vmem:[%s1412_s1 + $0xf8] sm:$0xff]  ;;  %v1165_v26 = vld [vmem:[%s1412_s1 + $0xf0] sm:$0xff] }
   0x6   :  { %175 = vmatpush.bf16.msra.mxu0 %v1062_v4  ;;  %v1115_v13 = vld [vmem:[%s1412_s1 + $0x80] sm:$0xff]  ;;  %v202_v20 = vunpack.c.h.b16 %v1108_v12  ;;  %v1146_v21 = vld [vmem:[%s1412_s1 + $0x118] sm:$0xff]  ;;  %v1172_v30 = vld [vmem:[%s1412_s1 + $0x110] sm:$0xff]  ;;  %v201_v49 = vunpack.c.l.b16 %v1108_v12 }
   0x7   :  { %192 = vmatpush.bf16.msra.mxu1 %v1067_v5  ;;  %v1120_v14 = vld [vmem:[%s1412_s1 + $0xa0] sm:$0xff]  ;;  %v1153_v24 = vld [vmem:[%s1412_s1 + $0x78] sm:$0xff]  ;;  %v1178_v33 = vld [vmem:[%s1412_s1 + $0x70] sm:$0xff] }
   0x8   :  { %282 = vmatpush.bf16.msra.mxu2 %v1074_v6  ;;  %v52_v15 = vld [vmem:[%s1413_s0] sm:$0x77]  ;;  %v1160_v25 = vld [vmem:[%s1412_s1 + $0x18] sm:$0xff]  ;;  %v204_v29 = vpack.c.b16 %v202_v20, %v202_v20  ;;  %v1185_v34 = vld [vmem:[%s1412_s1 + $0x10] sm:$0xff]  ;;  %v203_v55 = vpack.c.b16 %v201_v49, %v201_v49 }
   0x9   :  { %299 = vmatpush.bf16.msra.mxu3 %v1079_v7  ;;  %v1130_v16 = vld [vmem:[%s1412_s1 + $0x20] sm:$0xff]  ;;  %v80_v18 = vunpack.c.h.b16 %v52_v15  ;;  %v79_v23 = vunpack.c.l.b16 %v52_v15  ;;  %v1190_v35 = vld [vmem:[%s1412_s1 + $0xe8] sm:$0xff]  ;;  %v1244_v50 = vld [vmem:[%s1412_s1 + $0xd8] sm:$0xff] }
   0xa   :  { %176 = vmatpush.bf16.msra.mxu0 %v1086_v8  ;;  %v1140_v19 = vld [vmem:[%s1412_s1 + $0x40] sm:$0xff]  ;;  %v1197_v37 = vld [vmem:[%s1412_s1 + $0x108] sm:$0xff]  ;;  %v1265_v58 = vld [vmem:[%s1412_s1 + $0xd0] sm:$0xff] }
   0xb   :  { %193 = vmatpush.bf16.msra.mxu1 %v1091_v9  ;;  %v82_v22 = vpack.c.b16 %v80_v18, %v80_v18  ;;  %v81_v32 = vpack.c.b16 %v79_v23, %v79_v23  ;;  %v1204_v39 = vld [vmem:[%s1412_s1 + $0x68] sm:$0xff]  ;;  %v307_v40 = vld [vmem:[%s1413_s0] sm:$0x66]  ;;  %v1249_v51 = vld [vmem:[%s1413_s0] sm:$0x88] }
   0xc   :  { %283 = vmatpush.bf16.msra.mxu2 %v1098_v10  ;;  %v1214_v41 = vld [vmem:[%s1412_s1 + $0x8] sm:$0xff]  ;;  %v1219_v42 = vld [vmem:[%s1412_s1 + $0xe0] sm:$0xff]  ;;  %v335_v44 = vunpack.c.h.b16 %v307_v40  ;;  %v465_v56 = vunpack.c.h.b16 %v1249_v51  ;;  %v334_v60 = vunpack.c.l.b16 %v307_v40 }
   0xd   :  { %300 = vmatpush.bf16.msra.mxu3 %v1103_v11  ;;  %v91_v27 = vshrl.u32 %v82_v22, 16  ;;  %v93_v28 = vshll.u32 %v82_v22, 16  ;;  %v86_v38 = vshll.u32 %v81_v32, 16  ;;  %v1225_v43 = vld [vmem:[%s1412_s1 + $0x100] sm:$0xff]  ;;  %v84_v45 = vshrl.u32 %v81_v32, 16  ;;  %v984_v62 = vld [vmem:[%s1412_s1 + $0xc8] sm:$0xff] }
   0xe   :  { %177 = vmatpush.bf16.msra.mxu0 %v1115_v13  ;;  %v1231_v47 = vld [vmem:[%s1412_s1 + $0x60] sm:$0xff]  ;;  %v461_v52 = vld [vmem:[%s1413_s0 + $0x8] sm:$0x33]  ;;  %v337_v53 = vpack.c.b16 %v335_v44, %v335_v44  ;;  %v336_v63 = vpack.c.b16 %v334_v60, %v334_v60  ;;  %v610_v44 = vld [vmem:[%s1414_s2 + $0x38] sm:$0xff] }
   0xf   :  { %194 = vmatpush.bf16.msra.mxu1 %v1120_v14  ;;  %v95_v31 = vrot.slane %v93_v28, 1  ;;  %v88_v46 = vrot.slane %v86_v38, 1  ;;  %v1236_v48 = vld [vmem:[%s1412_s1] sm:$0xff]  ;;  %v1258_v57 = vunpack.c.h.b16 %v461_v52  ;;  %v466_v12 = vunpack.c.l.b16 %v461_v52  ;;  %v616_v32 = vld [vmem:[%s1414_s2 + $0x68] sm:$0xff]  ;;  %v613_v38 = vld [vmem:[%s1414_s2 + $0x50] sm:$0xff] }
  0x10   :  { %284 = vmatpush.bf16.msra.mxu2 %v1130_v16  ;;  %v339_v59 = vrot.slane %v337_v53, 1  ;;  %v612_v40 = vld [vmem:[%s1414_s2 + $0x48] sm:$0xff]  ;;  %v607_v49 = vld [vmem:[%s1414_s2 + $0x20] sm:$0xff]  ;;  %v606_v52 = vld [vmem:[%s1414_s2 + $0x18] sm:$0xff] }
  0x11   :  { %301 = vmatpush.bf16.msra.mxu3 %v1140_v19  ;;  %v96_v36 = vor.u32 %v95_v31, %v91_v27  ;;  %v89_v54 = vor.u32 %v88_v46, %v84_v45  ;;  %v469_v61 = vpack.c.b16 %v1258_v57, %v465_v56  ;;  %v609_v46 = vld [vmem:[%s1414_s2 + $0x30] sm:$0xff] }
  0x12   :  { %178 = vmatpush.bf16.msra.mxu0 %v1153_v24  ;;  %v605_v53 = vld [vmem:[%s1414_s2 + $0x10] sm:$0xff] }
  0x13   :  { %416 = vmatpush.bf16.msrb.mxu1 %v1135_v17 }
  0x14   :  { %285 = vmatpush.bf16.msra.mxu2 %v1160_v25  ;;  %880 = vmatmul.msk.bf16.vlgmr.msra.gmra.mxu3 %vm170_vm0, %v204_v29  ;;  %v618_v29 = vld [vmem:[%s1414_s2 + $0x78] sm:$0xff] }
  0x15   :  { %433 = vmatpush.bf16.msrb.mxu3 %v1146_v21  ;;  %831 = vmatmul.msk.bf16.vlgmr.msra.gmra.mxu1 %vm170_vm0, %v96_v36 }
  0x16   :  { %179 = vmatpush.bf16.msra.mxu0 %v1178_v33 }
  0x17   :  { %417 = vmatpush.bf16.msrb.mxu1 %v1165_v26 }
  0x18   :  { %286 = vmatpush.bf16.msra.mxu2 %v1185_v34 }
  0x19   :  { %434 = vmatpush.bf16.msrb.mxu3 %v1172_v30 }
  0x1a   :  { %180 = vmatpush.bf16.msra.mxu0 %v1204_v39 }
  0x1b   :  { %418 = vmatpush.bf16.msrb.mxu1 %v1190_v35 }
  0x1c   :  { %287 = vmatpush.bf16.msra.mxu2 %v1214_v41 }
  0x1d   :  { %435 = vmatpush.bf16.msrb.mxu3 %v1197_v37 }
  0x1e   :  { %181 = vmatpush.bf16.msra.mxu0 %v1231_v47 }
  0x1f   :  { %419 = vmatpush.bf16.msrb.mxu1 %v1219_v42 }
  0x20   :  { %288 = vmatpush.bf16.msra.mxu2 %v1236_v48 }
  0x21   :  { %436 = vmatpush.bf16.msrb.mxu3 %v1225_v43  ;;  %182 = vmatmul.bf16.vlgmr.msra.gmra.mxu0 %v89_v54 }
  0x22   :  { %490 = vmatpush.bf16.msrb.mxu0 %v1040_v0  ;;  %v479_v0 = vshrl.u32 %v469_v61, 16 }
  0x23   :  { %420 = vmatpush.bf16.msrb.mxu1 %v1244_v50  ;;  %289 = vmatmul.bf16.vlgmr.msra.gmra.mxu2 %v203_v55 }
  0x24   :  { %507 = vmatpush.bf16.msrb.mxu2 %v1045_v1  ;;  %953 = vmatmul.msk.bf16.vlgmr.msrb.gmra.mxu3 %vm170_vm0, %v339_v59  ;;  %v482_v1 = vshll.u32 %v469_v61, 16  ;;  %v603_v59 = vld [vmem:[%s1414_s2] sm:$0xff] }
  0x25   :  { %527 = vmatpush.bf16.msra.mxu3 %v1050_v2  ;;  %v983_v2 = vld [vmem:[%s1412_s1 + $0xc0] sm:$0xff] }
  0x26   :  { %491 = vmatpush.bf16.msrb.mxu0 %v1062_v4  ;;  %v338_v4 = vrot.slane %v336_v63, 1 }
  0x27   :  { %421 = vmatpush.bf16.msrb.mxu1 %v1265_v58 }
  0x28   :  { %508 = vmatpush.bf16.msrb.mxu2 %v1067_v5  ;;  %v481_v5 = vrot.slane %v479_v0, 3 }
  0x29   :  { %528 = vmatpush.bf16.msra.mxu3 %v1074_v6  ;;  %v484_v6 = vrot.slane %v482_v1, 4 }
  0x2a   :  { %492 = vmatpush.bf16.msrb.mxu0 %v1086_v8 }
  0x2b   :  { %422 = vmatpush.bf16.msrb.mxu1 %v984_v62  ;;  %v485_v8 = vor.u32 %v484_v6, %v481_v5 }
  0x2c   :  { %509 = vmatpush.bf16.msrb.mxu2 %v1091_v9  ;;  %v460_v9 = vld [vmem:[%s1413_s0 + $0x8] sm:$0x11] }
  0x2d   :  { %529 = vmatpush.bf16.msra.mxu3 %v1098_v10  ;;  %v464_v10 = vunpack.c.l.b16 %v1249_v51 }
  0x2e   :  { %493 = vmatpush.bf16.msrb.mxu0 %v1115_v13  ;;  %v517_v13 = vunpack.c.l.b16 %v460_v9 }
  0x2f   :  { %423 = vmatpush.bf16.msrb.mxu1 %v983_v2  ;;  %v468_v15 = vpack.c.b16 %v466_v12, %v464_v10 }
  0x30   :  { %510 = vmatpush.bf16.msrb.mxu2 %v1120_v14 }
  0x31   :  { %530 = vmatpush.bf16.msra.mxu3 %v1130_v16  ;;  %v471_v14 = vshrl.u32 %v468_v15, 16  ;;  %v474_v16 = vshll.u32 %v468_v15, 16 }
  0x32   :  { %424 = vmatmul.bf16.vlgmr.msrb.gmra.mxu1 %v338_v4  ;;  %494 = vmatpush.bf16.msrb.mxu0 %v1153_v24 }
  0x33   :  { %544 = vmatpush.bf16.msra.mxu1 %v1055_v3  ;;  %954 = vmatmul.msk.bf16.vlgmr.msrb.gmra.mxu2 %vm170_vm0, %v485_v8  ;;  %v518_v3 = vunpack.c.h.b16 %v460_v9  ;;  %v473_v20 = vrot.slane %v471_v14, 3 }
  0x34   :  { %559 = vmatpush.bf16.msra.mxu2 %v1135_v17  ;;  %v519_v17 = vpack.c.b16 %v517_v13, %v464_v10 }
  0x35   :  { %531 = vmatpush.bf16.msra.mxu3 %v1160_v25  ;;  %v520_v18 = vpack.c.b16 %v518_v3, %v465_v56  ;;  %v604_v56 = vld [vmem:[%s1414_s2 + $0x8] sm:$0xff] }
  0x36   :  { %495 = vmatpush.bf16.msrb.mxu0 %v1178_v33  ;;  %v521_v22 = vrot.slane %v519_v17, 3 }
  0x37   :  { %545 = vmatpush.bf16.msra.mxu1 %v1079_v7  ;;  %v476_v7 = vrot.slane %v474_v16, 4  ;;  %v522_v23 = vrot.slane %v520_v18, 3 }
  0x38   :  { %560 = vmatpush.bf16.msra.mxu2 %v1165_v26 }
  0x39   :  { %532 = vmatpush.bf16.msra.mxu3 %v1185_v34  ;;  %v477_v24 = vor.u32 %v476_v7, %v473_v20  ;;  %v615_v34 = vld [vmem:[%s1414_s2 + $0x60] sm:$0xff] }
  0x3a   :  { %496 = vmatpush.bf16.msrb.mxu0 %v1204_v39 }
  0x3b   :  { %546 = vmatpush.bf16.msra.mxu1 %v1103_v11  ;;  %v553_v11 = vpack.c.b16 %v466_v12, %v466_v12 }
  0x3c   :  { %561 = vmatpush.bf16.msra.mxu2 %v1190_v35 }
  0x3d   :  { %533 = vmatpush.bf16.msra.mxu3 %v1214_v41 }
  0x3e   :  { %497 = vmatpush.bf16.msrb.mxu0 %v1231_v47 }
  0x3f   :  { %547 = vmatpush.bf16.msra.mxu1 %v1140_v19  ;;  %v554_v19 = vpack.c.b16 %v1258_v57, %v1258_v57 }
  0x40   :  { %562 = vmatpush.bf16.msra.mxu2 %v1219_v42  ;;  %v611_v42 = vld [vmem:[%s1414_s2 + $0x40] sm:$0xff] }
  0x41   :  { %534 = vmatpush.bf16.msra.mxu3 %v1236_v48  ;;  %498 = vmatmul.bf16.vlgmr.msrb.gmra.mxu0 %v477_v24  ;;  %v608_v48 = vld [vmem:[%s1414_s2 + $0x28] sm:$0xff] }
  0x42   :  { %576 = vmatpush.bf16.msra.mxu0 %v1146_v21  ;;  %955 = vmatmul.msk.bf16.vlgmr.msra.gmra.mxu1 %vm170_vm0, %v522_v23 }
  0x43   :  { %619 = vmatpush.msrb.mxu1 %v618_v29 }
  0x44   :  { %563 = vmatpush.bf16.msra.mxu2 %v1244_v50  ;;  %535 = vmatmul.bf16.vlgmr.msra.gmra.mxu3 %v521_v22 }
  0x45   :  { %639 = vmatpush.msrb.mxu3 %v618_v29 }
  0x46   :  { %577 = vmatpush.bf16.msra.mxu0 %v1172_v30  ;;  %v617_v30 = vld [vmem:[%s1414_s2 + $0x70] sm:$0xff] }
  0x47   :  { %620 = vmatpush.msrb.mxu1 %v617_v30  ;;  %640 = vmatpush.msrb.mxu3 %v617_v30 }
  0x48   :  { %564 = vmatpush.bf16.msra.mxu2 %v1265_v58 }
  0x49   :  { %621 = vmatpush.msrb.mxu1 %v616_v32  ;;  %641 = vmatpush.msrb.mxu3 %v616_v32 }
  0x4a   :  { %578 = vmatpush.bf16.msra.mxu0 %v1197_v37  ;;  %v614_v37 = vld [vmem:[%s1414_s2 + $0x58] sm:$0xff] }
  0x4b   :  { %622 = vmatpush.msrb.mxu1 %v615_v34  ;;  %642 = vmatpush.msrb.mxu3 %v615_v34 }
  0x4c   :  { %565 = vmatpush.bf16.msra.mxu2 %v984_v62 }
  0x4d   :  { %623 = vmatpush.msrb.mxu1 %v614_v37  ;;  %643 = vmatpush.msrb.mxu3 %v614_v37 }
  0x4e   :  { %579 = vmatpush.bf16.msra.mxu0 %v1225_v43 }
  0x4f   :  { %624 = vmatpush.msrb.mxu1 %v613_v38  ;;  %644 = vmatpush.msrb.mxu3 %v613_v38 }
  0x50   :  { %566 = vmatpush.bf16.msra.mxu2 %v983_v2 }
  0x51   :  { %956 = vmatmul.msk.bf16.vlgmr.msra.gmra.mxu0 %vm170_vm0, %v554_v19  ;;  %625 = vmatpush.msrb.mxu1 %v612_v40 }
  0x52   :  { %645 = vmatpush.msrb.mxu3 %v612_v40 }
  0x53   :  { %567 = vmatmul.bf16.vlgmr.msra.gmra.mxu2 %v553_v11  ;;  %626 = vmatpush.msrb.mxu1 %v611_v42 }
  0x54   :  { %646 = vmatpush.msrb.mxu3 %v611_v42  ;;  %v683_v42 = vld [vmem:[%s1415_s3 + $0x18] sm:$0xff] }
  0x55   :  { %627 = vmatpush.msrb.mxu1 %v610_v44  ;;  %723 = vmatpush.msrb.mxu2 %v683_v42 }
  0x56   :  { %647 = vmatpush.msrb.mxu3 %v610_v44  ;;  %700 = vmatpush.msrb.mxu0 %v683_v42  ;;  %v681_v44 = vld [vmem:[%s1415_s3 + $0x8] sm:$0xff] }
  0x57   :  { %628 = vmatpush.msrb.mxu1 %v609_v46 }
  0x58   :  { %648 = vmatpush.msrb.mxu3 %v609_v46  ;;  %v680_v46 = vld [vmem:[%s1415_s3] sm:$0xff] }
  0x59   :  { %629 = vmatpush.msrb.mxu1 %v608_v48 }
  0x5a   :  { %649 = vmatpush.msrb.mxu3 %v608_v48 }
  0x5b   :  { %630 = vmatpush.msrb.mxu1 %v607_v49 }
  0x5c   :  { %650 = vmatpush.msrb.mxu3 %v607_v49 }
  0x5d   :  { %631 = vmatpush.msrb.mxu1 %v606_v52 }
  0x5e   :  { %651 = vmatpush.msrb.mxu3 %v606_v52 }
  0x5f   :  { %632 = vmatpush.msrb.mxu1 %v605_v53 }
  0x60   :  { %652 = vmatpush.msrb.mxu3 %v605_v53 }
  0x61   :  { %633 = vmatpush.msrb.mxu1 %v604_v56 }
  0x62   :  { %653 = vmatpush.msrb.mxu3 %v604_v56 }
  0x63   :  { %634 = vmatpush.msrb.mxu1 %v603_v59 }
  0x64   :  { %654 = vmatpush.msrb.mxu3 %v603_v59 }
  0x92   :  { %v196_v21 = vpop.f32.mrf.mxu1 }
  0x97   :  { %v303_v25 = vpop.f32.mrf.mxu3 }
  0x9a   :  { %v198_v26 = vpop.f32.mrf.mxu1 }
  0x9e   :  { %v183_v27 = vpop.f32.mrf.mxu0 }
  0x9f   :  { %v305_v28 = vpop.f32.mrf.mxu3  ;;  %v197_v47 = vadd.f32 %v196_v21, %v183_v27 }
  0xa6   :  { %v290_v31 = vpop.f32.mrf.mxu2  ;;  %v185_v33 = vpop.f32.mrf.mxu0 }
  0xa7   :  { %v438_v35 = vpop.f32.mrf.mxu3  ;;  %v291_v50 = vadd.f32 %v290_v31, %v197_v47 }
  0xa9   :  { %v304_v57 = vadd.f32 %v303_v25, %v291_v50 }
  0xae   :  { %v292_v39 = vpop.f32.mrf.mxu2 }
  0xaf   :  { %v425_v36 = vpop.f32.mrf.mxu1  ;;  %v440_v41 = vpop.f32.mrf.mxu3 }
  0xb0   :  { %v439_v58 = vadd.f32 %v438_v35, %v425_v36 }
  0xb2   :  { %v1366_v61 = vadd.f32 %v439_v58, %v304_v57 }
  0xb4   :  { %v451_v0 = vmul.f32 %v1366_v61, %v1366_v61  ;;  %v444_v1 = vsel %vm443_vm1, %v1366_v61, 0.0 }
  0xb5   :  { %v445_v6 = vrot.slane %v444_v1, 4 }
  0xb6   :  { %v512_v45 = vpop.f32.mrf.mxu2  ;;  %v452_v5 = vsel %vm443_vm1, %v451_v0, 0.0  ;;  %v677_v0 = vld [vmem:[%s1417_s5] sm:$0x1] }
  0xb7   :  { %v427_v43 = vpop.f32.mrf.mxu1  ;;  %v453_v8 = vrot.slane %v452_v5, 4  ;;  %v446_v9 = vadd.f32 %v445_v6, %v444_v1 }
  0xb8   :  { %v682_v43 = vld [vmem:[%s1415_s3 + $0x10] sm:$0xff] }
  0xb9   :  { %v454_v14 = vadd.f32 %v453_v8, %v452_v5  ;;  %v447_v17 = vrot.slane %v446_v9, 2  ;;  %724 = vmatpush.msrb.mxu2 %v682_v43  ;;  %701 = vmatpush.msrb.mxu0 %v682_v43  ;;  %v743_v5 = vld [vmem:[%s1418_s6] sm:$0xc] }
  0xbb   :  { %v455_v22 = vrot.slane %v454_v14, 2  ;;  %v448_v11 = vadd.f32 %v447_v17, %v446_v9  ;;  %725 = vmatpush.msrb.mxu2 %v681_v44  ;;  %702 = vmatpush.msrb.mxu0 %v681_v44 }
  0xbd   :  { %v456_v28 = vadd.f32 %v455_v22, %v454_v14  ;;  %v449_v31 = vrot.slane %v448_v11, 1  ;;  %703 = vmatpush.msrb.mxu0 %v680_v46  ;;  %726 = vmatpush.msrb.mxu2 %v680_v46 }
  0xbe   :  { %v499_v54 = vpop.f32.mrf.mxu0  ;;  %v514_v55 = vpop.f32.mrf.mxu2 }
  0xbf   :  { %v549_v51 = vpop.f32.mrf.mxu1  ;;  %v513_v2 = vadd.f32 %v512_v45, %v499_v54  ;;  %v457_v33 = vrot.slane %v456_v28, 1  ;;  %v450_v35 = vadd.f32 %v449_v31, %v448_v11 }
  0xc1   :  { %v458_v39 = vadd.f32 %v457_v33, %v456_v28 }
  0xc6   :  { %v501_v63 = vpop.f32.mrf.mxu0 }
  0xc7   :  { %v536_v60 = vpop.f32.mrf.mxu3  ;;  %v551_v62 = vpop.f32.mrf.mxu1 }
  0xc8   :  { %v537_v10 = vadd.f32 %v536_v60, %v513_v2  ;;  %v675_v60 = vld [vmem:[%s1416_s4] sm:$0x1] }
  0xca   :  { %v550_v13 = vadd.f32 %v549_v51, %v537_v10  ;;  %v735_v10 = vld [vmem:[%s1418_s6] sm:$0x3] }
  0xcb   :  { %v736_v9 = vunpack.c.l.bf16 %v735_v10 }
  0xce   :  { %v581_v12 = vpop.f32.mrf.mxu0 }
  0xcf   :  { %v538_v4 = vpop.f32.mrf.mxu3 }
  0xd6   :  { %v568_v15 = vpop.f32.mrf.mxu2  ;;  %v583_v7 = vpop.f32.mrf.mxu0 }
  0xd7   :  { %v582_v3 = vadd.f32 %v581_v12, %v568_v15  ;;  %v744_v12 = vunpack.c.l.bf16 %v743_v5 }
  0xd9   :  { %v1373_v16 = vadd.f32 %v582_v3, %v550_v13  ;;  %v746_v14 = vrot.slane %v744_v12, 4 }
  0xdb   :  { %v586_v18 = vsel %vm443_vm1, %v1373_v16, 0.0  ;;  %v593_v20 = vmul.f32 %v1373_v16, %v1373_v16 }
  0xdc   :  { %v587_v23 = vrot.slane %v586_v18, 4 }
  0xdd   :  { %v594_v24 = vsel %vm443_vm1, %v593_v20, 0.0 }
  0xde   :  { %v588_v19 = vadd.f32 %v587_v23, %v586_v18  ;;  %v595_v21 = vrot.slane %v594_v24, 4  ;;  %v570_v25 = vpop.f32.mrf.mxu2 }
  0xe0   :  { %v589_v26 = vrot.slane %v588_v19, 2  ;;  %v596_v27 = vadd.f32 %v595_v21, %v594_v24 }
  0xe2   :  { %v590_v29 = vadd.f32 %v589_v26, %v588_v19  ;;  %v597_v30 = vrot.slane %v596_v27, 2 }
  0xe4   :  { %v591_v32 = vrot.slane %v590_v29, 1  ;;  %v598_v34 = vadd.f32 %v597_v30, %v596_v27 }
  0xe6   :  { %v592_v36 = vadd.f32 %v591_v32, %v590_v29  ;;  %v599_v37 = vrot.slane %v598_v34, 1 }
  0xe8   :  { %v601_v38 = vadd.f32 %v592_v36, %v450_v35  ;;  %v600_v40 = vadd.f32 %v599_v37, %v598_v34 }
  0xea   :  { %635 = vmatmul.f32.vlgmr.msrb.gmra.mxu1 %v601_v38  ;;  %v602_v41 = vadd.f32 %v600_v40, %v458_v39 }
  0xec   :  { %655 = vmatmul.f32.vlgmr.msrb.gmra.mxu3 %v602_v41 }
 0x167   :  { %v636_v45 = vpop.f32.mrf.mxu1 }
 0x168   :  { %v659_v47 = vmul.f32 0.03125, %v636_v45 }
 0x16a   :  { %v661_v49 = vmul.f32 %v659_v47, %v659_v47 }
 0x16f   :  { %v656_v48 = vpop.f32.mrf.mxu3 }
 0x170   :  { %v660_v50 = vmul.f32 0.03125, %v656_v48 }
 0x172   :  { %v662_v51 = vsub.f32 %v660_v50, %v661_v49 }
 0x174   :  { %v663_v52 = vmax.f32 %v662_v51, 0.0 }
 0x176   :  { %v664_v53 = vadd.f32 1e-05, %v663_v52 }
 0x178   :  { %995 = vrsqrt.f32 %v664_v53  ;;  %vm671_vm3 = vweird.f32 %v664_v53 }
 0x17e   :  { %v996_v54 = vpop.eup %995 }
 0x17f   :  { %v666_v55 = vmul.f32 %v996_v54, %v664_v53  ;;  %vm672_vm2 = vweird.f32 %v996_v54 }
 0x180   :  { %vm673_vm4 = vmor %vm671_vm3, %vm672_vm2 }
 0x181   :  { %v667_v56 = vmul.f32 %v996_v54, %v666_v55 }
 0x183   :  { %v668_v57 = vmul.f32 0.5, %v667_v56 }
 0x185   :  { %v669_v58 = vsub.f32 1.5, %v668_v57 }
 0x187   :  { %v670_v59 = vmul.f32 %v996_v54, %v669_v58 }
 0x189   :  { %v674_v62 = vsel %vm673_vm4, %v996_v54, %v670_v59 }
 0x18a   :  { %v676_v63 = vmul.f32 %v675_v60, %v674_v62 }
 0x18c   :  { %v678_v1 = vmul.f32 %v676_v63, %v659_v47  ;;  %957 = vmatmul.msk.f32.vlgmr.msrb.gmra.mxu0 %vm684_vm5, %v676_v63 }
 0x18e   :  { %v679_v2 = vsub.f32 %v677_v0, %v678_v1 }
 0x190   :  { %958 = vmatmul.msk.f32.vlgmr.msrb.gmra.mxu2 %vm684_vm5, %v679_v2 }
 0x209   :  { %v705_v4 = vpop.f32.mrf.mxu0 }
 0x20a   :  { %v731_v6 = vperm.slane %v705_v4, 0 }
 0x20c   :  { %v732_v15 = vmul.f32 %v731_v6, %v1366_v61  ;;  %v741_v13 = vmul.f32 %v731_v6, %v1373_v16 }
 0x213   :  { %v728_v8 = vpop.f32.mrf.mxu2 }
 0x214   :  { %v733_v3 = vperm.slane %v728_v8, 0 }
 0x216   :  { %v734_v17 = vadd.f32 %v733_v3, %v732_v15  ;;  %v742_v18 = vadd.f32 %v741_v13, %v733_v3 }
 0x218   :  { %v737_v20 = vadd.f32 %v736_v9, %v734_v17  ;;  %v748_v7 = vadd.f32 %v746_v14, %v742_v18 }
 0x21a   :  { %v738_v22 = vmax.f32 %v737_v20, 0.0  ;;  %v749_v23 = vmax.f32 %v748_v7, 0.0 }
 0x21c   :  { %v739_v24 = vpack.c.bf16 %v738_v22, %v738_v22  ;;  %v750_v11 = vpack.c.bf16 %v749_v23, %v749_v23 }
 0x21e   :  { %740 = vst [vmem:[%s1419_s7] sm:$0x3] %v739_v24  ;;  %v752_v19 = vrot.slane %v750_v11, 6 }
 0x220   :  { %754 = vst [vmem:[%s1419_s7] sm:$0xc] %v752_v19 }

// kernel: resnet_generator_forward.13
= control target key start
LH: loop header
LB: loop body
LE: loop exit
PB: predicated region body
PF: predicated region fallthrough
CT: control target
= control target key end

     0   :  { %vm167_vm0 = vcmask 523264   ;;  %vm440_vm1 = vcmask 1043456   ;;  %vm681_vm5 = vcmask 261120   ;;  %s1389_s1 = inlined_call_operand.vmem [shape: bf16[3,192,128], index: 1, kind: input, shape index: {}]   ;;  %s1390_s0 = inlined_call_operand.vmem [shape: bf16[12,192], index: 0, kind: input, shape index: {}]   ;;  %s1391_s2 = inlined_call_operand.vmem [shape: f32[128,32], index: 2, kind: input, shape index: {}]   ;;  %s1392_s3 = inlined_call_operand.vmem [shape: f32[32,128], index: 3, kind: input, shape index: {}]   ;;  %s1393_s4 = inlined_call_operand.vmem [shape: f32[1,32], index: 4, kind: input, shape index: {}]   ;;  %s1394_s5 = inlined_call_operand.vmem [shape: f32[1,32], index: 5, kind: input, shape index: {}]   ;;  %s1395_s6 = inlined_call_operand.vmem [shape: bf16[8,128], index: 6, kind: output, shape index: {}]  }
   0x1   :  { %v1023_v0 = vld [vmem:[%s1389_s1 + $0x98] sm:$0xff]  ;;  %v1045_v4 = vld [vmem:[%s1389_s1 + $0x90] sm:$0xff]  ;;  %v1069_v8 = vld [vmem:[%s1389_s1 + $0x88] sm:$0xff] }
   0x2   :  { %v1028_v1 = vld [vmem:[%s1389_s1 + $0xb8] sm:$0xff]  ;;  %171 = vmatpush.bf16.msra.mxu0 %v1023_v0  ;;  %v1050_v5 = vld [vmem:[%s1389_s1 + $0xb0] sm:$0xff]  ;;  %v1074_v9 = vld [vmem:[%s1389_s1 + $0xa8] sm:$0xff] }
   0x3   :  { %v1033_v2 = vld [vmem:[%s1389_s1 + $0x38] sm:$0xff]  ;;  %188 = vmatpush.bf16.msra.mxu1 %v1028_v1  ;;  %v1057_v6 = vld [vmem:[%s1389_s1 + $0x30] sm:$0xff]  ;;  %v1081_v10 = vld [vmem:[%s1389_s1 + $0x28] sm:$0xff] }
   0x4   :  { %v1038_v3 = vld [vmem:[%s1389_s1 + $0x58] sm:$0xff]  ;;  %278 = vmatpush.bf16.msra.mxu2 %v1033_v2  ;;  %v1062_v7 = vld [vmem:[%s1389_s1 + $0x50] sm:$0xff]  ;;  %v1086_v11 = vld [vmem:[%s1389_s1 + $0x48] sm:$0xff] }
   0x5   :  { %295 = vmatpush.bf16.msra.mxu3 %v1038_v3  ;;  %v1091_v12 = vld [vmem:[%s1390_s0] sm:$0x33]  ;;  %v1118_v17 = vld [vmem:[%s1389_s1 + $0xf8] sm:$0xff]  ;;  %v1148_v26 = vld [vmem:[%s1389_s1 + $0xf0] sm:$0xff] }
   0x6   :  { %172 = vmatpush.bf16.msra.mxu0 %v1045_v4  ;;  %v1098_v13 = vld [vmem:[%s1389_s1 + $0x80] sm:$0xff]  ;;  %v199_v20 = vunpack.c.h.b16 %v1091_v12  ;;  %v1129_v21 = vld [vmem:[%s1389_s1 + $0x118] sm:$0xff]  ;;  %v1155_v30 = vld [vmem:[%s1389_s1 + $0x110] sm:$0xff]  ;;  %v198_v49 = vunpack.c.l.b16 %v1091_v12 }
   0x7   :  { %189 = vmatpush.bf16.msra.mxu1 %v1050_v5  ;;  %v1103_v14 = vld [vmem:[%s1389_s1 + $0xa0] sm:$0xff]  ;;  %v1136_v24 = vld [vmem:[%s1389_s1 + $0x78] sm:$0xff]  ;;  %v1161_v33 = vld [vmem:[%s1389_s1 + $0x70] sm:$0xff] }
   0x8   :  { %279 = vmatpush.bf16.msra.mxu2 %v1057_v6  ;;  %v49_v15 = vld [vmem:[%s1390_s0] sm:$0x77]  ;;  %v1143_v25 = vld [vmem:[%s1389_s1 + $0x18] sm:$0xff]  ;;  %v201_v29 = vpack.c.b16 %v199_v20, %v199_v20  ;;  %v1168_v34 = vld [vmem:[%s1389_s1 + $0x10] sm:$0xff]  ;;  %v200_v55 = vpack.c.b16 %v198_v49, %v198_v49 }
   0x9   :  { %296 = vmatpush.bf16.msra.mxu3 %v1062_v7  ;;  %v1113_v16 = vld [vmem:[%s1389_s1 + $0x20] sm:$0xff]  ;;  %v77_v18 = vunpack.c.h.b16 %v49_v15  ;;  %v76_v23 = vunpack.c.l.b16 %v49_v15  ;;  %v1173_v35 = vld [vmem:[%s1389_s1 + $0xe8] sm:$0xff]  ;;  %v1227_v50 = vld [vmem:[%s1389_s1 + $0xd8] sm:$0xff] }
   0xa   :  { %173 = vmatpush.bf16.msra.mxu0 %v1069_v8  ;;  %v1123_v19 = vld [vmem:[%s1389_s1 + $0x40] sm:$0xff]  ;;  %v1180_v37 = vld [vmem:[%s1389_s1 + $0x108] sm:$0xff]  ;;  %v1248_v58 = vld [vmem:[%s1389_s1 + $0xd0] sm:$0xff] }
   0xb   :  { %190 = vmatpush.bf16.msra.mxu1 %v1074_v9  ;;  %v79_v22 = vpack.c.b16 %v77_v18, %v77_v18  ;;  %v78_v32 = vpack.c.b16 %v76_v23, %v76_v23  ;;  %v1187_v39 = vld [vmem:[%s1389_s1 + $0x68] sm:$0xff]  ;;  %v304_v40 = vld [vmem:[%s1390_s0] sm:$0x66]  ;;  %v1232_v51 = vld [vmem:[%s1390_s0] sm:$0x88] }
   0xc   :  { %280 = vmatpush.bf16.msra.mxu2 %v1081_v10  ;;  %v1197_v41 = vld [vmem:[%s1389_s1 + $0x8] sm:$0xff]  ;;  %v1202_v42 = vld [vmem:[%s1389_s1 + $0xe0] sm:$0xff]  ;;  %v332_v44 = vunpack.c.h.b16 %v304_v40  ;;  %v462_v56 = vunpack.c.h.b16 %v1232_v51  ;;  %v331_v60 = vunpack.c.l.b16 %v304_v40 }
   0xd   :  { %297 = vmatpush.bf16.msra.mxu3 %v1086_v11  ;;  %v88_v27 = vshrl.u32 %v79_v22, 16  ;;  %v90_v28 = vshll.u32 %v79_v22, 16  ;;  %v83_v38 = vshll.u32 %v78_v32, 16  ;;  %v1208_v43 = vld [vmem:[%s1389_s1 + $0x100] sm:$0xff]  ;;  %v81_v45 = vshrl.u32 %v78_v32, 16  ;;  %v972_v62 = vld [vmem:[%s1389_s1 + $0xc8] sm:$0xff] }
   0xe   :  { %174 = vmatpush.bf16.msra.mxu0 %v1098_v13  ;;  %v1214_v47 = vld [vmem:[%s1389_s1 + $0x60] sm:$0xff]  ;;  %v458_v52 = vld [vmem:[%s1390_s0 + $0x8] sm:$0x33]  ;;  %v334_v53 = vpack.c.b16 %v332_v44, %v332_v44  ;;  %v333_v63 = vpack.c.b16 %v331_v60, %v331_v60  ;;  %v607_v44 = vld [vmem:[%s1391_s2 + $0x38] sm:$0xff] }
   0xf   :  { %191 = vmatpush.bf16.msra.mxu1 %v1103_v14  ;;  %v92_v31 = vrot.slane %v90_v28, 1  ;;  %v85_v46 = vrot.slane %v83_v38, 1  ;;  %v1219_v48 = vld [vmem:[%s1389_s1] sm:$0xff]  ;;  %v1241_v57 = vunpack.c.h.b16 %v458_v52  ;;  %v463_v12 = vunpack.c.l.b16 %v458_v52  ;;  %v613_v32 = vld [vmem:[%s1391_s2 + $0x68] sm:$0xff]  ;;  %v610_v38 = vld [vmem:[%s1391_s2 + $0x50] sm:$0xff] }
  0x10   :  { %281 = vmatpush.bf16.msra.mxu2 %v1113_v16  ;;  %v336_v59 = vrot.slane %v334_v53, 1  ;;  %v609_v40 = vld [vmem:[%s1391_s2 + $0x48] sm:$0xff]  ;;  %v604_v49 = vld [vmem:[%s1391_s2 + $0x20] sm:$0xff]  ;;  %v603_v52 = vld [vmem:[%s1391_s2 + $0x18] sm:$0xff] }
  0x11   :  { %298 = vmatpush.bf16.msra.mxu3 %v1123_v19  ;;  %v93_v36 = vor.u32 %v92_v31, %v88_v27  ;;  %v86_v54 = vor.u32 %v85_v46, %v81_v45  ;;  %v466_v61 = vpack.c.b16 %v1241_v57, %v462_v56  ;;  %v606_v46 = vld [vmem:[%s1391_s2 + $0x30] sm:$0xff] }
  0x12   :  { %175 = vmatpush.bf16.msra.mxu0 %v1136_v24  ;;  %v602_v53 = vld [vmem:[%s1391_s2 + $0x10] sm:$0xff] }
  0x13   :  { %413 = vmatpush.bf16.msrb.mxu1 %v1118_v17 }
  0x14   :  { %282 = vmatpush.bf16.msra.mxu2 %v1143_v25  ;;  %868 = vmatmul.msk.bf16.vlgmr.msra.gmra.mxu3 %vm167_vm0, %v201_v29  ;;  %v615_v29 = vld [vmem:[%s1391_s2 + $0x78] sm:$0xff] }
  0x15   :  { %430 = vmatpush.bf16.msrb.mxu3 %v1129_v21  ;;  %819 = vmatmul.msk.bf16.vlgmr.msra.gmra.mxu1 %vm167_vm0, %v93_v36 }
  0x16   :  { %176 = vmatpush.bf16.msra.mxu0 %v1161_v33 }
  0x17   :  { %414 = vmatpush.bf16.msrb.mxu1 %v1148_v26 }
  0x18   :  { %283 = vmatpush.bf16.msra.mxu2 %v1168_v34 }
  0x19   :  { %431 = vmatpush.bf16.msrb.mxu3 %v1155_v30 }
  0x1a   :  { %177 = vmatpush.bf16.msra.mxu0 %v1187_v39 }
  0x1b   :  { %415 = vmatpush.bf16.msrb.mxu1 %v1173_v35 }
  0x1c   :  { %284 = vmatpush.bf16.msra.mxu2 %v1197_v41 }
  0x1d   :  { %432 = vmatpush.bf16.msrb.mxu3 %v1180_v37 }
  0x1e   :  { %178 = vmatpush.bf16.msra.mxu0 %v1214_v47 }
  0x1f   :  { %416 = vmatpush.bf16.msrb.mxu1 %v1202_v42 }
  0x20   :  { %285 = vmatpush.bf16.msra.mxu2 %v1219_v48 }
  0x21   :  { %433 = vmatpush.bf16.msrb.mxu3 %v1208_v43  ;;  %179 = vmatmul.bf16.vlgmr.msra.gmra.mxu0 %v86_v54 }
  0x22   :  { %487 = vmatpush.bf16.msrb.mxu0 %v1023_v0  ;;  %v476_v0 = vshrl.u32 %v466_v61, 16 }
  0x23   :  { %417 = vmatpush.bf16.msrb.mxu1 %v1227_v50  ;;  %286 = vmatmul.bf16.vlgmr.msra.gmra.mxu2 %v200_v55 }
  0x24   :  { %504 = vmatpush.bf16.msrb.mxu2 %v1028_v1  ;;  %941 = vmatmul.msk.bf16.vlgmr.msrb.gmra.mxu3 %vm167_vm0, %v336_v59  ;;  %v479_v1 = vshll.u32 %v466_v61, 16  ;;  %v600_v59 = vld [vmem:[%s1391_s2] sm:$0xff] }
  0x25   :  { %524 = vmatpush.bf16.msra.mxu3 %v1033_v2  ;;  %v971_v2 = vld [vmem:[%s1389_s1 + $0xc0] sm:$0xff] }
  0x26   :  { %488 = vmatpush.bf16.msrb.mxu0 %v1045_v4  ;;  %v335_v4 = vrot.slane %v333_v63, 1 }
  0x27   :  { %418 = vmatpush.bf16.msrb.mxu1 %v1248_v58 }
  0x28   :  { %505 = vmatpush.bf16.msrb.mxu2 %v1050_v5  ;;  %v478_v5 = vrot.slane %v476_v0, 3 }
  0x29   :  { %525 = vmatpush.bf16.msra.mxu3 %v1057_v6  ;;  %v481_v6 = vrot.slane %v479_v1, 4 }
  0x2a   :  { %489 = vmatpush.bf16.msrb.mxu0 %v1069_v8 }
  0x2b   :  { %419 = vmatpush.bf16.msrb.mxu1 %v972_v62  ;;  %v482_v8 = vor.u32 %v481_v6, %v478_v5 }
  0x2c   :  { %506 = vmatpush.bf16.msrb.mxu2 %v1074_v9  ;;  %v457_v9 = vld [vmem:[%s1390_s0 + $0x8] sm:$0x11] }
  0x2d   :  { %526 = vmatpush.bf16.msra.mxu3 %v1081_v10  ;;  %v461_v10 = vunpack.c.l.b16 %v1232_v51 }
  0x2e   :  { %490 = vmatpush.bf16.msrb.mxu0 %v1098_v13  ;;  %v514_v13 = vunpack.c.l.b16 %v457_v9 }
  0x2f   :  { %420 = vmatpush.bf16.msrb.mxu1 %v971_v2  ;;  %v465_v15 = vpack.c.b16 %v463_v12, %v461_v10 }
  0x30   :  { %507 = vmatpush.bf16.msrb.mxu2 %v1103_v14 }
  0x31   :  { %527 = vmatpush.bf16.msra.mxu3 %v1113_v16  ;;  %v468_v14 = vshrl.u32 %v465_v15, 16  ;;  %v471_v16 = vshll.u32 %v465_v15, 16 }
  0x32   :  { %421 = vmatmul.bf16.vlgmr.msrb.gmra.mxu1 %v335_v4  ;;  %491 = vmatpush.bf16.msrb.mxu0 %v1136_v24 }
  0x33   :  { %541 = vmatpush.bf16.msra.mxu1 %v1038_v3  ;;  %942 = vmatmul.msk.bf16.vlgmr.msrb.gmra.mxu2 %vm167_vm0, %v482_v8  ;;  %v515_v3 = vunpack.c.h.b16 %v457_v9  ;;  %v470_v20 = vrot.slane %v468_v14, 3 }
  0x34   :  { %556 = vmatpush.bf16.msra.mxu2 %v1118_v17  ;;  %v516_v17 = vpack.c.b16 %v514_v13, %v461_v10 }
  0x35   :  { %528 = vmatpush.bf16.msra.mxu3 %v1143_v25  ;;  %v517_v18 = vpack.c.b16 %v515_v3, %v462_v56  ;;  %v601_v56 = vld [vmem:[%s1391_s2 + $0x8] sm:$0xff] }
  0x36   :  { %492 = vmatpush.bf16.msrb.mxu0 %v1161_v33  ;;  %v518_v22 = vrot.slane %v516_v17, 3 }
  0x37   :  { %542 = vmatpush.bf16.msra.mxu1 %v1062_v7  ;;  %v473_v7 = vrot.slane %v471_v16, 4  ;;  %v519_v23 = vrot.slane %v517_v18, 3 }
  0x38   :  { %557 = vmatpush.bf16.msra.mxu2 %v1148_v26 }
  0x39   :  { %529 = vmatpush.bf16.msra.mxu3 %v1168_v34  ;;  %v474_v24 = vor.u32 %v473_v7, %v470_v20  ;;  %v612_v34 = vld [vmem:[%s1391_s2 + $0x60] sm:$0xff] }
  0x3a   :  { %493 = vmatpush.bf16.msrb.mxu0 %v1187_v39 }
  0x3b   :  { %543 = vmatpush.bf16.msra.mxu1 %v1086_v11  ;;  %v550_v11 = vpack.c.b16 %v463_v12, %v463_v12 }
  0x3c   :  { %558 = vmatpush.bf16.msra.mxu2 %v1173_v35 }
  0x3d   :  { %530 = vmatpush.bf16.msra.mxu3 %v1197_v41 }
  0x3e   :  { %494 = vmatpush.bf16.msrb.mxu0 %v1214_v47 }
  0x3f   :  { %544 = vmatpush.bf16.msra.mxu1 %v1123_v19  ;;  %v551_v19 = vpack.c.b16 %v1241_v57, %v1241_v57 }
  0x40   :  { %559 = vmatpush.bf16.msra.mxu2 %v1202_v42  ;;  %v608_v42 = vld [vmem:[%s1391_s2 + $0x40] sm:$0xff] }
  0x41   :  { %531 = vmatpush.bf16.msra.mxu3 %v1219_v48  ;;  %495 = vmatmul.bf16.vlgmr.msrb.gmra.mxu0 %v474_v24  ;;  %v605_v48 = vld [vmem:[%s1391_s2 + $0x28] sm:$0xff] }
  0x42   :  { %573 = vmatpush.bf16.msra.mxu0 %v1129_v21  ;;  %943 = vmatmul.msk.bf16.vlgmr.msra.gmra.mxu1 %vm167_vm0, %v519_v23 }
  0x43   :  { %616 = vmatpush.msrb.mxu1 %v615_v29 }
  0x44   :  { %560 = vmatpush.bf16.msra.mxu2 %v1227_v50  ;;  %532 = vmatmul.bf16.vlgmr.msra.gmra.mxu3 %v518_v22 }
  0x45   :  { %636 = vmatpush.msrb.mxu3 %v615_v29 }
  0x46   :  { %574 = vmatpush.bf16.msra.mxu0 %v1155_v30  ;;  %v614_v30 = vld [vmem:[%s1391_s2 + $0x70] sm:$0xff] }
  0x47   :  { %617 = vmatpush.msrb.mxu1 %v614_v30  ;;  %637 = vmatpush.msrb.mxu3 %v614_v30 }
  0x48   :  { %561 = vmatpush.bf16.msra.mxu2 %v1248_v58 }
  0x49   :  { %618 = vmatpush.msrb.mxu1 %v613_v32  ;;  %638 = vmatpush.msrb.mxu3 %v613_v32 }
  0x4a   :  { %575 = vmatpush.bf16.msra.mxu0 %v1180_v37  ;;  %v611_v37 = vld [vmem:[%s1391_s2 + $0x58] sm:$0xff] }
  0x4b   :  { %619 = vmatpush.msrb.mxu1 %v612_v34  ;;  %639 = vmatpush.msrb.mxu3 %v612_v34 }
  0x4c   :  { %562 = vmatpush.bf16.msra.mxu2 %v972_v62 }
  0x4d   :  { %620 = vmatpush.msrb.mxu1 %v611_v37  ;;  %640 = vmatpush.msrb.mxu3 %v611_v37 }
  0x4e   :  { %576 = vmatpush.bf16.msra.mxu0 %v1208_v43 }
  0x4f   :  { %621 = vmatpush.msrb.mxu1 %v610_v38  ;;  %641 = vmatpush.msrb.mxu3 %v610_v38 }
  0x50   :  { %563 = vmatpush.bf16.msra.mxu2 %v971_v2 }
  0x51   :  { %944 = vmatmul.msk.bf16.vlgmr.msra.gmra.mxu0 %vm167_vm0, %v551_v19  ;;  %622 = vmatpush.msrb.mxu1 %v609_v40 }
  0x52   :  { %642 = vmatpush.msrb.mxu3 %v609_v40 }
  0x53   :  { %564 = vmatmul.bf16.vlgmr.msra.gmra.mxu2 %v550_v11  ;;  %623 = vmatpush.msrb.mxu1 %v608_v42 }
  0x54   :  { %643 = vmatpush.msrb.mxu3 %v608_v42  ;;  %v680_v42 = vld [vmem:[%s1392_s3 + $0x18] sm:$0xff] }
  0x55   :  { %624 = vmatpush.msrb.mxu1 %v607_v44  ;;  %720 = vmatpush.msrb.mxu2 %v680_v42 }
  0x56   :  { %644 = vmatpush.msrb.mxu3 %v607_v44  ;;  %697 = vmatpush.msrb.mxu0 %v680_v42  ;;  %v678_v44 = vld [vmem:[%s1392_s3 + $0x8] sm:$0xff] }
  0x57   :  { %625 = vmatpush.msrb.mxu1 %v606_v46 }
  0x58   :  { %645 = vmatpush.msrb.mxu3 %v606_v46  ;;  %v677_v46 = vld [vmem:[%s1392_s3] sm:$0xff] }
  0x59   :  { %626 = vmatpush.msrb.mxu1 %v605_v48 }
  0x5a   :  { %646 = vmatpush.msrb.mxu3 %v605_v48 }
  0x5b   :  { %627 = vmatpush.msrb.mxu1 %v604_v49 }
  0x5c   :  { %647 = vmatpush.msrb.mxu3 %v604_v49 }
  0x5d   :  { %628 = vmatpush.msrb.mxu1 %v603_v52 }
  0x5e   :  { %648 = vmatpush.msrb.mxu3 %v603_v52 }
  0x5f   :  { %629 = vmatpush.msrb.mxu1 %v602_v53 }
  0x60   :  { %649 = vmatpush.msrb.mxu3 %v602_v53 }
  0x61   :  { %630 = vmatpush.msrb.mxu1 %v601_v56 }
  0x62   :  { %650 = vmatpush.msrb.mxu3 %v601_v56 }
  0x63   :  { %631 = vmatpush.msrb.mxu1 %v600_v59 }
  0x64   :  { %651 = vmatpush.msrb.mxu3 %v600_v59 }
  0x92   :  { %v193_v21 = vpop.f32.mrf.mxu1 }
  0x97   :  { %v300_v25 = vpop.f32.mrf.mxu3 }
  0x9a   :  { %v195_v26 = vpop.f32.mrf.mxu1 }
  0x9e   :  { %v180_v27 = vpop.f32.mrf.mxu0 }
  0x9f   :  { %v302_v28 = vpop.f32.mrf.mxu3  ;;  %v194_v47 = vadd.f32 %v193_v21, %v180_v27 }
  0xa6   :  { %v287_v31 = vpop.f32.mrf.mxu2  ;;  %v182_v33 = vpop.f32.mrf.mxu0 }
  0xa7   :  { %v435_v35 = vpop.f32.mrf.mxu3  ;;  %v288_v50 = vadd.f32 %v287_v31, %v194_v47 }
  0xa9   :  { %v301_v57 = vadd.f32 %v300_v25, %v288_v50 }
  0xae   :  { %v289_v39 = vpop.f32.mrf.mxu2 }
  0xaf   :  { %v422_v36 = vpop.f32.mrf.mxu1  ;;  %v437_v41 = vpop.f32.mrf.mxu3 }
  0xb0   :  { %v436_v58 = vadd.f32 %v435_v35, %v422_v36 }
  0xb2   :  { %v1349_v61 = vadd.f32 %v436_v58, %v301_v57 }
  0xb4   :  { %v448_v0 = vmul.f32 %v1349_v61, %v1349_v61  ;;  %v441_v1 = vsel %vm440_vm1, %v1349_v61, 0.0 }
  0xb5   :  { %v442_v6 = vrot.slane %v441_v1, 4 }
  0xb6   :  { %v509_v45 = vpop.f32.mrf.mxu2  ;;  %v449_v5 = vsel %vm440_vm1, %v448_v0, 0.0  ;;  %v674_v0 = vld [vmem:[%s1394_s5] sm:$0x1] }
  0xb7   :  { %v424_v43 = vpop.f32.mrf.mxu1  ;;  %v450_v8 = vrot.slane %v449_v5, 4  ;;  %v443_v9 = vadd.f32 %v442_v6, %v441_v1 }
  0xb8   :  { %v679_v43 = vld [vmem:[%s1392_s3 + $0x10] sm:$0xff] }
  0xb9   :  { %v451_v14 = vadd.f32 %v450_v8, %v449_v5  ;;  %v444_v17 = vrot.slane %v443_v9, 2  ;;  %721 = vmatpush.msrb.mxu2 %v679_v43  ;;  %698 = vmatpush.msrb.mxu0 %v679_v43 }
  0xbb   :  { %v452_v22 = vrot.slane %v451_v14, 2  ;;  %v445_v11 = vadd.f32 %v444_v17, %v443_v9  ;;  %722 = vmatpush.msrb.mxu2 %v678_v44  ;;  %699 = vmatpush.msrb.mxu0 %v678_v44 }
  0xbd   :  { %v453_v28 = vadd.f32 %v452_v22, %v451_v14  ;;  %v446_v31 = vrot.slane %v445_v11, 1  ;;  %700 = vmatpush.msrb.mxu0 %v677_v46  ;;  %723 = vmatpush.msrb.mxu2 %v677_v46 }
  0xbe   :  { %v496_v54 = vpop.f32.mrf.mxu0  ;;  %v511_v55 = vpop.f32.mrf.mxu2 }
  0xbf   :  { %v546_v51 = vpop.f32.mrf.mxu1  ;;  %v510_v2 = vadd.f32 %v509_v45, %v496_v54  ;;  %v454_v33 = vrot.slane %v453_v28, 1  ;;  %v447_v35 = vadd.f32 %v446_v31, %v445_v11 }
  0xc1   :  { %v455_v39 = vadd.f32 %v454_v33, %v453_v28 }
  0xc6   :  { %v498_v63 = vpop.f32.mrf.mxu0 }
  0xc7   :  { %v533_v60 = vpop.f32.mrf.mxu3  ;;  %v548_v62 = vpop.f32.mrf.mxu1 }
  0xc8   :  { %v534_v10 = vadd.f32 %v533_v60, %v510_v2  ;;  %v672_v60 = vld [vmem:[%s1393_s4] sm:$0x1] }
  0xca   :  { %v547_v13 = vadd.f32 %v546_v51, %v534_v10 }
  0xce   :  { %v578_v12 = vpop.f32.mrf.mxu0 }
  0xcf   :  { %v535_v4 = vpop.f32.mrf.mxu3 }
  0xd6   :  { %v565_v15 = vpop.f32.mrf.mxu2  ;;  %v580_v7 = vpop.f32.mrf.mxu0 }
  0xd7   :  { %v579_v3 = vadd.f32 %v578_v12, %v565_v15 }
  0xd9   :  { %v1356_v16 = vadd.f32 %v579_v3, %v547_v13 }
  0xdb   :  { %v583_v18 = vsel %vm440_vm1, %v1356_v16, 0.0  ;;  %v590_v20 = vmul.f32 %v1356_v16, %v1356_v16 }
  0xdc   :  { %v584_v23 = vrot.slane %v583_v18, 4 }
  0xdd   :  { %v591_v24 = vsel %vm440_vm1, %v590_v20, 0.0 }
  0xde   :  { %v585_v19 = vadd.f32 %v584_v23, %v583_v18  ;;  %v592_v21 = vrot.slane %v591_v24, 4  ;;  %v567_v25 = vpop.f32.mrf.mxu2 }
  0xe0   :  { %v586_v26 = vrot.slane %v585_v19, 2  ;;  %v593_v27 = vadd.f32 %v592_v21, %v591_v24 }
  0xe2   :  { %v587_v29 = vadd.f32 %v586_v26, %v585_v19  ;;  %v594_v30 = vrot.slane %v593_v27, 2 }
  0xe4   :  { %v588_v32 = vrot.slane %v587_v29, 1  ;;  %v595_v34 = vadd.f32 %v594_v30, %v593_v27 }
  0xe6   :  { %v589_v36 = vadd.f32 %v588_v32, %v587_v29  ;;  %v596_v37 = vrot.slane %v595_v34, 1 }
  0xe8   :  { %v598_v38 = vadd.f32 %v589_v36, %v447_v35  ;;  %v597_v40 = vadd.f32 %v596_v37, %v595_v34 }
  0xea   :  { %632 = vmatmul.f32.vlgmr.msrb.gmra.mxu1 %v598_v38  ;;  %v599_v41 = vadd.f32 %v597_v40, %v455_v39 }
  0xec   :  { %652 = vmatmul.f32.vlgmr.msrb.gmra.mxu3 %v599_v41 }
 0x167   :  { %v633_v45 = vpop.f32.mrf.mxu1 }
 0x168   :  { %v656_v47 = vmul.f32 0.03125, %v633_v45 }
 0x16a   :  { %v658_v49 = vmul.f32 %v656_v47, %v656_v47 }
 0x16f   :  { %v653_v48 = vpop.f32.mrf.mxu3 }
 0x170   :  { %v657_v50 = vmul.f32 0.03125, %v653_v48 }
 0x172   :  { %v659_v51 = vsub.f32 %v657_v50, %v658_v49 }
 0x174   :  { %v660_v52 = vmax.f32 %v659_v51, 0.0 }
 0x176   :  { %v661_v53 = vadd.f32 1e-05, %v660_v52 }
 0x178   :  { %983 = vrsqrt.f32 %v661_v53  ;;  %vm668_vm3 = vweird.f32 %v661_v53 }
 0x17e   :  { %v984_v54 = vpop.eup %983 }
 0x17f   :  { %v663_v55 = vmul.f32 %v984_v54, %v661_v53  ;;  %vm669_vm2 = vweird.f32 %v984_v54 }
 0x180   :  { %vm670_vm4 = vmor %vm668_vm3, %vm669_vm2 }
 0x181   :  { %v664_v56 = vmul.f32 %v984_v54, %v663_v55 }
 0x183   :  { %v665_v57 = vmul.f32 0.5, %v664_v56 }
 0x185   :  { %v666_v58 = vsub.f32 1.5, %v665_v57 }
 0x187   :  { %v667_v59 = vmul.f32 %v984_v54, %v666_v58 }
 0x189   :  { %v671_v62 = vsel %vm670_vm4, %v984_v54, %v667_v59 }
 0x18a   :  { %v673_v63 = vmul.f32 %v672_v60, %v671_v62 }
 0x18c   :  { %v675_v1 = vmul.f32 %v673_v63, %v656_v47  ;;  %945 = vmatmul.msk.f32.vlgmr.msrb.gmra.mxu0 %vm681_vm5, %v673_v63 }
 0x18e   :  { %v676_v2 = vsub.f32 %v674_v0, %v675_v1 }
 0x190   :  { %946 = vmatmul.msk.f32.vlgmr.msrb.gmra.mxu2 %vm681_vm5, %v676_v2 }
 0x209   :  { %v702_v4 = vpop.f32.mrf.mxu0 }
 0x20a   :  { %v728_v5 = vperm.slane %v702_v4, 0 }
 0x20c   :  { %v729_v10 = vmul.f32 %v728_v5, %v1349_v61  ;;  %v735_v12 = vmul.f32 %v728_v5, %v1356_v16 }
 0x213   :  { %v725_v6 = vpop.f32.mrf.mxu2 }
 0x214   :  { %v730_v8 = vperm.slane %v725_v6, 0 }
 0x216   :  { %v731_v9 = vadd.f32 %v730_v8, %v729_v10  ;;  %v736_v15 = vadd.f32 %v735_v12, %v730_v8 }
 0x218   :  { %v732_v13 = vmax.f32 %v731_v9, 0.0  ;;  %v737_v3 = vmax.f32 %v736_v15, 0.0 }
 0x21a   :  { %v733_v14 = vpack.c.bf16 %v732_v13, %v732_v13  ;;  %v738_v17 = vpack.c.bf16 %v737_v3, %v737_v3 }
 0x21c   :  { %734 = vst [vmem:[%s1395_s6] sm:$0x3] %v733_v14  ;;  %v740_v18 = vrot.slane %v738_v17, 6 }
 0x21e   :  { %742 = vst [vmem:[%s1395_s6] sm:$0xc] %v740_v18 }

// kernel: resnet_generator_forward.17
= control target key start
LH: loop header
LB: loop body
LE: loop exit
PB: predicated region body
PF: predicated region fallthrough
CT: control target
= control target key end

     0   :  { %vm281_vm0 = vcmask 1043456   ;;  %vm557_vm4 = vcmask 130048   ;;  %s1365_s1 = inlined_call_operand.vmem [shape: bf16[2,128,256], index: 1, kind: input, shape index: {}]   ;;  %s1366_s0 = inlined_call_operand.vmem [shape: bf16[10,128], index: 0, kind: input, shape index: {}]   ;;  %s1367_s2 = inlined_call_operand.vmem [shape: f32[256,16], index: 2, kind: input, shape index: {}]   ;;  %s1368_s3 = inlined_call_operand.vmem [shape: f32[16,256], index: 3, kind: input, shape index: {}]   ;;  %s1369_s4 = inlined_call_operand.vmem [shape: f32[1,16], index: 4, kind: input, shape index: {}]   ;;  %s1370_s5 = inlined_call_operand.vmem [shape: f32[1,16], index: 5, kind: input, shape index: {}]   ;;  %s1371_s6 = inlined_call_operand.vmem [shape: bf16[8,256], index: 6, kind: output, shape index: {}]  }
   0x1   :  { %v745_v0 = vld [vmem:[%s1365_s1 + $0xf0] sm:$0xf]  ;;  %v850_v1 = vld [vmem:[%s1365_s1 + $0xf4] sm:$0xf0]  ;;  %v849_v2 = vld [vmem:[%s1365_s1 + $0xf4] sm:$0xf] }
   0x2   :  { %v897_v3 = vor.u32 %v850_v1, %v745_v0  ;;  %v747_v4 = vld [vmem:[%s1365_s1 + $0xf8] sm:$0xf0]  ;;  %v809_v5 = vld [vmem:[%s1365_s1 + $0x70] sm:$0xf]  ;;  %v834_v6 = vld [vmem:[%s1365_s1 + $0x74] sm:$0xf0] }
   0x3   :  { %v908_v7 = vor.u32 %v849_v2, %v747_v4  ;;  %v910_v8 = vor.u32 %v834_v6, %v809_v5  ;;  %v833_v9 = vld [vmem:[%s1365_s1 + $0x74] sm:$0xf]  ;;  %v811_v10 = vld [vmem:[%s1365_s1 + $0x78] sm:$0xf0]  ;;  %v737_v11 = vld [vmem:[%s1365_s1 + $0xe0] sm:$0xf] }
   0x4   :  { %149 = vmatpush.bf16.msra.mxu0 %v897_v3  ;;  %v922_v12 = vor.u32 %v833_v9, %v811_v10  ;;  %v848_v13 = vld [vmem:[%s1365_s1 + $0xe4] sm:$0xf0]  ;;  %v847_v14 = vld [vmem:[%s1365_s1 + $0xe4] sm:$0xf]  ;;  %v739_v15 = vld [vmem:[%s1365_s1 + $0xe8] sm:$0xf0] }
   0x5   :  { %162 = vmatpush.bf16.msra.mxu1 %v908_v7  ;;  %255 = vmatpush.bf16.msra.mxu2 %v910_v8  ;;  %v935_v16 = vor.u32 %v848_v13, %v737_v11  ;;  %v937_v17 = vor.u32 %v847_v14, %v739_v15  ;;  %v801_v18 = vld [vmem:[%s1365_s1 + $0x60] sm:$0xf]  ;;  %v832_v19 = vld [vmem:[%s1365_s1 + $0x64] sm:$0xf0]  ;;  %v831_v20 = vld [vmem:[%s1365_s1 + $0x64] sm:$0xf] }
   0x6   :  { %268 = vmatpush.bf16.msra.mxu3 %v922_v12  ;;  %v949_v21 = vor.u32 %v832_v19, %v801_v18  ;;  %v803_v22 = vld [vmem:[%s1365_s1 + $0x68] sm:$0xf0]  ;;  %v729_v23 = vld [vmem:[%s1365_s1 + $0xd0] sm:$0xf]  ;;  %v846_v24 = vld [vmem:[%s1365_s1 + $0xd4] sm:$0xf0] }
   0x7   :  { %v960_v25 = vor.u32 %v831_v20, %v803_v22  ;;  %v845_v26 = vld [vmem:[%s1365_s1 + $0xd4] sm:$0xf]  ;;  %v731_v27 = vld [vmem:[%s1365_s1 + $0xd8] sm:$0xf0]  ;;  %v793_v28 = vld [vmem:[%s1365_s1 + $0x50] sm:$0xf]  ;;  %v972_v29 = vor.u32 %v846_v24, %v729_v23 }
   0x8   :  { %150 = vmatpush.bf16.msra.mxu0 %v935_v16  ;;  %v830_v30 = vld [vmem:[%s1365_s1 + $0x54] sm:$0xf0]  ;;  %v829_v31 = vld [vmem:[%s1365_s1 + $0x54] sm:$0xf]  ;;  %v795_v32 = vld [vmem:[%s1365_s1 + $0x58] sm:$0xf0]  ;;  %v985_v33 = vor.u32 %v845_v26, %v731_v27 }
   0x9   :  { %163 = vmatpush.bf16.msra.mxu1 %v937_v17  ;;  %256 = vmatpush.bf16.msra.mxu2 %v949_v21  ;;  %v987_v34 = vor.u32 %v830_v30, %v793_v28  ;;  %v721_v35 = vld [vmem:[%s1365_s1 + $0xc0] sm:$0xf]  ;;  %v844_v36 = vld [vmem:[%s1365_s1 + $0xc4] sm:$0xf0]  ;;  %v843_v37 = vld [vmem:[%s1365_s1 + $0xc4] sm:$0xf]  ;;  %v999_v38 = vor.u32 %v829_v31, %v795_v32 }
   0xa   :  { %269 = vmatpush.bf16.msra.mxu3 %v960_v25  ;;  %v723_v39 = vld [vmem:[%s1365_s1 + $0xc8] sm:$0xf0]  ;;  %v785_v40 = vld [vmem:[%s1365_s1 + $0x40] sm:$0xf]  ;;  %v828_v41 = vld [vmem:[%s1365_s1 + $0x44] sm:$0xf0]  ;;  %v1017_v44 = vor.u32 %v844_v36, %v721_v35 }
   0xb   :  { %v827_v42 = vld [vmem:[%s1365_s1 + $0x44] sm:$0xf]  ;;  %v787_v43 = vld [vmem:[%s1365_s1 + $0x48] sm:$0xf0]  ;;  %v1021_v45 = vor.u32 %v843_v37, %v723_v39  ;;  %v1023_v46 = vor.u32 %v828_v41, %v785_v40  ;;  %v713_v47 = vld [vmem:[%s1365_s1 + $0xb0] sm:$0xf] }
   0xc   :  { %151 = vmatpush.bf16.msra.mxu0 %v972_v29  ;;  %v842_v48 = vld [vmem:[%s1365_s1 + $0xb4] sm:$0xf0]  ;;  %v841_v49 = vld [vmem:[%s1365_s1 + $0xb4] sm:$0xf]  ;;  %v1035_v50 = vor.u32 %v827_v42, %v787_v43  ;;  %v715_v51 = vld [vmem:[%s1365_s1 + $0xb8] sm:$0xf0] }
   0xd   :  { %164 = vmatpush.bf16.msra.mxu1 %v985_v33  ;;  %257 = vmatpush.bf16.msra.mxu2 %v987_v34  ;;  %v777_v52 = vld [vmem:[%s1365_s1 + $0x30] sm:$0xf]  ;;  %v826_v53 = vld [vmem:[%s1365_s1 + $0x34] sm:$0xf0]  ;;  %v825_v54 = vld [vmem:[%s1365_s1 + $0x34] sm:$0xf]  ;;  %v1053_v56 = vor.u32 %v842_v48, %v713_v47  ;;  %v1057_v57 = vor.u32 %v841_v49, %v715_v51 }
   0xe   :  { %270 = vmatpush.bf16.msra.mxu3 %v999_v38  ;;  %v779_v55 = vld [vmem:[%s1365_s1 + $0x38] sm:$0xf0]  ;;  %v1059_v58 = vor.u32 %v826_v53, %v777_v52  ;;  %v705_v59 = vld [vmem:[%s1365_s1 + $0xa0] sm:$0xf]  ;;  %v840_v60 = vld [vmem:[%s1365_s1 + $0xa4] sm:$0xf0] }
   0xf   :  { %v839_v61 = vld [vmem:[%s1365_s1 + $0xa4] sm:$0xf]  ;;  %v1071_v62 = vor.u32 %v825_v54, %v779_v55  ;;  %v707_v63 = vld [vmem:[%s1365_s1 + $0xa8] sm:$0xf0]  ;;  %v769_v0 = vld [vmem:[%s1365_s1 + $0x20] sm:$0xf]  ;;  %v1089_v5 = vor.u32 %v840_v60, %v705_v59 }
  0x10   :  { %152 = vmatpush.bf16.msra.mxu0 %v1017_v44  ;;  %v824_v1 = vld [vmem:[%s1365_s1 + $0x24] sm:$0xf0]  ;;  %v823_v2 = vld [vmem:[%s1365_s1 + $0x24] sm:$0xf]  ;;  %v771_v4 = vld [vmem:[%s1365_s1 + $0x28] sm:$0xf0]  ;;  %v1096_v9 = vor.u32 %v839_v61, %v707_v63 }
  0x11   :  { %165 = vmatpush.bf16.msra.mxu1 %v1021_v45  ;;  %258 = vmatpush.bf16.msra.mxu2 %v1023_v46  ;;  %v697_v6 = vld [vmem:[%s1365_s1 + $0x90] sm:$0xf]  ;;  %v1098_v10 = vor.u32 %v824_v1, %v769_v0  ;;  %v838_v11 = vld [vmem:[%s1365_s1 + $0x94] sm:$0xf0]  ;;  %v837_v13 = vld [vmem:[%s1365_s1 + $0x94] sm:$0xf]  ;;  %v1110_v15 = vor.u32 %v823_v2, %v771_v4 }
  0x12   :  { %271 = vmatpush.bf16.msra.mxu3 %v1035_v50  ;;  %v699_v14 = vld [vmem:[%s1365_s1 + $0x98] sm:$0xf0]  ;;  %v761_v18 = vld [vmem:[%s1365_s1 + $0x10] sm:$0xf]  ;;  %v822_v19 = vld [vmem:[%s1365_s1 + $0x14] sm:$0xf0]  ;;  %v1128_v26 = vor.u32 %v838_v11, %v697_v6 }
  0x13   :  { %v40_v20 = vld [vmem:[%s1366_s0] sm:$0x7]  ;;  %v821_v22 = vld [vmem:[%s1365_s1 + $0x14] sm:$0xf]  ;;  %v763_v23 = vld [vmem:[%s1365_s1 + $0x18] sm:$0xf0]  ;;  %v1132_v27 = vor.u32 %v837_v13, %v699_v14  ;;  %v1134_v28 = vor.u32 %v822_v19, %v761_v18 }
  0x14   :  { %153 = vmatpush.bf16.msra.mxu0 %v1053_v56  ;;  %v59_v24 = vunpack.c.l.b16 %v40_v20  ;;  %v689_v30 = vld [vmem:[%s1365_s1 + $0x80] sm:$0xf]  ;;  %v836_v31 = vld [vmem:[%s1365_s1 + $0x84] sm:$0xf0]  ;;  %v835_v32 = vld [vmem:[%s1365_s1 + $0x84] sm:$0xf]  ;;  %v1146_v36 = vor.u32 %v821_v22, %v763_v23 }
  0x15   :  { %166 = vmatpush.bf16.msra.mxu1 %v1057_v57  ;;  %259 = vmatpush.bf16.msra.mxu2 %v1059_v58  ;;  %v691_v37 = vld [vmem:[%s1365_s1 + $0x88] sm:$0xf0]  ;;  %v753_v39 = vld [vmem:[%s1365_s1] sm:$0xf]  ;;  %v820_v40 = vld [vmem:[%s1365_s1 + $0x4] sm:$0xf0]  ;;  %v690_v47 = vor.u32 %v836_v31, %v689_v30 }
  0x16   :  { %272 = vmatpush.bf16.msra.mxu3 %v1071_v62  ;;  %v60_v35 = vpack.c.b16 %v59_v24, %v59_v24  ;;  %v819_v41 = vld [vmem:[%s1365_s1 + $0x4] sm:$0xf]  ;;  %v755_v42 = vld [vmem:[%s1365_s1 + $0x8] sm:$0xf0]  ;;  %v694_v48 = vor.u32 %v835_v32, %v691_v37  ;;  %v754_v49 = vor.u32 %v820_v40, %v753_v39  ;;  %v23_v54 = vld [vmem:[%s1366_s0] sm:$0x3] }
  0x17   :  { %v758_v53 = vor.u32 %v819_v41, %v755_v42  ;;  %v449_v59 = vld [vmem:[%s1367_s2 + $0xe8] sm:$0xff]  ;;  %v432_v60 = vld [vmem:[%s1367_s2 + $0x60] sm:$0xff]  ;;  %v447_v63 = vld [vmem:[%s1367_s2 + $0xd8] sm:$0xff] }
  0x18   :  { %154 = vmatpush.bf16.msra.mxu0 %v1089_v5  ;;  %v64_v43 = vshll.u32 %v60_v35, 16  ;;  %v62_v51 = vshrl.u32 %v60_v35, 16  ;;  %v448_v61 = vld [vmem:[%s1367_s2 + $0xe0] sm:$0xff]  ;;  %v430_v0 = vld [vmem:[%s1367_s2 + $0x50] sm:$0xff]  ;;  %v429_v2 = vld [vmem:[%s1367_s2 + $0x48] sm:$0xff] }
  0x19   :  { %167 = vmatpush.bf16.msra.mxu1 %v1096_v9  ;;  %260 = vmatpush.bf16.msra.mxu2 %v1098_v10  ;;  %v446_v1 = vld [vmem:[%s1367_s2 + $0xd0] sm:$0xff]  ;;  %v445_v4 = vld [vmem:[%s1367_s2 + $0xc8] sm:$0xff]  ;;  %v427_v14 = vld [vmem:[%s1367_s2 + $0x38] sm:$0xff] }
  0x1a   :  { %273 = vmatpush.bf16.msra.mxu3 %v1110_v15  ;;  %v66_v52 = vrot.slane %v64_v43, 1  ;;  %v426_v19 = vld [vmem:[%s1367_s2 + $0x30] sm:$0xff]  ;;  %v425_v23 = vld [vmem:[%s1367_s2 + $0x28] sm:$0xff]  ;;  %v423_v31 = vld [vmem:[%s1367_s2 + $0x18] sm:$0xff] }
  0x1b   :  { %v442_v20 = vld [vmem:[%s1367_s2 + $0xb0] sm:$0xff]  ;;  %v441_v24 = vld [vmem:[%s1367_s2 + $0xa8] sm:$0xff]  ;;  %v439_v32 = vld [vmem:[%s1367_s2 + $0x98] sm:$0xff] }
  0x1c   :  { %155 = vmatpush.bf16.msra.mxu0 %v1128_v26  ;;  %v67_v55 = vor.u32 %v66_v52, %v62_v51  ;;  %v422_v35 = vld [vmem:[%s1367_s2 + $0x10] sm:$0xff]  ;;  %v421_v37 = vld [vmem:[%s1367_s2 + $0x8] sm:$0xff]  ;;  %v420_v40 = vld [vmem:[%s1367_s2] sm:$0xff] }
  0x1d   :  { %168 = vmatpush.bf16.msra.mxu1 %v1132_v27  ;;  %261 = vmatpush.bf16.msra.mxu2 %v1134_v28  ;;  %v437_v39 = vld [vmem:[%s1367_s2 + $0x88] sm:$0xff]  ;;  %v436_v41 = vld [vmem:[%s1367_s2 + $0x80] sm:$0xff] }
  0x1e   :  { %274 = vmatpush.bf16.msra.mxu3 %v1146_v36 }
  0x20   :  { %156 = vmatpush.bf16.msra.mxu0 %v690_v47 }
  0x21   :  { %169 = vmatpush.bf16.msra.mxu1 %v694_v48  ;;  %262 = vmatpush.bf16.msra.mxu2 %v754_v49 }
  0x22   :  { %275 = vmatpush.bf16.msra.mxu3 %v758_v53 }
  0x23   :  { %157 = vmatmul.bf16.vlgmr.msra.gmra.mxu0 %v67_v55 }
  0x24   :  { %322 = vmatpush.bf16.msrb.mxu0 %v897_v3  ;;  %263 = vmatmul.bf16.vlgmr.msra.gmra.mxu2 %v23_v54  ;;  %v313_v3 = vld [vmem:[%s1366_s0 + $0x4] sm:$0x1] }
  0x25   :  { %335 = vmatpush.bf16.msrb.mxu1 %v908_v7  ;;  %360 = vmatpush.bf16.msrb.mxu2 %v910_v8  ;;  %v312_v7 = vld [vmem:[%s1366_s0] sm:$0xc]  ;;  %v318_v8 = vunpack.c.l.b16 %v313_v3 }
  0x26   :  { %373 = vmatpush.bf16.msrb.mxu3 %v922_v12  ;;  %170 = vmatmul.bf16.vlgmr.msra.gmra.mxu1 %v67_v55  ;;  %v349_v12 = vunpack.c.l.b16 %v312_v7 }
  0x27   :  { %276 = vmatmul.bf16.vlgmr.msra.gmra.mxu3 %v23_v54 }
  0x28   :  { %323 = vmatpush.bf16.msrb.mxu0 %v935_v16  ;;  %v314_v16 = vld [vmem:[%s1366_s0] sm:$0x8] }
  0x29   :  { %336 = vmatpush.bf16.msrb.mxu1 %v937_v17  ;;  %361 = vmatpush.bf16.msrb.mxu2 %v949_v21  ;;  %v350_v17 = vpack.c.b16 %v318_v8, %v349_v12  ;;  %v317_v21 = vunpack.c.l.b16 %v314_v16 }
  0x2a   :  { %374 = vmatpush.bf16.msrb.mxu3 %v960_v25 }
  0x2b   :  { %v352_v25 = vshrl.u32 %v350_v17, 16 }
  0x2c   :  { %324 = vmatpush.bf16.msrb.mxu0 %v972_v29  ;;  %v355_v29 = vshll.u32 %v350_v17, 16 }
  0x2d   :  { %337 = vmatpush.bf16.msrb.mxu1 %v985_v33  ;;  %362 = vmatpush.bf16.msrb.mxu2 %v987_v34  ;;  %v319_v33 = vpack.c.b16 %v318_v8, %v317_v21  ;;  %v354_v34 = vrot.slane %v352_v25, 2 }
  0x2e   :  { %375 = vmatpush.bf16.msrb.mxu3 %v999_v38  ;;  %v357_v38 = vrot.slane %v355_v29, 3 }
  0x30   :  { %325 = vmatpush.bf16.msrb.mxu0 %v1017_v44  ;;  %v320_v44 = vrot.slane %v319_v33, 3 }
  0x31   :  { %338 = vmatpush.bf16.msrb.mxu1 %v1021_v45  ;;  %363 = vmatpush.bf16.msrb.mxu2 %v1023_v46  ;;  %v358_v45 = vor.u32 %v357_v38, %v354_v34  ;;  %v435_v46 = vld [vmem:[%s1367_s2 + $0x78] sm:$0xff] }
  0x32   :  { %376 = vmatpush.bf16.msrb.mxu3 %v1035_v50  ;;  %v451_v50 = vld [vmem:[%s1367_s2 + $0xf8] sm:$0xff] }
  0x34   :  { %326 = vmatpush.bf16.msrb.mxu0 %v1053_v56  ;;  %v434_v56 = vld [vmem:[%s1367_s2 + $0x70] sm:$0xff] }
  0x35   :  { %339 = vmatpush.bf16.msrb.mxu1 %v1057_v57  ;;  %364 = vmatpush.bf16.msrb.mxu2 %v1059_v58  ;;  %v450_v57 = vld [vmem:[%s1367_s2 + $0xf0] sm:$0xff]  ;;  %v433_v58 = vld [vmem:[%s1367_s2 + $0x68] sm:$0xff] }
  0x36   :  { %377 = vmatpush.bf16.msrb.mxu3 %v1071_v62  ;;  %v431_v62 = vld [vmem:[%s1367_s2 + $0x58] sm:$0xff] }
  0x38   :  { %327 = vmatpush.bf16.msrb.mxu0 %v1089_v5 }
  0x39   :  { %340 = vmatpush.bf16.msrb.mxu1 %v1096_v9  ;;  %365 = vmatpush.bf16.msrb.mxu2 %v1098_v10  ;;  %v428_v9 = vld [vmem:[%s1367_s2 + $0x40] sm:$0xff] }
  0x3a   :  { %378 = vmatpush.bf16.msrb.mxu3 %v1110_v15  ;;  %v444_v10 = vld [vmem:[%s1367_s2 + $0xc0] sm:$0xff]  ;;  %v443_v15 = vld [vmem:[%s1367_s2 + $0xb8] sm:$0xff] }
  0x3c   :  { %328 = vmatpush.bf16.msrb.mxu0 %v1128_v26  ;;  %v424_v26 = vld [vmem:[%s1367_s2 + $0x20] sm:$0xff] }
  0x3d   :  { %341 = vmatpush.bf16.msrb.mxu1 %v1132_v27  ;;  %366 = vmatpush.bf16.msrb.mxu2 %v1134_v28  ;;  %v440_v27 = vld [vmem:[%s1367_s2 + $0xa0] sm:$0xff] }
  0x3e   :  { %379 = vmatpush.bf16.msrb.mxu3 %v1146_v36  ;;  %v438_v36 = vld [vmem:[%s1367_s2 + $0x90] sm:$0xff] }
  0x40   :  { %329 = vmatpush.bf16.msrb.mxu0 %v690_v47 }
  0x41   :  { %342 = vmatpush.bf16.msrb.mxu1 %v694_v48  ;;  %367 = vmatpush.bf16.msrb.mxu2 %v754_v49 }
  0x42   :  { %380 = vmatpush.bf16.msrb.mxu3 %v758_v53 }
  0x43   :  { %330 = vmatmul.bf16.vlgmr.msrb.gmra.mxu0 %v320_v44 }
  0x44   :  { %343 = vmatmul.bf16.vlgmr.msrb.gmra.mxu1 %v320_v44  ;;  %368 = vmatmul.bf16.vlgmr.msrb.gmra.mxu2 %v358_v45 }
  0x45   :  { %381 = vmatmul.bf16.vlgmr.msrb.gmra.mxu3 %v358_v45  ;;  %452 = vmatpush.msra.mxu0 %v435_v46 }
  0x46   :  { %472 = vmatpush.msra.mxu1 %v451_v50  ;;  %492 = vmatpush.msra.mxu2 %v435_v46 }
  0x47   :  { %512 = vmatpush.msra.mxu3 %v451_v50  ;;  %453 = vmatpush.msra.mxu0 %v434_v56 }
  0x48   :  { %473 = vmatpush.msra.mxu1 %v450_v57  ;;  %493 = vmatpush.msra.mxu2 %v434_v56 }
  0x49   :  { %513 = vmatpush.msra.mxu3 %v450_v57  ;;  %454 = vmatpush.msra.mxu0 %v433_v58 }
  0x4a   :  { %474 = vmatpush.msra.mxu1 %v449_v59  ;;  %494 = vmatpush.msra.mxu2 %v433_v58 }
  0x4b   :  { %514 = vmatpush.msra.mxu3 %v449_v59  ;;  %455 = vmatpush.msra.mxu0 %v432_v60 }
  0x4c   :  { %475 = vmatpush.msra.mxu1 %v448_v61  ;;  %495 = vmatpush.msra.mxu2 %v432_v60 }
  0x4d   :  { %515 = vmatpush.msra.mxu3 %v448_v61  ;;  %456 = vmatpush.msra.mxu0 %v431_v62 }
  0x4e   :  { %476 = vmatpush.msra.mxu1 %v447_v63  ;;  %496 = vmatpush.msra.mxu2 %v431_v62 }
  0x4f   :  { %516 = vmatpush.msra.mxu3 %v447_v63  ;;  %457 = vmatpush.msra.mxu0 %v430_v0 }
  0x50   :  { %477 = vmatpush.msra.mxu1 %v446_v1  ;;  %497 = vmatpush.msra.mxu2 %v430_v0 }
  0x51   :  { %517 = vmatpush.msra.mxu3 %v446_v1  ;;  %458 = vmatpush.msra.mxu0 %v429_v2 }
  0x52   :  { %478 = vmatpush.msra.mxu1 %v445_v4  ;;  %498 = vmatpush.msra.mxu2 %v429_v2 }
  0x53   :  { %518 = vmatpush.msra.mxu3 %v445_v4  ;;  %459 = vmatpush.msra.mxu0 %v428_v9 }
  0x54   :  { %479 = vmatpush.msra.mxu1 %v444_v10  ;;  %499 = vmatpush.msra.mxu2 %v428_v9 }
  0x55   :  { %519 = vmatpush.msra.mxu3 %v444_v10  ;;  %460 = vmatpush.msra.mxu0 %v427_v14 }
  0x56   :  { %480 = vmatpush.msra.mxu1 %v443_v15  ;;  %500 = vmatpush.msra.mxu2 %v427_v14 }
  0x57   :  { %520 = vmatpush.msra.mxu3 %v443_v15  ;;  %461 = vmatpush.msra.mxu0 %v426_v19 }
  0x58   :  { %481 = vmatpush.msra.mxu1 %v442_v20  ;;  %501 = vmatpush.msra.mxu2 %v426_v19 }
  0x59   :  { %521 = vmatpush.msra.mxu3 %v442_v20  ;;  %462 = vmatpush.msra.mxu0 %v425_v23 }
  0x5a   :  { %482 = vmatpush.msra.mxu1 %v441_v24  ;;  %502 = vmatpush.msra.mxu2 %v425_v23 }
  0x5b   :  { %522 = vmatpush.msra.mxu3 %v441_v24  ;;  %463 = vmatpush.msra.mxu0 %v424_v26 }
  0x5c   :  { %483 = vmatpush.msra.mxu1 %v440_v27  ;;  %503 = vmatpush.msra.mxu2 %v424_v26 }
  0x5d   :  { %523 = vmatpush.msra.mxu3 %v440_v27  ;;  %464 = vmatpush.msra.mxu0 %v423_v31 }
  0x5e   :  { %484 = vmatpush.msra.mxu1 %v439_v32  ;;  %504 = vmatpush.msra.mxu2 %v423_v31 }
  0x5f   :  { %524 = vmatpush.msra.mxu3 %v439_v32  ;;  %465 = vmatpush.msra.mxu0 %v422_v35 }
  0x60   :  { %485 = vmatpush.msra.mxu1 %v438_v36  ;;  %505 = vmatpush.msra.mxu2 %v422_v35 }
  0x61   :  { %525 = vmatpush.msra.mxu3 %v438_v36  ;;  %466 = vmatpush.msra.mxu0 %v421_v37 }
  0x62   :  { %486 = vmatpush.msra.mxu1 %v437_v39  ;;  %506 = vmatpush.msra.mxu2 %v421_v37 }
  0x63   :  { %526 = vmatpush.msra.mxu3 %v437_v39  ;;  %467 = vmatpush.msra.mxu0 %v420_v40 }
  0x64   :  { %487 = vmatpush.msra.mxu1 %v436_v41  ;;  %507 = vmatpush.msra.mxu2 %v420_v40 }
  0x65   :  { %527 = vmatpush.msra.mxu3 %v436_v41 }
  0xa0   :  { %v1249_v5 = vpop.f32.mrf.mxu0 }
  0xa3   :  { %v1251_v6 = vpop.f32.mrf.mxu1 }
  0xa7   :  { %v264_v11 = vpop.f32.mrf.mxu2 }
  0xa8   :  { %v160_v18 = vpop.f32.mrf.mxu0  ;;  %v1308_v42 = vadd.f32 %v264_v11, %v1249_v5 }
  0xaa   :  { %v277_v13 = vpop.f32.mrf.mxu3  ;;  %v296_v47 = vmul.f32 %v1308_v42, %v1308_v42  ;;  %v282_v49 = vsel %vm281_vm0, %v1308_v42, 0.0 }
  0xab   :  { %v173_v22 = vpop.f32.mrf.mxu1  ;;  %v1311_v43 = vadd.f32 %v277_v13, %v1251_v6  ;;  %v283_v54 = vrot.slane %v282_v49, 4 }
  0xac   :  { %v298_v52 = vsel %vm281_vm0, %v296_v47, 0.0 }
  0xad   :  { %v297_v48 = vmul.f32 %v1311_v43, %v1311_v43  ;;  %v289_v51 = vsel %vm281_vm0, %v1311_v43, 0.0  ;;  %v299_v8 = vrot.slane %v298_v52, 4  ;;  %v284_v16 = vadd.f32 %v283_v54, %v282_v49 }
  0xae   :  { %v290_v7 = vrot.slane %v289_v51, 4 }
  0xaf   :  { %v266_v28 = vpop.f32.mrf.mxu2  ;;  %v305_v55 = vsel %vm281_vm0, %v297_v48, 0.0  ;;  %v300_v21 = vadd.f32 %v299_v8, %v298_v52  ;;  %v285_v44 = vrot.slane %v284_v16, 2 }
  0xb0   :  { %v306_v12 = vrot.slane %v305_v55, 4  ;;  %v291_v17 = vadd.f32 %v290_v7, %v289_v51 }
  0xb1   :  { %v301_v58 = vrot.slane %v300_v21, 2  ;;  %v286_v1 = vadd.f32 %v285_v44, %v284_v16 }
  0xb2   :  { %v279_v30 = vpop.f32.mrf.mxu3  ;;  %v307_v29 = vadd.f32 %v306_v12, %v305_v55  ;;  %v292_v50 = vrot.slane %v291_v17, 2 }
  0xb3   :  { %v302_v11 = vadd.f32 %v301_v58, %v300_v21  ;;  %v287_v23 = vrot.slane %v286_v1, 1 }
  0xb4   :  { %v308_v62 = vrot.slane %v307_v29, 2  ;;  %v293_v6 = vadd.f32 %v292_v50, %v291_v17 }
  0xb5   :  { %v303_v35 = vrot.slane %v302_v11, 1  ;;  %v288_v40 = vadd.f32 %v287_v23, %v286_v1 }
  0xb6   :  { %v309_v18 = vadd.f32 %v308_v62, %v307_v29  ;;  %v294_v27 = vrot.slane %v293_v6, 1  ;;  %v556_v29 = vld [vmem:[%s1368_s3 + $0x18] sm:$0xff] }
  0xb7   :  { %638 = vmatpush.msrb.mxu3 %v556_v29  ;;  %595 = vmatpush.msrb.mxu1 %v556_v29 }
  0xb8   :  { %v310_v39 = vrot.slane %v309_v18, 1  ;;  %v295_v48 = vadd.f32 %v294_v27, %v293_v6 }
  0xc0   :  { %v331_v53 = vpop.f32.mrf.mxu0 }
  0xc1   :  { %v344_v3 = vpop.f32.mrf.mxu1 }
  0xc7   :  { %v369_v25 = vpop.f32.mrf.mxu2 }
  0xc8   :  { %v1323_v33 = vadd.f32 %v369_v25, %v331_v53  ;;  %v382_v34 = vpop.f32.mrf.mxu3  ;;  %v333_v38 = vpop.f32.mrf.mxu0  ;;  %v304_v53 = vadd.f32 %v303_v35, %v302_v11  ;;  %v555_v25 = vld [vmem:[%s1368_s3 + $0x10] sm:$0xff] }
  0xc9   :  { %v1325_v45 = vadd.f32 %v382_v34, %v344_v3  ;;  %v346_v46 = vpop.f32.mrf.mxu1  ;;  %v311_v3 = vadd.f32 %v310_v39, %v309_v18  ;;  %618 = vmatpush.msrb.mxu2 %v555_v25  ;;  %v553_v34 = vld [vmem:[%s1368_s3] sm:$0xff]  ;;  %v554_v38 = vld [vmem:[%s1368_s3 + $0x8] sm:$0xff]  ;;  %575 = vmatpush.msrb.mxu0 %v555_v25 }
  0xca   :  { %v386_v56 = vsel %vm281_vm0, %v1323_v33, 0.0  ;;  %v400_v57 = vmul.f32 %v1323_v33, %v1323_v33  ;;  %639 = vmatpush.msrb.mxu3 %v554_v38  ;;  %596 = vmatpush.msrb.mxu1 %v554_v38 }
  0xcb   :  { %v387_v59 = vrot.slane %v386_v56, 4  ;;  %v393_v60 = vsel %vm281_vm0, %v1325_v45, 0.0  ;;  %v401_v61 = vmul.f32 %v1325_v45, %v1325_v45  ;;  %619 = vmatpush.msrb.mxu2 %v553_v34  ;;  %576 = vmatpush.msrb.mxu0 %v553_v34 }
  0xcc   :  { %v402_v63 = vsel %vm281_vm0, %v400_v57, 0.0  ;;  %v394_v0 = vrot.slane %v393_v60, 4 }
  0xcd   :  { %v388_v2 = vadd.f32 %v387_v59, %v386_v56  ;;  %v403_v4 = vrot.slane %v402_v63, 4  ;;  %v409_v5 = vsel %vm281_vm0, %v401_v61, 0.0 }
  0xce   :  { %v395_v9 = vadd.f32 %v394_v0, %v393_v60  ;;  %v410_v10 = vrot.slane %v409_v5, 4 }
  0xcf   :  { %v389_v13 = vrot.slane %v388_v2, 2  ;;  %v404_v14 = vadd.f32 %v403_v4, %v402_v63  ;;  %v371_v15 = vpop.f32.mrf.mxu2 }
  0xd0   :  { %v396_v19 = vrot.slane %v395_v9, 2  ;;  %v411_v20 = vadd.f32 %v410_v10, %v409_v5  ;;  %v384_v22 = vpop.f32.mrf.mxu3  ;;  %v548_v5 = vld [vmem:[%s1369_s4] sm:$0x1] }
  0xd1   :  { %v390_v24 = vadd.f32 %v389_v13, %v388_v2  ;;  %v405_v26 = vrot.slane %v404_v14, 2  ;;  %v550_v10 = vld [vmem:[%s1370_s5] sm:$0x1] }
  0xd2   :  { %v397_v28 = vadd.f32 %v396_v19, %v395_v9  ;;  %v412_v30 = vrot.slane %v411_v20, 2 }
  0xd3   :  { %v391_v31 = vrot.slane %v390_v24, 1  ;;  %v406_v32 = vadd.f32 %v405_v26, %v404_v14 }
  0xd4   :  { %v398_v36 = vrot.slane %v397_v28, 1  ;;  %v413_v37 = vadd.f32 %v412_v30, %v411_v20 }
  0xd5   :  { %v392_v41 = vadd.f32 %v391_v31, %v390_v24  ;;  %v407_v47 = vrot.slane %v406_v32, 1 }
  0xd6   :  { %v399_v49 = vadd.f32 %v398_v36, %v397_v28  ;;  %v414_v51 = vrot.slane %v413_v37, 1 }
  0xd7   :  { %v416_v52 = vadd.f32 %v392_v41, %v288_v40  ;;  %v408_v54 = vadd.f32 %v407_v47, %v406_v32 }
  0xd8   :  { %v417_v55 = vadd.f32 %v399_v49, %v295_v48  ;;  %v415_v7 = vadd.f32 %v414_v51, %v413_v37 }
  0xd9   :  { %468 = vmatmul.f32.vlgmr.msra.gmra.mxu0 %v416_v52  ;;  %v418_v8 = vadd.f32 %v408_v54, %v304_v53 }
  0xda   :  { %488 = vmatmul.f32.vlgmr.msra.gmra.mxu1 %v417_v55  ;;  %v419_v12 = vadd.f32 %v415_v7, %v311_v3 }
  0xdb   :  { %508 = vmatmul.f32.vlgmr.msra.gmra.mxu2 %v418_v8 }
  0xdc   :  { %528 = vmatmul.f32.vlgmr.msra.gmra.mxu3 %v419_v12 }
 0x156   :  { %v469_v16 = vpop.f32.mrf.mxu0 }
 0x157   :  { %v489_v17 = vpop.f32.mrf.mxu1 }
 0x158   :  { %v490_v21 = vadd.f32 %v489_v17, %v469_v16 }
 0x15a   :  { %v532_v44 = vmul.f32 0.0078125, %v490_v21 }
 0x15c   :  { %v534_v57 = vmul.f32 %v532_v44, %v532_v44 }
 0x15e   :  { %v509_v46 = vpop.f32.mrf.mxu2 }
 0x15f   :  { %v529_v50 = vpop.f32.mrf.mxu3 }
 0x160   :  { %v530_v56 = vadd.f32 %v529_v50, %v509_v46 }
 0x162   :  { %v533_v58 = vmul.f32 0.0078125, %v530_v56 }
 0x164   :  { %v535_v59 = vsub.f32 %v533_v58, %v534_v57 }
 0x166   :  { %v536_v60 = vmax.f32 %v535_v59, 0.0 }
 0x168   :  { %v537_v61 = vadd.f32 1e-05, %v536_v60 }
 0x16a   :  { %851 = vrsqrt.f32 %v537_v61  ;;  %vm544_vm2 = vweird.f32 %v537_v61 }
 0x170   :  { %v852_v62 = vpop.eup %851 }
 0x171   :  { %v539_v63 = vmul.f32 %v852_v62, %v537_v61  ;;  %vm545_vm1 = vweird.f32 %v852_v62 }
 0x172   :  { %vm546_vm3 = vmor %vm544_vm2, %vm545_vm1 }
 0x173   :  { %v540_v0 = vmul.f32 %v852_v62, %v539_v63 }
 0x175   :  { %v541_v1 = vmul.f32 0.5, %v540_v0 }
 0x177   :  { %v542_v2 = vsub.f32 1.5, %v541_v1 }
 0x179   :  { %v543_v4 = vmul.f32 %v852_v62, %v542_v2 }
 0x17b   :  { %v547_v6 = vsel %vm546_vm3, %v852_v62, %v543_v4 }
 0x17c   :  { %v549_v9 = vmul.f32 %v548_v5, %v547_v6 }
 0x17e   :  { %815 = vmatmul.msk.f32.vlgmr.msrb.gmra.mxu0 %vm557_vm4, %v549_v9  ;;  %816 = vmatmul.msk.f32.vlgmr.msrb.gmra.mxu1 %vm557_vm4, %v549_v9  ;;  %v551_v11 = vmul.f32 %v549_v9, %v532_v44 }
 0x180   :  { %v552_v13 = vsub.f32 %v550_v10, %v551_v11 }
 0x182   :  { %817 = vmatmul.msk.f32.vlgmr.msrb.gmra.mxu2 %vm557_vm4, %v552_v13  ;;  %818 = vmatmul.msk.f32.vlgmr.msrb.gmra.mxu3 %vm557_vm4, %v552_v13 }
 0x1fb   :  { %v578_v14 = vpop.f32.mrf.mxu0  ;;  %v598_v15 = vpop.f32.mrf.mxu1 }
 0x1fc   :  { %v644_v18 = vperm.slane %v578_v14, 0  ;;  %v645_v19 = vperm.slane %v598_v15, 0 }
 0x1fe   :  { %v646_v20 = vmul.f32 %v644_v18, %v1308_v42  ;;  %v656_v22 = vmul.f32 %v644_v18, %v1323_v33  ;;  %v647_v26 = vmul.f32 %v645_v19, %v1311_v43  ;;  %v657_v27 = vmul.f32 %v645_v19, %v1325_v45 }
 0x205   :  { %v621_v23 = vpop.f32.mrf.mxu2  ;;  %v641_v24 = vpop.f32.mrf.mxu3 }
 0x206   :  { %v648_v28 = vperm.slane %v621_v23, 0  ;;  %v649_v30 = vperm.slane %v641_v24, 0 }
 0x208   :  { %v650_v31 = vadd.f32 %v648_v28, %v646_v20  ;;  %v658_v32 = vadd.f32 %v656_v22, %v648_v28  ;;  %v651_v35 = vadd.f32 %v649_v30, %v647_v26  ;;  %v659_v36 = vadd.f32 %v657_v27, %v649_v30 }
 0x20a   :  { %v652_v37 = vmax.f32 %v650_v31, 0.0  ;;  %v660_v39 = vmax.f32 %v658_v32, 0.0  ;;  %v653_v40 = vmax.f32 %v651_v35, 0.0  ;;  %v661_v41 = vmax.f32 %v659_v36, 0.0 }
 0x20c   :  { %v654_v47 = vpack.c.bf16 %v653_v40, %v652_v37  ;;  %v662_v42 = vpack.c.bf16 %v661_v41, %v660_v39 }
 0x20e   :  { %655 = vst [vmem:[%s1371_s6] sm:$0x33] %v654_v47  ;;  %v664_v33 = vrot.slane %v662_v42, 6 }
 0x210   :  { %666 = vst [vmem:[%s1371_s6] sm:$0xcc] %v664_v33 }

// kernel: resnet_generator_forward.18
= control target key start
LH: loop header
LB: loop body
LE: loop exit
PB: predicated region body
PF: predicated region fallthrough
CT: control target
= control target key end

     0   :  { %vm547_vm3 = vcmask 64512   ;;  %s1350_s1 = inlined_call_operand.vmem [shape: bf16[2,128,256], index: 1, kind: input, shape index: {}]   ;;  %s1351_s0 = inlined_call_operand.vmem [shape: bf16[18,128], index: 0, kind: input, shape index: {}]   ;;  %s1352_s2 = inlined_call_operand.vmem [shape: f32[256,8], index: 2, kind: input, shape index: {}]   ;;  %s1353_s3 = inlined_call_operand.vmem [shape: f32[8,256], index: 3, kind: input, shape index: {}]   ;;  %s1354_s4 = inlined_call_operand.vmem [shape: f32[1,8], index: 4, kind: input, shape index: {}]   ;;  %s1355_s5 = inlined_call_operand.vmem [shape: f32[1,8], index: 5, kind: input, shape index: {}]   ;;  %s1356_s6 = inlined_call_operand.vmem [shape: bf16[16,256], index: 6, kind: output, shape index: {}]  }
   0x1   :  { %v736_v0 = vld [vmem:[%s1350_s1 + $0xf0] sm:$0xf]  ;;  %v842_v1 = vld [vmem:[%s1350_s1 + $0xf4] sm:$0xf0]  ;;  %v841_v2 = vld [vmem:[%s1350_s1 + $0xf4] sm:$0xf] }
   0x2   :  { %v889_v3 = vor.u32 %v842_v1, %v736_v0  ;;  %v738_v4 = vld [vmem:[%s1350_s1 + $0xf8] sm:$0xf0]  ;;  %v800_v5 = vld [vmem:[%s1350_s1 + $0x70] sm:$0xf]  ;;  %v825_v6 = vld [vmem:[%s1350_s1 + $0x74] sm:$0xf0] }
   0x3   :  { %v900_v7 = vor.u32 %v841_v2, %v738_v4  ;;  %v902_v8 = vor.u32 %v825_v6, %v800_v5  ;;  %v824_v9 = vld [vmem:[%s1350_s1 + $0x74] sm:$0xf]  ;;  %v802_v10 = vld [vmem:[%s1350_s1 + $0x78] sm:$0xf0]  ;;  %v728_v11 = vld [vmem:[%s1350_s1 + $0xe0] sm:$0xf] }
   0x4   :  { %151 = vmatpush.bf16.msra.mxu0 %v889_v3  ;;  %v914_v12 = vor.u32 %v824_v9, %v802_v10  ;;  %v840_v13 = vld [vmem:[%s1350_s1 + $0xe4] sm:$0xf0]  ;;  %v839_v14 = vld [vmem:[%s1350_s1 + $0xe4] sm:$0xf]  ;;  %v730_v15 = vld [vmem:[%s1350_s1 + $0xe8] sm:$0xf0] }
   0x5   :  { %164 = vmatpush.bf16.msra.mxu1 %v900_v7  ;;  %257 = vmatpush.bf16.msra.mxu2 %v902_v8  ;;  %v927_v16 = vor.u32 %v840_v13, %v728_v11  ;;  %v929_v17 = vor.u32 %v839_v14, %v730_v15  ;;  %v792_v18 = vld [vmem:[%s1350_s1 + $0x60] sm:$0xf]  ;;  %v823_v19 = vld [vmem:[%s1350_s1 + $0x64] sm:$0xf0]  ;;  %v822_v20 = vld [vmem:[%s1350_s1 + $0x64] sm:$0xf] }
   0x6   :  { %270 = vmatpush.bf16.msra.mxu3 %v914_v12  ;;  %v941_v21 = vor.u32 %v823_v19, %v792_v18  ;;  %v794_v22 = vld [vmem:[%s1350_s1 + $0x68] sm:$0xf0]  ;;  %v720_v23 = vld [vmem:[%s1350_s1 + $0xd0] sm:$0xf]  ;;  %v838_v24 = vld [vmem:[%s1350_s1 + $0xd4] sm:$0xf0] }
   0x7   :  { %v952_v25 = vor.u32 %v822_v20, %v794_v22  ;;  %v837_v26 = vld [vmem:[%s1350_s1 + $0xd4] sm:$0xf]  ;;  %v722_v27 = vld [vmem:[%s1350_s1 + $0xd8] sm:$0xf0]  ;;  %v784_v28 = vld [vmem:[%s1350_s1 + $0x50] sm:$0xf]  ;;  %v964_v29 = vor.u32 %v838_v24, %v720_v23 }
   0x8   :  { %152 = vmatpush.bf16.msra.mxu0 %v927_v16  ;;  %v821_v30 = vld [vmem:[%s1350_s1 + $0x54] sm:$0xf0]  ;;  %v820_v31 = vld [vmem:[%s1350_s1 + $0x54] sm:$0xf]  ;;  %v786_v32 = vld [vmem:[%s1350_s1 + $0x58] sm:$0xf0]  ;;  %v977_v33 = vor.u32 %v837_v26, %v722_v27 }
   0x9   :  { %165 = vmatpush.bf16.msra.mxu1 %v929_v17  ;;  %258 = vmatpush.bf16.msra.mxu2 %v941_v21  ;;  %v979_v34 = vor.u32 %v821_v30, %v784_v28  ;;  %v712_v35 = vld [vmem:[%s1350_s1 + $0xc0] sm:$0xf]  ;;  %v836_v36 = vld [vmem:[%s1350_s1 + $0xc4] sm:$0xf0]  ;;  %v835_v37 = vld [vmem:[%s1350_s1 + $0xc4] sm:$0xf]  ;;  %v991_v38 = vor.u32 %v820_v31, %v786_v32 }
   0xa   :  { %271 = vmatpush.bf16.msra.mxu3 %v952_v25  ;;  %v714_v39 = vld [vmem:[%s1350_s1 + $0xc8] sm:$0xf0]  ;;  %v776_v40 = vld [vmem:[%s1350_s1 + $0x40] sm:$0xf]  ;;  %v819_v41 = vld [vmem:[%s1350_s1 + $0x44] sm:$0xf0]  ;;  %v1009_v44 = vor.u32 %v836_v36, %v712_v35 }
   0xb   :  { %v818_v42 = vld [vmem:[%s1350_s1 + $0x44] sm:$0xf]  ;;  %v778_v43 = vld [vmem:[%s1350_s1 + $0x48] sm:$0xf0]  ;;  %v1013_v45 = vor.u32 %v835_v37, %v714_v39  ;;  %v1015_v46 = vor.u32 %v819_v41, %v776_v40  ;;  %v704_v47 = vld [vmem:[%s1350_s1 + $0xb0] sm:$0xf] }
   0xc   :  { %153 = vmatpush.bf16.msra.mxu0 %v964_v29  ;;  %v834_v48 = vld [vmem:[%s1350_s1 + $0xb4] sm:$0xf0]  ;;  %v833_v49 = vld [vmem:[%s1350_s1 + $0xb4] sm:$0xf]  ;;  %v1027_v50 = vor.u32 %v818_v42, %v778_v43  ;;  %v706_v51 = vld [vmem:[%s1350_s1 + $0xb8] sm:$0xf0] }
   0xd   :  { %166 = vmatpush.bf16.msra.mxu1 %v977_v33  ;;  %259 = vmatpush.bf16.msra.mxu2 %v979_v34  ;;  %v768_v52 = vld [vmem:[%s1350_s1 + $0x30] sm:$0xf]  ;;  %v817_v53 = vld [vmem:[%s1350_s1 + $0x34] sm:$0xf0]  ;;  %v816_v54 = vld [vmem:[%s1350_s1 + $0x34] sm:$0xf]  ;;  %v1045_v56 = vor.u32 %v834_v48, %v704_v47  ;;  %v1049_v57 = vor.u32 %v833_v49, %v706_v51 }
   0xe   :  { %272 = vmatpush.bf16.msra.mxu3 %v991_v38  ;;  %v770_v55 = vld [vmem:[%s1350_s1 + $0x38] sm:$0xf0]  ;;  %v1051_v58 = vor.u32 %v817_v53, %v768_v52  ;;  %v696_v59 = vld [vmem:[%s1350_s1 + $0xa0] sm:$0xf]  ;;  %v832_v60 = vld [vmem:[%s1350_s1 + $0xa4] sm:$0xf0] }
   0xf   :  { %v831_v61 = vld [vmem:[%s1350_s1 + $0xa4] sm:$0xf]  ;;  %v1063_v62 = vor.u32 %v816_v54, %v770_v55  ;;  %v698_v63 = vld [vmem:[%s1350_s1 + $0xa8] sm:$0xf0]  ;;  %v760_v0 = vld [vmem:[%s1350_s1 + $0x20] sm:$0xf]  ;;  %v1081_v5 = vor.u32 %v832_v60, %v696_v59 }
  0x10   :  { %154 = vmatpush.bf16.msra.mxu0 %v1009_v44  ;;  %v815_v1 = vld [vmem:[%s1350_s1 + $0x24] sm:$0xf0]  ;;  %v814_v2 = vld [vmem:[%s1350_s1 + $0x24] sm:$0xf]  ;;  %v762_v4 = vld [vmem:[%s1350_s1 + $0x28] sm:$0xf0]  ;;  %v1088_v9 = vor.u32 %v831_v61, %v698_v63 }
  0x11   :  { %167 = vmatpush.bf16.msra.mxu1 %v1013_v45  ;;  %260 = vmatpush.bf16.msra.mxu2 %v1015_v46  ;;  %v688_v6 = vld [vmem:[%s1350_s1 + $0x90] sm:$0xf]  ;;  %v1090_v10 = vor.u32 %v815_v1, %v760_v0  ;;  %v830_v11 = vld [vmem:[%s1350_s1 + $0x94] sm:$0xf0]  ;;  %v829_v13 = vld [vmem:[%s1350_s1 + $0x94] sm:$0xf]  ;;  %v1102_v15 = vor.u32 %v814_v2, %v762_v4 }
  0x12   :  { %273 = vmatpush.bf16.msra.mxu3 %v1027_v50  ;;  %v690_v14 = vld [vmem:[%s1350_s1 + $0x98] sm:$0xf0]  ;;  %v752_v18 = vld [vmem:[%s1350_s1 + $0x10] sm:$0xf]  ;;  %v813_v19 = vld [vmem:[%s1350_s1 + $0x14] sm:$0xf0]  ;;  %v1123_v26 = vor.u32 %v830_v11, %v688_v6 }
  0x13   :  { %v676_v20 = vld [vmem:[%s1351_s0] sm:$0xf]  ;;  %v812_v22 = vld [vmem:[%s1350_s1 + $0x14] sm:$0xf]  ;;  %v754_v23 = vld [vmem:[%s1350_s1 + $0x18] sm:$0xf0]  ;;  %v1130_v30 = vor.u32 %v829_v13, %v690_v14  ;;  %v1132_v31 = vor.u32 %v813_v19, %v752_v18 }
  0x14   :  { %155 = vmatpush.bf16.msra.mxu0 %v1045_v56  ;;  %v826_v24 = vld [vmem:[%s1351_s0] sm:$0x10]  ;;  %v680_v27 = vld [vmem:[%s1350_s1 + $0x80] sm:$0xf]  ;;  %v828_v32 = vld [vmem:[%s1350_s1 + $0x84] sm:$0xf0]  ;;  %v1144_v37 = vor.u32 %v812_v22, %v754_v23 }
  0x15   :  { %168 = vmatpush.bf16.msra.mxu1 %v1049_v57  ;;  %261 = vmatpush.bf16.msra.mxu2 %v1051_v58  ;;  %v677_v28 = vor.u32 %v826_v24, %v676_v20  ;;  %v827_v35 = vld [vmem:[%s1350_s1 + $0x84] sm:$0xf]  ;;  %v682_v36 = vld [vmem:[%s1350_s1 + $0x88] sm:$0xf0]  ;;  %v744_v39 = vld [vmem:[%s1350_s1] sm:$0xf]  ;;  %v681_v47 = vor.u32 %v828_v32, %v680_v27 }
  0x16   :  { %274 = vmatpush.bf16.msra.mxu3 %v1063_v62  ;;  %v811_v40 = vld [vmem:[%s1350_s1 + $0x4] sm:$0xf0]  ;;  %v810_v42 = vld [vmem:[%s1350_s1 + $0x4] sm:$0xf]  ;;  %v746_v43 = vld [vmem:[%s1350_s1 + $0x8] sm:$0xf0]  ;;  %v685_v48 = vor.u32 %v827_v35, %v682_v36 }
  0x17   :  { %v66_v41 = vshll.u32 %v677_v28, 16  ;;  %v745_v49 = vor.u32 %v811_v40, %v744_v39  ;;  %v64_v51 = vshrl.u32 %v677_v28, 16  ;;  %v749_v53 = vor.u32 %v810_v42, %v746_v43  ;;  %v23_v54 = vld [vmem:[%s1351_s0] sm:$0xf]  ;;  %v423_v61 = vld [vmem:[%s1352_s2 + $0x58] sm:$0xff]  ;;  %v422_v63 = vld [vmem:[%s1352_s2 + $0x50] sm:$0xff] }
  0x18   :  { %156 = vmatpush.bf16.msra.mxu0 %v1081_v5  ;;  %v424_v59 = vld [vmem:[%s1352_s2 + $0x60] sm:$0xff]  ;;  %v438_v0 = vld [vmem:[%s1352_s2 + $0xd0] sm:$0xff]  ;;  %v421_v1 = vld [vmem:[%s1352_s2 + $0x48] sm:$0xff] }
  0x19   :  { %169 = vmatpush.bf16.msra.mxu1 %v1088_v9  ;;  %262 = vmatpush.bf16.msra.mxu2 %v1090_v10  ;;  %v68_v52 = vrot.slane %v66_v41, 1  ;;  %v440_v60 = vld [vmem:[%s1352_s2 + $0xe0] sm:$0xff]  ;;  %v437_v2 = vld [vmem:[%s1352_s2 + $0xc8] sm:$0xff]  ;;  %v419_v11 = vld [vmem:[%s1352_s2 + $0x38] sm:$0xff] }
  0x1a   :  { %275 = vmatpush.bf16.msra.mxu3 %v1102_v15  ;;  %v420_v6 = vld [vmem:[%s1352_s2 + $0x40] sm:$0xff]  ;;  %v435_v13 = vld [vmem:[%s1352_s2 + $0xb8] sm:$0xff]  ;;  %v434_v18 = vld [vmem:[%s1352_s2 + $0xb0] sm:$0xff] }
  0x1b   :  { %v69_v55 = vor.u32 %v68_v52, %v64_v51  ;;  %v417_v22 = vld [vmem:[%s1352_s2 + $0x28] sm:$0xff]  ;;  %v416_v24 = vld [vmem:[%s1352_s2 + $0x20] sm:$0xff]  ;;  %v415_v28 = vld [vmem:[%s1352_s2 + $0x18] sm:$0xff] }
  0x1c   :  { %157 = vmatpush.bf16.msra.mxu0 %v1123_v26  ;;  %v433_v23 = vld [vmem:[%s1352_s2 + $0xa8] sm:$0xff]  ;;  %v430_v35 = vld [vmem:[%s1352_s2 + $0x90] sm:$0xff]  ;;  %v412_v39 = vld [vmem:[%s1352_s2] sm:$0xff] }
  0x1d   :  { %170 = vmatpush.bf16.msra.mxu1 %v1130_v30  ;;  %263 = vmatpush.bf16.msra.mxu2 %v1132_v31  ;;  %v413_v36 = vld [vmem:[%s1352_s2 + $0x8] sm:$0xff]  ;;  %v428_v40 = vld [vmem:[%s1352_s2 + $0x80] sm:$0xff] }
  0x1e   :  { %276 = vmatpush.bf16.msra.mxu3 %v1144_v37 }
  0x20   :  { %158 = vmatpush.bf16.msra.mxu0 %v681_v47 }
  0x21   :  { %171 = vmatpush.bf16.msra.mxu1 %v685_v48  ;;  %264 = vmatpush.bf16.msra.mxu2 %v745_v49 }
  0x22   :  { %277 = vmatpush.bf16.msra.mxu3 %v749_v53 }
  0x23   :  { %159 = vmatmul.bf16.vlgmr.msra.gmra.mxu0 %v69_v55 }
  0x24   :  { %319 = vmatpush.bf16.msrb.mxu0 %v889_v3  ;;  %265 = vmatmul.bf16.vlgmr.msra.gmra.mxu2 %v23_v54  ;;  %v310_v3 = vld [vmem:[%s1351_s0 + $0x8] sm:$0x1] }
  0x25   :  { %332 = vmatpush.bf16.msrb.mxu1 %v900_v7  ;;  %356 = vmatpush.bf16.msrb.mxu2 %v902_v8  ;;  %v309_v7 = vld [vmem:[%s1351_s0 + $0x4] sm:$0xf]  ;;  %v315_v8 = vunpack.c.l.b16 %v310_v3 }
  0x26   :  { %369 = vmatpush.bf16.msrb.mxu3 %v914_v12  ;;  %172 = vmatmul.bf16.vlgmr.msra.gmra.mxu1 %v69_v55  ;;  %v346_v12 = vunpack.c.l.b16 %v309_v7 }
  0x27   :  { %278 = vmatmul.bf16.vlgmr.msra.gmra.mxu3 %v23_v54 }
  0x28   :  { %320 = vmatpush.bf16.msrb.mxu0 %v927_v16  ;;  %v311_v16 = vld [vmem:[%s1351_s0 + $0x4] sm:$0xe] }
  0x29   :  { %333 = vmatpush.bf16.msrb.mxu1 %v929_v17  ;;  %357 = vmatpush.bf16.msrb.mxu2 %v941_v21  ;;  %v347_v17 = vpack.c.b16 %v315_v8, %v346_v12  ;;  %v314_v21 = vunpack.c.l.b16 %v311_v16 }
  0x2a   :  { %370 = vmatpush.bf16.msrb.mxu3 %v952_v25 }
  0x2b   :  { %v351_v25 = vshll.u32 %v347_v17, 16 }
  0x2c   :  { %321 = vmatpush.bf16.msrb.mxu0 %v964_v29  ;;  %v316_v29 = vpack.c.b16 %v315_v8, %v314_v21 }
  0x2d   :  { %334 = vmatpush.bf16.msrb.mxu1 %v977_v33  ;;  %358 = vmatpush.bf16.msrb.mxu2 %v979_v34  ;;  %v349_v33 = vshrl.u32 %v347_v17, 16  ;;  %v353_v34 = vrot.slane %v351_v25, 1 }
  0x2e   :  { %371 = vmatpush.bf16.msrb.mxu3 %v991_v38  ;;  %v317_v38 = vrot.slane %v316_v29, 1 }
  0x30   :  { %322 = vmatpush.bf16.msrb.mxu0 %v1009_v44  ;;  %v354_v44 = vor.u32 %v353_v34, %v349_v33 }
  0x31   :  { %335 = vmatpush.bf16.msrb.mxu1 %v1013_v45  ;;  %359 = vmatpush.bf16.msrb.mxu2 %v1015_v46  ;;  %v427_v45 = vld [vmem:[%s1352_s2 + $0x78] sm:$0xff] }
  0x32   :  { %372 = vmatpush.bf16.msrb.mxu3 %v1027_v50  ;;  %v443_v46 = vld [vmem:[%s1352_s2 + $0xf8] sm:$0xff]  ;;  %v426_v50 = vld [vmem:[%s1352_s2 + $0x70] sm:$0xff] }
  0x34   :  { %323 = vmatpush.bf16.msrb.mxu0 %v1045_v56  ;;  %v442_v56 = vld [vmem:[%s1352_s2 + $0xf0] sm:$0xff] }
  0x35   :  { %336 = vmatpush.bf16.msrb.mxu1 %v1049_v57  ;;  %360 = vmatpush.bf16.msrb.mxu2 %v1051_v58  ;;  %v425_v57 = vld [vmem:[%s1352_s2 + $0x68] sm:$0xff] }
  0x36   :  { %373 = vmatpush.bf16.msrb.mxu3 %v1063_v62  ;;  %v441_v58 = vld [vmem:[%s1352_s2 + $0xe8] sm:$0xff]  ;;  %v439_v62 = vld [vmem:[%s1352_s2 + $0xd8] sm:$0xff] }
  0x38   :  { %324 = vmatpush.bf16.msrb.mxu0 %v1081_v5 }
  0x39   :  { %337 = vmatpush.bf16.msrb.mxu1 %v1088_v9  ;;  %361 = vmatpush.bf16.msrb.mxu2 %v1090_v10  ;;  %v436_v9 = vld [vmem:[%s1352_s2 + $0xc0] sm:$0xff] }
  0x3a   :  { %374 = vmatpush.bf16.msrb.mxu3 %v1102_v15  ;;  %v418_v15 = vld [vmem:[%s1352_s2 + $0x30] sm:$0xff] }
  0x3c   :  { %325 = vmatpush.bf16.msrb.mxu0 %v1123_v26  ;;  %v432_v26 = vld [vmem:[%s1352_s2 + $0xa0] sm:$0xff] }
  0x3d   :  { %338 = vmatpush.bf16.msrb.mxu1 %v1130_v30  ;;  %362 = vmatpush.bf16.msrb.mxu2 %v1132_v31  ;;  %v431_v30 = vld [vmem:[%s1352_s2 + $0x98] sm:$0xff]  ;;  %v414_v31 = vld [vmem:[%s1352_s2 + $0x10] sm:$0xff] }
  0x3e   :  { %375 = vmatpush.bf16.msrb.mxu3 %v1144_v37  ;;  %v429_v37 = vld [vmem:[%s1352_s2 + $0x88] sm:$0xff] }
  0x40   :  { %326 = vmatpush.bf16.msrb.mxu0 %v681_v47 }
  0x41   :  { %339 = vmatpush.bf16.msrb.mxu1 %v685_v48  ;;  %363 = vmatpush.bf16.msrb.mxu2 %v745_v49 }
  0x42   :  { %376 = vmatpush.bf16.msrb.mxu3 %v749_v53 }
  0x43   :  { %327 = vmatmul.bf16.vlgmr.msrb.gmra.mxu0 %v317_v38 }
  0x44   :  { %340 = vmatmul.bf16.vlgmr.msrb.gmra.mxu1 %v317_v38  ;;  %364 = vmatmul.bf16.vlgmr.msrb.gmra.mxu2 %v354_v44 }
  0x45   :  { %377 = vmatmul.bf16.vlgmr.msrb.gmra.mxu3 %v354_v44  ;;  %444 = vmatpush.msra.mxu0 %v427_v45 }
  0x46   :  { %464 = vmatpush.msra.mxu1 %v443_v46  ;;  %484 = vmatpush.msra.mxu2 %v427_v45 }
  0x47   :  { %504 = vmatpush.msra.mxu3 %v443_v46  ;;  %445 = vmatpush.msra.mxu0 %v426_v50 }
  0x48   :  { %465 = vmatpush.msra.mxu1 %v442_v56  ;;  %485 = vmatpush.msra.mxu2 %v426_v50 }
  0x49   :  { %505 = vmatpush.msra.mxu3 %v442_v56  ;;  %446 = vmatpush.msra.mxu0 %v425_v57 }
  0x4a   :  { %466 = vmatpush.msra.mxu1 %v441_v58  ;;  %486 = vmatpush.msra.mxu2 %v425_v57 }
  0x4b   :  { %506 = vmatpush.msra.mxu3 %v441_v58  ;;  %447 = vmatpush.msra.mxu0 %v424_v59 }
  0x4c   :  { %467 = vmatpush.msra.mxu1 %v440_v60  ;;  %487 = vmatpush.msra.mxu2 %v424_v59 }
  0x4d   :  { %507 = vmatpush.msra.mxu3 %v440_v60  ;;  %448 = vmatpush.msra.mxu0 %v423_v61 }
  0x4e   :  { %468 = vmatpush.msra.mxu1 %v439_v62  ;;  %488 = vmatpush.msra.mxu2 %v423_v61 }
  0x4f   :  { %508 = vmatpush.msra.mxu3 %v439_v62  ;;  %449 = vmatpush.msra.mxu0 %v422_v63 }
  0x50   :  { %469 = vmatpush.msra.mxu1 %v438_v0  ;;  %489 = vmatpush.msra.mxu2 %v422_v63 }
  0x51   :  { %509 = vmatpush.msra.mxu3 %v438_v0  ;;  %450 = vmatpush.msra.mxu0 %v421_v1 }
  0x52   :  { %470 = vmatpush.msra.mxu1 %v437_v2  ;;  %490 = vmatpush.msra.mxu2 %v421_v1 }
  0x53   :  { %510 = vmatpush.msra.mxu3 %v437_v2  ;;  %451 = vmatpush.msra.mxu0 %v420_v6 }
  0x54   :  { %471 = vmatpush.msra.mxu1 %v436_v9  ;;  %491 = vmatpush.msra.mxu2 %v420_v6 }
  0x55   :  { %511 = vmatpush.msra.mxu3 %v436_v9  ;;  %452 = vmatpush.msra.mxu0 %v419_v11 }
  0x56   :  { %472 = vmatpush.msra.mxu1 %v435_v13  ;;  %492 = vmatpush.msra.mxu2 %v419_v11 }
  0x57   :  { %512 = vmatpush.msra.mxu3 %v435_v13  ;;  %453 = vmatpush.msra.mxu0 %v418_v15 }
  0x58   :  { %473 = vmatpush.msra.mxu1 %v434_v18  ;;  %493 = vmatpush.msra.mxu2 %v418_v15 }
  0x59   :  { %513 = vmatpush.msra.mxu3 %v434_v18  ;;  %454 = vmatpush.msra.mxu0 %v417_v22 }
  0x5a   :  { %474 = vmatpush.msra.mxu1 %v433_v23  ;;  %494 = vmatpush.msra.mxu2 %v417_v22 }
  0x5b   :  { %514 = vmatpush.msra.mxu3 %v433_v23  ;;  %455 = vmatpush.msra.mxu0 %v416_v24 }
  0x5c   :  { %475 = vmatpush.msra.mxu1 %v432_v26  ;;  %495 = vmatpush.msra.mxu2 %v416_v24 }
  0x5d   :  { %515 = vmatpush.msra.mxu3 %v432_v26  ;;  %456 = vmatpush.msra.mxu0 %v415_v28 }
  0x5e   :  { %476 = vmatpush.msra.mxu1 %v431_v30  ;;  %496 = vmatpush.msra.mxu2 %v415_v28 }
  0x5f   :  { %516 = vmatpush.msra.mxu3 %v431_v30  ;;  %457 = vmatpush.msra.mxu0 %v414_v31 }
  0x60   :  { %477 = vmatpush.msra.mxu1 %v430_v35  ;;  %497 = vmatpush.msra.mxu2 %v414_v31 }
  0x61   :  { %517 = vmatpush.msra.mxu3 %v430_v35  ;;  %458 = vmatpush.msra.mxu0 %v413_v36 }
  0x62   :  { %478 = vmatpush.msra.mxu1 %v429_v37  ;;  %498 = vmatpush.msra.mxu2 %v413_v36 }
  0x63   :  { %518 = vmatpush.msra.mxu3 %v429_v37  ;;  %459 = vmatpush.msra.mxu0 %v412_v39 }
  0x64   :  { %479 = vmatpush.msra.mxu1 %v428_v40  ;;  %499 = vmatpush.msra.mxu2 %v412_v39 }
  0x65   :  { %519 = vmatpush.msra.mxu3 %v428_v40 }
  0xa0   :  { %v1244_v4 = vpop.f32.mrf.mxu0 }
  0xa3   :  { %v1246_v5 = vpop.f32.mrf.mxu1 }
  0xa7   :  { %v266_v10 = vpop.f32.mrf.mxu2 }
  0xa8   :  { %v162_v19 = vpop.f32.mrf.mxu0  ;;  %v1303_v41 = vadd.f32 %v266_v10, %v1244_v4 }
  0xaa   :  { %v279_v14 = vpop.f32.mrf.mxu3  ;;  %v295_v43 = vmul.f32 %v1303_v41, %v1303_v41  ;;  %v283_v48 = vrot.slane %v1303_v41, 4 }
  0xab   :  { %v175_v20 = vpop.f32.mrf.mxu1  ;;  %v1306_v42 = vadd.f32 %v279_v14, %v1246_v5 }
  0xac   :  { %v297_v53 = vrot.slane %v295_v43, 4  ;;  %v284_v55 = vadd.f32 %v283_v48, %v1303_v41 }
  0xad   :  { %v296_v47 = vmul.f32 %v1306_v42, %v1306_v42  ;;  %v289_v51 = vrot.slane %v1306_v42, 4 }
  0xae   :  { %v298_v7 = vadd.f32 %v297_v53, %v295_v43  ;;  %v285_v16 = vrot.slane %v284_v55, 2 }
  0xaf   :  { %v268_v27 = vpop.f32.mrf.mxu2  ;;  %v303_v54 = vrot.slane %v296_v47, 4  ;;  %v290_v3 = vadd.f32 %v289_v51, %v1306_v42 }
  0xb0   :  { %v299_v38 = vrot.slane %v298_v7, 2  ;;  %v286_v57 = vadd.f32 %v285_v16, %v284_v55  ;;  %v546_v55 = vld [vmem:[%s1353_s3 + $0x8] sm:$0xff] }
  0xb1   :  { %v304_v8 = vadd.f32 %v303_v54, %v296_v47  ;;  %v291_v29 = vrot.slane %v290_v3, 2  ;;  %v545_v54 = vld [vmem:[%s1353_s3] sm:$0xff]  ;;  %629 = vmatpush.msrb.mxu3 %v546_v55  ;;  %586 = vmatpush.msrb.mxu1 %v546_v55 }
  0xb2   :  { %v281_v32 = vpop.f32.mrf.mxu3  ;;  %v300_v1 = vadd.f32 %v299_v38, %v298_v7  ;;  %v287_v13 = vrot.slane %v286_v57, 1  ;;  %609 = vmatpush.msrb.mxu2 %v545_v54  ;;  %566 = vmatpush.msrb.mxu0 %v545_v54 }
  0xb3   :  { %v305_v46 = vrot.slane %v304_v8, 2  ;;  %v292_v60 = vadd.f32 %v291_v29, %v290_v3 }
  0xb4   :  { %v301_v20 = vrot.slane %v300_v1, 1  ;;  %v288_v27 = vadd.f32 %v287_v13, %v286_v57  ;;  %v540_v57 = vld [vmem:[%s1354_s4] sm:$0x1] }
  0xb5   :  { %v306_v6 = vadd.f32 %v305_v46, %v304_v8  ;;  %v293_v18 = vrot.slane %v292_v60, 1 }
  0xb6   :  { %v302_v37 = vadd.f32 %v301_v20, %v300_v1 }
  0xb7   :  { %v307_v24 = vrot.slane %v306_v6, 1  ;;  %v294_v31 = vadd.f32 %v293_v18, %v292_v60  ;;  %v542_v60 = vld [vmem:[%s1355_s5] sm:$0x1] }
  0xb9   :  { %v308_v43 = vadd.f32 %v307_v24, %v306_v6 }
  0xc0   :  { %v328_v49 = vpop.f32.mrf.mxu0 }
  0xc1   :  { %v341_v52 = vpop.f32.mrf.mxu1 }
  0xc7   :  { %v365_v12 = vpop.f32.mrf.mxu2 }
  0xc8   :  { %v1316_v17 = vadd.f32 %v365_v12, %v328_v49  ;;  %v378_v21 = vpop.f32.mrf.mxu3  ;;  %v330_v25 = vpop.f32.mrf.mxu0 }
  0xc9   :  { %v1318_v33 = vadd.f32 %v378_v21, %v341_v52  ;;  %v343_v34 = vpop.f32.mrf.mxu1 }
  0xca   :  { %v382_v44 = vrot.slane %v1316_v17, 4  ;;  %v394_v45 = vmul.f32 %v1316_v17, %v1316_v17 }
  0xcb   :  { %v388_v50 = vrot.slane %v1318_v33, 4  ;;  %v395_v56 = vmul.f32 %v1318_v33, %v1318_v33 }
  0xcc   :  { %v383_v58 = vadd.f32 %v382_v44, %v1316_v17  ;;  %v396_v59 = vrot.slane %v394_v45, 4 }
  0xcd   :  { %v389_v61 = vadd.f32 %v388_v50, %v1318_v33  ;;  %v402_v62 = vrot.slane %v395_v56, 4 }
  0xce   :  { %v384_v63 = vrot.slane %v383_v58, 2  ;;  %v397_v0 = vadd.f32 %v396_v59, %v394_v45 }
  0xcf   :  { %v390_v2 = vrot.slane %v389_v61, 2  ;;  %v403_v4 = vadd.f32 %v402_v62, %v395_v56  ;;  %v367_v5 = vpop.f32.mrf.mxu2 }
  0xd0   :  { %v385_v9 = vadd.f32 %v384_v63, %v383_v58  ;;  %v398_v10 = vrot.slane %v397_v0, 2  ;;  %v380_v11 = vpop.f32.mrf.mxu3 }
  0xd1   :  { %v391_v14 = vadd.f32 %v390_v2, %v389_v61  ;;  %v404_v15 = vrot.slane %v403_v4, 2 }
  0xd2   :  { %v386_v19 = vrot.slane %v385_v9, 1  ;;  %v399_v22 = vadd.f32 %v398_v10, %v397_v0 }
  0xd3   :  { %v392_v23 = vrot.slane %v391_v14, 1  ;;  %v405_v26 = vadd.f32 %v404_v15, %v403_v4 }
  0xd4   :  { %v387_v28 = vadd.f32 %v386_v19, %v385_v9  ;;  %v400_v30 = vrot.slane %v399_v22, 1 }
  0xd5   :  { %v393_v32 = vadd.f32 %v392_v23, %v391_v14  ;;  %v406_v35 = vrot.slane %v405_v26, 1 }
  0xd6   :  { %v408_v36 = vadd.f32 %v387_v28, %v288_v27  ;;  %v401_v39 = vadd.f32 %v400_v30, %v399_v22 }
  0xd7   :  { %v409_v40 = vadd.f32 %v393_v32, %v294_v31  ;;  %v407_v47 = vadd.f32 %v406_v35, %v405_v26 }
  0xd8   :  { %460 = vmatmul.f32.vlgmr.msra.gmra.mxu0 %v408_v36  ;;  %v410_v48 = vadd.f32 %v401_v39, %v302_v37 }
  0xd9   :  { %480 = vmatmul.f32.vlgmr.msra.gmra.mxu1 %v409_v40  ;;  %v411_v49 = vadd.f32 %v407_v47, %v308_v43 }
  0xda   :  { %500 = vmatmul.f32.vlgmr.msra.gmra.mxu2 %v410_v48 }
  0xdb   :  { %520 = vmatmul.f32.vlgmr.msra.gmra.mxu3 %v411_v49 }
 0x155   :  { %v461_v51 = vpop.f32.mrf.mxu0 }
 0x156   :  { %v481_v52 = vpop.f32.mrf.mxu1 }
 0x157   :  { %v482_v53 = vadd.f32 %v481_v52, %v461_v51 }
 0x159   :  { %v524_v3 = vmul.f32 0.001953125, %v482_v53 }
 0x15b   :  { %v526_v16 = vmul.f32 %v524_v3, %v524_v3 }
 0x15d   :  { %v501_v7 = vpop.f32.mrf.mxu2 }
 0x15e   :  { %v521_v8 = vpop.f32.mrf.mxu3 }
 0x15f   :  { %v522_v12 = vadd.f32 %v521_v8, %v501_v7 }
 0x161   :  { %v525_v21 = vmul.f32 0.001953125, %v522_v12 }
 0x163   :  { %v527_v25 = vsub.f32 %v525_v21, %v526_v16 }
 0x165   :  { %v528_v29 = vmax.f32 %v527_v25, 0.0 }
 0x167   :  { %v529_v34 = vadd.f32 1e-05, %v528_v29 }
 0x169   :  { %843 = vrsqrt.f32 %v529_v34  ;;  %vm536_vm1 = vweird.f32 %v529_v34 }
 0x16f   :  { %v844_v38 = vpop.eup %843 }
 0x170   :  { %v531_v44 = vmul.f32 %v844_v38, %v529_v34  ;;  %vm537_vm0 = vweird.f32 %v844_v38 }
 0x171   :  { %vm538_vm2 = vmor %vm536_vm1, %vm537_vm0 }
 0x172   :  { %v532_v45 = vmul.f32 %v844_v38, %v531_v44 }
 0x174   :  { %v533_v46 = vmul.f32 0.5, %v532_v45 }
 0x176   :  { %v534_v50 = vsub.f32 1.5, %v533_v46 }
 0x178   :  { %v535_v56 = vmul.f32 %v844_v38, %v534_v50 }
 0x17a   :  { %v539_v58 = vsel %vm538_vm2, %v844_v38, %v535_v56 }
 0x17b   :  { %v541_v59 = vmul.f32 %v540_v57, %v539_v58 }
 0x17d   :  { %806 = vmatmul.msk.f32.vlgmr.msrb.gmra.mxu0 %vm547_vm3, %v541_v59  ;;  %807 = vmatmul.msk.f32.vlgmr.msrb.gmra.mxu1 %vm547_vm3, %v541_v59  ;;  %v543_v61 = vmul.f32 %v541_v59, %v524_v3 }
 0x17f   :  { %v544_v62 = vsub.f32 %v542_v60, %v543_v61 }
 0x181   :  { %808 = vmatmul.msk.f32.vlgmr.msrb.gmra.mxu2 %vm547_vm3, %v544_v62  ;;  %809 = vmatmul.msk.f32.vlgmr.msrb.gmra.mxu3 %vm547_vm3, %v544_v62 }
 0x1fa   :  { %v568_v63 = vpop.f32.mrf.mxu0  ;;  %v588_v0 = vpop.f32.mrf.mxu1 }
 0x1fb   :  { %v634_v1 = vperm.slane %v568_v63, 0  ;;  %v635_v2 = vperm.slane %v588_v0, 0 }
 0x1fd   :  { %v636_v4 = vmul.f32 %v634_v1, %v1303_v41  ;;  %v646_v5 = vmul.f32 %v634_v1, %v1316_v17  ;;  %v637_v10 = vmul.f32 %v635_v2, %v1306_v42  ;;  %v647_v11 = vmul.f32 %v635_v2, %v1318_v33 }
 0x204   :  { %v611_v6 = vpop.f32.mrf.mxu2  ;;  %v631_v9 = vpop.f32.mrf.mxu3 }
 0x205   :  { %v638_v13 = vperm.slane %v611_v6, 0  ;;  %v639_v14 = vperm.slane %v631_v9, 0 }
 0x207   :  { %v640_v15 = vadd.f32 %v638_v13, %v636_v4  ;;  %v648_v18 = vadd.f32 %v646_v5, %v638_v13  ;;  %v641_v19 = vadd.f32 %v639_v14, %v637_v10  ;;  %v649_v20 = vadd.f32 %v647_v11, %v639_v14 }
 0x209   :  { %v642_v22 = vmax.f32 %v640_v15, 0.0  ;;  %v650_v23 = vmax.f32 %v648_v18, 0.0  ;;  %v643_v24 = vmax.f32 %v641_v19, 0.0  ;;  %v651_v26 = vmax.f32 %v649_v20, 0.0 }
 0x20b   :  { %v644_v27 = vpack.c.bf16 %v643_v24, %v642_v22  ;;  %v652_v41 = vpack.c.bf16 %v651_v26, %v650_v23 }
 0x20d   :  { %645 = vst [vmem:[%s1356_s6] sm:$0xff] %v644_v27 }
 0x20e   :  { %653 = vst [vmem:[%s1356_s6 + $0x8] sm:$0xff] %v652_v41 }

// kernel: resnet_generator_forward.19
= control target key start
LH: loop header
LB: loop body
LE: loop exit
PB: predicated region body
PF: predicated region fallthrough
CT: control target
= control target key end

     0   :  { %vm168_vm0 = vcmask 392192   ;;  %vm76_vm1 = vsmask.f32 7424  ;;  %vm326_vm2 = vcmask 1046528   ;;  %vm462_vm3 = vsmask.f32 6400  ;;  %s2788_s1 = inlined_call_operand.vmem [shape: bf16[7,176,64], index: 1, kind: input, shape index: {}]   ;;  %s2789_s0 = inlined_call_operand.vmem [shape: bf16[44,176], index: 0, kind: input, shape index: {}]   ;;  %s2790_s2 = inlined_call_operand.vmem [shape: f32[1,64], index: 2, kind: input, shape index: {}]   ;;  %s2791_s3 = inlined_call_operand.vmem [shape: f32[32,64], index: 3, kind: output, shape index: {}]  }
   0x1   :  { %v2020_v0 = vld [vmem:[%s2788_s1 + $0x90] sm:$0xff]  ;;  %v2025_v1 = vld [vmem:[%s2788_s1 + $0xa8] sm:$0xff]  ;;  %v2030_v2 = vld [vmem:[%s2788_s1 + $0x38] sm:$0xff]  ;;  %vm626_vm4 = vcmask 1045504   ;;  %vm762_vm5 = vsmask.f32 5376 }
   0x2   :  { %v2035_v3 = vld [vmem:[%s2788_s1 + $0x50] sm:$0xff]  ;;  %172 = vmatpush.bf16.msra.mxu0 %v2020_v0  ;;  %191 = vmatpush.bf16.msra.mxu1 %v2025_v1  ;;  %v2042_v4 = vld [vmem:[%s2788_s1 + $0x88] sm:$0xff]  ;;  %v2047_v5 = vld [vmem:[%s2788_s1 + $0xa0] sm:$0xff]  ;;  %vm926_vm6 = vcmask 1044480   ;;  %vm1050_vm7 = vsmask.f32 4352 }
   0x3   :  { %269 = vmatpush.bf16.msra.mxu2 %v2030_v2  ;;  %288 = vmatpush.bf16.msra.mxu3 %v2035_v3  ;;  %v2054_v6 = vld [vmem:[%s2788_s1 + $0x30] sm:$0xff]  ;;  %v2059_v7 = vld [vmem:[%s2788_s1 + $0x48] sm:$0xff]  ;;  %v15_v8 = vld [vmem:[%s2789_s0] sm:$0xff]  ;;  %vm1444_vm8 = vcmask 523264  }
   0x4   :  { %v16_v9 = vld [vmem:[%s2789_s0 + $0x8] sm:$0xff]  ;;  %v67_v10 = vunpack.c.h.b16 %v15_v8  ;;  %v2072_v11 = vld [vmem:[%s2788_s1 + $0x80] sm:$0xff]  ;;  %v2077_v12 = vld [vmem:[%s2788_s1 + $0x98] sm:$0xff]  ;;  %v66_v19 = vunpack.c.l.b16 %v15_v8 }
   0x5   :  { %v2079_v13 = vunpack.c.h.b16 %v16_v9  ;;  %v2086_v14 = vld [vmem:[%s2788_s1 + $0x28] sm:$0xff]  ;;  %v2091_v15 = vld [vmem:[%s2788_s1 + $0x40] sm:$0xff]  ;;  %v2106_v20 = vunpack.c.l.b16 %v16_v9  ;;  %v2111_v22 = vld [vmem:[%s2788_s1 + $0x78] sm:$0xff] }
   0x6   :  { %173 = vmatpush.bf16.msra.mxu0 %v2042_v4  ;;  %192 = vmatpush.bf16.msra.mxu1 %v2047_v5  ;;  %v2096_v16 = vld [vmem:[%s2788_s1 + $0xe8] sm:$0xff]  ;;  %v2101_v17 = vld [vmem:[%s2788_s1 + $0x100] sm:$0xff]  ;;  %v39_v23 = vld [vmem:[%s2789_s0 + $0x10] sm:$0x11] }
   0x7   :  { %270 = vmatpush.bf16.msra.mxu2 %v2054_v6  ;;  %289 = vmatpush.bf16.msra.mxu3 %v2059_v7  ;;  %v73_v18 = vpack.c.b16 %v2079_v13, %v67_v10  ;;  %v2121_v24 = vld [vmem:[%s2788_s1 + $0x20] sm:$0xff]  ;;  %v71_v25 = vunpack.c.h.b16 %v39_v23  ;;  %v2133_v28 = vld [vmem:[%s2788_s1 + $0xf8] sm:$0xff]  ;;  %v2141_v32 = vpack.c.b16 %v2106_v20, %v66_v19  ;;  %v2148_v33 = vld [vmem:[%s2788_s1 + $0x70] sm:$0xff]  ;;  %v70_v34 = vunpack.c.l.b16 %v39_v23 }
   0x8   :  { %v2128_v27 = vld [vmem:[%s2788_s1 + $0xe0] sm:$0xff]  ;;  %v2154_v35 = vld [vmem:[%s2788_s1 + $0x18] sm:$0xff]  ;;  %v2167_v40 = vld [vmem:[%s2788_s1 + $0xf0] sm:$0xff] }
   0x9   :  { %v92_v21 = vshll.u32 %v73_v18, 16  ;;  %v90_v26 = vshrl.u32 %v73_v18, 16  ;;  %v75_v30 = vpack.c.b16 %v71_v25, %v71_v25  ;;  %v2138_v31 = vld [vmem:[%s2789_s0] sm:$0xee]  ;;  %v2162_v39 = vld [vmem:[%s2788_s1 + $0xd8] sm:$0xff]  ;;  %v2178_v43 = vld [vmem:[%s2788_s1 + $0x68] sm:$0xff]  ;;  %v2180_v44 = vpack.c.b16 %v70_v34, %v70_v34 }
   0xa   :  { %174 = vmatpush.bf16.msra.mxu0 %v2072_v11  ;;  %193 = vmatpush.bf16.msra.mxu1 %v2077_v12  ;;  %v323_v38 = vunpack.c.h.b16 %v2138_v31  ;;  %v2172_v41 = vld [vmem:[%s2788_s1 + $0x140] sm:$0xff]  ;;  %v80_v45 = vshll.u32 %v2141_v32, 16  ;;  %v2187_v46 = vld [vmem:[%s2788_s1 + $0x10] sm:$0xff]  ;;  %v2204_v50 = vld [vmem:[%s2788_s1 + $0x138] sm:$0xff]  ;;  %v78_v52 = vshrl.u32 %v2141_v32, 16 }
   0xb   :  { %271 = vmatpush.bf16.msra.mxu2 %v2086_v14  ;;  %290 = vmatpush.bf16.msra.mxu3 %v2091_v15  ;;  %v94_v29 = vrot.slane %v92_v21, 1  ;;  %v97_v37 = vshll.u32 %v75_v30, 16  ;;  %v2198_v49 = vld [vmem:[%s2788_s1 + $0xd0] sm:$0xff]  ;;  %2825 = vst [vmem:[#allocation2_spill] sm:$0xff] %v2204_v50  ;;  %v2211_v51 = vld [vmem:[%s2788_s1 + $0x60] sm:$0xff]  ;;  %v85_v54 = vshll.u32 %v2180_v44, 16 }
   0xc   :  { %v2191_v48 = vpack.c.b16 %v2079_v13, %v323_v38  ;;  %v82_v53 = vrot.slane %v80_v45, 1  ;;  %v2219_v55 = vld [vmem:[%s2788_s1 + $0x8] sm:$0xff]  ;;  %v331_v57 = vrot.slane %v75_v30, 1  ;;  %v2232_v59 = vld [vmem:[%s2788_s1 + $0x130] sm:$0xff]  ;;  %v2243_v61 = vld [vmem:[%s2788_s1 + $0x58] sm:$0xff] }
   0xd   :  { %v95_v36 = vor.u32 %v94_v29, %v90_v26  ;;  %v99_v42 = vrot.slane %v97_v37, 1  ;;  %v2226_v58 = vld [vmem:[%s2788_s1 + $0xc8] sm:$0xff]  ;;  %2826 = vst [vmem:[#allocation3_spill] sm:$0xff] %v2232_v59  ;;  %v2237_v60 = vld [vmem:[%s2789_s0 + $0x10] sm:$0x33]  ;;  %v87_v63 = vrot.slane %v85_v54, 1 }
   0xe   :  { %403 = vmatpush.bf16.msrb.mxu1 %v2096_v16  ;;  %1568 = vmatmul.msk.bf16.vlgmr.msra.gmra.mxu3 %vm168_vm0, %v73_v18  ;;  %v330_v56 = vrot.slane %v2191_v48, 1  ;;  %v83_v62 = vor.u32 %v82_v53, %v78_v52  ;;  %v2249_v8 = vld [vmem:[%s2788_s1] sm:$0xff]  ;;  %v2255_v10 = vld [vmem:[%s2788_s1 + $0x1f0] sm:$0xff]  ;;  %v322_v18 = vunpack.c.l.b16 %v2138_v31  ;;  %v2267_v21 = vld [vmem:[%s2788_s1 + $0x198] sm:$0xff]  ;;  %v458_v23 = vunpack.c.l.b16 %v2237_v60 }
   0xf   :  { %422 = vmatpush.bf16.msrb.mxu3 %v2101_v17  ;;  %175 = vmatpush.bf16.msra.mxu0 %v2111_v22  ;;  %v100_v47 = vsel %vm76_vm1, %v95_v36, %v99_v42  ;;  %2827 = vst [vmem:[#allocation4_spill] sm:$0xff] %v2249_v8  ;;  %v2262_v19 = vld [vmem:[%s2788_s1 + $0xc0] sm:$0xff]  ;;  %v2274_v25 = vld [vmem:[%s2788_s1 + $0x128] sm:$0xff]  ;;  %v2292_v31 = vld [vmem:[%s2788_s1 + $0xb8] sm:$0xff]  ;;  %v328_v42 = vrot.slane %v2180_v44, 1 }
  0x10   :  { %272 = vmatpush.bf16.msra.mxu2 %v2121_v24  ;;  %1523 = vmatmul.msk.bf16.vlgmr.msra.gmra.mxu1 %vm168_vm0, %v100_v47  ;;  %v332_v9 = vsel %vm326_vm2, %v330_v56, %v331_v57  ;;  %2828 = vst [vmem:[#allocation5_spill] sm:$0xff] %v2255_v10  ;;  %v88_v26 = vsel %vm76_vm1, %v83_v62, %v87_v63  ;;  %v2284_v29 = vld [vmem:[%s2788_s1 + $0x1e8] sm:$0xff]  ;;  %v2297_v34 = vld [vmem:[%s2788_s1 + $0x190] sm:$0xff]  ;;  %v2305_v37 = vld [vmem:[%s2788_s1 + $0x120] sm:$0xff] }
  0x11   :  { %2829 = vst [vmem:[#allocation6_spill] sm:$0xff] %v2267_v21  ;;  %v324_v30 = vpack.c.b16 %v2106_v20, %v322_v18  ;;  %v2299_v36 = vpack.c.b16 %v458_v23, %v458_v23  ;;  %v2313_v45 = vld [vmem:[%s2788_s1 + $0x1e0] sm:$0xff]  ;;  %v2320_v47 = vld [vmem:[%s2788_s1 + $0xb0] sm:$0xff]  ;;  %v2333_v56 = vld [vmem:[%s2788_s1 + $0x118] sm:$0xff] }
  0x12   :  { %404 = vmatpush.bf16.msrb.mxu1 %v2128_v27  ;;  %2830 = vst [vmem:[#allocation7_spill] sm:$0xff] %v2274_v25  ;;  %v2338_v57 = vld [vmem:[%s2788_s1 + $0x1b0] sm:$0xff]  ;;  %v2355_v18 = vld [vmem:[%s2788_s1 + $0x1d8] sm:$0xff] }
  0x13   :  { %423 = vmatpush.bf16.msrb.mxu3 %v2133_v28  ;;  %176 = vmatpush.bf16.msra.mxu0 %v2148_v33  ;;  %2831 = vst [vmem:[#allocation8_spill] sm:$0xff] %v2284_v29  ;;  %v327_v38 = vrot.slane %v324_v30, 1  ;;  %v464_v44 = vshrl.u32 %v324_v30, 16  ;;  %v467_v52 = vshll.u32 %v324_v30, 16  ;;  %v472_v53 = vshrl.u32 %v2299_v36, 16 }
  0x14   :  { %273 = vmatpush.bf16.msra.mxu2 %v2154_v35  ;;  %2832 = vst [vmem:[#allocation9_spill] sm:$0xff] %v2292_v31  ;;  %v475_v54 = vshll.u32 %v2299_v36, 16  ;;  %v2343_v62 = vld [vmem:[%s2789_s0 + $0x10] sm:$0x77] }
  0x15   :  { %2833 = vst [vmem:[#allocation10_spill] sm:$0xff] %v2297_v34  ;;  %v329_v63 = vsel %vm326_vm2, %v327_v38, %v328_v42  ;;  %v466_v23 = vrot.slane %v464_v44, 1  ;;  %v474_v30 = vrot.slane %v472_v53, 1  ;;  %v597_v42 = vld [vmem:[%s2789_s0] sm:$0xcc]  ;;  %v2372_v44 = vld [vmem:[%s2788_s1 + $0x1a8] sm:$0xff] }
  0x16   :  { %405 = vmatpush.bf16.msrb.mxu1 %v2162_v39  ;;  %2834 = vst [vmem:[#allocation11_spill] sm:$0xff] %v2305_v37  ;;  %v477_v38 = vrot.slane %v475_v54, 2  ;;  %v2379_v53 = vld [vmem:[%s2788_s1 + $0x1d0] sm:$0xff]  ;;  %v459_v54 = vunpack.c.h.b16 %v2237_v60  ;;  %v2398_v60 = vld [vmem:[%s2788_s1 + $0x1a0] sm:$0xff] }
  0x17   :  { %424 = vmatpush.bf16.msrb.mxu3 %v2167_v40  ;;  %177 = vmatpush.bf16.msra.mxu0 %v2178_v43  ;;  %2835 = vst [vmem:[#allocation12_spill] sm:$0xff] %v2313_v45 }
  0x18   :  { %274 = vmatpush.bf16.msra.mxu2 %v2187_v46  ;;  %2836 = vst [vmem:[#allocation13_spill] sm:$0xff] %v2320_v47 }
  0x19   :  { %2838 = vst [vmem:[#allocation15_spill] sm:$0xff] %v2333_v56 }
  0x1a   :  { %406 = vmatpush.bf16.msrb.mxu1 %v2198_v49  ;;  %2839 = vst [vmem:[#allocation16_spill] sm:$0xff] %v2338_v57 }
  0x1b   :  { %567 = vmatpush.bf16.msra.mxu3 %v2172_v41  ;;  %178 = vmatpush.bf16.msra.mxu0 %v2211_v51  ;;  %2841 = vst [vmem:[#allocation18_spill] sm:$0xff] %v2355_v18 }
  0x1c   :  { %275 = vmatpush.bf16.msra.mxu2 %v2219_v55  ;;  %2843 = vst [vmem:[#allocation20_spill] sm:$0xff] %v2372_v44 }
  0x1d   :  { %2844 = vst [vmem:[#allocation21_spill] sm:$0xff] %v2379_v53 }
  0x1e   :  { %407 = vmatpush.bf16.msrb.mxu1 %v2226_v58  ;;  %1635 = vmatmul.msk.bf16.vlgmr.msrb.gmra.mxu3 %vm168_vm0, %v332_v9  ;;  %v2349_v9 = vld [vmem:[%s2788_s1 + $0x180] sm:$0xff]  ;;  %2847 = vst [vmem:[#allocation24_spill] sm:$0xff] %v2398_v60 }
  0x1f   :  { %568 = vmatpush.bf16.msra.mxu3 %v2204_v50  ;;  %179 = vmatpush.bf16.msra.mxu0 %v2243_v61  ;;  %2840 = vst [vmem:[#allocation17_spill] sm:$0xff] %v2349_v9 }
  0x20   :  { %276 = vmatpush.bf16.msra.mxu2 %v2249_v8 }
  0x22   :  { %408 = vmatpush.bf16.msrb.mxu1 %v2262_v19  ;;  %180 = vmatmul.bf16.vlgmr.msra.gmra.mxu0 %v88_v26  ;;  %v469_v26 = vrot.slane %v467_v52, 2  ;;  %v758_v52 = vunpack.c.l.b16 %v2343_v62 }
  0x23   :  { %569 = vmatpush.bf16.msra.mxu3 %v2232_v59  ;;  %867 = vmatpush.bf16.msrb.mxu0 %v2255_v10 }
  0x24   :  { %703 = vmatpush.bf16.msrb.mxu2 %v2267_v21 }
  0x25   :  { %277 = vmatmul.bf16.vlgmr.msra.gmra.mxu2 %v2141_v32  ;;  %v2325_v32 = vld [vmem:[%s2788_s1 + $0x188] sm:$0xff] }
  0x26   :  { %409 = vmatpush.bf16.msrb.mxu1 %v2292_v31  ;;  %2837 = vst [vmem:[#allocation14_spill] sm:$0xff] %v2325_v32 }
  0x27   :  { %570 = vmatpush.bf16.msra.mxu3 %v2274_v25  ;;  %868 = vmatpush.bf16.msrb.mxu0 %v2284_v29  ;;  %v2386_v29 = vld [vmem:[%s2788_s1 + $0x178] sm:$0xff]  ;;  %v470_v25 = vor.u32 %v469_v26, %v466_v23  ;;  %v2410_v26 = vld [vmem:[%s2788_s1 + $0x208] sm:$0xff] }
  0x28   :  { %704 = vmatpush.bf16.msrb.mxu2 %v2297_v34  ;;  %2845 = vst [vmem:[#allocation22_spill] sm:$0xff] %v2386_v29  ;;  %v2405_v23 = vld [vmem:[%s2788_s1 + $0x158] sm:$0xff] }
  0x29   :  { %2848 = vst [vmem:[#allocation25_spill] sm:$0xff] %v2405_v23 }
  0x2a   :  { %410 = vmatpush.bf16.msrb.mxu1 %v2320_v47  ;;  %2849 = vst [vmem:[#allocation26_spill] sm:$0xff] %v2410_v26 }
  0x2b   :  { %571 = vmatpush.bf16.msra.mxu3 %v2305_v37  ;;  %869 = vmatpush.bf16.msrb.mxu0 %v2313_v45  ;;  %v2367_v45 = vld [vmem:[%s2788_s1 + $0x110] sm:$0xff]  ;;  %v622_v37 = vunpack.c.l.b16 %v597_v42 }
  0x2c   :  { %705 = vmatpush.bf16.msrb.mxu2 %v2325_v32  ;;  %2842 = vst [vmem:[#allocation19_spill] sm:$0xff] %v2367_v45 }
  0x2d   :  { %411 = vmatmul.bf16.vlgmr.msrb.gmra.mxu1 %v329_v63  ;;  %v478_v63 = vor.u32 %v477_v38, %v474_v30  ;;  %v2416_v30 = vld [vmem:[%s2788_s1 + $0x1c8] sm:$0xff]  ;;  %v461_v38 = vpack.c.b16 %v459_v54, %v459_v54 }
  0x2e   :  { %722 = vmatpush.bf16.msra.mxu1 %v2338_v57  ;;  %2850 = vst [vmem:[#allocation27_spill] sm:$0xff] %v2416_v30  ;;  %v759_v57 = vunpack.c.h.b16 %v2343_v62  ;;  %v2480_v62 = vld [vmem:[%s2788_s1 + $0x248] sm:$0xff] }
  0x2f   :  { %572 = vmatpush.bf16.msra.mxu3 %v2333_v56  ;;  %870 = vmatpush.bf16.msrb.mxu0 %v2355_v18  ;;  %v623_v56 = vunpack.c.h.b16 %v597_v42  ;;  %v2393_v18 = vld [vmem:[%s2788_s1 + $0x108] sm:$0xff]  ;;  %v2400_v42 = vpack.c.b16 %v758_v52, %v758_v52  ;;  %v489_v32 = vshrl.u32 %v461_v38, 16  ;;  %v492_v59 = vshll.u32 %v461_v38, 16 }
  0x30   :  { %706 = vmatpush.bf16.msrb.mxu2 %v2349_v9  ;;  %2846 = vst [vmem:[#allocation23_spill] sm:$0xff] %v2393_v18  ;;  %v479_v9 = vsel %vm462_vm3, %v470_v25, %v478_v63  ;;  %v2442_v25 = vld [vmem:[%s2788_s1 + $0x150] sm:$0xff]  ;;  %v2447_v63 = vld [vmem:[%s2788_s1 + $0x200] sm:$0xff] }
  0x31   :  { %v2419_v52 = vpack.c.b16 %v2079_v13, %v623_v56  ;;  %v775_v10 = vshll.u32 %v2400_v42, 16  ;;  %2852 = vst [vmem:[#allocation29_spill] sm:$0xff] %v2442_v25  ;;  %v494_v31 = vrot.slane %v492_v59, 2 }
  0x32   :  { %723 = vmatpush.bf16.msra.mxu1 %v2372_v44  ;;  %2853 = vst [vmem:[#allocation30_spill] sm:$0xff] %v2447_v63  ;;  %v2461_v44 = vld [vmem:[%s2788_s1 + $0x168] sm:$0xff] }
  0x33   :  { %573 = vmatpush.bf16.msra.mxu3 %v2367_v45  ;;  %871 = vmatpush.bf16.msrb.mxu0 %v2379_v53  ;;  %v2422_v45 = vpack.c.b16 %v2106_v20, %v622_v37  ;;  %v2429_v53 = vld [vmem:[%s2788_s1 + $0x170] sm:$0xff]  ;;  %v772_v37 = vshrl.u32 %v2400_v42, 16  ;;  %2855 = vst [vmem:[#allocation32_spill] sm:$0xff] %v2461_v44  ;;  %v781_v59 = vshrl.u32 %v2419_v52, 16 }
  0x34   :  { %707 = vmatpush.bf16.msrb.mxu2 %v2386_v29  ;;  %2851 = vst [vmem:[#allocation28_spill] sm:$0xff] %v2429_v53  ;;  %v631_v29 = vrot.slane %v461_v38, 2 }
  0x35   :  { %v764_v54 = vshrl.u32 %v2422_v45, 16  ;;  %v767_v56 = vshll.u32 %v2422_v45, 16  ;;  %v774_v50 = vrot.slane %v772_v37, 2  ;;  %v627_v38 = vrot.slane %v2422_v45, 2  ;;  %v2498_v37 = vld [vmem:[%s2789_s0 + $0x20] sm:$0xff] }
  0x36   :  { %724 = vmatpush.bf16.msra.mxu1 %v2398_v60  ;;  %v481_v60 = vshrl.u32 %v2191_v48, 16  ;;  %v628_v45 = vrot.slane %v2299_v36, 2 }
  0x37   :  { %574 = vmatpush.bf16.msra.mxu3 %v2393_v18  ;;  %872 = vmatpush.bf16.msrb.mxu0 %v2416_v30  ;;  %v630_v18 = vrot.slane %v2419_v52, 2  ;;  %v484_v30 = vshll.u32 %v2191_v48, 16  ;;  %v766_v47 = vrot.slane %v764_v54, 2  ;;  %v769_v34 = vrot.slane %v767_v56, 3  ;;  %v2475_v48 = vld [vmem:[%s2788_s1 + $0x1f8] sm:$0xff] }
  0x38   :  { %708 = vmatpush.bf16.msrb.mxu2 %v2429_v53  ;;  %2856 = vst [vmem:[#allocation33_spill] sm:$0xff] %v2475_v48  ;;  %v2488_v54 = vld [vmem:[%s2789_s0 + $0x10] sm:$0x88]  ;;  %v2493_v56 = vld [vmem:[%s2789_s0 + $0x18] sm:$0xff]  ;;  %v2512_v53 = vld [vmem:[%s2788_s1 + $0x260] sm:$0xff] }
  0x39   :  { %v770_v8 = vor.u32 %v769_v34, %v766_v47  ;;  %v1041_v36 = vunpack.c.h.b16 %v2488_v54  ;;  %v784_v34 = vshll.u32 %v2419_v52, 16  ;;  %v629_v47 = vsel %vm626_vm4, %v627_v38, %v628_v45 }
  0x3a   :  { %886 = vmatpush.bf16.msrb.mxu1 %v2410_v26  ;;  %v2454_v26 = vld [vmem:[%s2788_s1 + $0x1c0] sm:$0xff]  ;;  %575 = vmatmul.bf16.vlgmr.msra.gmra.mxu3 %v479_v9  ;;  %v2470_v9 = vld [vmem:[%s2788_s1 + $0x148] sm:$0xff] }
  0x3b   :  { %586 = vmatpush.bf16.msrb.mxu3 %v2405_v23  ;;  %2854 = vst [vmem:[#allocation31_spill] sm:$0xff] %v2454_v26  ;;  %v777_v23 = vrot.slane %v775_v10, 3  ;;  %v632_v10 = vsel %vm626_vm4, %v630_v18, %v631_v29  ;;  %873 = vmatpush.bf16.msrb.mxu0 %v2454_v26  ;;  %v2504_v29 = vld [vmem:[%s2788_s1 + $0x160] sm:$0xff]  ;;  %v483_v18 = vrot.slane %v481_v60, 1  ;;  %v486_v26 = vrot.slane %v484_v30, 2 }
  0x3c   :  { %709 = vmatpush.bf16.msrb.mxu2 %v2461_v44  ;;  %v2517_v44 = vld [vmem:[%s2788_s1 + $0x1b8] sm:$0xff]  ;;  %v2524_v60 = vunpack.c.h.b16 %v2498_v37  ;;  %v2543_v30 = vld [vmem:[%s2789_s0] sm:$0x88] }
  0x3d   :  { %2857 = vst [vmem:[#allocation34_spill] sm:$0xff] %v2517_v44  ;;  %v778_v21 = vor.u32 %v777_v23, %v774_v50  ;;  %1769 = vmatmul.msk.bf16.vlgmr.msra.gmra.mxu1 %vm168_vm0, %v632_v10  ;;  %v2531_v50 = vld [vmem:[%s2788_s1 + $0x240] sm:$0xff]  ;;  %v487_v52 = vor.u32 %v486_v26, %v483_v18  ;;  %v786_v26 = vrot.slane %v784_v34, 3  ;;  %v2573_v18 = vld [vmem:[%s2788_s1 + $0x250] sm:$0xff] }
  0x3e   :  { %887 = vmatpush.bf16.msrb.mxu1 %v2447_v63  ;;  %v2507_v63 = vpack.c.b16 %v759_v57, %v759_v57  ;;  %v1043_v57 = vunpack.c.h.b16 %v2493_v56 }
  0x3f   :  { %587 = vmatpush.bf16.msrb.mxu3 %v2442_v25  ;;  %v491_v25 = vrot.slane %v489_v32, 1  ;;  %874 = vmatpush.bf16.msrb.mxu0 %v2517_v44  ;;  %v779_v38 = vsel %vm762_vm5, %v770_v8, %v778_v21  ;;  %v2564_v44 = vld [vmem:[%s2788_s1 + $0x238] sm:$0xff]  ;;  %v923_v8 = vunpack.c.h.b16 %v2543_v30 }
  0x40   :  { %710 = vmatpush.bf16.msrb.mxu2 %v2504_v29  ;;  %v789_v32 = vshrl.u32 %v2507_v63, 16  ;;  %v792_v23 = vshll.u32 %v2507_v63, 16  ;;  %v2556_v45 = vpack.c.b16 %v1043_v57, %v1041_v36 }
  0x41   :  { %v495_v10 = vor.u32 %v494_v31, %v491_v25  ;;  %v783_v31 = vrot.slane %v781_v59, 2 }
  0x42   :  { %888 = vmatpush.bf16.msrb.mxu1 %v2475_v48  ;;  %v1049_v48 = vpack.c.b16 %v2524_v60, %v2524_v60  ;;  %875 = vmatmul.bf16.vlgmr.msrb.gmra.mxu0 %v779_v38  ;;  %v794_v21 = vrot.slane %v792_v23, 3  ;;  %v1069_v36 = vshrl.u32 %v2556_v45, 16  ;;  %v1072_v59 = vshll.u32 %v2556_v45, 16 }
  0x43   :  { %588 = vmatpush.bf16.msrb.mxu3 %v2470_v9  ;;  %1108 = vmatpush.bf16.msra.mxu0 %v2025_v1  ;;  %v791_v1 = vrot.slane %v789_v32, 2  ;;  %v496_v25 = vsel %vm462_vm3, %v487_v52, %v495_v10  ;;  %v787_v32 = vor.u32 %v786_v26, %v783_v31  ;;  %v925_v23 = vpack.c.b16 %v2079_v13, %v923_v8 }
  0x44   :  { %1022 = vmatpush.bf16.msra.mxu2 %v2512_v53  ;;  %v1077_v34 = vshrl.u32 %v1049_v48, 16  ;;  %v1040_v52 = vunpack.c.l.b16 %v2488_v54  ;;  %v1042_v10 = vunpack.c.l.b16 %v2493_v56  ;;  %v1071_v38 = vrot.slane %v1069_v36, 3  ;;  %v2599_v54 = vld [vmem:[%s2788_s1 + $0x228] sm:$0xff] }
  0x45   :  { %711 = vmatmul.bf16.vlgmr.msrb.gmra.mxu2 %v629_v47  ;;  %v2582_v47 = vld [vmem:[%s2788_s1 + $0x230] sm:$0xff]  ;;  %v1074_v13 = vrot.slane %v1072_v59, 4  ;;  %v931_v26 = vrot.slane %v2507_v63, 3  ;;  %v922_v63 = vunpack.c.l.b16 %v2543_v30  ;;  %v2631_v30 = vld [vmem:[%s2788_s1 + $0x218] sm:$0xff] }
  0x46   :  { %1089 = vmatpush.bf16.msra.mxu1 %v2020_v0  ;;  %v2550_v0 = vld [vmem:[%s2788_s1 + $0x258] sm:$0xff]  ;;  %v1079_v31 = vrot.slane %v1077_v34, 3 }
  0x47   :  { %1003 = vmatpush.bf16.msra.mxu3 %v2480_v62  ;;  %1109 = vmatpush.bf16.msra.mxu0 %v2047_v5  ;;  %v795_v5 = vor.u32 %v794_v21, %v791_v1  ;;  %v1075_v1 = vor.u32 %v1074_v13, %v1071_v38  ;;  %v1161_v13 = vpack.c.b16 %v2524_v60, %v1043_v57  ;;  %v2867_v57 = vld [vmem:[#allocation3_spill] sm:$0xff] }
  0x48   :  { %1023 = vmatpush.bf16.msra.mxu2 %v2550_v0 }
  0x49   :  { %v1225_v56 = vshrl.u32 %v1161_v13, 16 }
  0x4a   :  { %1090 = vmatpush.bf16.msra.mxu1 %v2042_v4  ;;  %v1080_v4 = vshll.u32 %v1049_v48, 16  ;;  %1702 = vmatmul.msk.bf16.vlgmr.msrb.gmra.mxu3 %vm168_vm0, %v496_v25  ;;  %v2590_v48 = vunpack.c.l.b16 %v2498_v37  ;;  %v930_v37 = vrot.slane %v925_v23, 3  ;;  %v2643_v23 = vld [vmem:[%s2788_s1 + $0x210] sm:$0xff] }
  0x4b   :  { %1004 = vmatpush.bf16.msra.mxu3 %v2531_v50  ;;  %1110 = vmatpush.bf16.msra.mxu0 %v2077_v12  ;;  %v2607_v12 = vpack.c.b16 %v1042_v10, %v1040_v52 }
  0x4c   :  { %1024 = vmatpush.bf16.msra.mxu2 %v2573_v18  ;;  %v1048_v8 = vpack.c.b16 %v2590_v48, %v2590_v48 }
  0x4d   :  { %v1055_v25 = vshll.u32 %v2607_v12, 16 }
  0x4e   :  { %1091 = vmatpush.bf16.msra.mxu1 %v2072_v11  ;;  %v1082_v11 = vrot.slane %v1080_v4, 4  ;;  %v1060_v36 = vshrl.u32 %v1048_v8, 16  ;;  %v1063_v59 = vshll.u32 %v1048_v8, 16  ;;  %v2866_v8 = vld [vmem:[#allocation16_spill] sm:$0xff] }
  0x4f   :  { %1005 = vmatpush.bf16.msra.mxu3 %v2564_v44  ;;  %1166 = vmatpush.bf16.msrb.mxu0 %v2096_v16  ;;  %v2617_v16 = vld [vmem:[%s2788_s1 + $0x220] sm:$0xff]  ;;  %v1057_v4 = vrot.slane %v1055_v25, 4 }
  0x50   :  { %1132 = vmatpush.bf16.msrb.mxu2 %v2030_v2  ;;  %v796_v2 = vsel %vm762_vm5, %v787_v32, %v795_v5  ;;  %v1083_v21 = vor.u32 %v1082_v11, %v1079_v31  ;;  %v1065_v32 = vrot.slane %v1063_v59, 4  ;;  %v2863_v31 = vld [vmem:[#allocation10_spill] sm:$0xff]  ;;  %v2864_v11 = vld [vmem:[#allocation13_spill] sm:$0xff] }
  0x51   :  { %1836 = vmatmul.msk.bf16.vlgmr.msrb.gmra.mxu1 %vm168_vm0, %v796_v2 }
  0x52   :  { %1092 = vmatpush.bf16.msra.mxu1 %v2111_v22  ;;  %v932_v22 = vsel %vm926_vm6, %v930_v37, %v931_v26  ;;  %v1084_v34 = vsel %vm1050_vm7, %v1075_v1, %v1083_v21  ;;  %v2865_v37 = vld [vmem:[#allocation29_spill] sm:$0xff]  ;;  %v2868_v21 = vld [vmem:[#allocation14_spill] sm:$0xff] }
  0x53   :  { %1006 = vmatpush.bf16.msra.mxu3 %v2582_v47  ;;  %1167 = vmatpush.bf16.msrb.mxu0 %v2128_v27  ;;  %v924_v27 = vpack.c.b16 %v2106_v20, %v922_v63  ;;  %v1270_v1 = vld [vmem:[%s2789_s0 + $0x18] sm:$0xee]  ;;  %v2869_v63 = vld [vmem:[#allocation20_spill] sm:$0xff] }
  0x54   :  { %1133 = vmatpush.bf16.msrb.mxu2 %v2054_v6  ;;  %v1052_v6 = vshrl.u32 %v2607_v12, 16  ;;  %1904 = vmatmul.msk.bf16.vlgmr.msra.gmra.mxu0 %vm168_vm0, %v1084_v34  ;;  %v1273_v25 = vunpack.c.h.b16 %v1270_v1  ;;  %v2872_v34 = vld [vmem:[#allocation17_spill] sm:$0xff] }
  0x55   :  { %1903 = vmatmul.msk.bf16.vlgmr.msra.gmra.mxu2 %vm168_vm0, %v932_v22  ;;  %v927_v20 = vrot.slane %v924_v27, 3 }
  0x56   :  { %1093 = vmatpush.bf16.msra.mxu1 %v2148_v33  ;;  %v1054_v33 = vrot.slane %v1052_v6, 3  ;;  %v2870_v6 = vld [vmem:[#allocation5_spill] sm:$0xff] }
  0x57   :  { %1007 = vmatpush.bf16.msra.mxu3 %v2599_v54  ;;  %1168 = vmatpush.bf16.msrb.mxu0 %v2162_v39  ;;  %v1035_v39 = vld [vmem:[%s2789_s0 + $0x20] sm:$0x77] }
  0x58   :  { %1134 = vmatpush.bf16.msrb.mxu2 %v2086_v14  ;;  %v1062_v14 = vrot.slane %v1060_v36, 3  ;;  %v1058_v5 = vor.u32 %v1057_v4, %v1054_v33  ;;  %v1118_v52 = vunpack.c.l.b16 %v1035_v39  ;;  %v2871_v36 = vld [vmem:[#allocation7_spill] sm:$0xff]  ;;  %v2873_v4 = vld [vmem:[#allocation24_spill] sm:$0xff] }
  0x5a   :  { %1094 = vmatpush.bf16.msra.mxu1 %v2178_v43  ;;  %v928_v43 = vrot.slane %v2400_v42, 3 }
  0x5b   :  { %1008 = vmatpush.bf16.msra.mxu3 %v2617_v16  ;;  %1169 = vmatpush.bf16.msrb.mxu0 %v2198_v49  ;;  %v1120_v49 = vpack.c.b16 %v1118_v52, %v1118_v52 }
  0x5c   :  { %1135 = vmatpush.bf16.msrb.mxu2 %v2121_v24  ;;  %v1066_v24 = vor.u32 %v1065_v32, %v1062_v14  ;;  %v929_v38 = vsel %vm926_vm6, %v927_v20, %v928_v43  ;;  %v2704_v14 = vpack.c.b16 %v2524_v60, %v1273_v25  ;;  %v2875_v32 = vld [vmem:[#allocation11_spill] sm:$0xff] }
  0x5e   :  { %1095 = vmatpush.bf16.msra.mxu1 %v2211_v51  ;;  %v1067_v42 = vsel %vm1050_vm7, %v1058_v5, %v1066_v24  ;;  %v1123_v51 = vrot.slane %v1120_v49, 3  ;;  %v2876_v5 = vld [vmem:[#allocation22_spill] sm:$0xff]  ;;  %v1272_v24 = vunpack.c.l.b16 %v1270_v1  ;;  %v1390_v1 = vld [vmem:[%s2789_s0 + $0x18] sm:$0xcc] }
  0x5f   :  { %1009 = vmatpush.bf16.msra.mxu3 %v2631_v30  ;;  %1170 = vmatpush.bf16.msrb.mxu0 %v2226_v58  ;;  %v2860_v58 = vld [vmem:[#allocation9_spill] sm:$0xff] }
  0x60   :  { %1136 = vmatpush.bf16.msrb.mxu2 %v2154_v35  ;;  %v1119_v35 = vunpack.c.h.b16 %v1035_v39  ;;  %v1316_v39 = vld [vmem:[%s2789_s0 + $0x28] sm:$0x33] }
  0x62   :  { %1096 = vmatpush.bf16.msra.mxu1 %v2243_v61  ;;  %v2861_v61 = vld [vmem:[#allocation25_spill] sm:$0xff] }
  0x63   :  { %1010 = vmatpush.bf16.msra.mxu3 %v2643_v23  ;;  %1171 = vmatpush.bf16.msrb.mxu0 %v2262_v19 }
  0x64   :  { %1137 = vmatpush.bf16.msrb.mxu2 %v2187_v46  ;;  %v1198_v46 = vld [vmem:[%s2789_s0 + $0x28] sm:$0x11] }
  0x65   :  { %1097 = vmatmul.bf16.vlgmr.msra.gmra.mxu1 %v1067_v42  ;;  %v1206_v59 = vunpack.c.l.b16 %v1198_v46  ;;  %v1279_v42 = vrot.slane %v2704_v14, 1 }
  0x66   :  { %1185 = vmatpush.bf16.msrb.mxu1 %v2101_v17  ;;  %1011 = vmatmul.bf16.vlgmr.msra.gmra.mxu3 %v929_v38  ;;  %v1121_v17 = vpack.c.b16 %v1119_v35, %v1119_v35  ;;  %v2877_v38 = vld [vmem:[#allocation12_spill] sm:$0xff]  ;;  %v1318_v35 = vunpack.c.l.b16 %v1316_v39 }
  0x67   :  { %1151 = vmatpush.bf16.msrb.mxu3 %v2035_v3  ;;  %v1122_v3 = vrot.slane %v2607_v12, 3  ;;  %1172 = vmatpush.bf16.msrb.mxu0 %v2860_v58  ;;  %v1227_v12 = vshll.u32 %v1161_v13, 16  ;;  %v1210_v20 = vpack.c.b16 %v1206_v59, %v1206_v59  ;;  %v2887_v59 = vld [vmem:[#allocation30_spill] sm:$0xff] }
  0x68   :  { %1138 = vmatpush.bf16.msrb.mxu2 %v2219_v55  ;;  %v1126_v19 = vrot.slane %v1121_v17, 3  ;;  %v2722_v58 = vpack.c.b16 %v1318_v35, %v1318_v35 }
  0x69   :  { %v1124_v55 = vsel %vm926_vm6, %v1122_v3, %v1123_v51  ;;  %v1229_v22 = vrot.slane %v1227_v12, 1  ;;  %v2878_v3 = vld [vmem:[#allocation15_spill] sm:$0xff]  ;;  %v1220_v17 = vshll.u32 %v1210_v20, 16 }
  0x6a   :  { %1186 = vmatpush.bf16.msrb.mxu1 %v2133_v28  ;;  %v2859_v28 = vld [vmem:[#allocation4_spill] sm:$0xff] }
  0x6b   :  { %1152 = vmatpush.bf16.msrb.mxu3 %v2059_v7  ;;  %v2858_v7 = vld [vmem:[#allocation6_spill] sm:$0xff]  ;;  %1173 = vmatpush.bf16.msrb.mxu0 %v2864_v11  ;;  %v1230_v27 = vor.u32 %v1229_v22, %v1225_v56  ;;  %v2883_v11 = vld [vmem:[#allocation21_spill] sm:$0xff]  ;;  %v2886_v56 = vld [vmem:[#allocation27_spill] sm:$0xff] }
  0x6c   :  { %1139 = vmatpush.bf16.msrb.mxu2 %v2859_v28  ;;  %v2880_v28 = vld [vmem:[#allocation18_spill] sm:$0xff] }
  0x6e   :  { %1187 = vmatpush.bf16.msrb.mxu1 %v2167_v40  ;;  %v1207_v40 = vunpack.c.h.b16 %v1198_v46  ;;  %v2879_v46 = vld [vmem:[#allocation28_spill] sm:$0xff] }
  0x6f   :  { %1153 = vmatpush.bf16.msrb.mxu3 %v2091_v15  ;;  %v1125_v15 = vrot.slane %v2556_v45, 3  ;;  %1140 = vmatmul.bf16.vlgmr.msrb.gmra.mxu2 %v1124_v55  ;;  %v1160_v45 = vpack.c.b16 %v2590_v48, %v1042_v10 }
  0x70   :  { %1259 = vmatpush.bf16.msra.mxu2 %v2861_v61  ;;  %v1211_v2 = vpack.c.b16 %v1207_v40, %v1207_v40  ;;  %1305 = vmatpush.bf16.msra.mxu0 %v2866_v8  ;;  %v2881_v61 = vld [vmem:[#allocation19_spill] sm:$0xff] }
  0x71   :  { %v1127_v26 = vsel %vm926_vm6, %v1125_v15, %v1126_v19  ;;  %1174 = vmatmul.bf16.vlgmr.msrb.gmra.mxu0 %v1160_v45  ;;  %v1215_v43 = vshll.u32 %v1160_v45, 16  ;;  %v1222_v15 = vrot.slane %v1220_v17, 1  ;;  %v1319_v19 = vunpack.c.h.b16 %v1316_v39  ;;  %v2890_v39 = vld [vmem:[#allocation34_spill] sm:$0xff] }
  0x72   :  { %1286 = vmatpush.bf16.msra.mxu1 %v2858_v7  ;;  %v1232_v10 = vshll.u32 %v1211_v2, 16  ;;  %v1280_v49 = vrot.slane %v1211_v2, 1  ;;  %v1274_v7 = vpack.c.b16 %v2590_v48, %v1272_v24  ;;  %v2884_v2 = vld [vmem:[#allocation23_spill] sm:$0xff] }
  0x73   :  { %1240 = vmatpush.bf16.msra.mxu3 %v2172_v41  ;;  %v2862_v41 = vld [vmem:[#allocation2_spill] sm:$0xff]  ;;  %v1217_v51 = vrot.slane %v1215_v43, 1  ;;  %v1321_v12 = vpack.c.b16 %v1319_v19, %v1319_v19 }
  0x74   :  { %1260 = vmatpush.bf16.msra.mxu2 %v2865_v37  ;;  %1306 = vmatpush.bf16.msra.mxu0 %v2869_v63  ;;  %v1234_v33 = vrot.slane %v1232_v10, 1  ;;  %v1281_v55 = vsel %vm326_vm2, %v1279_v42, %v1280_v49  ;;  %v1276_v40 = vrot.slane %v1274_v7, 1  ;;  %v1326_v37 = vshll.u32 %v1274_v7, 16 }
  0x75   :  { %1906 = vmatmul.msk.bf16.vlgmr.msrb.gmra.mxu1 %vm168_vm0, %v1161_v13  ;;  %v2882_v13 = vld [vmem:[#allocation32_spill] sm:$0xff]  ;;  %v1340_v63 = vshrl.u32 %v2704_v14, 16  ;;  %v1351_v25 = vshll.u32 %v1321_v12, 16  ;;  %v1400_v42 = vrot.slane %v1321_v12, 2 }
  0x76   :  { %1287 = vmatpush.bf16.msra.mxu1 %v2863_v31  ;;  %1905 = vmatmul.msk.bf16.vlgmr.msrb.gmra.mxu3 %vm168_vm0, %v1127_v26  ;;  %v1235_v52 = vsel %vm76_vm1, %v1230_v27, %v1234_v33  ;;  %v1323_v31 = vshrl.u32 %v1274_v7, 16  ;;  %v1331_v26 = vshrl.u32 %v2722_v58, 16 }
  0x77   :  { %1241 = vmatpush.bf16.msra.mxu3 %v2862_v41  ;;  %v1277_v41 = vrot.slane %v1210_v20, 1  ;;  %v2889_v20 = vld [vmem:[#allocation33_spill] sm:$0xff] }
  0x78   :  { %1261 = vmatpush.bf16.msra.mxu2 %v2470_v9  ;;  %1307 = vmatpush.bf16.msra.mxu0 %v2873_v4  ;;  %v2874_v9 = vld [vmem:[#allocation8_spill] sm:$0xff]  ;;  %v1333_v22 = vrot.slane %v1331_v26, 1  ;;  %v1342_v4 = vrot.slane %v1340_v63, 1 }
  0x79   :  { %v1278_v8 = vsel %vm326_vm2, %v1276_v40, %v1277_v41 }
  0x7a   :  { %1288 = vmatpush.bf16.msra.mxu1 %v2868_v21  ;;  %v1325_v21 = vrot.slane %v1323_v31, 1 }
  0x7b   :  { %1242 = vmatpush.bf16.msra.mxu3 %v2867_v57  ;;  %v2885_v57 = vld [vmem:[#allocation26_spill] sm:$0xff] }
  0x7c   :  { %1360 = vmatpush.bf16.msrb.mxu2 %v2870_v6  ;;  %1406 = vmatpush.bf16.msrb.mxu0 %v2480_v62  ;;  %v1213_v62 = vshrl.u32 %v1160_v45, 16  ;;  %v1334_v45 = vshll.u32 %v2722_v58, 16  ;;  %v1348_v6 = vshrl.u32 %v1321_v12, 16 }
  0x7e   :  { %1289 = vmatpush.bf16.msra.mxu1 %v2872_v34  ;;  %v1336_v10 = vrot.slane %v1334_v45, 2  ;;  %v2888_v34 = vld [vmem:[#allocation31_spill] sm:$0xff] }
  0x7f   :  { %1243 = vmatpush.bf16.msra.mxu3 %v2871_v36  ;;  %1907 = vmatmul.msk.bf16.vlgmr.msra.gmra.mxu2 %vm168_vm0, %v1235_v52  ;;  %v1392_v36 = vunpack.c.l.b16 %v1390_v1  ;;  %v1397_v52 = vrot.slane %v2722_v58, 2 }
  0x80   :  { %1361 = vmatpush.bf16.msrb.mxu2 %v2874_v9  ;;  %1407 = vmatpush.bf16.msrb.mxu0 %v2531_v50  ;;  %v1218_v50 = vor.u32 %v1217_v51, %v1213_v62  ;;  %v1337_v33 = vor.u32 %v1336_v10, %v1333_v22 }
  0x81   :  { %1908 = vmatmul.msk.bf16.vlgmr.msra.gmra.mxu0 %vm168_vm0, %v1281_v55 }
  0x82   :  { %1290 = vmatpush.bf16.msra.mxu1 %v2876_v5 }
  0x83   :  { %1244 = vmatpush.bf16.msra.mxu3 %v2875_v32  ;;  %v1350_v32 = vrot.slane %v1348_v6, 1 }
  0x84   :  { %1362 = vmatpush.bf16.msrb.mxu2 %v2877_v38  ;;  %1408 = vmatpush.bf16.msrb.mxu0 %v2564_v44  ;;  %v1223_v44 = vsel %vm76_vm1, %v1218_v50, %v1222_v15 }
  0x86   :  { %1291 = vmatpush.bf16.msra.mxu1 %v2879_v46 }
  0x87   :  { %1245 = vmatpush.bf16.msra.mxu3 %v2878_v3 }
  0x88   :  { %1363 = vmatpush.bf16.msrb.mxu2 %v2880_v28  ;;  %1409 = vmatpush.bf16.msrb.mxu0 %v2582_v47  ;;  %v1328_v47 = vrot.slane %v1326_v37, 2 }
  0x8a   :  { %1292 = vmatpush.bf16.msra.mxu1 %v2882_v13  ;;  %v1329_v27 = vor.u32 %v1328_v47, %v1325_v21 }
  0x8b   :  { %1246 = vmatpush.bf16.msra.mxu3 %v2881_v61 }
  0x8c   :  { %1364 = vmatpush.bf16.msrb.mxu2 %v2883_v11  ;;  %1410 = vmatpush.bf16.msrb.mxu0 %v2599_v54  ;;  %v1353_v54 = vrot.slane %v1351_v25, 2 }
  0x8d   :  { %v195_v49 = vpop.f32.mrf.mxu1 }
  0x8e   :  { %1293 = vmatpush.bf16.msra.mxu1 %v2504_v29  ;;  %v1343_v29 = vshll.u32 %v2704_v14, 16  ;;  %v1394_v14 = vpack.c.b16 %v2590_v48, %v1392_v36  ;;  %v1354_v24 = vor.u32 %v1353_v54, %v1350_v32 }
  0x8f   :  { %1247 = vmatpush.bf16.msra.mxu3 %v2884_v2 }
  0x90   :  { %1365 = vmatpush.bf16.msrb.mxu2 %v2886_v56  ;;  %1411 = vmatpush.bf16.msrb.mxu0 %v2617_v16  ;;  %v1345_v9 = vrot.slane %v1343_v29, 2  ;;  %v1396_v16 = vrot.slane %v1394_v14, 2 }
  0x91   :  { %1294 = vmatmul.bf16.vlgmr.msra.gmra.mxu1 %v1278_v8 }
  0x92   :  { %1425 = vmatpush.bf16.msrb.mxu1 %v2512_v53  ;;  %1248 = vmatmul.bf16.vlgmr.msra.gmra.mxu3 %v1223_v44  ;;  %v1393_v53 = vunpack.c.h.b16 %v1390_v1  ;;  %v1346_v5 = vor.u32 %v1345_v9, %v1342_v4  ;;  %v2766_v9 = vld [vmem:[%s2790_s2] ss:$0 sm:$0xff] }
  0x93   :  { %1379 = vmatpush.bf16.msrb.mxu3 %v2885_v57 }
  0x94   :  { %1366 = vmatpush.bf16.msrb.mxu2 %v2888_v34  ;;  %v1395_v43 = vpack.c.b16 %v2524_v60, %v1393_v53  ;;  %1412 = vmatpush.bf16.msrb.mxu0 %v2631_v30  ;;  %v1355_v60 = vsel %vm462_vm3, %v1346_v5, %v1354_v24  ;;  %v292_v30 = vpop.f32.mrf.mxu3 }
  0x95   :  { %v197_v3 = vpop.f32.mrf.mxu1 }
  0x96   :  { %1426 = vmatpush.bf16.msrb.mxu1 %v2550_v0  ;;  %v1338_v0 = vsel %vm462_vm3, %v1329_v27, %v1337_v33  ;;  %v1399_v38 = vrot.slane %v1395_v43, 2 }
  0x97   :  { %1380 = vmatpush.bf16.msrb.mxu3 %v2887_v59 }
  0x98   :  { %1367 = vmatpush.bf16.msrb.mxu2 %v2890_v39  ;;  %1413 = vmatpush.bf16.msrb.mxu0 %v2643_v23  ;;  %v1401_v48 = vsel %vm626_vm4, %v1399_v38, %v1400_v42 }
  0x9a   :  { %1427 = vmatpush.bf16.msrb.mxu1 %v2573_v18  ;;  %v1398_v18 = vsel %vm626_vm4, %v1396_v16, %v1397_v52 }
  0x9b   :  { %1381 = vmatpush.bf16.msrb.mxu3 %v2889_v20  ;;  %1368 = vmatmul.bf16.vlgmr.msrb.gmra.mxu2 %v1338_v0 }
  0x9c   :  { %1414 = vmatmul.bf16.vlgmr.msrb.gmra.mxu0 %v1398_v18  ;;  %v294_v35 = vpop.f32.mrf.mxu3 }
  0x9f   :  { %v181_v46 = vpop.f32.mrf.mxu0 }
  0xa0   :  { %v196_v41 = vadd.f32 %v195_v49, %v181_v46 }
  0xa1   :  { %1910 = vmatmul.msk.bf16.vlgmr.msrb.gmra.mxu1 %vm168_vm0, %v1401_v48 }
  0xa2   :  { %1909 = vmatmul.msk.bf16.vlgmr.msrb.gmra.mxu3 %vm168_vm0, %v1355_v60 }
  0xa4   :  { %v426_v62 = vpop.f32.mrf.mxu3 }
  0xa7   :  { %v183_v58 = vpop.f32.mrf.mxu0 }
  0xa8   :  { %v278_v7 = vpop.f32.mrf.mxu2  ;;  %v198_v12 = vadd.f32 %v197_v3, %v183_v58 }
  0xa9   :  { %v279_v11 = vadd.f32 %v278_v7, %v196_v41 }
  0xaa   :  { %v412_v51 = vpop.f32.mrf.mxu1 }
  0xab   :  { %v293_v26 = vadd.f32 %v292_v30, %v279_v11  ;;  %v427_v45 = vadd.f32 %v426_v62, %v412_v51 }
  0xac   :  { %v428_v17 = vpop.f32.mrf.mxu3 }
  0xad   :  { %v431_v57 = vadd.f32 %v427_v45, %v293_v26 }
  0xb0   :  { %v280_v61 = vpop.f32.mrf.mxu2 }
  0xb1   :  { %v281_v1 = vadd.f32 %v280_v61, %v198_v12 }
  0xb2   :  { %v414_v23 = vpop.f32.mrf.mxu1 }
  0xb3   :  { %v295_v22 = vadd.f32 %v294_v35, %v281_v1  ;;  %v429_v10 = vadd.f32 %v428_v17, %v414_v23 }
  0xb5   :  { %v432_v53 = vadd.f32 %v429_v10, %v295_v22 }
  0xba   :  { %v726_v55 = vpop.f32.mrf.mxu1 }
  0xbd   :  { %v576_v28 = vpop.f32.mrf.mxu3 }
  0xbf   :  { %v876_v19 = vpop.f32.mrf.mxu0 }
  0xc2   :  { %v728_v50 = vpop.f32.mrf.mxu1 }
  0xc5   :  { %v578_v15 = vpop.f32.mrf.mxu3 }
  0xc7   :  { %v878_v37 = vpop.f32.mrf.mxu0 }
  0xc8   :  { %v712_v13 = vpop.f32.mrf.mxu2 }
  0xc9   :  { %v727_v63 = vadd.f32 %v726_v55, %v712_v13 }
  0xcd   :  { %v590_v31 = vpop.f32.mrf.mxu3 }
  0xce   :  { %v890_v40 = vpop.f32.mrf.mxu1  ;;  %v591_v8 = vadd.f32 %v590_v31, %v576_v28 }
  0xcf   :  { %v891_v36 = vadd.f32 %v890_v40, %v876_v19 }
  0xd0   :  { %v714_v44 = vpop.f32.mrf.mxu2  ;;  %v595_v47 = vadd.f32 %v591_v8, %v431_v57 }
  0xd1   :  { %v1112_v21 = vpop.f32.mrf.mxu0  ;;  %v729_v54 = vadd.f32 %v728_v50, %v714_v44 }
  0xd2   :  { %v731_v25 = vadd.f32 %v727_v63, %v595_v47 }
  0xd4   :  { %v895_v27 = vadd.f32 %v891_v36, %v731_v25 }
  0xd5   :  { %v592_v56 = vpop.f32.mrf.mxu3 }
  0xd6   :  { %v892_v2 = vpop.f32.mrf.mxu1  ;;  %v593_v59 = vadd.f32 %v592_v56, %v578_v15 }
  0xd7   :  { %v893_v5 = vadd.f32 %v892_v2, %v878_v37 }
  0xd8   :  { %v1026_v6 = vpop.f32.mrf.mxu2  ;;  %v596_v33 = vadd.f32 %v593_v59, %v432_v53 }
  0xd9   :  { %v1114_v32 = vpop.f32.mrf.mxu0 }
  0xda   :  { %v732_v43 = vadd.f32 %v729_v54, %v596_v33 }
  0xdc   :  { %v896_v16 = vadd.f32 %v893_v5, %v732_v43 }
  0xe0   :  { %v1028_v0 = vpop.f32.mrf.mxu2 }
  0xe2   :  { %v1098_v29 = vpop.f32.mrf.mxu1 }
  0xe3   :  { %v1113_v55 = vadd.f32 %v1112_v21, %v1098_v29 }
  0xe9   :  { %v1012_v34 = vpop.f32.mrf.mxu3 }
  0xea   :  { %v1027_v4 = vadd.f32 %v1026_v6, %v1012_v34  ;;  %v1100_v20 = vpop.f32.mrf.mxu1 }
  0xeb   :  { %v1115_v31 = vadd.f32 %v1114_v32, %v1100_v20 }
  0xec   :  { %v1031_v14 = vadd.f32 %v1027_v4, %v895_v27 }
  0xee   :  { %v1440_v39 = vadd.f32 %v2766_v9, %v1031_v14  ;;  %v1175_v42 = vpop.f32.mrf.mxu0 }
  0xf0   :  { %1989 = vtanh.f32 %v1440_v39 }
  0xf1   :  { %v1014_v24 = vpop.f32.mrf.mxu3 }
  0xf2   :  { %v1029_v52 = vadd.f32 %v1028_v0, %v1014_v24  ;;  %v1189_v48 = vpop.f32.mrf.mxu1  ;;  %v1141_v30 = vpop.f32.mrf.mxu2 }
  0xf3   :  { %v1142_v50 = vadd.f32 %v1141_v30, %v1113_v55  ;;  %v1190_v13 = vadd.f32 %v1189_v48, %v1175_v42 }
  0xf4   :  { %v1032_v38 = vadd.f32 %v1029_v52, %v896_v16 }
  0xf6   :  { %v1990_v60 = vpop.eup %1989  ;;  %v1441_v18 = vadd.f32 %v2766_v9, %v1032_v38  ;;  %v1177_v3 = vpop.f32.mrf.mxu0 }
  0xf7   :  { %1445 = vst.msk [vmem:[%s2791_s3] sm:$0xff] %vm1444_vm8, %v1990_v60 }
  0xf8   :  { %1991 = vtanh.f32 %v1441_v18 }
  0xf9   :  { %v1155_v49 = vpop.f32.mrf.mxu3 }
  0xfa   :  { %v1191_v62 = vpop.f32.mrf.mxu1  ;;  %v1143_v51 = vpop.f32.mrf.mxu2  ;;  %v1156_v19 = vadd.f32 %v1155_v49, %v1142_v50 }
  0xfb   :  { %v1144_v37 = vadd.f32 %v1143_v51, %v1115_v31  ;;  %v1192_v57 = vadd.f32 %v1191_v62, %v1177_v3 }
  0xfc   :  { %v1194_v11 = vadd.f32 %v1190_v13, %v1156_v19 }
  0xfe   :  { %v1992_v35 = vpop.eup %1991  ;;  %v1309_v46 = vpop.f32.mrf.mxu0 }
  0xff   :  { %1446 = vst.msk [vmem:[%s2791_s3 + $0x8] sm:$0xff] %vm1444_vm8, %v1992_v35 }
 0x101   :  { %v1157_v17 = vpop.f32.mrf.mxu3 }
 0x102   :  { %v1263_v7 = vpop.f32.mrf.mxu2  ;;  %v1158_v8 = vadd.f32 %v1157_v17, %v1144_v37 }
 0x104   :  { %v1195_v10 = vadd.f32 %v1192_v57, %v1158_v8 }
 0x106   :  { %v1311_v61 = vpop.f32.mrf.mxu0 }
 0x10a   :  { %v1265_v15 = vpop.f32.mrf.mxu2 }
 0x10e   :  { %v1295_v23 = vpop.f32.mrf.mxu1 }
 0x10f   :  { %v1310_v26 = vadd.f32 %v1309_v46, %v1295_v23 }
 0x115   :  { %v1249_v28 = vpop.f32.mrf.mxu3 }
 0x116   :  { %v1297_v58 = vpop.f32.mrf.mxu1  ;;  %v1264_v41 = vadd.f32 %v1263_v7, %v1249_v28 }
 0x117   :  { %v1312_v25 = vadd.f32 %v1311_v61, %v1297_v58 }
 0x118   :  { %v1268_v45 = vadd.f32 %v1264_v41, %v1194_v11 }
 0x119   :  { %v1415_v2 = vpop.f32.mrf.mxu0 }
 0x11a   :  { %v1314_v47 = vadd.f32 %v1310_v26, %v1268_v45 }
 0x11d   :  { %v1251_v40 = vpop.f32.mrf.mxu3 }
 0x11e   :  { %v1429_v44 = vpop.f32.mrf.mxu1  ;;  %v1369_v12 = vpop.f32.mrf.mxu2  ;;  %v1266_v21 = vadd.f32 %v1265_v15, %v1251_v40 }
 0x11f   :  { %v1430_v56 = vadd.f32 %v1429_v44, %v1415_v2 }
 0x120   :  { %v1269_v29 = vadd.f32 %v1266_v21, %v1195_v10 }
 0x121   :  { %v1417_v59 = vpop.f32.mrf.mxu0 }
 0x122   :  { %v1315_v33 = vadd.f32 %v1312_v25, %v1269_v29 }
 0x125   :  { %v1383_v1 = vpop.f32.mrf.mxu3 }
 0x126   :  { %v1384_v22 = vadd.f32 %v1383_v1, %v1369_v12  ;;  %v1431_v53 = vpop.f32.mrf.mxu1  ;;  %v1371_v34 = vpop.f32.mrf.mxu2 }
 0x127   :  { %v1432_v32 = vadd.f32 %v1431_v53, %v1417_v59 }
 0x128   :  { %v1388_v63 = vadd.f32 %v1384_v22, %v1314_v47 }
 0x12a   :  { %v1434_v6 = vadd.f32 %v1430_v56, %v1388_v63 }
 0x12c   :  { %v1447_v36 = vadd.f32 %v2766_v9, %v1434_v6 }
 0x12d   :  { %v1385_v27 = vpop.f32.mrf.mxu3 }
 0x12e   :  { %1993 = vtanh.f32 %v1447_v36  ;;  %v1386_v4 = vadd.f32 %v1385_v27, %v1371_v34 }
 0x130   :  { %v1389_v54 = vadd.f32 %v1386_v4, %v1315_v33 }
 0x132   :  { %v1435_v14 = vadd.f32 %v1432_v32, %v1389_v54 }
 0x134   :  { %v1994_v20 = vpop.eup %1993  ;;  %v1448_v43 = vadd.f32 %v2766_v9, %v1435_v14 }
 0x135   :  { %1451 = vst.msk [vmem:[%s2791_s3 + $0x10] sm:$0xff] %vm1444_vm8, %v1994_v20 }
 0x136   :  { %1995 = vtanh.f32 %v1448_v43 }
 0x13c   :  { %v1996_v39 = vpop.eup %1995 }
 0x13d   :  { %1452 = vst.msk [vmem:[%s2791_s3 + $0x18] sm:$0xff] %vm1444_vm8, %v1996_v39 }

</bundles_post_ra>
